<compile_context>
chip_gen: v6e
topology: v6e:2x2x1
jax: 0.10.0
libtpu: 0.0.40
codegen_flags: <defaults>
</compile_context>

<pallas_src>
import math
import functools

import jax
import jax.numpy as jnp
from jax import lax
from jax.experimental import pallas as pl
from jax.experimental.pallas import tpu as pltpu


# ----------------------------------------------------------------------------
# The single fused TFCAM kernel
# ----------------------------------------------------------------------------

def _tfcam_kernel(
    x_ref, emb_w_ref, emb_b_ref, pos_ref,
    lstm_wih_ref, lstm_whh_ref, lstm_b_ref,
    fattn_wf_ref, fattn_wb_ref, fattn_b_ref,
    tattn_wf_ref, tattn_wb_ref, tattn_b_ref,
    qkv_w_ref, qkv_b_ref, o_w_ref, o_b_ref,
    ff1_w_ref, ff1_b_ref, ff2_w_ref, ff2_b_ref,
    n1_w_ref, n1_b_ref, n2_w_ref, n2_b_ref,
    alphas_ref,
    out1_w_ref, out1_b_ref, out2_w_ref, out2_b_ref,
    out_ref,
    gx0, gx1, gx2, gx3, ho0, ho1, ho2, ho3,
    *, num_heads):
    B, S, J = x_ref.shape
    E = emb_w_ref.shape[1]
    H = lstm_whh_ref.shape[1]
    L = qkv_w_ref.shape[0]
    D = E // num_heads
    M = B * S
    scale = 1.0 / math.sqrt(D)

    gx_refs = (gx0, gx1, gx2, gx3)      # per-direction hoisted input projections
    out_refs = (ho0, ho1, ho2, ho3)     # per-direction LSTM hidden outputs (stay in VMEM)

    # ---------------- embedding (VPU broadcast-MAC) + positional encoding --------------
    x = x_ref[...]                                            # [B, S, J]
    emb_w = emb_w_ref[...]                                    # [J, E]
    h3 = x[:, :, 0:1] * emb_w[0][None, None, :]
    for j in range(1, J):
        h3 = h3 + x[:, :, j:j + 1] * emb_w[j][None, None, :]
    h3 = h3 + emb_b_ref[...][None, :, :] + pos_ref[...][None, :, :]   # [B, S, E]
    h2d = h3.reshape(M, E)

    # ---------------- 4 LSTM directions, interleaved in one time loop ------------------
    # dirs: 0 = temporal fwd, 1 = temporal bwd, 2 = feature fwd, 3 = feature bwd
    whh = [lstm_whh_ref[d] for d in range(4)]                 # each [H, 4H], gate order i|f|g|o
    for d in range(4):                                        # hoisted input projection
        gx = jnp.dot(h2d, lstm_wih_ref[d],
                     preferred_element_type=jnp.float32) + lstm_b_ref[d]
        gx_refs[d][...] = gx.reshape(B, S, 4 * H)

    def step_fn(step, carry):
        new_carry = []
        for d in range(4):
            h, c = carry[d]
            t = step if (d % 2 == 0) else (S - 1 - step)
            g = gx_refs[d][:, pl.ds(t, 1), :][:, 0, :] + jnp.dot(
                h, whh[d], preferred_element_type=jnp.float32)        # [B, 4H]
            i_g = jax.nn.sigmoid(g[:, 0 * H:1 * H])
            f_g = jax.nn.sigmoid(g[:, 1 * H:2 * H])
            g_g = jnp.tanh(g[:, 2 * H:3 * H])
            o_g = jax.nn.sigmoid(g[:, 3 * H:4 * H])
            c_new = f_g * c + i_g * g_g
            h_new = o_g * jnp.tanh(c_new)
            out_refs[d][:, pl.ds(t, 1), :] = h_new[:, None, :]
            new_carry.append((h_new, c_new))
        return tuple(new_carry)

    zeros = jnp.zeros((B, H), jnp.float32)
    lax.fori_loop(0, S, step_fn, tuple((zeros, zeros) for _ in range(4)), unroll=True)
    # TODO(synk): partial unroll (4/8) + time-major scratch for long sequences.

    # ---------------- feature gate: x * sigmoid(feature_attn(feature_lstm)) ------------
    f_fwd = out_refs[2][...].reshape(M, H)
    f_bwd = out_refs[3][...].reshape(M, H)
    gate_logits = (jnp.dot(f_fwd, fattn_wf_ref[...], preferred_element_type=jnp.float32)
                   + jnp.dot(f_bwd, fattn_wb_ref[...], preferred_element_type=jnp.float32)
                   + fattn_b_ref[...])                         # [M, E]
    xcur = h2d * jax.nn.sigmoid(gate_logits)

    # ---------------- transformer layers (weights resident in VMEM, static loop) -------
    for l in range(L):
        qkv = jnp.dot(xcur, qkv_w_ref[l],
                      preferred_element_type=jnp.float32) + qkv_b_ref[l]   # [M, 3E]
        o_w = o_w_ref[l]                                                    # [E, E]
        attn = None
        for hi in range(num_heads):
            qh = qkv[:, hi * D:(hi + 1) * D].reshape(B, S, D)
            kh = qkv[:, E + hi * D:E + (hi + 1) * D].reshape(B, S, D)
            vh = qkv[:, 2 * E + hi * D:2 * E + (hi + 1) * D].reshape(B, S, D)
            s = jnp.einsum('bqd,bkd->bqk', qh, kh,
                           preferred_element_type=jnp.float32) * scale
            s = s - jnp.max(s, axis=-1, keepdims=True)
            p = jnp.exp(s)
            p = p * pl.reciprocal(jnp.sum(p, axis=-1, keepdims=True), approx=True)
            ch = jnp.einsum('bqk,bkd->bqd', p, vh,
                            preferred_element_type=jnp.float32).reshape(M, D)
            # fold out-projection per head (no concatenate): sum_h ctx_h @ o_w[hD:(h+1)D]
            contrib = jnp.dot(ch, o_w[hi * D:(hi + 1) * D, :],
                              preferred_element_type=jnp.float32)
            attn = contrib if attn is None else attn + contrib
        attn = attn + o_b_ref[l]
        # TODO(synk): head-batched 'bhqd,bhkd->bhqk' contraction for production E/num_heads.

        a1 = alphas_ref[l, 0]
        a2 = alphas_ref[l, 1]
        xcur = jnp.tanh(a1 * (xcur + attn)) * n1_w_ref[l] + n1_b_ref[l]      # DyT norm1

        ff = jnp.maximum(jnp.dot(xcur, ff1_w_ref[l],
                                 preferred_element_type=jnp.float32) + ff1_b_ref[l], 0.0)
        ff = jnp.dot(ff, ff2_w_ref[l],
                     preferred_element_type=jnp.float32) + ff2_b_ref[l]
        xcur = jnp.tanh(a2 * (xcur + ff)) * n2_w_ref[l] + n2_b_ref[l]        # DyT norm2

    # ---------------- temporal softmax pooling + output MLP ----------------------------
    t_fwd = out_refs[0][...].reshape(M, H)
    t_bwd = out_refs[1][...].reshape(M, H)
    tl = (jnp.dot(t_fwd, tattn_wf_ref[...], preferred_element_type=jnp.float32)
          + jnp.dot(t_bwd, tattn_wb_ref[...], preferred_element_type=jnp.float32)
          + tattn_b_ref[...]).reshape(B, S, 1)
    tl = tl - jnp.max(tl, axis=1, keepdims=True)
    e = jnp.exp(tl)
    w = e * pl.reciprocal(jnp.sum(e, axis=1, keepdims=True), approx=True)    # softmax over S

    pooled = jnp.mean(xcur.reshape(B, S, E) * w, axis=1)       # [B, E]  (matches torch.mean)
    h1 = jnp.maximum(jnp.dot(pooled, out1_w_ref[...],
                             preferred_element_type=jnp.float32) + out1_b_ref[...], 0.0)
    out_ref[...] = jnp.dot(h1, out2_w_ref[...],
                           preferred_element_type=jnp.float32) + out2_b_ref[...]


# ----------------------------------------------------------------------------
# Wrapper: single pallas_call, explicit memory spaces
# ----------------------------------------------------------------------------

def tfcam_forward(params, x, *, num_heads):
    """x: [batch, seq, input_dim] -> [batch, output_dim]  (dropout = identity)."""
    B, S, _ = x.shape
    H = params["lstm_whh"].shape[1]
    out_dim = params["out2_w"].shape[1]

    vmem = pl.BlockSpec(memory_space=pltpu.MemorySpace.VMEM)
    smem = pl.BlockSpec(memory_space=pltpu.MemorySpace.SMEM)

    args, specs = [], []

    def add(a, spec=vmem):
        args.append(a)
        specs.append(spec)

    add(x)
    add(params["emb_w"]); add(params["emb_b"]); add(params["pos"][:S])
    add(params["lstm_wih"]); add(params["lstm_whh"]); add(params["lstm_b"])
    add(params["fattn_wf"]); add(params["fattn_wb"]); add(params["fattn_b"])
    add(params["tattn_wf"]); add(params["tattn_wb"]); add(params["tattn_b"])
    add(params["qkv_w"]); add(params["qkv_b"]); add(params["o_w"]); add(params["o_b"])
    add(params["ff1_w"]); add(params["ff1_b"]); add(params["ff2_w"]); add(params["ff2_b"])
    add(params["n1_w"]); add(params["n1_b"]); add(params["n2_w"]); add(params["n2_b"])
    add(params["alphas"], smem)                      # DyT alphas -> scalar path
    add(params["out1_w"]); add(params["out1_b"]); add(params["out2_w"]); add(params["out2_b"])

    return pl.pallas_call(
        functools.partial(_tfcam_kernel, num_heads=num_heads),
        out_shape=jax.ShapeDtypeStruct((B, out_dim), jnp.float32),
        in_specs=specs,
        out_specs=vmem,
        scratch_shapes=(
            [pltpu.VMEM((B, S, 4 * H), jnp.float32) for _ in range(4)]   # hoisted gx
            + [pltpu.VMEM((B, S, H), jnp.float32) for _ in range(4)]     # LSTM hidden outs
        ),
    )(*args)


# ----------------------------------------------------------------------------
# Parameter construction (deterministic, synthetic; PyTorch layouts pre-transposed)
# ----------------------------------------------------------------------------

def _init_linear(key, in_dim, out_dim, scale=0.1):
    k1, k2 = jax.random.split(key)
    w = jax.random.normal(k1, (in_dim, out_dim), jnp.float32) * scale
    b = jax.random.normal(k2, (1, out_dim), jnp.float32) * scale
    return w, b


def _init_lstm_dir(key, in_dim, hidden, scale=0.1):
    ks = jax.random.split(key, 4)
    w_ih = jax.random.normal(ks[0], (4 * hidden, in_dim), jnp.float32) * scale
    w_hh = jax.random.normal(ks[1], (4 * hidden, hidden), jnp.float32) * scale
    b_ih = jax.random.normal(ks[2], (4 * hidden,), jnp.float32) * scale
    b_hh = jax.random.normal(ks[3], (4 * hidden,), jnp.float32) * scale
    # PyTorch gate order along 4H is (i, f, g, o); transpose to [in, 4H]
    return w_ih.T, w_hh.T, (b_ih + b_hh)[None, :]


def _positional_encoding(max_len, d):
    position = jnp.arange(max_len, dtype=jnp.float32)[:, None]
    div = jnp.exp(jnp.arange(0, d, 2, dtype=jnp.float32) * (-math.log(10000.0) / d))
    pe = jnp.zeros((max_len, d), jnp.float32)
    pe = pe.at[:, 0::2].set(jnp.sin(position * div))
    pe = pe.at[:, 1::2].set(jnp.cos(position * div))
    return pe                                         # [max_len, d]


def init_tfcam_params(key, input_dim, emb_dim, hidden_dim, num_heads, num_layers,
                      output_dim=1, max_seq_len=50):
    assert emb_dim % num_heads == 0
    keys = jax.random.split(key, 6 + num_layers)
    emb_w, emb_b = _init_linear(keys[0], input_dim, emb_dim)

    dir_keys = jax.random.split(keys[1], 4)
    dirs = [_init_lstm_dir(k, emb_dim, hidden_dim) for k in dir_keys]
    lstm_wih = jnp.stack([d[0] for d in dirs])        # [4, E, 4H]
    lstm_whh = jnp.stack([d[1] for d in dirs])        # [4, H, 4H]
    lstm_b = jnp.stack([d[2] for d in dirs])          # [4, 1, 4H]

    tattn_w, tattn_b = _init_linear(keys[2], 2 * hidden_dim, 1)
    fattn_w, fattn_b = _init_linear(keys[3], 2 * hidden_dim, emb_dim)
    out1_w, out1_b = _init_linear(keys[4], emb_dim, emb_dim // 2)
    out2_w, out2_b = _init_linear(keys[5], emb_dim // 2, output_dim)

    names = ["qkv_w", "qkv_b", "o_w", "o_b", "ff1_w", "ff1_b", "ff2_w", "ff2_b",
             "n1_w", "n1_b", "n2_w", "n2_b", "alphas"]
    stacks = {n: [] for n in names}
    for li in range(num_layers):
        lk = jax.random.split(keys[6 + li], 6)
        q_w, q_b = _init_linear(lk[0], emb_dim, emb_dim)
        k_w, k_b = _init_linear(lk[1], emb_dim, emb_dim)
        v_w, v_b = _init_linear(lk[2], emb_dim, emb_dim)
        o_w, o_b = _init_linear(lk[3], emb_dim, emb_dim)
        ff1_w, ff1_b = _init_linear(lk[4], emb_dim, 4 * emb_dim)
        ff2_w, ff2_b = _init_linear(lk[5], 4 * emb_dim, emb_dim)
        stacks["qkv_w"].append(jnp.concatenate([q_w, k_w, v_w], axis=1))     # [E, 3E]
        stacks["qkv_b"].append(jnp.concatenate([q_b, k_b, v_b], axis=1))     # [1, 3E]
        stacks["o_w"].append(o_w); stacks["o_b"].append(o_b)
        stacks["ff1_w"].append(ff1_w); stacks["ff1_b"].append(ff1_b)
        stacks["ff2_w"].append(ff2_w); stacks["ff2_b"].append(ff2_b)
        stacks["n1_w"].append(jnp.ones((1, emb_dim), jnp.float32))
        stacks["n1_b"].append(jnp.zeros((1, emb_dim), jnp.float32))
        stacks["n2_w"].append(jnp.ones((1, emb_dim), jnp.float32))
        stacks["n2_b"].append(jnp.zeros((1, emb_dim), jnp.float32))
        stacks["alphas"].append(jnp.full((2,), 0.5, jnp.float32))
    layer_params = {n: jnp.stack(v) for n, v in stacks.items()}

    return dict(
        emb_w=emb_w, emb_b=emb_b,
        pos=_positional_encoding(max_seq_len, emb_dim),
        lstm_wih=lstm_wih, lstm_whh=lstm_whh, lstm_b=lstm_b,
        tattn_wf=tattn_w[:hidden_dim], tattn_wb=tattn_w[hidden_dim:], tattn_b=tattn_b,
        fattn_wf=fattn_w[:hidden_dim], fattn_wb=fattn_w[hidden_dim:], fattn_b=fattn_b,
        out1_w=out1_w, out1_b=out1_b, out2_w=out2_w, out2_b=out2_b,
        **layer_params,
    )


if __name__ == "__main__":
    input_dim, emb_dim, hidden_dim = 4, 32, 16
    num_heads, num_layers, output_dim = 4, 2, 1
    batch, seq_len = 2, 8

    params = init_tfcam_params(jax.random.PRNGKey(42), input_dim, emb_dim,
                               hidden_dim, num_heads, num_layers, output_dim)
    x = jax.random.normal(jax.random.PRNGKey(0), (batch, seq_len, input_dim), jnp.float32)

    fwd = jax.jit(functools.partial(tfcam_forward, num_heads=num_heads))
    out = fwd(params, x)
    jax.block_until_ready(out)
    assert out.shape == (batch, output_dim)
    assert bool(jnp.all(jnp.isfinite(out)))
    print("KERNEL_OK")
</pallas_src>

<mosaic_0001>
module attributes {stable_mosaic.version = 11 : i64} {
  func.func @_tfcam_kernel(%arg0: memref<2x8x4xf32, #tpu.memory_space<vmem>>, %arg1: memref<4x32xf32, #tpu.memory_space<vmem>>, %arg2: memref<1x32xf32, #tpu.memory_space<vmem>>, %arg3: memref<8x32xf32, #tpu.memory_space<vmem>>, %arg4: memref<4x32x64xf32, #tpu.memory_space<vmem>>, %arg5: memref<4x16x64xf32, #tpu.memory_space<vmem>>, %arg6: memref<4x1x64xf32, #tpu.memory_space<vmem>>, %arg7: memref<16x32xf32, #tpu.memory_space<vmem>>, %arg8: memref<16x32xf32, #tpu.memory_space<vmem>>, %arg9: memref<1x32xf32, #tpu.memory_space<vmem>>, %arg10: memref<16x1xf32, #tpu.memory_space<vmem>>, %arg11: memref<16x1xf32, #tpu.memory_space<vmem>>, %arg12: memref<1x1xf32, #tpu.memory_space<vmem>>, %arg13: memref<2x32x96xf32, #tpu.memory_space<vmem>>, %arg14: memref<2x1x96xf32, #tpu.memory_space<vmem>>, %arg15: memref<2x32x32xf32, #tpu.memory_space<vmem>>, %arg16: memref<2x1x32xf32, #tpu.memory_space<vmem>>, %arg17: memref<2x32x128xf32, #tpu.memory_space<vmem>>, %arg18: memref<2x1x128xf32, #tpu.memory_space<vmem>>, %arg19: memref<2x128x32xf32, #tpu.memory_space<vmem>>, %arg20: memref<2x1x32xf32, #tpu.memory_space<vmem>>, %arg21: memref<2x1x32xf32, #tpu.memory_space<vmem>>, %arg22: memref<2x1x32xf32, #tpu.memory_space<vmem>>, %arg23: memref<2x1x32xf32, #tpu.memory_space<vmem>>, %arg24: memref<2x1x32xf32, #tpu.memory_space<vmem>>, %arg25: memref<2x2xf32, #tpu.memory_space<smem>>, %arg26: memref<32x16xf32, #tpu.memory_space<vmem>>, %arg27: memref<1x16xf32, #tpu.memory_space<vmem>>, %arg28: memref<16x1xf32, #tpu.memory_space<vmem>>, %arg29: memref<1x1xf32, #tpu.memory_space<vmem>>, %arg30: memref<2x1xf32, #tpu.memory_space<vmem>>, %arg31: memref<2x8x64xf32, #tpu.memory_space<vmem>>, %arg32: memref<2x8x64xf32, #tpu.memory_space<vmem>>, %arg33: memref<2x8x64xf32, #tpu.memory_space<vmem>>, %arg34: memref<2x8x64xf32, #tpu.memory_space<vmem>>, %arg35: memref<2x8x16xf32, #tpu.memory_space<vmem>>, %arg36: memref<2x8x16xf32, #tpu.memory_space<vmem>>, %arg37: memref<2x8x16xf32, #tpu.memory_space<vmem>>, %arg38: memref<2x8x16xf32, #tpu.memory_space<vmem>>) attributes {dimension_semantics = [], scalar_prefetch = 0 : i64, scratch_operands = 8 : i64, tpu.core_type = #tpu.core_type<tc>} {
    %c0 = arith.constant 0 : index
    %c0_0 = arith.constant 0 : index
    %c0_1 = arith.constant 0 : index
    %0 = vector.load %arg0[%c0, %c0_0, %c0_1] : memref<2x8x4xf32, #tpu.memory_space<vmem>>, vector<2x8x4xf32>
    %c0_2 = arith.constant 0 : index
    %c0_3 = arith.constant 0 : index
    %1 = vector.load %arg1[%c0_2, %c0_3] : memref<4x32xf32, #tpu.memory_space<vmem>>, vector<4x32xf32>
    %2 = vector.extract_strided_slice %0 {offsets = [0, 0, 0], sizes = [2, 8, 1], strides = [1, 1, 1]} : vector<2x8x4xf32> to vector<2x8x1xf32>
    %3 = vector.extract_strided_slice %1 {offsets = [0, 0], sizes = [1, 32], strides = [1, 1]} : vector<4x32xf32> to vector<1x32xf32>
    %4 = vector.shape_cast %3 : vector<1x32xf32> to vector<32xf32>
    %5 = vector.shape_cast %4 : vector<32xf32> to vector<1x1x32xf32>
    %6 = vector.broadcast %2 : vector<2x8x1xf32> to vector<2x8x32xf32>
    %7 = vector.broadcast %5 : vector<1x1x32xf32> to vector<2x8x32xf32>
    %8 = arith.mulf %6, %7 : vector<2x8x32xf32>
    %9 = vector.extract_strided_slice %0 {offsets = [0, 0, 1], sizes = [2, 8, 1], strides = [1, 1, 1]} : vector<2x8x4xf32> to vector<2x8x1xf32>
    %10 = vector.extract_strided_slice %1 {offsets = [1, 0], sizes = [1, 32], strides = [1, 1]} : vector<4x32xf32> to vector<1x32xf32>
    %11 = vector.shape_cast %10 : vector<1x32xf32> to vector<32xf32>
    %12 = vector.shape_cast %11 : vector<32xf32> to vector<1x1x32xf32>
    %13 = vector.broadcast %9 : vector<2x8x1xf32> to vector<2x8x32xf32>
    %14 = vector.broadcast %12 : vector<1x1x32xf32> to vector<2x8x32xf32>
    %15 = arith.mulf %13, %14 : vector<2x8x32xf32>
    %16 = arith.addf %8, %15 : vector<2x8x32xf32>
    %17 = vector.extract_strided_slice %0 {offsets = [0, 0, 2], sizes = [2, 8, 1], strides = [1, 1, 1]} : vector<2x8x4xf32> to vector<2x8x1xf32>
    %18 = vector.extract_strided_slice %1 {offsets = [2, 0], sizes = [1, 32], strides = [1, 1]} : vector<4x32xf32> to vector<1x32xf32>
    %19 = vector.shape_cast %18 : vector<1x32xf32> to vector<32xf32>
    %20 = vector.shape_cast %19 : vector<32xf32> to vector<1x1x32xf32>
    %21 = vector.broadcast %17 : vector<2x8x1xf32> to vector<2x8x32xf32>
    %22 = vector.broadcast %20 : vector<1x1x32xf32> to vector<2x8x32xf32>
    %23 = arith.mulf %21, %22 : vector<2x8x32xf32>
    %24 = arith.addf %16, %23 : vector<2x8x32xf32>
    %25 = vector.extract_strided_slice %0 {offsets = [0, 0, 3], sizes = [2, 8, 1], strides = [1, 1, 1]} : vector<2x8x4xf32> to vector<2x8x1xf32>
    %26 = vector.extract_strided_slice %1 {offsets = [3, 0], sizes = [1, 32], strides = [1, 1]} : vector<4x32xf32> to vector<1x32xf32>
    %27 = vector.shape_cast %26 : vector<1x32xf32> to vector<32xf32>
    %28 = vector.shape_cast %27 : vector<32xf32> to vector<1x1x32xf32>
    %29 = vector.broadcast %25 : vector<2x8x1xf32> to vector<2x8x32xf32>
    %30 = vector.broadcast %28 : vector<1x1x32xf32> to vector<2x8x32xf32>
    %31 = arith.mulf %29, %30 : vector<2x8x32xf32>
    %32 = arith.addf %24, %31 : vector<2x8x32xf32>
    %c0_4 = arith.constant 0 : index
    %c0_5 = arith.constant 0 : index
    %33 = vector.load %arg2[%c0_4, %c0_5] : memref<1x32xf32, #tpu.memory_space<vmem>>, vector<1x32xf32>
    %34 = vector.shape_cast %33 : vector<1x32xf32> to vector<1x1x32xf32>
    %35 = vector.broadcast %34 : vector<1x1x32xf32> to vector<2x8x32xf32>
    %36 = arith.addf %32, %35 : vector<2x8x32xf32>
    %c0_6 = arith.constant 0 : index
    %c0_7 = arith.constant 0 : index
    %37 = vector.load %arg3[%c0_6, %c0_7] : memref<8x32xf32, #tpu.memory_space<vmem>>, vector<8x32xf32>
    %38 = vector.shape_cast %37 : vector<8x32xf32> to vector<1x8x32xf32>
    %39 = vector.broadcast %38 : vector<1x8x32xf32> to vector<2x8x32xf32>
    %40 = arith.addf %36, %39 : vector<2x8x32xf32>
    %41 = vector.shape_cast %40 : vector<2x8x32xf32> to vector<16x32xf32>
    %c0_8 = arith.constant 0 : index
    %c0_9 = arith.constant 0 : index
    %c0_10 = arith.constant 0 : index
    %42 = vector.load %arg5[%c0_8, %c0_9, %c0_10] : memref<4x16x64xf32, #tpu.memory_space<vmem>>, vector<1x16x64xf32>
    %43 = vector.shape_cast %42 : vector<1x16x64xf32> to vector<16x64xf32>
    %c1 = arith.constant 1 : index
    %c0_11 = arith.constant 0 : index
    %c0_12 = arith.constant 0 : index
    %44 = vector.load %arg5[%c1, %c0_11, %c0_12] : memref<4x16x64xf32, #tpu.memory_space<vmem>>, vector<1x16x64xf32>
    %45 = vector.shape_cast %44 : vector<1x16x64xf32> to vector<16x64xf32>
    %c2 = arith.constant 2 : index
    %c0_13 = arith.constant 0 : index
    %c0_14 = arith.constant 0 : index
    %46 = vector.load %arg5[%c2, %c0_13, %c0_14] : memref<4x16x64xf32, #tpu.memory_space<vmem>>, vector<1x16x64xf32>
    %47 = vector.shape_cast %46 : vector<1x16x64xf32> to vector<16x64xf32>
    %c3 = arith.constant 3 : index
    %c0_15 = arith.constant 0 : index
    %c0_16 = arith.constant 0 : index
    %48 = vector.load %arg5[%c3, %c0_15, %c0_16] : memref<4x16x64xf32, #tpu.memory_space<vmem>>, vector<1x16x64xf32>
    %49 = vector.shape_cast %48 : vector<1x16x64xf32> to vector<16x64xf32>
    %c0_17 = arith.constant 0 : index
    %c0_18 = arith.constant 0 : index
    %c0_19 = arith.constant 0 : index
    %50 = vector.load %arg4[%c0_17, %c0_18, %c0_19] : memref<4x32x64xf32, #tpu.memory_space<vmem>>, vector<1x32x64xf32>
    %51 = vector.shape_cast %50 : vector<1x32x64xf32> to vector<32x64xf32>
    %cst = arith.constant dense<0.000000e+00> : vector<16x64xf32>
    %52 = tpu.matmul %41, %51, %cst {dimension_numbers = #tpu.dot_dimension_numbers<[1], [0], [0], [1], [0, 0, 1, 1], [], []>} : vector<16x32xf32>, vector<32x64xf32>, vector<16x64xf32> -> vector<16x64xf32>
    %c0_20 = arith.constant 0 : index
    %c0_21 = arith.constant 0 : index
    %c0_22 = arith.constant 0 : index
    %53 = vector.load %arg6[%c0_20, %c0_21, %c0_22] : memref<4x1x64xf32, #tpu.memory_space<vmem>>, vector<1x1x64xf32>
    %54 = vector.shape_cast %53 : vector<1x1x64xf32> to vector<1x64xf32>
    %55 = vector.broadcast %54 : vector<1x64xf32> to vector<16x64xf32>
    %56 = arith.addf %52, %55 : vector<16x64xf32>
    %57 = vector.shape_cast %56 : vector<16x64xf32> to vector<2x8x64xf32>
    %c0_23 = arith.constant 0 : index
    %c0_24 = arith.constant 0 : index
    %c0_25 = arith.constant 0 : index
    %58 = vector.load %arg31[%c0_23, %c0_24, %c0_25] : memref<2x8x64xf32, #tpu.memory_space<vmem>>, vector<2x8x64xf32>
    tpu.vector_store %arg31[%c0_23, %c0_24, %c0_25], %57 {strides = array<i32>} : memref<2x8x64xf32, #tpu.memory_space<vmem>>, vector<2x8x64xf32>,
    %c1_26 = arith.constant 1 : index
    %c0_27 = arith.constant 0 : index
    %c0_28 = arith.constant 0 : index
    %59 = vector.load %arg4[%c1_26, %c0_27, %c0_28] : memref<4x32x64xf32, #tpu.memory_space<vmem>>, vector<1x32x64xf32>
    %60 = vector.shape_cast %59 : vector<1x32x64xf32> to vector<32x64xf32>
    %cst_29 = arith.constant dense<0.000000e+00> : vector<16x64xf32>
    %61 = tpu.matmul %41, %60, %cst_29 {dimension_numbers = #tpu.dot_dimension_numbers<[1], [0], [0], [1], [0, 0, 1, 1], [], []>} : vector<16x32xf32>, vector<32x64xf32>, vector<16x64xf32> -> vector<16x64xf32>
    %c1_30 = arith.constant 1 : index
    %c0_31 = arith.constant 0 : index
    %c0_32 = arith.constant 0 : index
    %62 = vector.load %arg6[%c1_30, %c0_31, %c0_32] : memref<4x1x64xf32, #tpu.memory_space<vmem>>, vector<1x1x64xf32>
    %63 = vector.shape_cast %62 : vector<1x1x64xf32> to vector<1x64xf32>
    %64 = vector.broadcast %63 : vector<1x64xf32> to vector<16x64xf32>
    %65 = arith.addf %61, %64 : vector<16x64xf32>
    %66 = vector.shape_cast %65 : vector<16x64xf32> to vector<2x8x64xf32>
    %c0_33 = arith.constant 0 : index
    %c0_34 = arith.constant 0 : index
    %c0_35 = arith.constant 0 : index
    %67 = vector.load %arg32[%c0_33, %c0_34, %c0_35] : memref<2x8x64xf32, #tpu.memory_space<vmem>>, vector<2x8x64xf32>
    tpu.vector_store %arg32[%c0_33, %c0_34, %c0_35], %66 {strides = array<i32>} : memref<2x8x64xf32, #tpu.memory_space<vmem>>, vector<2x8x64xf32>,
    %c2_36 = arith.constant 2 : index
    %c0_37 = arith.constant 0 : index
    %c0_38 = arith.constant 0 : index
    %68 = vector.load %arg4[%c2_36, %c0_37, %c0_38] : memref<4x32x64xf32, #tpu.memory_space<vmem>>, vector<1x32x64xf32>
    %69 = vector.shape_cast %68 : vector<1x32x64xf32> to vector<32x64xf32>
    %cst_39 = arith.constant dense<0.000000e+00> : vector<16x64xf32>
    %70 = tpu.matmul %41, %69, %cst_39 {dimension_numbers = #tpu.dot_dimension_numbers<[1], [0], [0], [1], [0, 0, 1, 1], [], []>} : vector<16x32xf32>, vector<32x64xf32>, vector<16x64xf32> -> vector<16x64xf32>
    %c2_40 = arith.constant 2 : index
    %c0_41 = arith.constant 0 : index
    %c0_42 = arith.constant 0 : index
    %71 = vector.load %arg6[%c2_40, %c0_41, %c0_42] : memref<4x1x64xf32, #tpu.memory_space<vmem>>, vector<1x1x64xf32>
    %72 = vector.shape_cast %71 : vector<1x1x64xf32> to vector<1x64xf32>
    %73 = vector.broadcast %72 : vector<1x64xf32> to vector<16x64xf32>
    %74 = arith.addf %70, %73 : vector<16x64xf32>
    %75 = vector.shape_cast %74 : vector<16x64xf32> to vector<2x8x64xf32>
    %c0_43 = arith.constant 0 : index
    %c0_44 = arith.constant 0 : index
    %c0_45 = arith.constant 0 : index
    %76 = vector.load %arg33[%c0_43, %c0_44, %c0_45] : memref<2x8x64xf32, #tpu.memory_space<vmem>>, vector<2x8x64xf32>
    tpu.vector_store %arg33[%c0_43, %c0_44, %c0_45], %75 {strides = array<i32>} : memref<2x8x64xf32, #tpu.memory_space<vmem>>, vector<2x8x64xf32>,
    %c3_46 = arith.constant 3 : index
    %c0_47 = arith.constant 0 : index
    %c0_48 = arith.constant 0 : index
    %77 = vector.load %arg4[%c3_46, %c0_47, %c0_48] : memref<4x32x64xf32, #tpu.memory_space<vmem>>, vector<1x32x64xf32>
    %78 = vector.shape_cast %77 : vector<1x32x64xf32> to vector<32x64xf32>
    %cst_49 = arith.constant dense<0.000000e+00> : vector<16x64xf32>
    %79 = tpu.matmul %41, %78, %cst_49 {dimension_numbers = #tpu.dot_dimension_numbers<[1], [0], [0], [1], [0, 0, 1, 1], [], []>} : vector<16x32xf32>, vector<32x64xf32>, vector<16x64xf32> -> vector<16x64xf32>
    %c3_50 = arith.constant 3 : index
    %c0_51 = arith.constant 0 : index
    %c0_52 = arith.constant 0 : index
    %80 = vector.load %arg6[%c3_50, %c0_51, %c0_52] : memref<4x1x64xf32, #tpu.memory_space<vmem>>, vector<1x1x64xf32>
    %81 = vector.shape_cast %80 : vector<1x1x64xf32> to vector<1x64xf32>
    %82 = vector.broadcast %81 : vector<1x64xf32> to vector<16x64xf32>
    %83 = arith.addf %79, %82 : vector<16x64xf32>
    %84 = vector.shape_cast %83 : vector<16x64xf32> to vector<2x8x64xf32>
    %c0_53 = arith.constant 0 : index
    %c0_54 = arith.constant 0 : index
    %c0_55 = arith.constant 0 : index
    %85 = vector.load %arg34[%c0_53, %c0_54, %c0_55] : memref<2x8x64xf32, #tpu.memory_space<vmem>>, vector<2x8x64xf32>
    tpu.vector_store %arg34[%c0_53, %c0_54, %c0_55], %84 {strides = array<i32>} : memref<2x8x64xf32, #tpu.memory_space<vmem>>, vector<2x8x64xf32>,
    %cst_56 = arith.constant 0.000000e+00 : f32
    %86 = vector.broadcast %cst_56 : f32 to vector<2x16xf32>
    %c0_i32 = arith.constant 0 : i32
    %c0_57 = arith.constant 0 : index
    %87 = arith.index_cast %c0_i32 : i32 to index
    %c0_58 = arith.constant 0 : index
    %88 = vector.load %arg31[%c0_57, %87, %c0_58] : memref<2x8x64xf32, #tpu.memory_space<vmem>>, vector<2x1x64xf32>
    %89 = vector.shape_cast %88 : vector<2x1x64xf32> to vector<2x64xf32>
    %cst_59 = arith.constant dense<0.000000e+00> : vector<2x64xf32>
    %90 = tpu.matmul %86, %43, %cst_59 {dimension_numbers = #tpu.dot_dimension_numbers<[1], [0], [0], [1], [0, 0, 1, 1], [], []>} : vector<2x16xf32>, vector<16x64xf32>, vector<2x64xf32> -> vector<2x64xf32>
    %91 = arith.addf %89, %90 : vector<2x64xf32>
    %92 = vector.extract_strided_slice %91 {offsets = [0, 0], sizes = [2, 16], strides = [1, 1]} : vector<2x64xf32> to vector<2x16xf32>
    %93 = arith.negf %92 : vector<2x16xf32>
    %94 = math.exp %93 : vector<2x16xf32>
    %cst_60 = arith.constant 1.000000e+00 : f32
    %95 = vector.broadcast %cst_60 : f32 to vector<2x16xf32>
    %96 = arith.addf %95, %94 : vector<2x16xf32>
    %97 = arith.divf %95, %96 : vector<2x16xf32>
    %98 = vector.extract_strided_slice %91 {offsets = [0, 16], sizes = [2, 16], strides = [1, 1]} : vector<2x64xf32> to vector<2x16xf32>
    %99 = arith.negf %98 : vector<2x16xf32>
    %100 = math.exp %99 : vector<2x16xf32>
    %cst_61 = arith.constant 1.000000e+00 : f32
    %101 = vector.broadcast %cst_61 : f32 to vector<2x16xf32>
    %102 = arith.addf %101, %100 : vector<2x16xf32>
    %103 = arith.divf %101, %102 : vector<2x16xf32>
    %104 = vector.extract_strided_slice %91 {offsets = [0, 32], sizes = [2, 16], strides = [1, 1]} : vector<2x64xf32> to vector<2x16xf32>
    %105 = math.tanh %104 : vector<2x16xf32>
    %106 = vector.extract_strided_slice %91 {offsets = [0, 48], sizes = [2, 16], strides = [1, 1]} : vector<2x64xf32> to vector<2x16xf32>
    %107 = arith.negf %106 : vector<2x16xf32>
    %108 = math.exp %107 : vector<2x16xf32>
    %cst_62 = arith.constant 1.000000e+00 : f32
    %109 = vector.broadcast %cst_62 : f32 to vector<2x16xf32>
    %110 = arith.addf %109, %108 : vector<2x16xf32>
    %111 = arith.divf %109, %110 : vector<2x16xf32>
    %112 = arith.mulf %103, %86 : vector<2x16xf32>
    %113 = arith.mulf %97, %105 : vector<2x16xf32>
    %114 = arith.addf %112, %113 : vector<2x16xf32>
    %115 = math.tanh %114 : vector<2x16xf32>
    %116 = arith.mulf %111, %115 : vector<2x16xf32>
    %117 = vector.shape_cast %116 : vector<2x16xf32> to vector<2x1x16xf32>
    %c0_63 = arith.constant 0 : index
    %118 = arith.index_cast %c0_i32 : i32 to index
    %c0_64 = arith.constant 0 : index
    %119 = vector.load %arg35[%c0_63, %118, %c0_64] : memref<2x8x16xf32, #tpu.memory_space<vmem>>, vector<2x1x16xf32>
    tpu.vector_store %arg35[%c0_63, %118, %c0_64], %117 {strides = array<i32>} : memref<2x8x16xf32, #tpu.memory_space<vmem>>, vector<2x1x16xf32>,
    %c7_i32 = arith.constant 7 : i32
    %120 = arith.subi %c7_i32, %c0_i32 : i32
    %c0_65 = arith.constant 0 : index
    %121 = arith.index_cast %120 : i32 to index
    %c0_66 = arith.constant 0 : index
    %122 = vector.load %arg32[%c0_65, %121, %c0_66] : memref<2x8x64xf32, #tpu.memory_space<vmem>>, vector<2x1x64xf32>
    %123 = vector.shape_cast %122 : vector<2x1x64xf32> to vector<2x64xf32>
    %cst_67 = arith.constant dense<0.000000e+00> : vector<2x64xf32>
    %124 = tpu.matmul %86, %45, %cst_67 {dimension_numbers = #tpu.dot_dimension_numbers<[1], [0], [0], [1], [0, 0, 1, 1], [], []>} : vector<2x16xf32>, vector<16x64xf32>, vector<2x64xf32> -> vector<2x64xf32>
    %125 = arith.addf %123, %124 : vector<2x64xf32>
    %126 = vector.extract_strided_slice %125 {offsets = [0, 0], sizes = [2, 16], strides = [1, 1]} : vector<2x64xf32> to vector<2x16xf32>
    %127 = arith.negf %126 : vector<2x16xf32>
    %128 = math.exp %127 : vector<2x16xf32>
    %cst_68 = arith.constant 1.000000e+00 : f32
    %129 = vector.broadcast %cst_68 : f32 to vector<2x16xf32>
    %130 = arith.addf %129, %128 : vector<2x16xf32>
    %131 = arith.divf %129, %130 : vector<2x16xf32>
    %132 = vector.extract_strided_slice %125 {offsets = [0, 16], sizes = [2, 16], strides = [1, 1]} : vector<2x64xf32> to vector<2x16xf32>
    %133 = arith.negf %132 : vector<2x16xf32>
    %134 = math.exp %133 : vector<2x16xf32>
    %cst_69 = arith.constant 1.000000e+00 : f32
    %135 = vector.broadcast %cst_69 : f32 to vector<2x16xf32>
    %136 = arith.addf %135, %134 : vector<2x16xf32>
    %137 = arith.divf %135, %136 : vector<2x16xf32>
    %138 = vector.extract_strided_slice %125 {offsets = [0, 32], sizes = [2, 16], strides = [1, 1]} : vector<2x64xf32> to vector<2x16xf32>
    %139 = math.tanh %138 : vector<2x16xf32>
    %140 = vector.extract_strided_slice %125 {offsets = [0, 48], sizes = [2, 16], strides = [1, 1]} : vector<2x64xf32> to vector<2x16xf32>
    %141 = arith.negf %140 : vector<2x16xf32>
    %142 = math.exp %141 : vector<2x16xf32>
    %cst_70 = arith.constant 1.000000e+00 : f32
    %143 = vector.broadcast %cst_70 : f32 to vector<2x16xf32>
    %144 = arith.addf %143, %142 : vector<2x16xf32>
    %145 = arith.divf %143, %144 : vector<2x16xf32>
    %146 = arith.mulf %137, %86 : vector<2x16xf32>
    %147 = arith.mulf %131, %139 : vector<2x16xf32>
    %148 = arith.addf %146, %147 : vector<2x16xf32>
    %149 = math.tanh %148 : vector<2x16xf32>
    %150 = arith.mulf %145, %149 : vector<2x16xf32>
    %151 = vector.shape_cast %150 : vector<2x16xf32> to vector<2x1x16xf32>
    %c0_71 = arith.constant 0 : index
    %152 = arith.index_cast %120 : i32 to index
    %c0_72 = arith.constant 0 : index
    %153 = vector.load %arg36[%c0_71, %152, %c0_72] : memref<2x8x16xf32, #tpu.memory_space<vmem>>, vector<2x1x16xf32>
    tpu.vector_store %arg36[%c0_71, %152, %c0_72], %151 {strides = array<i32>} : memref<2x8x16xf32, #tpu.memory_space<vmem>>, vector<2x1x16xf32>,
    %c0_73 = arith.constant 0 : index
    %154 = arith.index_cast %c0_i32 : i32 to index
    %c0_74 = arith.constant 0 : index
    %155 = vector.load %arg33[%c0_73, %154, %c0_74] : memref<2x8x64xf32, #tpu.memory_space<vmem>>, vector<2x1x64xf32>
    %156 = vector.shape_cast %155 : vector<2x1x64xf32> to vector<2x64xf32>
    %cst_75 = arith.constant dense<0.000000e+00> : vector<2x64xf32>
    %157 = tpu.matmul %86, %47, %cst_75 {dimension_numbers = #tpu.dot_dimension_numbers<[1], [0], [0], [1], [0, 0, 1, 1], [], []>} : vector<2x16xf32>, vector<16x64xf32>, vector<2x64xf32> -> vector<2x64xf32>
    %158 = arith.addf %156, %157 : vector<2x64xf32>
    %159 = vector.extract_strided_slice %158 {offsets = [0, 0], sizes = [2, 16], strides = [1, 1]} : vector<2x64xf32> to vector<2x16xf32>
    %160 = arith.negf %159 : vector<2x16xf32>
    %161 = math.exp %160 : vector<2x16xf32>
    %cst_76 = arith.constant 1.000000e+00 : f32
    %162 = vector.broadcast %cst_76 : f32 to vector<2x16xf32>
    %163 = arith.addf %162, %161 : vector<2x16xf32>
    %164 = arith.divf %162, %163 : vector<2x16xf32>
    %165 = vector.extract_strided_slice %158 {offsets = [0, 16], sizes = [2, 16], strides = [1, 1]} : vector<2x64xf32> to vector<2x16xf32>
    %166 = arith.negf %165 : vector<2x16xf32>
    %167 = math.exp %166 : vector<2x16xf32>
    %cst_77 = arith.constant 1.000000e+00 : f32
    %168 = vector.broadcast %cst_77 : f32 to vector<2x16xf32>
    %169 = arith.addf %168, %167 : vector<2x16xf32>
    %170 = arith.divf %168, %169 : vector<2x16xf32>
    %171 = vector.extract_strided_slice %158 {offsets = [0, 32], sizes = [2, 16], strides = [1, 1]} : vector<2x64xf32> to vector<2x16xf32>
    %172 = math.tanh %171 : vector<2x16xf32>
    %173 = vector.extract_strided_slice %158 {offsets = [0, 48], sizes = [2, 16], strides = [1, 1]} : vector<2x64xf32> to vector<2x16xf32>
    %174 = arith.negf %173 : vector<2x16xf32>
    %175 = math.exp %174 : vector<2x16xf32>
    %cst_78 = arith.constant 1.000000e+00 : f32
    %176 = vector.broadcast %cst_78 : f32 to vector<2x16xf32>
    %177 = arith.addf %176, %175 : vector<2x16xf32>
    %178 = arith.divf %176, %177 : vector<2x16xf32>
    %179 = arith.mulf %170, %86 : vector<2x16xf32>
    %180 = arith.mulf %164, %172 : vector<2x16xf32>
    %181 = arith.addf %179, %180 : vector<2x16xf32>
    %182 = math.tanh %181 : vector<2x16xf32>
    %183 = arith.mulf %178, %182 : vector<2x16xf32>
    %184 = vector.shape_cast %183 : vector<2x16xf32> to vector<2x1x16xf32>
    %c0_79 = arith.constant 0 : index
    %185 = arith.index_cast %c0_i32 : i32 to index
    %c0_80 = arith.constant 0 : index
    %186 = vector.load %arg37[%c0_79, %185, %c0_80] : memref<2x8x16xf32, #tpu.memory_space<vmem>>, vector<2x1x16xf32>
    tpu.vector_store %arg37[%c0_79, %185, %c0_80], %184 {strides = array<i32>} : memref<2x8x16xf32, #tpu.memory_space<vmem>>, vector<2x1x16xf32>,
    %c7_i32_81 = arith.constant 7 : i32
    %187 = arith.subi %c7_i32_81, %c0_i32 : i32
    %c0_82 = arith.constant 0 : index
    %188 = arith.index_cast %187 : i32 to index
    %c0_83 = arith.constant 0 : index
    %189 = vector.load %arg34[%c0_82, %188, %c0_83] : memref<2x8x64xf32, #tpu.memory_space<vmem>>, vector<2x1x64xf32>
    %190 = vector.shape_cast %189 : vector<2x1x64xf32> to vector<2x64xf32>
    %cst_84 = arith.constant dense<0.000000e+00> : vector<2x64xf32>
    %191 = tpu.matmul %86, %49, %cst_84 {dimension_numbers = #tpu.dot_dimension_numbers<[1], [0], [0], [1], [0, 0, 1, 1], [], []>} : vector<2x16xf32>, vector<16x64xf32>, vector<2x64xf32> -> vector<2x64xf32>
    %192 = arith.addf %190, %191 : vector<2x64xf32>
    %193 = vector.extract_strided_slice %192 {offsets = [0, 0], sizes = [2, 16], strides = [1, 1]} : vector<2x64xf32> to vector<2x16xf32>
    %194 = arith.negf %193 : vector<2x16xf32>
    %195 = math.exp %194 : vector<2x16xf32>
    %cst_85 = arith.constant 1.000000e+00 : f32
    %196 = vector.broadcast %cst_85 : f32 to vector<2x16xf32>
    %197 = arith.addf %196, %195 : vector<2x16xf32>
    %198 = arith.divf %196, %197 : vector<2x16xf32>
    %199 = vector.extract_strided_slice %192 {offsets = [0, 16], sizes = [2, 16], strides = [1, 1]} : vector<2x64xf32> to vector<2x16xf32>
    %200 = arith.negf %199 : vector<2x16xf32>
    %201 = math.exp %200 : vector<2x16xf32>
    %cst_86 = arith.constant 1.000000e+00 : f32
    %202 = vector.broadcast %cst_86 : f32 to vector<2x16xf32>
    %203 = arith.addf %202, %201 : vector<2x16xf32>
    %204 = arith.divf %202, %203 : vector<2x16xf32>
    %205 = vector.extract_strided_slice %192 {offsets = [0, 32], sizes = [2, 16], strides = [1, 1]} : vector<2x64xf32> to vector<2x16xf32>
    %206 = math.tanh %205 : vector<2x16xf32>
    %207 = vector.extract_strided_slice %192 {offsets = [0, 48], sizes = [2, 16], strides = [1, 1]} : vector<2x64xf32> to vector<2x16xf32>
    %208 = arith.negf %207 : vector<2x16xf32>
    %209 = math.exp %208 : vector<2x16xf32>
    %cst_87 = arith.constant 1.000000e+00 : f32
    %210 = vector.broadcast %cst_87 : f32 to vector<2x16xf32>
    %211 = arith.addf %210, %209 : vector<2x16xf32>
    %212 = arith.divf %210, %211 : vector<2x16xf32>
    %213 = arith.mulf %204, %86 : vector<2x16xf32>
    %214 = arith.mulf %198, %206 : vector<2x16xf32>
    %215 = arith.addf %213, %214 : vector<2x16xf32>
    %216 = math.tanh %215 : vector<2x16xf32>
    %217 = arith.mulf %212, %216 : vector<2x16xf32>
    %218 = vector.shape_cast %217 : vector<2x16xf32> to vector<2x1x16xf32>
    %c0_88 = arith.constant 0 : index
    %219 = arith.index_cast %187 : i32 to index
    %c0_89 = arith.constant 0 : index
    %220 = vector.load %arg38[%c0_88, %219, %c0_89] : memref<2x8x16xf32, #tpu.memory_space<vmem>>, vector<2x1x16xf32>
    tpu.vector_store %arg38[%c0_88, %219, %c0_89], %218 {strides = array<i32>} : memref<2x8x16xf32, #tpu.memory_space<vmem>>, vector<2x1x16xf32>,
    %c1_i32 = arith.constant 1 : i32
    %c0_90 = arith.constant 0 : index
    %221 = arith.index_cast %c1_i32 : i32 to index
    %c0_91 = arith.constant 0 : index
    %222 = vector.load %arg31[%c0_90, %221, %c0_91] : memref<2x8x64xf32, #tpu.memory_space<vmem>>, vector<2x1x64xf32>
    %223 = vector.shape_cast %222 : vector<2x1x64xf32> to vector<2x64xf32>
    %cst_92 = arith.constant dense<0.000000e+00> : vector<2x64xf32>
    %224 = tpu.matmul %116, %43, %cst_92 {dimension_numbers = #tpu.dot_dimension_numbers<[1], [0], [0], [1], [0, 0, 1, 1], [], []>} : vector<2x16xf32>, vector<16x64xf32>, vector<2x64xf32> -> vector<2x64xf32>
    %225 = arith.addf %223, %224 : vector<2x64xf32>
    %226 = vector.extract_strided_slice %225 {offsets = [0, 0], sizes = [2, 16], strides = [1, 1]} : vector<2x64xf32> to vector<2x16xf32>
    %227 = arith.negf %226 : vector<2x16xf32>
    %228 = math.exp %227 : vector<2x16xf32>
    %cst_93 = arith.constant 1.000000e+00 : f32
    %229 = vector.broadcast %cst_93 : f32 to vector<2x16xf32>
    %230 = arith.addf %229, %228 : vector<2x16xf32>
    %231 = arith.divf %229, %230 : vector<2x16xf32>
    %232 = vector.extract_strided_slice %225 {offsets = [0, 16], sizes = [2, 16], strides = [1, 1]} : vector<2x64xf32> to vector<2x16xf32>
    %233 = arith.negf %232 : vector<2x16xf32>
    %234 = math.exp %233 : vector<2x16xf32>
    %cst_94 = arith.constant 1.000000e+00 : f32
    %235 = vector.broadcast %cst_94 : f32 to vector<2x16xf32>
    %236 = arith.addf %235, %234 : vector<2x16xf32>
    %237 = arith.divf %235, %236 : vector<2x16xf32>
    %238 = vector.extract_strided_slice %225 {offsets = [0, 32], sizes = [2, 16], strides = [1, 1]} : vector<2x64xf32> to vector<2x16xf32>
    %239 = math.tanh %238 : vector<2x16xf32>
    %240 = vector.extract_strided_slice %225 {offsets = [0, 48], sizes = [2, 16], strides = [1, 1]} : vector<2x64xf32> to vector<2x16xf32>
    %241 = arith.negf %240 : vector<2x16xf32>
    %242 = math.exp %241 : vector<2x16xf32>
    %cst_95 = arith.constant 1.000000e+00 : f32
    %243 = vector.broadcast %cst_95 : f32 to vector<2x16xf32>
    %244 = arith.addf %243, %242 : vector<2x16xf32>
    %245 = arith.divf %243, %244 : vector<2x16xf32>
    %246 = arith.mulf %237, %114 : vector<2x16xf32>
    %247 = arith.mulf %231, %239 : vector<2x16xf32>
    %248 = arith.addf %246, %247 : vector<2x16xf32>
    %249 = math.tanh %248 : vector<2x16xf32>
    %250 = arith.mulf %245, %249 : vector<2x16xf32>
    %251 = vector.shape_cast %250 : vector<2x16xf32> to vector<2x1x16xf32>
    %c0_96 = arith.constant 0 : index
    %252 = arith.index_cast %c1_i32 : i32 to index
    %c0_97 = arith.constant 0 : index
    %253 = vector.load %arg35[%c0_96, %252, %c0_97] : memref<2x8x16xf32, #tpu.memory_space<vmem>>, vector<2x1x16xf32>
    tpu.vector_store %arg35[%c0_96, %252, %c0_97], %251 {strides = array<i32>} : memref<2x8x16xf32, #tpu.memory_space<vmem>>, vector<2x1x16xf32>,
    %c7_i32_98 = arith.constant 7 : i32
    %254 = arith.subi %c7_i32_98, %c1_i32 : i32
    %c0_99 = arith.constant 0 : index
    %255 = arith.index_cast %254 : i32 to index
    %c0_100 = arith.constant 0 : index
    %256 = vector.load %arg32[%c0_99, %255, %c0_100] : memref<2x8x64xf32, #tpu.memory_space<vmem>>, vector<2x1x64xf32>
    %257 = vector.shape_cast %256 : vector<2x1x64xf32> to vector<2x64xf32>
    %cst_101 = arith.constant dense<0.000000e+00> : vector<2x64xf32>
    %258 = tpu.matmul %150, %45, %cst_101 {dimension_numbers = #tpu.dot_dimension_numbers<[1], [0], [0], [1], [0, 0, 1, 1], [], []>} : vector<2x16xf32>, vector<16x64xf32>, vector<2x64xf32> -> vector<2x64xf32>
    %259 = arith.addf %257, %258 : vector<2x64xf32>
    %260 = vector.extract_strided_slice %259 {offsets = [0, 0], sizes = [2, 16], strides = [1, 1]} : vector<2x64xf32> to vector<2x16xf32>
    %261 = arith.negf %260 : vector<2x16xf32>
    %262 = math.exp %261 : vector<2x16xf32>
    %cst_102 = arith.constant 1.000000e+00 : f32
    %263 = vector.broadcast %cst_102 : f32 to vector<2x16xf32>
    %264 = arith.addf %263, %262 : vector<2x16xf32>
    %265 = arith.divf %263, %264 : vector<2x16xf32>
    %266 = vector.extract_strided_slice %259 {offsets = [0, 16], sizes = [2, 16], strides = [1, 1]} : vector<2x64xf32> to vector<2x16xf32>
    %267 = arith.negf %266 : vector<2x16xf32>
    %268 = math.exp %267 : vector<2x16xf32>
    %cst_103 = arith.constant 1.000000e+00 : f32
    %269 = vector.broadcast %cst_103 : f32 to vector<2x16xf32>
    %270 = arith.addf %269, %268 : vector<2x16xf32>
    %271 = arith.divf %269, %270 : vector<2x16xf32>
    %272 = vector.extract_strided_slice %259 {offsets = [0, 32], sizes = [2, 16], strides = [1, 1]} : vector<2x64xf32> to vector<2x16xf32>
    %273 = math.tanh %272 : vector<2x16xf32>
    %274 = vector.extract_strided_slice %259 {offsets = [0, 48], sizes = [2, 16], strides = [1, 1]} : vector<2x64xf32> to vector<2x16xf32>
    %275 = arith.negf %274 : vector<2x16xf32>
    %276 = math.exp %275 : vector<2x16xf32>
    %cst_104 = arith.constant 1.000000e+00 : f32
    %277 = vector.broadcast %cst_104 : f32 to vector<2x16xf32>
    %278 = arith.addf %277, %276 : vector<2x16xf32>
    %279 = arith.divf %277, %278 : vector<2x16xf32>
    %280 = arith.mulf %271, %148 : vector<2x16xf32>
    %281 = arith.mulf %265, %273 : vector<2x16xf32>
    %282 = arith.addf %280, %281 : vector<2x16xf32>
    %283 = math.tanh %282 : vector<2x16xf32>
    %284 = arith.mulf %279, %283 : vector<2x16xf32>
    %285 = vector.shape_cast %284 : vector<2x16xf32> to vector<2x1x16xf32>
    %c0_105 = arith.constant 0 : index
    %286 = arith.index_cast %254 : i32 to index
    %c0_106 = arith.constant 0 : index
    %287 = vector.load %arg36[%c0_105, %286, %c0_106] : memref<2x8x16xf32, #tpu.memory_space<vmem>>, vector<2x1x16xf32>
    tpu.vector_store %arg36[%c0_105, %286, %c0_106], %285 {strides = array<i32>} : memref<2x8x16xf32, #tpu.memory_space<vmem>>, vector<2x1x16xf32>,
    %c0_107 = arith.constant 0 : index
    %288 = arith.index_cast %c1_i32 : i32 to index
    %c0_108 = arith.constant 0 : index
    %289 = vector.load %arg33[%c0_107, %288, %c0_108] : memref<2x8x64xf32, #tpu.memory_space<vmem>>, vector<2x1x64xf32>
    %290 = vector.shape_cast %289 : vector<2x1x64xf32> to vector<2x64xf32>
    %cst_109 = arith.constant dense<0.000000e+00> : vector<2x64xf32>
    %291 = tpu.matmul %183, %47, %cst_109 {dimension_numbers = #tpu.dot_dimension_numbers<[1], [0], [0], [1], [0, 0, 1, 1], [], []>} : vector<2x16xf32>, vector<16x64xf32>, vector<2x64xf32> -> vector<2x64xf32>
    %292 = arith.addf %290, %291 : vector<2x64xf32>
    %293 = vector.extract_strided_slice %292 {offsets = [0, 0], sizes = [2, 16], strides = [1, 1]} : vector<2x64xf32> to vector<2x16xf32>
    %294 = arith.negf %293 : vector<2x16xf32>
    %295 = math.exp %294 : vector<2x16xf32>
    %cst_110 = arith.constant 1.000000e+00 : f32
    %296 = vector.broadcast %cst_110 : f32 to vector<2x16xf32>
    %297 = arith.addf %296, %295 : vector<2x16xf32>
    %298 = arith.divf %296, %297 : vector<2x16xf32>
    %299 = vector.extract_strided_slice %292 {offsets = [0, 16], sizes = [2, 16], strides = [1, 1]} : vector<2x64xf32> to vector<2x16xf32>
    %300 = arith.negf %299 : vector<2x16xf32>
    %301 = math.exp %300 : vector<2x16xf32>
    %cst_111 = arith.constant 1.000000e+00 : f32
    %302 = vector.broadcast %cst_111 : f32 to vector<2x16xf32>
    %303 = arith.addf %302, %301 : vector<2x16xf32>
    %304 = arith.divf %302, %303 : vector<2x16xf32>
    %305 = vector.extract_strided_slice %292 {offsets = [0, 32], sizes = [2, 16], strides = [1, 1]} : vector<2x64xf32> to vector<2x16xf32>
    %306 = math.tanh %305 : vector<2x16xf32>
    %307 = vector.extract_strided_slice %292 {offsets = [0, 48], sizes = [2, 16], strides = [1, 1]} : vector<2x64xf32> to vector<2x16xf32>
    %308 = arith.negf %307 : vector<2x16xf32>
    %309 = math.exp %308 : vector<2x16xf32>
    %cst_112 = arith.constant 1.000000e+00 : f32
    %310 = vector.broadcast %cst_112 : f32 to vector<2x16xf32>
    %311 = arith.addf %310, %309 : vector<2x16xf32>
    %312 = arith.divf %310, %311 : vector<2x16xf32>
    %313 = arith.mulf %304, %181 : vector<2x16xf32>
    %314 = arith.mulf %298, %306 : vector<2x16xf32>
    %315 = arith.addf %313, %314 : vector<2x16xf32>
    %316 = math.tanh %315 : vector<2x16xf32>
    %317 = arith.mulf %312, %316 : vector<2x16xf32>
    %318 = vector.shape_cast %317 : vector<2x16xf32> to vector<2x1x16xf32>
    %c0_113 = arith.constant 0 : index
    %319 = arith.index_cast %c1_i32 : i32 to index
    %c0_114 = arith.constant 0 : index
    %320 = vector.load %arg37[%c0_113, %319, %c0_114] : memref<2x8x16xf32, #tpu.memory_space<vmem>>, vector<2x1x16xf32>
    tpu.vector_store %arg37[%c0_113, %319, %c0_114], %318 {strides = array<i32>} : memref<2x8x16xf32, #tpu.memory_space<vmem>>, vector<2x1x16xf32>,
    %c7_i32_115 = arith.constant 7 : i32
    %321 = arith.subi %c7_i32_115, %c1_i32 : i32
    %c0_116 = arith.constant 0 : index
    %322 = arith.index_cast %321 : i32 to index
    %c0_117 = arith.constant 0 : index
    %323 = vector.load %arg34[%c0_116, %322, %c0_117] : memref<2x8x64xf32, #tpu.memory_space<vmem>>, vector<2x1x64xf32>
    %324 = vector.shape_cast %323 : vector<2x1x64xf32> to vector<2x64xf32>
    %cst_118 = arith.constant dense<0.000000e+00> : vector<2x64xf32>
    %325 = tpu.matmul %217, %49, %cst_118 {dimension_numbers = #tpu.dot_dimension_numbers<[1], [0], [0], [1], [0, 0, 1, 1], [], []>} : vector<2x16xf32>, vector<16x64xf32>, vector<2x64xf32> -> vector<2x64xf32>
    %326 = arith.addf %324, %325 : vector<2x64xf32>
    %327 = vector.extract_strided_slice %326 {offsets = [0, 0], sizes = [2, 16], strides = [1, 1]} : vector<2x64xf32> to vector<2x16xf32>
    %328 = arith.negf %327 : vector<2x16xf32>
    %329 = math.exp %328 : vector<2x16xf32>
    %cst_119 = arith.constant 1.000000e+00 : f32
    %330 = vector.broadcast %cst_119 : f32 to vector<2x16xf32>
    %331 = arith.addf %330, %329 : vector<2x16xf32>
    %332 = arith.divf %330, %331 : vector<2x16xf32>
    %333 = vector.extract_strided_slice %326 {offsets = [0, 16], sizes = [2, 16], strides = [1, 1]} : vector<2x64xf32> to vector<2x16xf32>
    %334 = arith.negf %333 : vector<2x16xf32>
    %335 = math.exp %334 : vector<2x16xf32>
    %cst_120 = arith.constant 1.000000e+00 : f32
    %336 = vector.broadcast %cst_120 : f32 to vector<2x16xf32>
    %337 = arith.addf %336, %335 : vector<2x16xf32>
    %338 = arith.divf %336, %337 : vector<2x16xf32>
    %339 = vector.extract_strided_slice %326 {offsets = [0, 32], sizes = [2, 16], strides = [1, 1]} : vector<2x64xf32> to vector<2x16xf32>
    %340 = math.tanh %339 : vector<2x16xf32>
    %341 = vector.extract_strided_slice %326 {offsets = [0, 48], sizes = [2, 16], strides = [1, 1]} : vector<2x64xf32> to vector<2x16xf32>
    %342 = arith.negf %341 : vector<2x16xf32>
    %343 = math.exp %342 : vector<2x16xf32>
    %cst_121 = arith.constant 1.000000e+00 : f32
    %344 = vector.broadcast %cst_121 : f32 to vector<2x16xf32>
    %345 = arith.addf %344, %343 : vector<2x16xf32>
    %346 = arith.divf %344, %345 : vector<2x16xf32>
    %347 = arith.mulf %338, %215 : vector<2x16xf32>
    %348 = arith.mulf %332, %340 : vector<2x16xf32>
    %349 = arith.addf %347, %348 : vector<2x16xf32>
    %350 = math.tanh %349 : vector<2x16xf32>
    %351 = arith.mulf %346, %350 : vector<2x16xf32>
    %352 = vector.shape_cast %351 : vector<2x16xf32> to vector<2x1x16xf32>
    %c0_122 = arith.constant 0 : index
    %353 = arith.index_cast %321 : i32 to index
    %c0_123 = arith.constant 0 : index
    %354 = vector.load %arg38[%c0_122, %353, %c0_123] : memref<2x8x16xf32, #tpu.memory_space<vmem>>, vector<2x1x16xf32>
    tpu.vector_store %arg38[%c0_122, %353, %c0_123], %352 {strides = array<i32>} : memref<2x8x16xf32, #tpu.memory_space<vmem>>, vector<2x1x16xf32>,
    %c2_i32 = arith.constant 2 : i32
    %c0_124 = arith.constant 0 : index
    %355 = arith.index_cast %c2_i32 : i32 to index
    %c0_125 = arith.constant 0 : index
    %356 = vector.load %arg31[%c0_124, %355, %c0_125] : memref<2x8x64xf32, #tpu.memory_space<vmem>>, vector<2x1x64xf32>
    %357 = vector.shape_cast %356 : vector<2x1x64xf32> to vector<2x64xf32>
    %cst_126 = arith.constant dense<0.000000e+00> : vector<2x64xf32>
    %358 = tpu.matmul %250, %43, %cst_126 {dimension_numbers = #tpu.dot_dimension_numbers<[1], [0], [0], [1], [0, 0, 1, 1], [], []>} : vector<2x16xf32>, vector<16x64xf32>, vector<2x64xf32> -> vector<2x64xf32>
    %359 = arith.addf %357, %358 : vector<2x64xf32>
    %360 = vector.extract_strided_slice %359 {offsets = [0, 0], sizes = [2, 16], strides = [1, 1]} : vector<2x64xf32> to vector<2x16xf32>
    %361 = arith.negf %360 : vector<2x16xf32>
    %362 = math.exp %361 : vector<2x16xf32>
    %cst_127 = arith.constant 1.000000e+00 : f32
    %363 = vector.broadcast %cst_127 : f32 to vector<2x16xf32>
    %364 = arith.addf %363, %362 : vector<2x16xf32>
    %365 = arith.divf %363, %364 : vector<2x16xf32>
    %366 = vector.extract_strided_slice %359 {offsets = [0, 16], sizes = [2, 16], strides = [1, 1]} : vector<2x64xf32> to vector<2x16xf32>
    %367 = arith.negf %366 : vector<2x16xf32>
    %368 = math.exp %367 : vector<2x16xf32>
    %cst_128 = arith.constant 1.000000e+00 : f32
    %369 = vector.broadcast %cst_128 : f32 to vector<2x16xf32>
    %370 = arith.addf %369, %368 : vector<2x16xf32>
    %371 = arith.divf %369, %370 : vector<2x16xf32>
    %372 = vector.extract_strided_slice %359 {offsets = [0, 32], sizes = [2, 16], strides = [1, 1]} : vector<2x64xf32> to vector<2x16xf32>
    %373 = math.tanh %372 : vector<2x16xf32>
    %374 = vector.extract_strided_slice %359 {offsets = [0, 48], sizes = [2, 16], strides = [1, 1]} : vector<2x64xf32> to vector<2x16xf32>
    %375 = arith.negf %374 : vector<2x16xf32>
    %376 = math.exp %375 : vector<2x16xf32>
    %cst_129 = arith.constant 1.000000e+00 : f32
    %377 = vector.broadcast %cst_129 : f32 to vector<2x16xf32>
    %378 = arith.addf %377, %376 : vector<2x16xf32>
    %379 = arith.divf %377, %378 : vector<2x16xf32>
    %380 = arith.mulf %371, %248 : vector<2x16xf32>
    %381 = arith.mulf %365, %373 : vector<2x16xf32>
    %382 = arith.addf %380, %381 : vector<2x16xf32>
    %383 = math.tanh %382 : vector<2x16xf32>
    %384 = arith.mulf %379, %383 : vector<2x16xf32>
    %385 = vector.shape_cast %384 : vector<2x16xf32> to vector<2x1x16xf32>
    %c0_130 = arith.constant 0 : index
    %386 = arith.index_cast %c2_i32 : i32 to index
    %c0_131 = arith.constant 0 : index
    %387 = vector.load %arg35[%c0_130, %386, %c0_131] : memref<2x8x16xf32, #tpu.memory_space<vmem>>, vector<2x1x16xf32>
    tpu.vector_store %arg35[%c0_130, %386, %c0_131], %385 {strides = array<i32>} : memref<2x8x16xf32, #tpu.memory_space<vmem>>, vector<2x1x16xf32>,
    %c7_i32_132 = arith.constant 7 : i32
    %388 = arith.subi %c7_i32_132, %c2_i32 : i32
    %c0_133 = arith.constant 0 : index
    %389 = arith.index_cast %388 : i32 to index
    %c0_134 = arith.constant 0 : index
    %390 = vector.load %arg32[%c0_133, %389, %c0_134] : memref<2x8x64xf32, #tpu.memory_space<vmem>>, vector<2x1x64xf32>
    %391 = vector.shape_cast %390 : vector<2x1x64xf32> to vector<2x64xf32>
    %cst_135 = arith.constant dense<0.000000e+00> : vector<2x64xf32>
    %392 = tpu.matmul %284, %45, %cst_135 {dimension_numbers = #tpu.dot_dimension_numbers<[1], [0], [0], [1], [0, 0, 1, 1], [], []>} : vector<2x16xf32>, vector<16x64xf32>, vector<2x64xf32> -> vector<2x64xf32>
    %393 = arith.addf %391, %392 : vector<2x64xf32>
    %394 = vector.extract_strided_slice %393 {offsets = [0, 0], sizes = [2, 16], strides = [1, 1]} : vector<2x64xf32> to vector<2x16xf32>
    %395 = arith.negf %394 : vector<2x16xf32>
    %396 = math.exp %395 : vector<2x16xf32>
    %cst_136 = arith.constant 1.000000e+00 : f32
    %397 = vector.broadcast %cst_136 : f32 to vector<2x16xf32>
    %398 = arith.addf %397, %396 : vector<2x16xf32>
    %399 = arith.divf %397, %398 : vector<2x16xf32>
    %400 = vector.extract_strided_slice %393 {offsets = [0, 16], sizes = [2, 16], strides = [1, 1]} : vector<2x64xf32> to vector<2x16xf32>
    %401 = arith.negf %400 : vector<2x16xf32>
    %402 = math.exp %401 : vector<2x16xf32>
    %cst_137 = arith.constant 1.000000e+00 : f32
    %403 = vector.broadcast %cst_137 : f32 to vector<2x16xf32>
    %404 = arith.addf %403, %402 : vector<2x16xf32>
    %405 = arith.divf %403, %404 : vector<2x16xf32>
    %406 = vector.extract_strided_slice %393 {offsets = [0, 32], sizes = [2, 16], strides = [1, 1]} : vector<2x64xf32> to vector<2x16xf32>
    %407 = math.tanh %406 : vector<2x16xf32>
    %408 = vector.extract_strided_slice %393 {offsets = [0, 48], sizes = [2, 16], strides = [1, 1]} : vector<2x64xf32> to vector<2x16xf32>
    %409 = arith.negf %408 : vector<2x16xf32>
    %410 = math.exp %409 : vector<2x16xf32>
    %cst_138 = arith.constant 1.000000e+00 : f32
    %411 = vector.broadcast %cst_138 : f32 to vector<2x16xf32>
    %412 = arith.addf %411, %410 : vector<2x16xf32>
    %413 = arith.divf %411, %412 : vector<2x16xf32>
    %414 = arith.mulf %405, %282 : vector<2x16xf32>
    %415 = arith.mulf %399, %407 : vector<2x16xf32>
    %416 = arith.addf %414, %415 : vector<2x16xf32>
    %417 = math.tanh %416 : vector<2x16xf32>
    %418 = arith.mulf %413, %417 : vector<2x16xf32>
    %419 = vector.shape_cast %418 : vector<2x16xf32> to vector<2x1x16xf32>
    %c0_139 = arith.constant 0 : index
    %420 = arith.index_cast %388 : i32 to index
    %c0_140 = arith.constant 0 : index
    %421 = vector.load %arg36[%c0_139, %420, %c0_140] : memref<2x8x16xf32, #tpu.memory_space<vmem>>, vector<2x1x16xf32>
    tpu.vector_store %arg36[%c0_139, %420, %c0_140], %419 {strides = array<i32>} : memref<2x8x16xf32, #tpu.memory_space<vmem>>, vector<2x1x16xf32>,
    %c0_141 = arith.constant 0 : index
    %422 = arith.index_cast %c2_i32 : i32 to index
    %c0_142 = arith.constant 0 : index
    %423 = vector.load %arg33[%c0_141, %422, %c0_142] : memref<2x8x64xf32, #tpu.memory_space<vmem>>, vector<2x1x64xf32>
    %424 = vector.shape_cast %423 : vector<2x1x64xf32> to vector<2x64xf32>
    %cst_143 = arith.constant dense<0.000000e+00> : vector<2x64xf32>
    %425 = tpu.matmul %317, %47, %cst_143 {dimension_numbers = #tpu.dot_dimension_numbers<[1], [0], [0], [1], [0, 0, 1, 1], [], []>} : vector<2x16xf32>, vector<16x64xf32>, vector<2x64xf32> -> vector<2x64xf32>
    %426 = arith.addf %424, %425 : vector<2x64xf32>
    %427 = vector.extract_strided_slice %426 {offsets = [0, 0], sizes = [2, 16], strides = [1, 1]} : vector<2x64xf32> to vector<2x16xf32>
    %428 = arith.negf %427 : vector<2x16xf32>
    %429 = math.exp %428 : vector<2x16xf32>
    %cst_144 = arith.constant 1.000000e+00 : f32
    %430 = vector.broadcast %cst_144 : f32 to vector<2x16xf32>
    %431 = arith.addf %430, %429 : vector<2x16xf32>
    %432 = arith.divf %430, %431 : vector<2x16xf32>
    %433 = vector.extract_strided_slice %426 {offsets = [0, 16], sizes = [2, 16], strides = [1, 1]} : vector<2x64xf32> to vector<2x16xf32>
    %434 = arith.negf %433 : vector<2x16xf32>
    %435 = math.exp %434 : vector<2x16xf32>
    %cst_145 = arith.constant 1.000000e+00 : f32
    %436 = vector.broadcast %cst_145 : f32 to vector<2x16xf32>
    %437 = arith.addf %436, %435 : vector<2x16xf32>
    %438 = arith.divf %436, %437 : vector<2x16xf32>
    %439 = vector.extract_strided_slice %426 {offsets = [0, 32], sizes = [2, 16], strides = [1, 1]} : vector<2x64xf32> to vector<2x16xf32>
    %440 = math.tanh %439 : vector<2x16xf32>
    %441 = vector.extract_strided_slice %426 {offsets = [0, 48], sizes = [2, 16], strides = [1, 1]} : vector<2x64xf32> to vector<2x16xf32>
    %442 = arith.negf %441 : vector<2x16xf32>
    %443 = math.exp %442 : vector<2x16xf32>
    %cst_146 = arith.constant 1.000000e+00 : f32
    %444 = vector.broadcast %cst_146 : f32 to vector<2x16xf32>
    %445 = arith.addf %444, %443 : vector<2x16xf32>
    %446 = arith.divf %444, %445 : vector<2x16xf32>
    %447 = arith.mulf %438, %315 : vector<2x16xf32>
    %448 = arith.mulf %432, %440 : vector<2x16xf32>
    %449 = arith.addf %447, %448 : vector<2x16xf32>
    %450 = math.tanh %449 : vector<2x16xf32>
    %451 = arith.mulf %446, %450 : vector<2x16xf32>
    %452 = vector.shape_cast %451 : vector<2x16xf32> to vector<2x1x16xf32>
    %c0_147 = arith.constant 0 : index
    %453 = arith.index_cast %c2_i32 : i32 to index
    %c0_148 = arith.constant 0 : index
    %454 = vector.load %arg37[%c0_147, %453, %c0_148] : memref<2x8x16xf32, #tpu.memory_space<vmem>>, vector<2x1x16xf32>
    tpu.vector_store %arg37[%c0_147, %453, %c0_148], %452 {strides = array<i32>} : memref<2x8x16xf32, #tpu.memory_space<vmem>>, vector<2x1x16xf32>,
    %c7_i32_149 = arith.constant 7 : i32
    %455 = arith.subi %c7_i32_149, %c2_i32 : i32
    %c0_150 = arith.constant 0 : index
    %456 = arith.index_cast %455 : i32 to index
    %c0_151 = arith.constant 0 : index
    %457 = vector.load %arg34[%c0_150, %456, %c0_151] : memref<2x8x64xf32, #tpu.memory_space<vmem>>, vector<2x1x64xf32>
    %458 = vector.shape_cast %457 : vector<2x1x64xf32> to vector<2x64xf32>
    %cst_152 = arith.constant dense<0.000000e+00> : vector<2x64xf32>
    %459 = tpu.matmul %351, %49, %cst_152 {dimension_numbers = #tpu.dot_dimension_numbers<[1], [0], [0], [1], [0, 0, 1, 1], [], []>} : vector<2x16xf32>, vector<16x64xf32>, vector<2x64xf32> -> vector<2x64xf32>
    %460 = arith.addf %458, %459 : vector<2x64xf32>
    %461 = vector.extract_strided_slice %460 {offsets = [0, 0], sizes = [2, 16], strides = [1, 1]} : vector<2x64xf32> to vector<2x16xf32>
    %462 = arith.negf %461 : vector<2x16xf32>
    %463 = math.exp %462 : vector<2x16xf32>
    %cst_153 = arith.constant 1.000000e+00 : f32
    %464 = vector.broadcast %cst_153 : f32 to vector<2x16xf32>
    %465 = arith.addf %464, %463 : vector<2x16xf32>
    %466 = arith.divf %464, %465 : vector<2x16xf32>
    %467 = vector.extract_strided_slice %460 {offsets = [0, 16], sizes = [2, 16], strides = [1, 1]} : vector<2x64xf32> to vector<2x16xf32>
    %468 = arith.negf %467 : vector<2x16xf32>
    %469 = math.exp %468 : vector<2x16xf32>
    %cst_154 = arith.constant 1.000000e+00 : f32
    %470 = vector.broadcast %cst_154 : f32 to vector<2x16xf32>
    %471 = arith.addf %470, %469 : vector<2x16xf32>
    %472 = arith.divf %470, %471 : vector<2x16xf32>
    %473 = vector.extract_strided_slice %460 {offsets = [0, 32], sizes = [2, 16], strides = [1, 1]} : vector<2x64xf32> to vector<2x16xf32>
    %474 = math.tanh %473 : vector<2x16xf32>
    %475 = vector.extract_strided_slice %460 {offsets = [0, 48], sizes = [2, 16], strides = [1, 1]} : vector<2x64xf32> to vector<2x16xf32>
    %476 = arith.negf %475 : vector<2x16xf32>
    %477 = math.exp %476 : vector<2x16xf32>
    %cst_155 = arith.constant 1.000000e+00 : f32
    %478 = vector.broadcast %cst_155 : f32 to vector<2x16xf32>
    %479 = arith.addf %478, %477 : vector<2x16xf32>
    %480 = arith.divf %478, %479 : vector<2x16xf32>
    %481 = arith.mulf %472, %349 : vector<2x16xf32>
    %482 = arith.mulf %466, %474 : vector<2x16xf32>
    %483 = arith.addf %481, %482 : vector<2x16xf32>
    %484 = math.tanh %483 : vector<2x16xf32>
    %485 = arith.mulf %480, %484 : vector<2x16xf32>
    %486 = vector.shape_cast %485 : vector<2x16xf32> to vector<2x1x16xf32>
    %c0_156 = arith.constant 0 : index
    %487 = arith.index_cast %455 : i32 to index
    %c0_157 = arith.constant 0 : index
    %488 = vector.load %arg38[%c0_156, %487, %c0_157] : memref<2x8x16xf32, #tpu.memory_space<vmem>>, vector<2x1x16xf32>
    tpu.vector_store %arg38[%c0_156, %487, %c0_157], %486 {strides = array<i32>} : memref<2x8x16xf32, #tpu.memory_space<vmem>>, vector<2x1x16xf32>,
    %c3_i32 = arith.constant 3 : i32
    %c0_158 = arith.constant 0 : index
    %489 = arith.index_cast %c3_i32 : i32 to index
    %c0_159 = arith.constant 0 : index
    %490 = vector.load %arg31[%c0_158, %489, %c0_159] : memref<2x8x64xf32, #tpu.memory_space<vmem>>, vector<2x1x64xf32>
    %491 = vector.shape_cast %490 : vector<2x1x64xf32> to vector<2x64xf32>
    %cst_160 = arith.constant dense<0.000000e+00> : vector<2x64xf32>
    %492 = tpu.matmul %384, %43, %cst_160 {dimension_numbers = #tpu.dot_dimension_numbers<[1], [0], [0], [1], [0, 0, 1, 1], [], []>} : vector<2x16xf32>, vector<16x64xf32>, vector<2x64xf32> -> vector<2x64xf32>
    %493 = arith.addf %491, %492 : vector<2x64xf32>
    %494 = vector.extract_strided_slice %493 {offsets = [0, 0], sizes = [2, 16], strides = [1, 1]} : vector<2x64xf32> to vector<2x16xf32>
    %495 = arith.negf %494 : vector<2x16xf32>
    %496 = math.exp %495 : vector<2x16xf32>
    %cst_161 = arith.constant 1.000000e+00 : f32
    %497 = vector.broadcast %cst_161 : f32 to vector<2x16xf32>
    %498 = arith.addf %497, %496 : vector<2x16xf32>
    %499 = arith.divf %497, %498 : vector<2x16xf32>
    %500 = vector.extract_strided_slice %493 {offsets = [0, 16], sizes = [2, 16], strides = [1, 1]} : vector<2x64xf32> to vector<2x16xf32>
    %501 = arith.negf %500 : vector<2x16xf32>
    %502 = math.exp %501 : vector<2x16xf32>
    %cst_162 = arith.constant 1.000000e+00 : f32
    %503 = vector.broadcast %cst_162 : f32 to vector<2x16xf32>
    %504 = arith.addf %503, %502 : vector<2x16xf32>
    %505 = arith.divf %503, %504 : vector<2x16xf32>
    %506 = vector.extract_strided_slice %493 {offsets = [0, 32], sizes = [2, 16], strides = [1, 1]} : vector<2x64xf32> to vector<2x16xf32>
    %507 = math.tanh %506 : vector<2x16xf32>
    %508 = vector.extract_strided_slice %493 {offsets = [0, 48], sizes = [2, 16], strides = [1, 1]} : vector<2x64xf32> to vector<2x16xf32>
    %509 = arith.negf %508 : vector<2x16xf32>
    %510 = math.exp %509 : vector<2x16xf32>
    %cst_163 = arith.constant 1.000000e+00 : f32
    %511 = vector.broadcast %cst_163 : f32 to vector<2x16xf32>
    %512 = arith.addf %511, %510 : vector<2x16xf32>
    %513 = arith.divf %511, %512 : vector<2x16xf32>
    %514 = arith.mulf %505, %382 : vector<2x16xf32>
    %515 = arith.mulf %499, %507 : vector<2x16xf32>
    %516 = arith.addf %514, %515 : vector<2x16xf32>
    %517 = math.tanh %516 : vector<2x16xf32>
    %518 = arith.mulf %513, %517 : vector<2x16xf32>
    %519 = vector.shape_cast %518 : vector<2x16xf32> to vector<2x1x16xf32>
    %c0_164 = arith.constant 0 : index
    %520 = arith.index_cast %c3_i32 : i32 to index
    %c0_165 = arith.constant 0 : index
    %521 = vector.load %arg35[%c0_164, %520, %c0_165] : memref<2x8x16xf32, #tpu.memory_space<vmem>>, vector<2x1x16xf32>
    tpu.vector_store %arg35[%c0_164, %520, %c0_165], %519 {strides = array<i32>} : memref<2x8x16xf32, #tpu.memory_space<vmem>>, vector<2x1x16xf32>,
    %c7_i32_166 = arith.constant 7 : i32
    %522 = arith.subi %c7_i32_166, %c3_i32 : i32
    %c0_167 = arith.constant 0 : index
    %523 = arith.index_cast %522 : i32 to index
    %c0_168 = arith.constant 0 : index
    %524 = vector.load %arg32[%c0_167, %523, %c0_168] : memref<2x8x64xf32, #tpu.memory_space<vmem>>, vector<2x1x64xf32>
    %525 = vector.shape_cast %524 : vector<2x1x64xf32> to vector<2x64xf32>
    %cst_169 = arith.constant dense<0.000000e+00> : vector<2x64xf32>
    %526 = tpu.matmul %418, %45, %cst_169 {dimension_numbers = #tpu.dot_dimension_numbers<[1], [0], [0], [1], [0, 0, 1, 1], [], []>} : vector<2x16xf32>, vector<16x64xf32>, vector<2x64xf32> -> vector<2x64xf32>
    %527 = arith.addf %525, %526 : vector<2x64xf32>
    %528 = vector.extract_strided_slice %527 {offsets = [0, 0], sizes = [2, 16], strides = [1, 1]} : vector<2x64xf32> to vector<2x16xf32>
    %529 = arith.negf %528 : vector<2x16xf32>
    %530 = math.exp %529 : vector<2x16xf32>
    %cst_170 = arith.constant 1.000000e+00 : f32
    %531 = vector.broadcast %cst_170 : f32 to vector<2x16xf32>
    %532 = arith.addf %531, %530 : vector<2x16xf32>
    %533 = arith.divf %531, %532 : vector<2x16xf32>
    %534 = vector.extract_strided_slice %527 {offsets = [0, 16], sizes = [2, 16], strides = [1, 1]} : vector<2x64xf32> to vector<2x16xf32>
    %535 = arith.negf %534 : vector<2x16xf32>
    %536 = math.exp %535 : vector<2x16xf32>
    %cst_171 = arith.constant 1.000000e+00 : f32
    %537 = vector.broadcast %cst_171 : f32 to vector<2x16xf32>
    %538 = arith.addf %537, %536 : vector<2x16xf32>
    %539 = arith.divf %537, %538 : vector<2x16xf32>
    %540 = vector.extract_strided_slice %527 {offsets = [0, 32], sizes = [2, 16], strides = [1, 1]} : vector<2x64xf32> to vector<2x16xf32>
    %541 = math.tanh %540 : vector<2x16xf32>
    %542 = vector.extract_strided_slice %527 {offsets = [0, 48], sizes = [2, 16], strides = [1, 1]} : vector<2x64xf32> to vector<2x16xf32>
    %543 = arith.negf %542 : vector<2x16xf32>
    %544 = math.exp %543 : vector<2x16xf32>
    %cst_172 = arith.constant 1.000000e+00 : f32
    %545 = vector.broadcast %cst_172 : f32 to vector<2x16xf32>
    %546 = arith.addf %545, %544 : vector<2x16xf32>
    %547 = arith.divf %545, %546 : vector<2x16xf32>
    %548 = arith.mulf %539, %416 : vector<2x16xf32>
    %549 = arith.mulf %533, %541 : vector<2x16xf32>
    %550 = arith.addf %548, %549 : vector<2x16xf32>
    %551 = math.tanh %550 : vector<2x16xf32>
    %552 = arith.mulf %547, %551 : vector<2x16xf32>
    %553 = vector.shape_cast %552 : vector<2x16xf32> to vector<2x1x16xf32>
    %c0_173 = arith.constant 0 : index
    %554 = arith.index_cast %522 : i32 to index
    %c0_174 = arith.constant 0 : index
    %555 = vector.load %arg36[%c0_173, %554, %c0_174] : memref<2x8x16xf32, #tpu.memory_space<vmem>>, vector<2x1x16xf32>
    tpu.vector_store %arg36[%c0_173, %554, %c0_174], %553 {strides = array<i32>} : memref<2x8x16xf32, #tpu.memory_space<vmem>>, vector<2x1x16xf32>,
    %c0_175 = arith.constant 0 : index
    %556 = arith.index_cast %c3_i32 : i32 to index
    %c0_176 = arith.constant 0 : index
    %557 = vector.load %arg33[%c0_175, %556, %c0_176] : memref<2x8x64xf32, #tpu.memory_space<vmem>>, vector<2x1x64xf32>
    %558 = vector.shape_cast %557 : vector<2x1x64xf32> to vector<2x64xf32>
    %cst_177 = arith.constant dense<0.000000e+00> : vector<2x64xf32>
    %559 = tpu.matmul %451, %47, %cst_177 {dimension_numbers = #tpu.dot_dimension_numbers<[1], [0], [0], [1], [0, 0, 1, 1], [], []>} : vector<2x16xf32>, vector<16x64xf32>, vector<2x64xf32> -> vector<2x64xf32>
    %560 = arith.addf %558, %559 : vector<2x64xf32>
    %561 = vector.extract_strided_slice %560 {offsets = [0, 0], sizes = [2, 16], strides = [1, 1]} : vector<2x64xf32> to vector<2x16xf32>
    %562 = arith.negf %561 : vector<2x16xf32>
    %563 = math.exp %562 : vector<2x16xf32>
    %cst_178 = arith.constant 1.000000e+00 : f32
    %564 = vector.broadcast %cst_178 : f32 to vector<2x16xf32>
    %565 = arith.addf %564, %563 : vector<2x16xf32>
    %566 = arith.divf %564, %565 : vector<2x16xf32>
    %567 = vector.extract_strided_slice %560 {offsets = [0, 16], sizes = [2, 16], strides = [1, 1]} : vector<2x64xf32> to vector<2x16xf32>
    %568 = arith.negf %567 : vector<2x16xf32>
    %569 = math.exp %568 : vector<2x16xf32>
    %cst_179 = arith.constant 1.000000e+00 : f32
    %570 = vector.broadcast %cst_179 : f32 to vector<2x16xf32>
    %571 = arith.addf %570, %569 : vector<2x16xf32>
    %572 = arith.divf %570, %571 : vector<2x16xf32>
    %573 = vector.extract_strided_slice %560 {offsets = [0, 32], sizes = [2, 16], strides = [1, 1]} : vector<2x64xf32> to vector<2x16xf32>
    %574 = math.tanh %573 : vector<2x16xf32>
    %575 = vector.extract_strided_slice %560 {offsets = [0, 48], sizes = [2, 16], strides = [1, 1]} : vector<2x64xf32> to vector<2x16xf32>
    %576 = arith.negf %575 : vector<2x16xf32>
    %577 = math.exp %576 : vector<2x16xf32>
    %cst_180 = arith.constant 1.000000e+00 : f32
    %578 = vector.broadcast %cst_180 : f32 to vector<2x16xf32>
    %579 = arith.addf %578, %577 : vector<2x16xf32>
    %580 = arith.divf %578, %579 : vector<2x16xf32>
    %581 = arith.mulf %572, %449 : vector<2x16xf32>
    %582 = arith.mulf %566, %574 : vector<2x16xf32>
    %583 = arith.addf %581, %582 : vector<2x16xf32>
    %584 = math.tanh %583 : vector<2x16xf32>
    %585 = arith.mulf %580, %584 : vector<2x16xf32>
    %586 = vector.shape_cast %585 : vector<2x16xf32> to vector<2x1x16xf32>
    %c0_181 = arith.constant 0 : index
    %587 = arith.index_cast %c3_i32 : i32 to index
    %c0_182 = arith.constant 0 : index
    %588 = vector.load %arg37[%c0_181, %587, %c0_182] : memref<2x8x16xf32, #tpu.memory_space<vmem>>, vector<2x1x16xf32>
    tpu.vector_store %arg37[%c0_181, %587, %c0_182], %586 {strides = array<i32>} : memref<2x8x16xf32, #tpu.memory_space<vmem>>, vector<2x1x16xf32>,
    %c7_i32_183 = arith.constant 7 : i32
    %589 = arith.subi %c7_i32_183, %c3_i32 : i32
    %c0_184 = arith.constant 0 : index
    %590 = arith.index_cast %589 : i32 to index
    %c0_185 = arith.constant 0 : index
    %591 = vector.load %arg34[%c0_184, %590, %c0_185] : memref<2x8x64xf32, #tpu.memory_space<vmem>>, vector<2x1x64xf32>
    %592 = vector.shape_cast %591 : vector<2x1x64xf32> to vector<2x64xf32>
    %cst_186 = arith.constant dense<0.000000e+00> : vector<2x64xf32>
    %593 = tpu.matmul %485, %49, %cst_186 {dimension_numbers = #tpu.dot_dimension_numbers<[1], [0], [0], [1], [0, 0, 1, 1], [], []>} : vector<2x16xf32>, vector<16x64xf32>, vector<2x64xf32> -> vector<2x64xf32>
    %594 = arith.addf %592, %593 : vector<2x64xf32>
    %595 = vector.extract_strided_slice %594 {offsets = [0, 0], sizes = [2, 16], strides = [1, 1]} : vector<2x64xf32> to vector<2x16xf32>
    %596 = arith.negf %595 : vector<2x16xf32>
    %597 = math.exp %596 : vector<2x16xf32>
    %cst_187 = arith.constant 1.000000e+00 : f32
    %598 = vector.broadcast %cst_187 : f32 to vector<2x16xf32>
    %599 = arith.addf %598, %597 : vector<2x16xf32>
    %600 = arith.divf %598, %599 : vector<2x16xf32>
    %601 = vector.extract_strided_slice %594 {offsets = [0, 16], sizes = [2, 16], strides = [1, 1]} : vector<2x64xf32> to vector<2x16xf32>
    %602 = arith.negf %601 : vector<2x16xf32>
    %603 = math.exp %602 : vector<2x16xf32>
    %cst_188 = arith.constant 1.000000e+00 : f32
    %604 = vector.broadcast %cst_188 : f32 to vector<2x16xf32>
    %605 = arith.addf %604, %603 : vector<2x16xf32>
    %606 = arith.divf %604, %605 : vector<2x16xf32>
    %607 = vector.extract_strided_slice %594 {offsets = [0, 32], sizes = [2, 16], strides = [1, 1]} : vector<2x64xf32> to vector<2x16xf32>
    %608 = math.tanh %607 : vector<2x16xf32>
    %609 = vector.extract_strided_slice %594 {offsets = [0, 48], sizes = [2, 16], strides = [1, 1]} : vector<2x64xf32> to vector<2x16xf32>
    %610 = arith.negf %609 : vector<2x16xf32>
    %611 = math.exp %610 : vector<2x16xf32>
    %cst_189 = arith.constant 1.000000e+00 : f32
    %612 = vector.broadcast %cst_189 : f32 to vector<2x16xf32>
    %613 = arith.addf %612, %611 : vector<2x16xf32>
    %614 = arith.divf %612, %613 : vector<2x16xf32>
    %615 = arith.mulf %606, %483 : vector<2x16xf32>
    %616 = arith.mulf %600, %608 : vector<2x16xf32>
    %617 = arith.addf %615, %616 : vector<2x16xf32>
    %618 = math.tanh %617 : vector<2x16xf32>
    %619 = arith.mulf %614, %618 : vector<2x16xf32>
    %620 = vector.shape_cast %619 : vector<2x16xf32> to vector<2x1x16xf32>
    %c0_190 = arith.constant 0 : index
    %621 = arith.index_cast %589 : i32 to index
    %c0_191 = arith.constant 0 : index
    %622 = vector.load %arg38[%c0_190, %621, %c0_191] : memref<2x8x16xf32, #tpu.memory_space<vmem>>, vector<2x1x16xf32>
    tpu.vector_store %arg38[%c0_190, %621, %c0_191], %620 {strides = array<i32>} : memref<2x8x16xf32, #tpu.memory_space<vmem>>, vector<2x1x16xf32>,
    %c4_i32 = arith.constant 4 : i32
    %c0_192 = arith.constant 0 : index
    %623 = arith.index_cast %c4_i32 : i32 to index
    %c0_193 = arith.constant 0 : index
    %624 = vector.load %arg31[%c0_192, %623, %c0_193] : memref<2x8x64xf32, #tpu.memory_space<vmem>>, vector<2x1x64xf32>
    %625 = vector.shape_cast %624 : vector<2x1x64xf32> to vector<2x64xf32>
    %cst_194 = arith.constant dense<0.000000e+00> : vector<2x64xf32>
    %626 = tpu.matmul %518, %43, %cst_194 {dimension_numbers = #tpu.dot_dimension_numbers<[1], [0], [0], [1], [0, 0, 1, 1], [], []>} : vector<2x16xf32>, vector<16x64xf32>, vector<2x64xf32> -> vector<2x64xf32>
    %627 = arith.addf %625, %626 : vector<2x64xf32>
    %628 = vector.extract_strided_slice %627 {offsets = [0, 0], sizes = [2, 16], strides = [1, 1]} : vector<2x64xf32> to vector<2x16xf32>
    %629 = arith.negf %628 : vector<2x16xf32>
    %630 = math.exp %629 : vector<2x16xf32>
    %cst_195 = arith.constant 1.000000e+00 : f32
    %631 = vector.broadcast %cst_195 : f32 to vector<2x16xf32>
    %632 = arith.addf %631, %630 : vector<2x16xf32>
    %633 = arith.divf %631, %632 : vector<2x16xf32>
    %634 = vector.extract_strided_slice %627 {offsets = [0, 16], sizes = [2, 16], strides = [1, 1]} : vector<2x64xf32> to vector<2x16xf32>
    %635 = arith.negf %634 : vector<2x16xf32>
    %636 = math.exp %635 : vector<2x16xf32>
    %cst_196 = arith.constant 1.000000e+00 : f32
    %637 = vector.broadcast %cst_196 : f32 to vector<2x16xf32>
    %638 = arith.addf %637, %636 : vector<2x16xf32>
    %639 = arith.divf %637, %638 : vector<2x16xf32>
    %640 = vector.extract_strided_slice %627 {offsets = [0, 32], sizes = [2, 16], strides = [1, 1]} : vector<2x64xf32> to vector<2x16xf32>
    %641 = math.tanh %640 : vector<2x16xf32>
    %642 = vector.extract_strided_slice %627 {offsets = [0, 48], sizes = [2, 16], strides = [1, 1]} : vector<2x64xf32> to vector<2x16xf32>
    %643 = arith.negf %642 : vector<2x16xf32>
    %644 = math.exp %643 : vector<2x16xf32>
    %cst_197 = arith.constant 1.000000e+00 : f32
    %645 = vector.broadcast %cst_197 : f32 to vector<2x16xf32>
    %646 = arith.addf %645, %644 : vector<2x16xf32>
    %647 = arith.divf %645, %646 : vector<2x16xf32>
    %648 = arith.mulf %639, %516 : vector<2x16xf32>
    %649 = arith.mulf %633, %641 : vector<2x16xf32>
    %650 = arith.addf %648, %649 : vector<2x16xf32>
    %651 = math.tanh %650 : vector<2x16xf32>
    %652 = arith.mulf %647, %651 : vector<2x16xf32>
    %653 = vector.shape_cast %652 : vector<2x16xf32> to vector<2x1x16xf32>
    %c0_198 = arith.constant 0 : index
    %654 = arith.index_cast %c4_i32 : i32 to index
    %c0_199 = arith.constant 0 : index
    %655 = vector.load %arg35[%c0_198, %654, %c0_199] : memref<2x8x16xf32, #tpu.memory_space<vmem>>, vector<2x1x16xf32>
    tpu.vector_store %arg35[%c0_198, %654, %c0_199], %653 {strides = array<i32>} : memref<2x8x16xf32, #tpu.memory_space<vmem>>, vector<2x1x16xf32>,
    %c7_i32_200 = arith.constant 7 : i32
    %656 = arith.subi %c7_i32_200, %c4_i32 : i32
    %c0_201 = arith.constant 0 : index
    %657 = arith.index_cast %656 : i32 to index
    %c0_202 = arith.constant 0 : index
    %658 = vector.load %arg32[%c0_201, %657, %c0_202] : memref<2x8x64xf32, #tpu.memory_space<vmem>>, vector<2x1x64xf32>
    %659 = vector.shape_cast %658 : vector<2x1x64xf32> to vector<2x64xf32>
    %cst_203 = arith.constant dense<0.000000e+00> : vector<2x64xf32>
    %660 = tpu.matmul %552, %45, %cst_203 {dimension_numbers = #tpu.dot_dimension_numbers<[1], [0], [0], [1], [0, 0, 1, 1], [], []>} : vector<2x16xf32>, vector<16x64xf32>, vector<2x64xf32> -> vector<2x64xf32>
    %661 = arith.addf %659, %660 : vector<2x64xf32>
    %662 = vector.extract_strided_slice %661 {offsets = [0, 0], sizes = [2, 16], strides = [1, 1]} : vector<2x64xf32> to vector<2x16xf32>
    %663 = arith.negf %662 : vector<2x16xf32>
    %664 = math.exp %663 : vector<2x16xf32>
    %cst_204 = arith.constant 1.000000e+00 : f32
    %665 = vector.broadcast %cst_204 : f32 to vector<2x16xf32>
    %666 = arith.addf %665, %664 : vector<2x16xf32>
    %667 = arith.divf %665, %666 : vector<2x16xf32>
    %668 = vector.extract_strided_slice %661 {offsets = [0, 16], sizes = [2, 16], strides = [1, 1]} : vector<2x64xf32> to vector<2x16xf32>
    %669 = arith.negf %668 : vector<2x16xf32>
    %670 = math.exp %669 : vector<2x16xf32>
    %cst_205 = arith.constant 1.000000e+00 : f32
    %671 = vector.broadcast %cst_205 : f32 to vector<2x16xf32>
    %672 = arith.addf %671, %670 : vector<2x16xf32>
    %673 = arith.divf %671, %672 : vector<2x16xf32>
    %674 = vector.extract_strided_slice %661 {offsets = [0, 32], sizes = [2, 16], strides = [1, 1]} : vector<2x64xf32> to vector<2x16xf32>
    %675 = math.tanh %674 : vector<2x16xf32>
    %676 = vector.extract_strided_slice %661 {offsets = [0, 48], sizes = [2, 16], strides = [1, 1]} : vector<2x64xf32> to vector<2x16xf32>
    %677 = arith.negf %676 : vector<2x16xf32>
    %678 = math.exp %677 : vector<2x16xf32>
    %cst_206 = arith.constant 1.000000e+00 : f32
    %679 = vector.broadcast %cst_206 : f32 to vector<2x16xf32>
    %680 = arith.addf %679, %678 : vector<2x16xf32>
    %681 = arith.divf %679, %680 : vector<2x16xf32>
    %682 = arith.mulf %673, %550 : vector<2x16xf32>
    %683 = arith.mulf %667, %675 : vector<2x16xf32>
    %684 = arith.addf %682, %683 : vector<2x16xf32>
    %685 = math.tanh %684 : vector<2x16xf32>
    %686 = arith.mulf %681, %685 : vector<2x16xf32>
    %687 = vector.shape_cast %686 : vector<2x16xf32> to vector<2x1x16xf32>
    %c0_207 = arith.constant 0 : index
    %688 = arith.index_cast %656 : i32 to index
    %c0_208 = arith.constant 0 : index
    %689 = vector.load %arg36[%c0_207, %688, %c0_208] : memref<2x8x16xf32, #tpu.memory_space<vmem>>, vector<2x1x16xf32>
    tpu.vector_store %arg36[%c0_207, %688, %c0_208], %687 {strides = array<i32>} : memref<2x8x16xf32, #tpu.memory_space<vmem>>, vector<2x1x16xf32>,
    %c0_209 = arith.constant 0 : index
    %690 = arith.index_cast %c4_i32 : i32 to index
    %c0_210 = arith.constant 0 : index
    %691 = vector.load %arg33[%c0_209, %690, %c0_210] : memref<2x8x64xf32, #tpu.memory_space<vmem>>, vector<2x1x64xf32>
    %692 = vector.shape_cast %691 : vector<2x1x64xf32> to vector<2x64xf32>
    %cst_211 = arith.constant dense<0.000000e+00> : vector<2x64xf32>
    %693 = tpu.matmul %585, %47, %cst_211 {dimension_numbers = #tpu.dot_dimension_numbers<[1], [0], [0], [1], [0, 0, 1, 1], [], []>} : vector<2x16xf32>, vector<16x64xf32>, vector<2x64xf32> -> vector<2x64xf32>
    %694 = arith.addf %692, %693 : vector<2x64xf32>
    %695 = vector.extract_strided_slice %694 {offsets = [0, 0], sizes = [2, 16], strides = [1, 1]} : vector<2x64xf32> to vector<2x16xf32>
    %696 = arith.negf %695 : vector<2x16xf32>
    %697 = math.exp %696 : vector<2x16xf32>
    %cst_212 = arith.constant 1.000000e+00 : f32
    %698 = vector.broadcast %cst_212 : f32 to vector<2x16xf32>
    %699 = arith.addf %698, %697 : vector<2x16xf32>
    %700 = arith.divf %698, %699 : vector<2x16xf32>
    %701 = vector.extract_strided_slice %694 {offsets = [0, 16], sizes = [2, 16], strides = [1, 1]} : vector<2x64xf32> to vector<2x16xf32>
    %702 = arith.negf %701 : vector<2x16xf32>
    %703 = math.exp %702 : vector<2x16xf32>
    %cst_213 = arith.constant 1.000000e+00 : f32
    %704 = vector.broadcast %cst_213 : f32 to vector<2x16xf32>
    %705 = arith.addf %704, %703 : vector<2x16xf32>
    %706 = arith.divf %704, %705 : vector<2x16xf32>
    %707 = vector.extract_strided_slice %694 {offsets = [0, 32], sizes = [2, 16], strides = [1, 1]} : vector<2x64xf32> to vector<2x16xf32>
    %708 = math.tanh %707 : vector<2x16xf32>
    %709 = vector.extract_strided_slice %694 {offsets = [0, 48], sizes = [2, 16], strides = [1, 1]} : vector<2x64xf32> to vector<2x16xf32>
    %710 = arith.negf %709 : vector<2x16xf32>
    %711 = math.exp %710 : vector<2x16xf32>
    %cst_214 = arith.constant 1.000000e+00 : f32
    %712 = vector.broadcast %cst_214 : f32 to vector<2x16xf32>
    %713 = arith.addf %712, %711 : vector<2x16xf32>
    %714 = arith.divf %712, %713 : vector<2x16xf32>
    %715 = arith.mulf %706, %583 : vector<2x16xf32>
    %716 = arith.mulf %700, %708 : vector<2x16xf32>
    %717 = arith.addf %715, %716 : vector<2x16xf32>
    %718 = math.tanh %717 : vector<2x16xf32>
    %719 = arith.mulf %714, %718 : vector<2x16xf32>
    %720 = vector.shape_cast %719 : vector<2x16xf32> to vector<2x1x16xf32>
    %c0_215 = arith.constant 0 : index
    %721 = arith.index_cast %c4_i32 : i32 to index
    %c0_216 = arith.constant 0 : index
    %722 = vector.load %arg37[%c0_215, %721, %c0_216] : memref<2x8x16xf32, #tpu.memory_space<vmem>>, vector<2x1x16xf32>
    tpu.vector_store %arg37[%c0_215, %721, %c0_216], %720 {strides = array<i32>} : memref<2x8x16xf32, #tpu.memory_space<vmem>>, vector<2x1x16xf32>,
    %c7_i32_217 = arith.constant 7 : i32
    %723 = arith.subi %c7_i32_217, %c4_i32 : i32
    %c0_218 = arith.constant 0 : index
    %724 = arith.index_cast %723 : i32 to index
    %c0_219 = arith.constant 0 : index
    %725 = vector.load %arg34[%c0_218, %724, %c0_219] : memref<2x8x64xf32, #tpu.memory_space<vmem>>, vector<2x1x64xf32>
    %726 = vector.shape_cast %725 : vector<2x1x64xf32> to vector<2x64xf32>
    %cst_220 = arith.constant dense<0.000000e+00> : vector<2x64xf32>
    %727 = tpu.matmul %619, %49, %cst_220 {dimension_numbers = #tpu.dot_dimension_numbers<[1], [0], [0], [1], [0, 0, 1, 1], [], []>} : vector<2x16xf32>, vector<16x64xf32>, vector<2x64xf32> -> vector<2x64xf32>
    %728 = arith.addf %726, %727 : vector<2x64xf32>
    %729 = vector.extract_strided_slice %728 {offsets = [0, 0], sizes = [2, 16], strides = [1, 1]} : vector<2x64xf32> to vector<2x16xf32>
    %730 = arith.negf %729 : vector<2x16xf32>
    %731 = math.exp %730 : vector<2x16xf32>
    %cst_221 = arith.constant 1.000000e+00 : f32
    %732 = vector.broadcast %cst_221 : f32 to vector<2x16xf32>
    %733 = arith.addf %732, %731 : vector<2x16xf32>
    %734 = arith.divf %732, %733 : vector<2x16xf32>
    %735 = vector.extract_strided_slice %728 {offsets = [0, 16], sizes = [2, 16], strides = [1, 1]} : vector<2x64xf32> to vector<2x16xf32>
    %736 = arith.negf %735 : vector<2x16xf32>
    %737 = math.exp %736 : vector<2x16xf32>
    %cst_222 = arith.constant 1.000000e+00 : f32
    %738 = vector.broadcast %cst_222 : f32 to vector<2x16xf32>
    %739 = arith.addf %738, %737 : vector<2x16xf32>
    %740 = arith.divf %738, %739 : vector<2x16xf32>
    %741 = vector.extract_strided_slice %728 {offsets = [0, 32], sizes = [2, 16], strides = [1, 1]} : vector<2x64xf32> to vector<2x16xf32>
    %742 = math.tanh %741 : vector<2x16xf32>
    %743 = vector.extract_strided_slice %728 {offsets = [0, 48], sizes = [2, 16], strides = [1, 1]} : vector<2x64xf32> to vector<2x16xf32>
    %744 = arith.negf %743 : vector<2x16xf32>
    %745 = math.exp %744 : vector<2x16xf32>
    %cst_223 = arith.constant 1.000000e+00 : f32
    %746 = vector.broadcast %cst_223 : f32 to vector<2x16xf32>
    %747 = arith.addf %746, %745 : vector<2x16xf32>
    %748 = arith.divf %746, %747 : vector<2x16xf32>
    %749 = arith.mulf %740, %617 : vector<2x16xf32>
    %750 = arith.mulf %734, %742 : vector<2x16xf32>
    %751 = arith.addf %749, %750 : vector<2x16xf32>
    %752 = math.tanh %751 : vector<2x16xf32>
    %753 = arith.mulf %748, %752 : vector<2x16xf32>
    %754 = vector.shape_cast %753 : vector<2x16xf32> to vector<2x1x16xf32>
    %c0_224 = arith.constant 0 : index
    %755 = arith.index_cast %723 : i32 to index
    %c0_225 = arith.constant 0 : index
    %756 = vector.load %arg38[%c0_224, %755, %c0_225] : memref<2x8x16xf32, #tpu.memory_space<vmem>>, vector<2x1x16xf32>
    tpu.vector_store %arg38[%c0_224, %755, %c0_225], %754 {strides = array<i32>} : memref<2x8x16xf32, #tpu.memory_space<vmem>>, vector<2x1x16xf32>,
    %c5_i32 = arith.constant 5 : i32
    %c0_226 = arith.constant 0 : index
    %757 = arith.index_cast %c5_i32 : i32 to index
    %c0_227 = arith.constant 0 : index
    %758 = vector.load %arg31[%c0_226, %757, %c0_227] : memref<2x8x64xf32, #tpu.memory_space<vmem>>, vector<2x1x64xf32>
    %759 = vector.shape_cast %758 : vector<2x1x64xf32> to vector<2x64xf32>
    %cst_228 = arith.constant dense<0.000000e+00> : vector<2x64xf32>
    %760 = tpu.matmul %652, %43, %cst_228 {dimension_numbers = #tpu.dot_dimension_numbers<[1], [0], [0], [1], [0, 0, 1, 1], [], []>} : vector<2x16xf32>, vector<16x64xf32>, vector<2x64xf32> -> vector<2x64xf32>
    %761 = arith.addf %759, %760 : vector<2x64xf32>
    %762 = vector.extract_strided_slice %761 {offsets = [0, 0], sizes = [2, 16], strides = [1, 1]} : vector<2x64xf32> to vector<2x16xf32>
    %763 = arith.negf %762 : vector<2x16xf32>
    %764 = math.exp %763 : vector<2x16xf32>
    %cst_229 = arith.constant 1.000000e+00 : f32
    %765 = vector.broadcast %cst_229 : f32 to vector<2x16xf32>
    %766 = arith.addf %765, %764 : vector<2x16xf32>
    %767 = arith.divf %765, %766 : vector<2x16xf32>
    %768 = vector.extract_strided_slice %761 {offsets = [0, 16], sizes = [2, 16], strides = [1, 1]} : vector<2x64xf32> to vector<2x16xf32>
    %769 = arith.negf %768 : vector<2x16xf32>
    %770 = math.exp %769 : vector<2x16xf32>
    %cst_230 = arith.constant 1.000000e+00 : f32
    %771 = vector.broadcast %cst_230 : f32 to vector<2x16xf32>
    %772 = arith.addf %771, %770 : vector<2x16xf32>
    %773 = arith.divf %771, %772 : vector<2x16xf32>
    %774 = vector.extract_strided_slice %761 {offsets = [0, 32], sizes = [2, 16], strides = [1, 1]} : vector<2x64xf32> to vector<2x16xf32>
    %775 = math.tanh %774 : vector<2x16xf32>
    %776 = vector.extract_strided_slice %761 {offsets = [0, 48], sizes = [2, 16], strides = [1, 1]} : vector<2x64xf32> to vector<2x16xf32>
    %777 = arith.negf %776 : vector<2x16xf32>
    %778 = math.exp %777 : vector<2x16xf32>
    %cst_231 = arith.constant 1.000000e+00 : f32
    %779 = vector.broadcast %cst_231 : f32 to vector<2x16xf32>
    %780 = arith.addf %779, %778 : vector<2x16xf32>
    %781 = arith.divf %779, %780 : vector<2x16xf32>
    %782 = arith.mulf %773, %650 : vector<2x16xf32>
    %783 = arith.mulf %767, %775 : vector<2x16xf32>
    %784 = arith.addf %782, %783 : vector<2x16xf32>
    %785 = math.tanh %784 : vector<2x16xf32>
    %786 = arith.mulf %781, %785 : vector<2x16xf32>
    %787 = vector.shape_cast %786 : vector<2x16xf32> to vector<2x1x16xf32>
    %c0_232 = arith.constant 0 : index
    %788 = arith.index_cast %c5_i32 : i32 to index
    %c0_233 = arith.constant 0 : index
    %789 = vector.load %arg35[%c0_232, %788, %c0_233] : memref<2x8x16xf32, #tpu.memory_space<vmem>>, vector<2x1x16xf32>
    tpu.vector_store %arg35[%c0_232, %788, %c0_233], %787 {strides = array<i32>} : memref<2x8x16xf32, #tpu.memory_space<vmem>>, vector<2x1x16xf32>,
    %c7_i32_234 = arith.constant 7 : i32
    %790 = arith.subi %c7_i32_234, %c5_i32 : i32
    %c0_235 = arith.constant 0 : index
    %791 = arith.index_cast %790 : i32 to index
    %c0_236 = arith.constant 0 : index
    %792 = vector.load %arg32[%c0_235, %791, %c0_236] : memref<2x8x64xf32, #tpu.memory_space<vmem>>, vector<2x1x64xf32>
    %793 = vector.shape_cast %792 : vector<2x1x64xf32> to vector<2x64xf32>
    %cst_237 = arith.constant dense<0.000000e+00> : vector<2x64xf32>
    %794 = tpu.matmul %686, %45, %cst_237 {dimension_numbers = #tpu.dot_dimension_numbers<[1], [0], [0], [1], [0, 0, 1, 1], [], []>} : vector<2x16xf32>, vector<16x64xf32>, vector<2x64xf32> -> vector<2x64xf32>
    %795 = arith.addf %793, %794 : vector<2x64xf32>
    %796 = vector.extract_strided_slice %795 {offsets = [0, 0], sizes = [2, 16], strides = [1, 1]} : vector<2x64xf32> to vector<2x16xf32>
    %797 = arith.negf %796 : vector<2x16xf32>
    %798 = math.exp %797 : vector<2x16xf32>
    %cst_238 = arith.constant 1.000000e+00 : f32
    %799 = vector.broadcast %cst_238 : f32 to vector<2x16xf32>
    %800 = arith.addf %799, %798 : vector<2x16xf32>
    %801 = arith.divf %799, %800 : vector<2x16xf32>
    %802 = vector.extract_strided_slice %795 {offsets = [0, 16], sizes = [2, 16], strides = [1, 1]} : vector<2x64xf32> to vector<2x16xf32>
    %803 = arith.negf %802 : vector<2x16xf32>
    %804 = math.exp %803 : vector<2x16xf32>
    %cst_239 = arith.constant 1.000000e+00 : f32
    %805 = vector.broadcast %cst_239 : f32 to vector<2x16xf32>
    %806 = arith.addf %805, %804 : vector<2x16xf32>
    %807 = arith.divf %805, %806 : vector<2x16xf32>
    %808 = vector.extract_strided_slice %795 {offsets = [0, 32], sizes = [2, 16], strides = [1, 1]} : vector<2x64xf32> to vector<2x16xf32>
    %809 = math.tanh %808 : vector<2x16xf32>
    %810 = vector.extract_strided_slice %795 {offsets = [0, 48], sizes = [2, 16], strides = [1, 1]} : vector<2x64xf32> to vector<2x16xf32>
    %811 = arith.negf %810 : vector<2x16xf32>
    %812 = math.exp %811 : vector<2x16xf32>
    %cst_240 = arith.constant 1.000000e+00 : f32
    %813 = vector.broadcast %cst_240 : f32 to vector<2x16xf32>
    %814 = arith.addf %813, %812 : vector<2x16xf32>
    %815 = arith.divf %813, %814 : vector<2x16xf32>
    %816 = arith.mulf %807, %684 : vector<2x16xf32>
    %817 = arith.mulf %801, %809 : vector<2x16xf32>
    %818 = arith.addf %816, %817 : vector<2x16xf32>
    %819 = math.tanh %818 : vector<2x16xf32>
    %820 = arith.mulf %815, %819 : vector<2x16xf32>
    %821 = vector.shape_cast %820 : vector<2x16xf32> to vector<2x1x16xf32>
    %c0_241 = arith.constant 0 : index
    %822 = arith.index_cast %790 : i32 to index
    %c0_242 = arith.constant 0 : index
    %823 = vector.load %arg36[%c0_241, %822, %c0_242] : memref<2x8x16xf32, #tpu.memory_space<vmem>>, vector<2x1x16xf32>
    tpu.vector_store %arg36[%c0_241, %822, %c0_242], %821 {strides = array<i32>} : memref<2x8x16xf32, #tpu.memory_space<vmem>>, vector<2x1x16xf32>,
    %c0_243 = arith.constant 0 : index
    %824 = arith.index_cast %c5_i32 : i32 to index
    %c0_244 = arith.constant 0 : index
    %825 = vector.load %arg33[%c0_243, %824, %c0_244] : memref<2x8x64xf32, #tpu.memory_space<vmem>>, vector<2x1x64xf32>
    %826 = vector.shape_cast %825 : vector<2x1x64xf32> to vector<2x64xf32>
    %cst_245 = arith.constant dense<0.000000e+00> : vector<2x64xf32>
    %827 = tpu.matmul %719, %47, %cst_245 {dimension_numbers = #tpu.dot_dimension_numbers<[1], [0], [0], [1], [0, 0, 1, 1], [], []>} : vector<2x16xf32>, vector<16x64xf32>, vector<2x64xf32> -> vector<2x64xf32>
    %828 = arith.addf %826, %827 : vector<2x64xf32>
    %829 = vector.extract_strided_slice %828 {offsets = [0, 0], sizes = [2, 16], strides = [1, 1]} : vector<2x64xf32> to vector<2x16xf32>
    %830 = arith.negf %829 : vector<2x16xf32>
    %831 = math.exp %830 : vector<2x16xf32>
    %cst_246 = arith.constant 1.000000e+00 : f32
    %832 = vector.broadcast %cst_246 : f32 to vector<2x16xf32>
    %833 = arith.addf %832, %831 : vector<2x16xf32>
    %834 = arith.divf %832, %833 : vector<2x16xf32>
    %835 = vector.extract_strided_slice %828 {offsets = [0, 16], sizes = [2, 16], strides = [1, 1]} : vector<2x64xf32> to vector<2x16xf32>
    %836 = arith.negf %835 : vector<2x16xf32>
    %837 = math.exp %836 : vector<2x16xf32>
    %cst_247 = arith.constant 1.000000e+00 : f32
    %838 = vector.broadcast %cst_247 : f32 to vector<2x16xf32>
    %839 = arith.addf %838, %837 : vector<2x16xf32>
    %840 = arith.divf %838, %839 : vector<2x16xf32>
    %841 = vector.extract_strided_slice %828 {offsets = [0, 32], sizes = [2, 16], strides = [1, 1]} : vector<2x64xf32> to vector<2x16xf32>
    %842 = math.tanh %841 : vector<2x16xf32>
    %843 = vector.extract_strided_slice %828 {offsets = [0, 48], sizes = [2, 16], strides = [1, 1]} : vector<2x64xf32> to vector<2x16xf32>
    %844 = arith.negf %843 : vector<2x16xf32>
    %845 = math.exp %844 : vector<2x16xf32>
    %cst_248 = arith.constant 1.000000e+00 : f32
    %846 = vector.broadcast %cst_248 : f32 to vector<2x16xf32>
    %847 = arith.addf %846, %845 : vector<2x16xf32>
    %848 = arith.divf %846, %847 : vector<2x16xf32>
    %849 = arith.mulf %840, %717 : vector<2x16xf32>
    %850 = arith.mulf %834, %842 : vector<2x16xf32>
    %851 = arith.addf %849, %850 : vector<2x16xf32>
    %852 = math.tanh %851 : vector<2x16xf32>
    %853 = arith.mulf %848, %852 : vector<2x16xf32>
    %854 = vector.shape_cast %853 : vector<2x16xf32> to vector<2x1x16xf32>
    %c0_249 = arith.constant 0 : index
    %855 = arith.index_cast %c5_i32 : i32 to index
    %c0_250 = arith.constant 0 : index
    %856 = vector.load %arg37[%c0_249, %855, %c0_250] : memref<2x8x16xf32, #tpu.memory_space<vmem>>, vector<2x1x16xf32>
    tpu.vector_store %arg37[%c0_249, %855, %c0_250], %854 {strides = array<i32>} : memref<2x8x16xf32, #tpu.memory_space<vmem>>, vector<2x1x16xf32>,
    %c7_i32_251 = arith.constant 7 : i32
    %857 = arith.subi %c7_i32_251, %c5_i32 : i32
    %c0_252 = arith.constant 0 : index
    %858 = arith.index_cast %857 : i32 to index
    %c0_253 = arith.constant 0 : index
    %859 = vector.load %arg34[%c0_252, %858, %c0_253] : memref<2x8x64xf32, #tpu.memory_space<vmem>>, vector<2x1x64xf32>
    %860 = vector.shape_cast %859 : vector<2x1x64xf32> to vector<2x64xf32>
    %cst_254 = arith.constant dense<0.000000e+00> : vector<2x64xf32>
    %861 = tpu.matmul %753, %49, %cst_254 {dimension_numbers = #tpu.dot_dimension_numbers<[1], [0], [0], [1], [0, 0, 1, 1], [], []>} : vector<2x16xf32>, vector<16x64xf32>, vector<2x64xf32> -> vector<2x64xf32>
    %862 = arith.addf %860, %861 : vector<2x64xf32>
    %863 = vector.extract_strided_slice %862 {offsets = [0, 0], sizes = [2, 16], strides = [1, 1]} : vector<2x64xf32> to vector<2x16xf32>
    %864 = arith.negf %863 : vector<2x16xf32>
    %865 = math.exp %864 : vector<2x16xf32>
    %cst_255 = arith.constant 1.000000e+00 : f32
    %866 = vector.broadcast %cst_255 : f32 to vector<2x16xf32>
    %867 = arith.addf %866, %865 : vector<2x16xf32>
    %868 = arith.divf %866, %867 : vector<2x16xf32>
    %869 = vector.extract_strided_slice %862 {offsets = [0, 16], sizes = [2, 16], strides = [1, 1]} : vector<2x64xf32> to vector<2x16xf32>
    %870 = arith.negf %869 : vector<2x16xf32>
    %871 = math.exp %870 : vector<2x16xf32>
    %cst_256 = arith.constant 1.000000e+00 : f32
    %872 = vector.broadcast %cst_256 : f32 to vector<2x16xf32>
    %873 = arith.addf %872, %871 : vector<2x16xf32>
    %874 = arith.divf %872, %873 : vector<2x16xf32>
    %875 = vector.extract_strided_slice %862 {offsets = [0, 32], sizes = [2, 16], strides = [1, 1]} : vector<2x64xf32> to vector<2x16xf32>
    %876 = math.tanh %875 : vector<2x16xf32>
    %877 = vector.extract_strided_slice %862 {offsets = [0, 48], sizes = [2, 16], strides = [1, 1]} : vector<2x64xf32> to vector<2x16xf32>
    %878 = arith.negf %877 : vector<2x16xf32>
    %879 = math.exp %878 : vector<2x16xf32>
    %cst_257 = arith.constant 1.000000e+00 : f32
    %880 = vector.broadcast %cst_257 : f32 to vector<2x16xf32>
    %881 = arith.addf %880, %879 : vector<2x16xf32>
    %882 = arith.divf %880, %881 : vector<2x16xf32>
    %883 = arith.mulf %874, %751 : vector<2x16xf32>
    %884 = arith.mulf %868, %876 : vector<2x16xf32>
    %885 = arith.addf %883, %884 : vector<2x16xf32>
    %886 = math.tanh %885 : vector<2x16xf32>
    %887 = arith.mulf %882, %886 : vector<2x16xf32>
    %888 = vector.shape_cast %887 : vector<2x16xf32> to vector<2x1x16xf32>
    %c0_258 = arith.constant 0 : index
    %889 = arith.index_cast %857 : i32 to index
    %c0_259 = arith.constant 0 : index
    %890 = vector.load %arg38[%c0_258, %889, %c0_259] : memref<2x8x16xf32, #tpu.memory_space<vmem>>, vector<2x1x16xf32>
    tpu.vector_store %arg38[%c0_258, %889, %c0_259], %888 {strides = array<i32>} : memref<2x8x16xf32, #tpu.memory_space<vmem>>, vector<2x1x16xf32>,
    %c6_i32 = arith.constant 6 : i32
    %c0_260 = arith.constant 0 : index
    %891 = arith.index_cast %c6_i32 : i32 to index
    %c0_261 = arith.constant 0 : index
    %892 = vector.load %arg31[%c0_260, %891, %c0_261] : memref<2x8x64xf32, #tpu.memory_space<vmem>>, vector<2x1x64xf32>
    %893 = vector.shape_cast %892 : vector<2x1x64xf32> to vector<2x64xf32>
    %cst_262 = arith.constant dense<0.000000e+00> : vector<2x64xf32>
    %894 = tpu.matmul %786, %43, %cst_262 {dimension_numbers = #tpu.dot_dimension_numbers<[1], [0], [0], [1], [0, 0, 1, 1], [], []>} : vector<2x16xf32>, vector<16x64xf32>, vector<2x64xf32> -> vector<2x64xf32>
    %895 = arith.addf %893, %894 : vector<2x64xf32>
    %896 = vector.extract_strided_slice %895 {offsets = [0, 0], sizes = [2, 16], strides = [1, 1]} : vector<2x64xf32> to vector<2x16xf32>
    %897 = arith.negf %896 : vector<2x16xf32>
    %898 = math.exp %897 : vector<2x16xf32>
    %cst_263 = arith.constant 1.000000e+00 : f32
    %899 = vector.broadcast %cst_263 : f32 to vector<2x16xf32>
    %900 = arith.addf %899, %898 : vector<2x16xf32>
    %901 = arith.divf %899, %900 : vector<2x16xf32>
    %902 = vector.extract_strided_slice %895 {offsets = [0, 16], sizes = [2, 16], strides = [1, 1]} : vector<2x64xf32> to vector<2x16xf32>
    %903 = arith.negf %902 : vector<2x16xf32>
    %904 = math.exp %903 : vector<2x16xf32>
    %cst_264 = arith.constant 1.000000e+00 : f32
    %905 = vector.broadcast %cst_264 : f32 to vector<2x16xf32>
    %906 = arith.addf %905, %904 : vector<2x16xf32>
    %907 = arith.divf %905, %906 : vector<2x16xf32>
    %908 = vector.extract_strided_slice %895 {offsets = [0, 32], sizes = [2, 16], strides = [1, 1]} : vector<2x64xf32> to vector<2x16xf32>
    %909 = math.tanh %908 : vector<2x16xf32>
    %910 = vector.extract_strided_slice %895 {offsets = [0, 48], sizes = [2, 16], strides = [1, 1]} : vector<2x64xf32> to vector<2x16xf32>
    %911 = arith.negf %910 : vector<2x16xf32>
    %912 = math.exp %911 : vector<2x16xf32>
    %cst_265 = arith.constant 1.000000e+00 : f32
    %913 = vector.broadcast %cst_265 : f32 to vector<2x16xf32>
    %914 = arith.addf %913, %912 : vector<2x16xf32>
    %915 = arith.divf %913, %914 : vector<2x16xf32>
    %916 = arith.mulf %907, %784 : vector<2x16xf32>
    %917 = arith.mulf %901, %909 : vector<2x16xf32>
    %918 = arith.addf %916, %917 : vector<2x16xf32>
    %919 = math.tanh %918 : vector<2x16xf32>
    %920 = arith.mulf %915, %919 : vector<2x16xf32>
    %921 = vector.shape_cast %920 : vector<2x16xf32> to vector<2x1x16xf32>
    %c0_266 = arith.constant 0 : index
    %922 = arith.index_cast %c6_i32 : i32 to index
    %c0_267 = arith.constant 0 : index
    %923 = vector.load %arg35[%c0_266, %922, %c0_267] : memref<2x8x16xf32, #tpu.memory_space<vmem>>, vector<2x1x16xf32>
    tpu.vector_store %arg35[%c0_266, %922, %c0_267], %921 {strides = array<i32>} : memref<2x8x16xf32, #tpu.memory_space<vmem>>, vector<2x1x16xf32>,
    %c7_i32_268 = arith.constant 7 : i32
    %924 = arith.subi %c7_i32_268, %c6_i32 : i32
    %c0_269 = arith.constant 0 : index
    %925 = arith.index_cast %924 : i32 to index
    %c0_270 = arith.constant 0 : index
    %926 = vector.load %arg32[%c0_269, %925, %c0_270] : memref<2x8x64xf32, #tpu.memory_space<vmem>>, vector<2x1x64xf32>
    %927 = vector.shape_cast %926 : vector<2x1x64xf32> to vector<2x64xf32>
    %cst_271 = arith.constant dense<0.000000e+00> : vector<2x64xf32>
    %928 = tpu.matmul %820, %45, %cst_271 {dimension_numbers = #tpu.dot_dimension_numbers<[1], [0], [0], [1], [0, 0, 1, 1], [], []>} : vector<2x16xf32>, vector<16x64xf32>, vector<2x64xf32> -> vector<2x64xf32>
    %929 = arith.addf %927, %928 : vector<2x64xf32>
    %930 = vector.extract_strided_slice %929 {offsets = [0, 0], sizes = [2, 16], strides = [1, 1]} : vector<2x64xf32> to vector<2x16xf32>
    %931 = arith.negf %930 : vector<2x16xf32>
    %932 = math.exp %931 : vector<2x16xf32>
    %cst_272 = arith.constant 1.000000e+00 : f32
    %933 = vector.broadcast %cst_272 : f32 to vector<2x16xf32>
    %934 = arith.addf %933, %932 : vector<2x16xf32>
    %935 = arith.divf %933, %934 : vector<2x16xf32>
    %936 = vector.extract_strided_slice %929 {offsets = [0, 16], sizes = [2, 16], strides = [1, 1]} : vector<2x64xf32> to vector<2x16xf32>
    %937 = arith.negf %936 : vector<2x16xf32>
    %938 = math.exp %937 : vector<2x16xf32>
    %cst_273 = arith.constant 1.000000e+00 : f32
    %939 = vector.broadcast %cst_273 : f32 to vector<2x16xf32>
    %940 = arith.addf %939, %938 : vector<2x16xf32>
    %941 = arith.divf %939, %940 : vector<2x16xf32>
    %942 = vector.extract_strided_slice %929 {offsets = [0, 32], sizes = [2, 16], strides = [1, 1]} : vector<2x64xf32> to vector<2x16xf32>
    %943 = math.tanh %942 : vector<2x16xf32>
    %944 = vector.extract_strided_slice %929 {offsets = [0, 48], sizes = [2, 16], strides = [1, 1]} : vector<2x64xf32> to vector<2x16xf32>
    %945 = arith.negf %944 : vector<2x16xf32>
    %946 = math.exp %945 : vector<2x16xf32>
    %cst_274 = arith.constant 1.000000e+00 : f32
    %947 = vector.broadcast %cst_274 : f32 to vector<2x16xf32>
    %948 = arith.addf %947, %946 : vector<2x16xf32>
    %949 = arith.divf %947, %948 : vector<2x16xf32>
    %950 = arith.mulf %941, %818 : vector<2x16xf32>
    %951 = arith.mulf %935, %943 : vector<2x16xf32>
    %952 = arith.addf %950, %951 : vector<2x16xf32>
    %953 = math.tanh %952 : vector<2x16xf32>
    %954 = arith.mulf %949, %953 : vector<2x16xf32>
    %955 = vector.shape_cast %954 : vector<2x16xf32> to vector<2x1x16xf32>
    %c0_275 = arith.constant 0 : index
    %956 = arith.index_cast %924 : i32 to index
    %c0_276 = arith.constant 0 : index
    %957 = vector.load %arg36[%c0_275, %956, %c0_276] : memref<2x8x16xf32, #tpu.memory_space<vmem>>, vector<2x1x16xf32>
    tpu.vector_store %arg36[%c0_275, %956, %c0_276], %955 {strides = array<i32>} : memref<2x8x16xf32, #tpu.memory_space<vmem>>, vector<2x1x16xf32>,
    %c0_277 = arith.constant 0 : index
    %958 = arith.index_cast %c6_i32 : i32 to index
    %c0_278 = arith.constant 0 : index
    %959 = vector.load %arg33[%c0_277, %958, %c0_278] : memref<2x8x64xf32, #tpu.memory_space<vmem>>, vector<2x1x64xf32>
    %960 = vector.shape_cast %959 : vector<2x1x64xf32> to vector<2x64xf32>
    %cst_279 = arith.constant dense<0.000000e+00> : vector<2x64xf32>
    %961 = tpu.matmul %853, %47, %cst_279 {dimension_numbers = #tpu.dot_dimension_numbers<[1], [0], [0], [1], [0, 0, 1, 1], [], []>} : vector<2x16xf32>, vector<16x64xf32>, vector<2x64xf32> -> vector<2x64xf32>
    %962 = arith.addf %960, %961 : vector<2x64xf32>
    %963 = vector.extract_strided_slice %962 {offsets = [0, 0], sizes = [2, 16], strides = [1, 1]} : vector<2x64xf32> to vector<2x16xf32>
    %964 = arith.negf %963 : vector<2x16xf32>
    %965 = math.exp %964 : vector<2x16xf32>
    %cst_280 = arith.constant 1.000000e+00 : f32
    %966 = vector.broadcast %cst_280 : f32 to vector<2x16xf32>
    %967 = arith.addf %966, %965 : vector<2x16xf32>
    %968 = arith.divf %966, %967 : vector<2x16xf32>
    %969 = vector.extract_strided_slice %962 {offsets = [0, 16], sizes = [2, 16], strides = [1, 1]} : vector<2x64xf32> to vector<2x16xf32>
    %970 = arith.negf %969 : vector<2x16xf32>
    %971 = math.exp %970 : vector<2x16xf32>
    %cst_281 = arith.constant 1.000000e+00 : f32
    %972 = vector.broadcast %cst_281 : f32 to vector<2x16xf32>
    %973 = arith.addf %972, %971 : vector<2x16xf32>
    %974 = arith.divf %972, %973 : vector<2x16xf32>
    %975 = vector.extract_strided_slice %962 {offsets = [0, 32], sizes = [2, 16], strides = [1, 1]} : vector<2x64xf32> to vector<2x16xf32>
    %976 = math.tanh %975 : vector<2x16xf32>
    %977 = vector.extract_strided_slice %962 {offsets = [0, 48], sizes = [2, 16], strides = [1, 1]} : vector<2x64xf32> to vector<2x16xf32>
    %978 = arith.negf %977 : vector<2x16xf32>
    %979 = math.exp %978 : vector<2x16xf32>
    %cst_282 = arith.constant 1.000000e+00 : f32
    %980 = vector.broadcast %cst_282 : f32 to vector<2x16xf32>
    %981 = arith.addf %980, %979 : vector<2x16xf32>
    %982 = arith.divf %980, %981 : vector<2x16xf32>
    %983 = arith.mulf %974, %851 : vector<2x16xf32>
    %984 = arith.mulf %968, %976 : vector<2x16xf32>
    %985 = arith.addf %983, %984 : vector<2x16xf32>
    %986 = math.tanh %985 : vector<2x16xf32>
    %987 = arith.mulf %982, %986 : vector<2x16xf32>
    %988 = vector.shape_cast %987 : vector<2x16xf32> to vector<2x1x16xf32>
    %c0_283 = arith.constant 0 : index
    %989 = arith.index_cast %c6_i32 : i32 to index
    %c0_284 = arith.constant 0 : index
    %990 = vector.load %arg37[%c0_283, %989, %c0_284] : memref<2x8x16xf32, #tpu.memory_space<vmem>>, vector<2x1x16xf32>
    tpu.vector_store %arg37[%c0_283, %989, %c0_284], %988 {strides = array<i32>} : memref<2x8x16xf32, #tpu.memory_space<vmem>>, vector<2x1x16xf32>,
    %c7_i32_285 = arith.constant 7 : i32
    %991 = arith.subi %c7_i32_285, %c6_i32 : i32
    %c0_286 = arith.constant 0 : index
    %992 = arith.index_cast %991 : i32 to index
    %c0_287 = arith.constant 0 : index
    %993 = vector.load %arg34[%c0_286, %992, %c0_287] : memref<2x8x64xf32, #tpu.memory_space<vmem>>, vector<2x1x64xf32>
    %994 = vector.shape_cast %993 : vector<2x1x64xf32> to vector<2x64xf32>
    %cst_288 = arith.constant dense<0.000000e+00> : vector<2x64xf32>
    %995 = tpu.matmul %887, %49, %cst_288 {dimension_numbers = #tpu.dot_dimension_numbers<[1], [0], [0], [1], [0, 0, 1, 1], [], []>} : vector<2x16xf32>, vector<16x64xf32>, vector<2x64xf32> -> vector<2x64xf32>
    %996 = arith.addf %994, %995 : vector<2x64xf32>
    %997 = vector.extract_strided_slice %996 {offsets = [0, 0], sizes = [2, 16], strides = [1, 1]} : vector<2x64xf32> to vector<2x16xf32>
    %998 = arith.negf %997 : vector<2x16xf32>
    %999 = math.exp %998 : vector<2x16xf32>
    %cst_289 = arith.constant 1.000000e+00 : f32
    %1000 = vector.broadcast %cst_289 : f32 to vector<2x16xf32>
    %1001 = arith.addf %1000, %999 : vector<2x16xf32>
    %1002 = arith.divf %1000, %1001 : vector<2x16xf32>
    %1003 = vector.extract_strided_slice %996 {offsets = [0, 16], sizes = [2, 16], strides = [1, 1]} : vector<2x64xf32> to vector<2x16xf32>
    %1004 = arith.negf %1003 : vector<2x16xf32>
    %1005 = math.exp %1004 : vector<2x16xf32>
    %cst_290 = arith.constant 1.000000e+00 : f32
    %1006 = vector.broadcast %cst_290 : f32 to vector<2x16xf32>
    %1007 = arith.addf %1006, %1005 : vector<2x16xf32>
    %1008 = arith.divf %1006, %1007 : vector<2x16xf32>
    %1009 = vector.extract_strided_slice %996 {offsets = [0, 32], sizes = [2, 16], strides = [1, 1]} : vector<2x64xf32> to vector<2x16xf32>
    %1010 = math.tanh %1009 : vector<2x16xf32>
    %1011 = vector.extract_strided_slice %996 {offsets = [0, 48], sizes = [2, 16], strides = [1, 1]} : vector<2x64xf32> to vector<2x16xf32>
    %1012 = arith.negf %1011 : vector<2x16xf32>
    %1013 = math.exp %1012 : vector<2x16xf32>
    %cst_291 = arith.constant 1.000000e+00 : f32
    %1014 = vector.broadcast %cst_291 : f32 to vector<2x16xf32>
    %1015 = arith.addf %1014, %1013 : vector<2x16xf32>
    %1016 = arith.divf %1014, %1015 : vector<2x16xf32>
    %1017 = arith.mulf %1008, %885 : vector<2x16xf32>
    %1018 = arith.mulf %1002, %1010 : vector<2x16xf32>
    %1019 = arith.addf %1017, %1018 : vector<2x16xf32>
    %1020 = math.tanh %1019 : vector<2x16xf32>
    %1021 = arith.mulf %1016, %1020 : vector<2x16xf32>
    %1022 = vector.shape_cast %1021 : vector<2x16xf32> to vector<2x1x16xf32>
    %c0_292 = arith.constant 0 : index
    %1023 = arith.index_cast %991 : i32 to index
    %c0_293 = arith.constant 0 : index
    %1024 = vector.load %arg38[%c0_292, %1023, %c0_293] : memref<2x8x16xf32, #tpu.memory_space<vmem>>, vector<2x1x16xf32>
    tpu.vector_store %arg38[%c0_292, %1023, %c0_293], %1022 {strides = array<i32>} : memref<2x8x16xf32, #tpu.memory_space<vmem>>, vector<2x1x16xf32>,
    %c7_i32_294 = arith.constant 7 : i32
    %c0_295 = arith.constant 0 : index
    %1025 = arith.index_cast %c7_i32_294 : i32 to index
    %c0_296 = arith.constant 0 : index
    %1026 = vector.load %arg31[%c0_295, %1025, %c0_296] : memref<2x8x64xf32, #tpu.memory_space<vmem>>, vector<2x1x64xf32>
    %1027 = vector.shape_cast %1026 : vector<2x1x64xf32> to vector<2x64xf32>
    %cst_297 = arith.constant dense<0.000000e+00> : vector<2x64xf32>
    %1028 = tpu.matmul %920, %43, %cst_297 {dimension_numbers = #tpu.dot_dimension_numbers<[1], [0], [0], [1], [0, 0, 1, 1], [], []>} : vector<2x16xf32>, vector<16x64xf32>, vector<2x64xf32> -> vector<2x64xf32>
    %1029 = arith.addf %1027, %1028 : vector<2x64xf32>
    %1030 = vector.extract_strided_slice %1029 {offsets = [0, 0], sizes = [2, 16], strides = [1, 1]} : vector<2x64xf32> to vector<2x16xf32>
    %1031 = arith.negf %1030 : vector<2x16xf32>
    %1032 = math.exp %1031 : vector<2x16xf32>
    %cst_298 = arith.constant 1.000000e+00 : f32
    %1033 = vector.broadcast %cst_298 : f32 to vector<2x16xf32>
    %1034 = arith.addf %1033, %1032 : vector<2x16xf32>
    %1035 = arith.divf %1033, %1034 : vector<2x16xf32>
    %1036 = vector.extract_strided_slice %1029 {offsets = [0, 16], sizes = [2, 16], strides = [1, 1]} : vector<2x64xf32> to vector<2x16xf32>
    %1037 = arith.negf %1036 : vector<2x16xf32>
    %1038 = math.exp %1037 : vector<2x16xf32>
    %cst_299 = arith.constant 1.000000e+00 : f32
    %1039 = vector.broadcast %cst_299 : f32 to vector<2x16xf32>
    %1040 = arith.addf %1039, %1038 : vector<2x16xf32>
    %1041 = arith.divf %1039, %1040 : vector<2x16xf32>
    %1042 = vector.extract_strided_slice %1029 {offsets = [0, 32], sizes = [2, 16], strides = [1, 1]} : vector<2x64xf32> to vector<2x16xf32>
    %1043 = math.tanh %1042 : vector<2x16xf32>
    %1044 = vector.extract_strided_slice %1029 {offsets = [0, 48], sizes = [2, 16], strides = [1, 1]} : vector<2x64xf32> to vector<2x16xf32>
    %1045 = arith.negf %1044 : vector<2x16xf32>
    %1046 = math.exp %1045 : vector<2x16xf32>
    %cst_300 = arith.constant 1.000000e+00 : f32
    %1047 = vector.broadcast %cst_300 : f32 to vector<2x16xf32>
    %1048 = arith.addf %1047, %1046 : vector<2x16xf32>
    %1049 = arith.divf %1047, %1048 : vector<2x16xf32>
    %1050 = arith.mulf %1041, %918 : vector<2x16xf32>
    %1051 = arith.mulf %1035, %1043 : vector<2x16xf32>
    %1052 = arith.addf %1050, %1051 : vector<2x16xf32>
    %1053 = math.tanh %1052 : vector<2x16xf32>
    %1054 = arith.mulf %1049, %1053 : vector<2x16xf32>
    %1055 = vector.shape_cast %1054 : vector<2x16xf32> to vector<2x1x16xf32>
    %c0_301 = arith.constant 0 : index
    %1056 = arith.index_cast %c7_i32_294 : i32 to index
    %c0_302 = arith.constant 0 : index
    %1057 = vector.load %arg35[%c0_301, %1056, %c0_302] : memref<2x8x16xf32, #tpu.memory_space<vmem>>, vector<2x1x16xf32>
    tpu.vector_store %arg35[%c0_301, %1056, %c0_302], %1055 {strides = array<i32>} : memref<2x8x16xf32, #tpu.memory_space<vmem>>, vector<2x1x16xf32>,
    %c7_i32_303 = arith.constant 7 : i32
    %1058 = arith.subi %c7_i32_303, %c7_i32_294 : i32
    %c0_304 = arith.constant 0 : index
    %1059 = arith.index_cast %1058 : i32 to index
    %c0_305 = arith.constant 0 : index
    %1060 = vector.load %arg32[%c0_304, %1059, %c0_305] : memref<2x8x64xf32, #tpu.memory_space<vmem>>, vector<2x1x64xf32>
    %1061 = vector.shape_cast %1060 : vector<2x1x64xf32> to vector<2x64xf32>
    %cst_306 = arith.constant dense<0.000000e+00> : vector<2x64xf32>
    %1062 = tpu.matmul %954, %45, %cst_306 {dimension_numbers = #tpu.dot_dimension_numbers<[1], [0], [0], [1], [0, 0, 1, 1], [], []>} : vector<2x16xf32>, vector<16x64xf32>, vector<2x64xf32> -> vector<2x64xf32>
    %1063 = arith.addf %1061, %1062 : vector<2x64xf32>
    %1064 = vector.extract_strided_slice %1063 {offsets = [0, 0], sizes = [2, 16], strides = [1, 1]} : vector<2x64xf32> to vector<2x16xf32>
    %1065 = arith.negf %1064 : vector<2x16xf32>
    %1066 = math.exp %1065 : vector<2x16xf32>
    %cst_307 = arith.constant 1.000000e+00 : f32
    %1067 = vector.broadcast %cst_307 : f32 to vector<2x16xf32>
    %1068 = arith.addf %1067, %1066 : vector<2x16xf32>
    %1069 = arith.divf %1067, %1068 : vector<2x16xf32>
    %1070 = vector.extract_strided_slice %1063 {offsets = [0, 16], sizes = [2, 16], strides = [1, 1]} : vector<2x64xf32> to vector<2x16xf32>
    %1071 = arith.negf %1070 : vector<2x16xf32>
    %1072 = math.exp %1071 : vector<2x16xf32>
    %cst_308 = arith.constant 1.000000e+00 : f32
    %1073 = vector.broadcast %cst_308 : f32 to vector<2x16xf32>
    %1074 = arith.addf %1073, %1072 : vector<2x16xf32>
    %1075 = arith.divf %1073, %1074 : vector<2x16xf32>
    %1076 = vector.extract_strided_slice %1063 {offsets = [0, 32], sizes = [2, 16], strides = [1, 1]} : vector<2x64xf32> to vector<2x16xf32>
    %1077 = math.tanh %1076 : vector<2x16xf32>
    %1078 = vector.extract_strided_slice %1063 {offsets = [0, 48], sizes = [2, 16], strides = [1, 1]} : vector<2x64xf32> to vector<2x16xf32>
    %1079 = arith.negf %1078 : vector<2x16xf32>
    %1080 = math.exp %1079 : vector<2x16xf32>
    %cst_309 = arith.constant 1.000000e+00 : f32
    %1081 = vector.broadcast %cst_309 : f32 to vector<2x16xf32>
    %1082 = arith.addf %1081, %1080 : vector<2x16xf32>
    %1083 = arith.divf %1081, %1082 : vector<2x16xf32>
    %1084 = arith.mulf %1075, %952 : vector<2x16xf32>
    %1085 = arith.mulf %1069, %1077 : vector<2x16xf32>
    %1086 = arith.addf %1084, %1085 : vector<2x16xf32>
    %1087 = math.tanh %1086 : vector<2x16xf32>
    %1088 = arith.mulf %1083, %1087 : vector<2x16xf32>
    %1089 = vector.shape_cast %1088 : vector<2x16xf32> to vector<2x1x16xf32>
    %c0_310 = arith.constant 0 : index
    %1090 = arith.index_cast %1058 : i32 to index
    %c0_311 = arith.constant 0 : index
    %1091 = vector.load %arg36[%c0_310, %1090, %c0_311] : memref<2x8x16xf32, #tpu.memory_space<vmem>>, vector<2x1x16xf32>
    tpu.vector_store %arg36[%c0_310, %1090, %c0_311], %1089 {strides = array<i32>} : memref<2x8x16xf32, #tpu.memory_space<vmem>>, vector<2x1x16xf32>,
    %c0_312 = arith.constant 0 : index
    %1092 = arith.index_cast %c7_i32_294 : i32 to index
    %c0_313 = arith.constant 0 : index
    %1093 = vector.load %arg33[%c0_312, %1092, %c0_313] : memref<2x8x64xf32, #tpu.memory_space<vmem>>, vector<2x1x64xf32>
    %1094 = vector.shape_cast %1093 : vector<2x1x64xf32> to vector<2x64xf32>
    %cst_314 = arith.constant dense<0.000000e+00> : vector<2x64xf32>
    %1095 = tpu.matmul %987, %47, %cst_314 {dimension_numbers = #tpu.dot_dimension_numbers<[1], [0], [0], [1], [0, 0, 1, 1], [], []>} : vector<2x16xf32>, vector<16x64xf32>, vector<2x64xf32> -> vector<2x64xf32>
    %1096 = arith.addf %1094, %1095 : vector<2x64xf32>
    %1097 = vector.extract_strided_slice %1096 {offsets = [0, 0], sizes = [2, 16], strides = [1, 1]} : vector<2x64xf32> to vector<2x16xf32>
    %1098 = arith.negf %1097 : vector<2x16xf32>
    %1099 = math.exp %1098 : vector<2x16xf32>
    %cst_315 = arith.constant 1.000000e+00 : f32
    %1100 = vector.broadcast %cst_315 : f32 to vector<2x16xf32>
    %1101 = arith.addf %1100, %1099 : vector<2x16xf32>
    %1102 = arith.divf %1100, %1101 : vector<2x16xf32>
    %1103 = vector.extract_strided_slice %1096 {offsets = [0, 16], sizes = [2, 16], strides = [1, 1]} : vector<2x64xf32> to vector<2x16xf32>
    %1104 = arith.negf %1103 : vector<2x16xf32>
    %1105 = math.exp %1104 : vector<2x16xf32>
    %cst_316 = arith.constant 1.000000e+00 : f32
    %1106 = vector.broadcast %cst_316 : f32 to vector<2x16xf32>
    %1107 = arith.addf %1106, %1105 : vector<2x16xf32>
    %1108 = arith.divf %1106, %1107 : vector<2x16xf32>
    %1109 = vector.extract_strided_slice %1096 {offsets = [0, 32], sizes = [2, 16], strides = [1, 1]} : vector<2x64xf32> to vector<2x16xf32>
    %1110 = math.tanh %1109 : vector<2x16xf32>
    %1111 = vector.extract_strided_slice %1096 {offsets = [0, 48], sizes = [2, 16], strides = [1, 1]} : vector<2x64xf32> to vector<2x16xf32>
    %1112 = arith.negf %1111 : vector<2x16xf32>
    %1113 = math.exp %1112 : vector<2x16xf32>
    %cst_317 = arith.constant 1.000000e+00 : f32
    %1114 = vector.broadcast %cst_317 : f32 to vector<2x16xf32>
    %1115 = arith.addf %1114, %1113 : vector<2x16xf32>
    %1116 = arith.divf %1114, %1115 : vector<2x16xf32>
    %1117 = arith.mulf %1108, %985 : vector<2x16xf32>
    %1118 = arith.mulf %1102, %1110 : vector<2x16xf32>
    %1119 = arith.addf %1117, %1118 : vector<2x16xf32>
    %1120 = math.tanh %1119 : vector<2x16xf32>
    %1121 = arith.mulf %1116, %1120 : vector<2x16xf32>
    %1122 = vector.shape_cast %1121 : vector<2x16xf32> to vector<2x1x16xf32>
    %c0_318 = arith.constant 0 : index
    %1123 = arith.index_cast %c7_i32_294 : i32 to index
    %c0_319 = arith.constant 0 : index
    %1124 = vector.load %arg37[%c0_318, %1123, %c0_319] : memref<2x8x16xf32, #tpu.memory_space<vmem>>, vector<2x1x16xf32>
    tpu.vector_store %arg37[%c0_318, %1123, %c0_319], %1122 {strides = array<i32>} : memref<2x8x16xf32, #tpu.memory_space<vmem>>, vector<2x1x16xf32>,
    %c7_i32_320 = arith.constant 7 : i32
    %1125 = arith.subi %c7_i32_320, %c7_i32_294 : i32
    %c0_321 = arith.constant 0 : index
    %1126 = arith.index_cast %1125 : i32 to index
    %c0_322 = arith.constant 0 : index
    %1127 = vector.load %arg34[%c0_321, %1126, %c0_322] : memref<2x8x64xf32, #tpu.memory_space<vmem>>, vector<2x1x64xf32>
    %1128 = vector.shape_cast %1127 : vector<2x1x64xf32> to vector<2x64xf32>
    %cst_323 = arith.constant dense<0.000000e+00> : vector<2x64xf32>
    %1129 = tpu.matmul %1021, %49, %cst_323 {dimension_numbers = #tpu.dot_dimension_numbers<[1], [0], [0], [1], [0, 0, 1, 1], [], []>} : vector<2x16xf32>, vector<16x64xf32>, vector<2x64xf32> -> vector<2x64xf32>
    %1130 = arith.addf %1128, %1129 : vector<2x64xf32>
    %1131 = vector.extract_strided_slice %1130 {offsets = [0, 0], sizes = [2, 16], strides = [1, 1]} : vector<2x64xf32> to vector<2x16xf32>
    %1132 = arith.negf %1131 : vector<2x16xf32>
    %1133 = math.exp %1132 : vector<2x16xf32>
    %cst_324 = arith.constant 1.000000e+00 : f32
    %1134 = vector.broadcast %cst_324 : f32 to vector<2x16xf32>
    %1135 = arith.addf %1134, %1133 : vector<2x16xf32>
    %1136 = arith.divf %1134, %1135 : vector<2x16xf32>
    %1137 = vector.extract_strided_slice %1130 {offsets = [0, 16], sizes = [2, 16], strides = [1, 1]} : vector<2x64xf32> to vector<2x16xf32>
    %1138 = arith.negf %1137 : vector<2x16xf32>
    %1139 = math.exp %1138 : vector<2x16xf32>
    %cst_325 = arith.constant 1.000000e+00 : f32
    %1140 = vector.broadcast %cst_325 : f32 to vector<2x16xf32>
    %1141 = arith.addf %1140, %1139 : vector<2x16xf32>
    %1142 = arith.divf %1140, %1141 : vector<2x16xf32>
    %1143 = vector.extract_strided_slice %1130 {offsets = [0, 32], sizes = [2, 16], strides = [1, 1]} : vector<2x64xf32> to vector<2x16xf32>
    %1144 = math.tanh %1143 : vector<2x16xf32>
    %1145 = vector.extract_strided_slice %1130 {offsets = [0, 48], sizes = [2, 16], strides = [1, 1]} : vector<2x64xf32> to vector<2x16xf32>
    %1146 = arith.negf %1145 : vector<2x16xf32>
    %1147 = math.exp %1146 : vector<2x16xf32>
    %cst_326 = arith.constant 1.000000e+00 : f32
    %1148 = vector.broadcast %cst_326 : f32 to vector<2x16xf32>
    %1149 = arith.addf %1148, %1147 : vector<2x16xf32>
    %1150 = arith.divf %1148, %1149 : vector<2x16xf32>
    %1151 = arith.mulf %1142, %1019 : vector<2x16xf32>
    %1152 = arith.mulf %1136, %1144 : vector<2x16xf32>
    %1153 = arith.addf %1151, %1152 : vector<2x16xf32>
    %1154 = math.tanh %1153 : vector<2x16xf32>
    %1155 = arith.mulf %1150, %1154 : vector<2x16xf32>
    %1156 = vector.shape_cast %1155 : vector<2x16xf32> to vector<2x1x16xf32>
    %c0_327 = arith.constant 0 : index
    %1157 = arith.index_cast %1125 : i32 to index
    %c0_328 = arith.constant 0 : index
    %1158 = vector.load %arg38[%c0_327, %1157, %c0_328] : memref<2x8x16xf32, #tpu.memory_space<vmem>>, vector<2x1x16xf32>
    tpu.vector_store %arg38[%c0_327, %1157, %c0_328], %1156 {strides = array<i32>} : memref<2x8x16xf32, #tpu.memory_space<vmem>>, vector<2x1x16xf32>,
    %c8_i32 = arith.constant 8 : i32
    %c0_329 = arith.constant 0 : index
    %c0_330 = arith.constant 0 : index
    %c0_331 = arith.constant 0 : index
    %1159 = vector.load %arg37[%c0_329, %c0_330, %c0_331] : memref<2x8x16xf32, #tpu.memory_space<vmem>>, vector<2x8x16xf32>
    %1160 = vector.shape_cast %1159 : vector<2x8x16xf32> to vector<16x16xf32>
    %c0_332 = arith.constant 0 : index
    %c0_333 = arith.constant 0 : index
    %c0_334 = arith.constant 0 : index
    %1161 = vector.load %arg38[%c0_332, %c0_333, %c0_334] : memref<2x8x16xf32, #tpu.memory_space<vmem>>, vector<2x8x16xf32>
    %1162 = vector.shape_cast %1161 : vector<2x8x16xf32> to vector<16x16xf32>
    %c0_335 = arith.constant 0 : index
    %c0_336 = arith.constant 0 : index
    %1163 = vector.load %arg7[%c0_335, %c0_336] : memref<16x32xf32, #tpu.memory_space<vmem>>, vector<16x32xf32>
    %cst_337 = arith.constant dense<0.000000e+00> : vector<16x32xf32>
    %1164 = tpu.matmul %1160, %1163, %cst_337 {dimension_numbers = #tpu.dot_dimension_numbers<[1], [0], [0], [1], [0, 0, 1, 1], [], []>} : vector<16x16xf32>, vector<16x32xf32>, vector<16x32xf32> -> vector<16x32xf32>
    %c0_338 = arith.constant 0 : index
    %c0_339 = arith.constant 0 : index
    %1165 = vector.load %arg8[%c0_338, %c0_339] : memref<16x32xf32, #tpu.memory_space<vmem>>, vector<16x32xf32>
    %cst_340 = arith.constant dense<0.000000e+00> : vector<16x32xf32>
    %1166 = tpu.matmul %1162, %1165, %cst_340 {dimension_numbers = #tpu.dot_dimension_numbers<[1], [0], [0], [1], [0, 0, 1, 1], [], []>} : vector<16x16xf32>, vector<16x32xf32>, vector<16x32xf32> -> vector<16x32xf32>
    %1167 = arith.addf %1164, %1166 : vector<16x32xf32>
    %c0_341 = arith.constant 0 : index
    %c0_342 = arith.constant 0 : index
    %1168 = vector.load %arg9[%c0_341, %c0_342] : memref<1x32xf32, #tpu.memory_space<vmem>>, vector<1x32xf32>
    %1169 = vector.broadcast %1168 : vector<1x32xf32> to vector<16x32xf32>
    %1170 = arith.addf %1167, %1169 : vector<16x32xf32>
    %1171 = arith.negf %1170 : vector<16x32xf32>
    %1172 = math.exp %1171 : vector<16x32xf32>
    %cst_343 = arith.constant 1.000000e+00 : f32
    %1173 = vector.broadcast %cst_343 : f32 to vector<16x32xf32>
    %1174 = arith.addf %1173, %1172 : vector<16x32xf32>
    %1175 = arith.divf %1173, %1174 : vector<16x32xf32>
    %1176 = arith.mulf %41, %1175 : vector<16x32xf32>
    %c0_344 = arith.constant 0 : index
    %c0_345 = arith.constant 0 : index
    %c0_346 = arith.constant 0 : index
    %1177 = vector.load %arg13[%c0_344, %c0_345, %c0_346] : memref<2x32x96xf32, #tpu.memory_space<vmem>>, vector<1x32x96xf32>
    %1178 = vector.shape_cast %1177 : vector<1x32x96xf32> to vector<32x96xf32>
    %cst_347 = arith.constant dense<0.000000e+00> : vector<16x96xf32>
    %1179 = tpu.matmul %1176, %1178, %cst_347 {dimension_numbers = #tpu.dot_dimension_numbers<[1], [0], [0], [1], [0, 0, 1, 1], [], []>} : vector<16x32xf32>, vector<32x96xf32>, vector<16x96xf32> -> vector<16x96xf32>
    %c0_348 = arith.constant 0 : index
    %c0_349 = arith.constant 0 : index
    %c0_350 = arith.constant 0 : index
    %1180 = vector.load %arg14[%c0_348, %c0_349, %c0_350] : memref<2x1x96xf32, #tpu.memory_space<vmem>>, vector<1x1x96xf32>
    %1181 = vector.shape_cast %1180 : vector<1x1x96xf32> to vector<1x96xf32>
    %1182 = vector.broadcast %1181 : vector<1x96xf32> to vector<16x96xf32>
    %1183 = arith.addf %1179, %1182 : vector<16x96xf32>
    %c0_351 = arith.constant 0 : index
    %c0_352 = arith.constant 0 : index
    %c0_353 = arith.constant 0 : index
    %1184 = vector.load %arg15[%c0_351, %c0_352, %c0_353] : memref<2x32x32xf32, #tpu.memory_space<vmem>>, vector<1x32x32xf32>
    %1185 = vector.shape_cast %1184 : vector<1x32x32xf32> to vector<32x32xf32>
    %1186 = vector.extract_strided_slice %1183 {offsets = [0, 0], sizes = [16, 8], strides = [1, 1]} : vector<16x96xf32> to vector<16x8xf32>
    %1187 = vector.shape_cast %1186 : vector<16x8xf32> to vector<2x8x8xf32>
    %1188 = vector.extract_strided_slice %1183 {offsets = [0, 32], sizes = [16, 8], strides = [1, 1]} : vector<16x96xf32> to vector<16x8xf32>
    %1189 = vector.shape_cast %1188 : vector<16x8xf32> to vector<2x8x8xf32>
    %1190 = vector.extract_strided_slice %1183 {offsets = [0, 64], sizes = [16, 8], strides = [1, 1]} : vector<16x96xf32> to vector<16x8xf32>
    %1191 = vector.shape_cast %1190 : vector<16x8xf32> to vector<2x8x8xf32>
    "tpu.trace_start"() <{level = 10 : i32, message = "bqd,bkd->bqk"}> : () -> ()
    %cst_354 = arith.constant dense<0.000000e+00> : vector<2x8x8xf32>
    %1192 = tpu.matmul %1187, %1189, %cst_354 {dimension_numbers = #tpu.dot_dimension_numbers<[2], [2], [1], [1], [0, 0, 0, 1, 1, 1], [0], [0]>} : vector<2x8x8xf32>, vector<2x8x8xf32>, vector<2x8x8xf32> -> vector<2x8x8xf32>
    "tpu.trace_stop"() : () -> ()
    %cst_355 = arith.constant 0.353553385 : f32
    %1193 = vector.broadcast %cst_355 : f32 to vector<2x8x8xf32>
    %1194 = arith.mulf %1192, %1193 : vector<2x8x8xf32>
    %cst_356 = arith.constant dense<0xFF800000> : vector<2x8xf32>
    %1195 = vector.multi_reduction <maximumf>, %1194, %cst_356 [2] : vector<2x8x8xf32> to vector<2x8xf32>
    %1196 = vector.shape_cast %1195 : vector<2x8xf32> to vector<2x8x1xf32>
    %1197 = vector.broadcast %1196 : vector<2x8x1xf32> to vector<2x8x8xf32>
    %1198 = arith.subf %1194, %1197 : vector<2x8x8xf32>
    %1199 = math.exp %1198 : vector<2x8x8xf32>
    %cst_357 = arith.constant dense<0.000000e+00> : vector<2x8xf32>
    %1200 = vector.multi_reduction <add>, %1199, %cst_357 [2] : vector<2x8x8xf32> to vector<2x8xf32>
    %1201 = vector.shape_cast %1200 : vector<2x8xf32> to vector<2x8x1xf32>
    %1202 = tpu.reciprocal %1201 {approx = true} : vector<2x8x1xf32> -> vector<2x8x1xf32>
    %1203 = vector.broadcast %1202 : vector<2x8x1xf32> to vector<2x8x8xf32>
    %1204 = arith.mulf %1199, %1203 : vector<2x8x8xf32>
    "tpu.trace_start"() <{level = 10 : i32, message = "bqk,bkd->bqd"}> : () -> ()
    %cst_358 = arith.constant dense<0.000000e+00> : vector<2x8x8xf32>
    %1205 = tpu.matmul %1204, %1191, %cst_358 {dimension_numbers = #tpu.dot_dimension_numbers<[2], [1], [1], [2], [0, 0, 0, 1, 1, 2], [0], [0]>} : vector<2x8x8xf32>, vector<2x8x8xf32>, vector<2x8x8xf32> -> vector<2x8x8xf32>
    "tpu.trace_stop"() : () -> ()
    %1206 = vector.shape_cast %1205 : vector<2x8x8xf32> to vector<16x8xf32>
    %1207 = vector.extract_strided_slice %1185 {offsets = [0, 0], sizes = [8, 32], strides = [1, 1]} : vector<32x32xf32> to vector<8x32xf32>
    %cst_359 = arith.constant dense<0.000000e+00> : vector<16x32xf32>
    %1208 = tpu.matmul %1206, %1207, %cst_359 {dimension_numbers = #tpu.dot_dimension_numbers<[1], [0], [0], [1], [0, 0, 1, 1], [], []>} : vector<16x8xf32>, vector<8x32xf32>, vector<16x32xf32> -> vector<16x32xf32>
    %1209 = vector.extract_strided_slice %1183 {offsets = [0, 8], sizes = [16, 8], strides = [1, 1]} : vector<16x96xf32> to vector<16x8xf32>
    %1210 = vector.shape_cast %1209 : vector<16x8xf32> to vector<2x8x8xf32>
    %1211 = vector.extract_strided_slice %1183 {offsets = [0, 40], sizes = [16, 8], strides = [1, 1]} : vector<16x96xf32> to vector<16x8xf32>
    %1212 = vector.shape_cast %1211 : vector<16x8xf32> to vector<2x8x8xf32>
    %1213 = vector.extract_strided_slice %1183 {offsets = [0, 72], sizes = [16, 8], strides = [1, 1]} : vector<16x96xf32> to vector<16x8xf32>
    %1214 = vector.shape_cast %1213 : vector<16x8xf32> to vector<2x8x8xf32>
    "tpu.trace_start"() <{level = 10 : i32, message = "bqd,bkd->bqk"}> : () -> ()
    %cst_360 = arith.constant dense<0.000000e+00> : vector<2x8x8xf32>
    %1215 = tpu.matmul %1210, %1212, %cst_360 {dimension_numbers = #tpu.dot_dimension_numbers<[2], [2], [1], [1], [0, 0, 0, 1, 1, 1], [0], [0]>} : vector<2x8x8xf32>, vector<2x8x8xf32>, vector<2x8x8xf32> -> vector<2x8x8xf32>
    "tpu.trace_stop"() : () -> ()
    %cst_361 = arith.constant 0.353553385 : f32
    %1216 = vector.broadcast %cst_361 : f32 to vector<2x8x8xf32>
    %1217 = arith.mulf %1215, %1216 : vector<2x8x8xf32>
    %cst_362 = arith.constant dense<0xFF800000> : vector<2x8xf32>
    %1218 = vector.multi_reduction <maximumf>, %1217, %cst_362 [2] : vector<2x8x8xf32> to vector<2x8xf32>
    %1219 = vector.shape_cast %1218 : vector<2x8xf32> to vector<2x8x1xf32>
    %1220 = vector.broadcast %1219 : vector<2x8x1xf32> to vector<2x8x8xf32>
    %1221 = arith.subf %1217, %1220 : vector<2x8x8xf32>
    %1222 = math.exp %1221 : vector<2x8x8xf32>
    %cst_363 = arith.constant dense<0.000000e+00> : vector<2x8xf32>
    %1223 = vector.multi_reduction <add>, %1222, %cst_363 [2] : vector<2x8x8xf32> to vector<2x8xf32>
    %1224 = vector.shape_cast %1223 : vector<2x8xf32> to vector<2x8x1xf32>
    %1225 = tpu.reciprocal %1224 {approx = true} : vector<2x8x1xf32> -> vector<2x8x1xf32>
    %1226 = vector.broadcast %1225 : vector<2x8x1xf32> to vector<2x8x8xf32>
    %1227 = arith.mulf %1222, %1226 : vector<2x8x8xf32>
    "tpu.trace_start"() <{level = 10 : i32, message = "bqk,bkd->bqd"}> : () -> ()
    %cst_364 = arith.constant dense<0.000000e+00> : vector<2x8x8xf32>
    %1228 = tpu.matmul %1227, %1214, %cst_364 {dimension_numbers = #tpu.dot_dimension_numbers<[2], [1], [1], [2], [0, 0, 0, 1, 1, 2], [0], [0]>} : vector<2x8x8xf32>, vector<2x8x8xf32>, vector<2x8x8xf32> -> vector<2x8x8xf32>
    "tpu.trace_stop"() : () -> ()
    %1229 = vector.shape_cast %1228 : vector<2x8x8xf32> to vector<16x8xf32>
    %1230 = vector.extract_strided_slice %1185 {offsets = [8, 0], sizes = [8, 32], strides = [1, 1]} : vector<32x32xf32> to vector<8x32xf32>
    %cst_365 = arith.constant dense<0.000000e+00> : vector<16x32xf32>
    %1231 = tpu.matmul %1229, %1230, %cst_365 {dimension_numbers = #tpu.dot_dimension_numbers<[1], [0], [0], [1], [0, 0, 1, 1], [], []>} : vector<16x8xf32>, vector<8x32xf32>, vector<16x32xf32> -> vector<16x32xf32>
    %1232 = arith.addf %1208, %1231 : vector<16x32xf32>
    %1233 = vector.extract_strided_slice %1183 {offsets = [0, 16], sizes = [16, 8], strides = [1, 1]} : vector<16x96xf32> to vector<16x8xf32>
    %1234 = vector.shape_cast %1233 : vector<16x8xf32> to vector<2x8x8xf32>
    %1235 = vector.extract_strided_slice %1183 {offsets = [0, 48], sizes = [16, 8], strides = [1, 1]} : vector<16x96xf32> to vector<16x8xf32>
    %1236 = vector.shape_cast %1235 : vector<16x8xf32> to vector<2x8x8xf32>
    %1237 = vector.extract_strided_slice %1183 {offsets = [0, 80], sizes = [16, 8], strides = [1, 1]} : vector<16x96xf32> to vector<16x8xf32>
    %1238 = vector.shape_cast %1237 : vector<16x8xf32> to vector<2x8x8xf32>
    "tpu.trace_start"() <{level = 10 : i32, message = "bqd,bkd->bqk"}> : () -> ()
    %cst_366 = arith.constant dense<0.000000e+00> : vector<2x8x8xf32>
    %1239 = tpu.matmul %1234, %1236, %cst_366 {dimension_numbers = #tpu.dot_dimension_numbers<[2], [2], [1], [1], [0, 0, 0, 1, 1, 1], [0], [0]>} : vector<2x8x8xf32>, vector<2x8x8xf32>, vector<2x8x8xf32> -> vector<2x8x8xf32>
    "tpu.trace_stop"() : () -> ()
    %cst_367 = arith.constant 0.353553385 : f32
    %1240 = vector.broadcast %cst_367 : f32 to vector<2x8x8xf32>
    %1241 = arith.mulf %1239, %1240 : vector<2x8x8xf32>
    %cst_368 = arith.constant dense<0xFF800000> : vector<2x8xf32>
    %1242 = vector.multi_reduction <maximumf>, %1241, %cst_368 [2] : vector<2x8x8xf32> to vector<2x8xf32>
    %1243 = vector.shape_cast %1242 : vector<2x8xf32> to vector<2x8x1xf32>
    %1244 = vector.broadcast %1243 : vector<2x8x1xf32> to vector<2x8x8xf32>
    %1245 = arith.subf %1241, %1244 : vector<2x8x8xf32>
    %1246 = math.exp %1245 : vector<2x8x8xf32>
    %cst_369 = arith.constant dense<0.000000e+00> : vector<2x8xf32>
    %1247 = vector.multi_reduction <add>, %1246, %cst_369 [2] : vector<2x8x8xf32> to vector<2x8xf32>
    %1248 = vector.shape_cast %1247 : vector<2x8xf32> to vector<2x8x1xf32>
    %1249 = tpu.reciprocal %1248 {approx = true} : vector<2x8x1xf32> -> vector<2x8x1xf32>
    %1250 = vector.broadcast %1249 : vector<2x8x1xf32> to vector<2x8x8xf32>
    %1251 = arith.mulf %1246, %1250 : vector<2x8x8xf32>
    "tpu.trace_start"() <{level = 10 : i32, message = "bqk,bkd->bqd"}> : () -> ()
    %cst_370 = arith.constant dense<0.000000e+00> : vector<2x8x8xf32>
    %1252 = tpu.matmul %1251, %1238, %cst_370 {dimension_numbers = #tpu.dot_dimension_numbers<[2], [1], [1], [2], [0, 0, 0, 1, 1, 2], [0], [0]>} : vector<2x8x8xf32>, vector<2x8x8xf32>, vector<2x8x8xf32> -> vector<2x8x8xf32>
    "tpu.trace_stop"() : () -> ()
    %1253 = vector.shape_cast %1252 : vector<2x8x8xf32> to vector<16x8xf32>
    %1254 = vector.extract_strided_slice %1185 {offsets = [16, 0], sizes = [8, 32], strides = [1, 1]} : vector<32x32xf32> to vector<8x32xf32>
    %cst_371 = arith.constant dense<0.000000e+00> : vector<16x32xf32>
    %1255 = tpu.matmul %1253, %1254, %cst_371 {dimension_numbers = #tpu.dot_dimension_numbers<[1], [0], [0], [1], [0, 0, 1, 1], [], []>} : vector<16x8xf32>, vector<8x32xf32>, vector<16x32xf32> -> vector<16x32xf32>
    %1256 = arith.addf %1232, %1255 : vector<16x32xf32>
    %1257 = vector.extract_strided_slice %1183 {offsets = [0, 24], sizes = [16, 8], strides = [1, 1]} : vector<16x96xf32> to vector<16x8xf32>
    %1258 = vector.shape_cast %1257 : vector<16x8xf32> to vector<2x8x8xf32>
    %1259 = vector.extract_strided_slice %1183 {offsets = [0, 56], sizes = [16, 8], strides = [1, 1]} : vector<16x96xf32> to vector<16x8xf32>
    %1260 = vector.shape_cast %1259 : vector<16x8xf32> to vector<2x8x8xf32>
    %1261 = vector.extract_strided_slice %1183 {offsets = [0, 88], sizes = [16, 8], strides = [1, 1]} : vector<16x96xf32> to vector<16x8xf32>
    %1262 = vector.shape_cast %1261 : vector<16x8xf32> to vector<2x8x8xf32>
    "tpu.trace_start"() <{level = 10 : i32, message = "bqd,bkd->bqk"}> : () -> ()
    %cst_372 = arith.constant dense<0.000000e+00> : vector<2x8x8xf32>
    %1263 = tpu.matmul %1258, %1260, %cst_372 {dimension_numbers = #tpu.dot_dimension_numbers<[2], [2], [1], [1], [0, 0, 0, 1, 1, 1], [0], [0]>} : vector<2x8x8xf32>, vector<2x8x8xf32>, vector<2x8x8xf32> -> vector<2x8x8xf32>
    "tpu.trace_stop"() : () -> ()
    %cst_373 = arith.constant 0.353553385 : f32
    %1264 = vector.broadcast %cst_373 : f32 to vector<2x8x8xf32>
    %1265 = arith.mulf %1263, %1264 : vector<2x8x8xf32>
    %cst_374 = arith.constant dense<0xFF800000> : vector<2x8xf32>
    %1266 = vector.multi_reduction <maximumf>, %1265, %cst_374 [2] : vector<2x8x8xf32> to vector<2x8xf32>
    %1267 = vector.shape_cast %1266 : vector<2x8xf32> to vector<2x8x1xf32>
    %1268 = vector.broadcast %1267 : vector<2x8x1xf32> to vector<2x8x8xf32>
    %1269 = arith.subf %1265, %1268 : vector<2x8x8xf32>
    %1270 = math.exp %1269 : vector<2x8x8xf32>
    %cst_375 = arith.constant dense<0.000000e+00> : vector<2x8xf32>
    %1271 = vector.multi_reduction <add>, %1270, %cst_375 [2] : vector<2x8x8xf32> to vector<2x8xf32>
    %1272 = vector.shape_cast %1271 : vector<2x8xf32> to vector<2x8x1xf32>
    %1273 = tpu.reciprocal %1272 {approx = true} : vector<2x8x1xf32> -> vector<2x8x1xf32>
    %1274 = vector.broadcast %1273 : vector<2x8x1xf32> to vector<2x8x8xf32>
    %1275 = arith.mulf %1270, %1274 : vector<2x8x8xf32>
    "tpu.trace_start"() <{level = 10 : i32, message = "bqk,bkd->bqd"}> : () -> ()
    %cst_376 = arith.constant dense<0.000000e+00> : vector<2x8x8xf32>
    %1276 = tpu.matmul %1275, %1262, %cst_376 {dimension_numbers = #tpu.dot_dimension_numbers<[2], [1], [1], [2], [0, 0, 0, 1, 1, 2], [0], [0]>} : vector<2x8x8xf32>, vector<2x8x8xf32>, vector<2x8x8xf32> -> vector<2x8x8xf32>
    "tpu.trace_stop"() : () -> ()
    %1277 = vector.shape_cast %1276 : vector<2x8x8xf32> to vector<16x8xf32>
    %1278 = vector.extract_strided_slice %1185 {offsets = [24, 0], sizes = [8, 32], strides = [1, 1]} : vector<32x32xf32> to vector<8x32xf32>
    %cst_377 = arith.constant dense<0.000000e+00> : vector<16x32xf32>
    %1279 = tpu.matmul %1277, %1278, %cst_377 {dimension_numbers = #tpu.dot_dimension_numbers<[1], [0], [0], [1], [0, 0, 1, 1], [], []>} : vector<16x8xf32>, vector<8x32xf32>, vector<16x32xf32> -> vector<16x32xf32>
    %1280 = arith.addf %1256, %1279 : vector<16x32xf32>
    %c0_378 = arith.constant 0 : index
    %c0_379 = arith.constant 0 : index
    %c0_380 = arith.constant 0 : index
    %1281 = vector.load %arg16[%c0_378, %c0_379, %c0_380] : memref<2x1x32xf32, #tpu.memory_space<vmem>>, vector<1x1x32xf32>
    %1282 = vector.shape_cast %1281 : vector<1x1x32xf32> to vector<1x32xf32>
    %1283 = vector.broadcast %1282 : vector<1x32xf32> to vector<16x32xf32>
    %1284 = arith.addf %1280, %1283 : vector<16x32xf32>
    %c0_381 = arith.constant 0 : index
    %c0_382 = arith.constant 0 : index
    %1285 = memref.load %arg25[%c0_381, %c0_382] : memref<2x2xf32, #tpu.memory_space<smem>>
    %c0_383 = arith.constant 0 : index
    %c1_384 = arith.constant 1 : index
    %1286 = memref.load %arg25[%c0_383, %c1_384] : memref<2x2xf32, #tpu.memory_space<smem>>
    %1287 = arith.addf %1176, %1284 : vector<16x32xf32>
    %1288 = vector.broadcast %1285 : f32 to vector<16x32xf32>
    %1289 = arith.mulf %1288, %1287 : vector<16x32xf32>
    %1290 = math.tanh %1289 : vector<16x32xf32>
    %c0_385 = arith.constant 0 : index
    %c0_386 = arith.constant 0 : index
    %c0_387 = arith.constant 0 : index
    %1291 = vector.load %arg21[%c0_385, %c0_386, %c0_387] : memref<2x1x32xf32, #tpu.memory_space<vmem>>, vector<1x1x32xf32>
    %1292 = vector.shape_cast %1291 : vector<1x1x32xf32> to vector<1x32xf32>
    %1293 = vector.broadcast %1292 : vector<1x32xf32> to vector<16x32xf32>
    %1294 = arith.mulf %1290, %1293 : vector<16x32xf32>
    %c0_388 = arith.constant 0 : index
    %c0_389 = arith.constant 0 : index
    %c0_390 = arith.constant 0 : index
    %1295 = vector.load %arg22[%c0_388, %c0_389, %c0_390] : memref<2x1x32xf32, #tpu.memory_space<vmem>>, vector<1x1x32xf32>
    %1296 = vector.shape_cast %1295 : vector<1x1x32xf32> to vector<1x32xf32>
    %1297 = vector.broadcast %1296 : vector<1x32xf32> to vector<16x32xf32>
    %1298 = arith.addf %1294, %1297 : vector<16x32xf32>
    %c0_391 = arith.constant 0 : index
    %c0_392 = arith.constant 0 : index
    %c0_393 = arith.constant 0 : index
    %1299 = vector.load %arg17[%c0_391, %c0_392, %c0_393] : memref<2x32x128xf32, #tpu.memory_space<vmem>>, vector<1x32x128xf32>
    %1300 = vector.shape_cast %1299 : vector<1x32x128xf32> to vector<32x128xf32>
    %cst_394 = arith.constant dense<0.000000e+00> : vector<16x128xf32>
    %1301 = tpu.matmul %1298, %1300, %cst_394 {dimension_numbers = #tpu.dot_dimension_numbers<[1], [0], [0], [1], [0, 0, 1, 1], [], []>} : vector<16x32xf32>, vector<32x128xf32>, vector<16x128xf32> -> vector<16x128xf32>
    %c0_395 = arith.constant 0 : index
    %c0_396 = arith.constant 0 : index
    %c0_397 = arith.constant 0 : index
    %1302 = vector.load %arg18[%c0_395, %c0_396, %c0_397] : memref<2x1x128xf32, #tpu.memory_space<vmem>>, vector<1x1x128xf32>
    %1303 = vector.shape_cast %1302 : vector<1x1x128xf32> to vector<1x128xf32>
    %1304 = vector.broadcast %1303 : vector<1x128xf32> to vector<16x128xf32>
    %1305 = arith.addf %1301, %1304 : vector<16x128xf32>
    %cst_398 = arith.constant 0.000000e+00 : f32
    %1306 = vector.broadcast %cst_398 : f32 to vector<16x128xf32>
    %1307 = arith.maximumf %1305, %1306 : vector<16x128xf32>
    %c0_399 = arith.constant 0 : index
    %c0_400 = arith.constant 0 : index
    %c0_401 = arith.constant 0 : index
    %1308 = vector.load %arg19[%c0_399, %c0_400, %c0_401] : memref<2x128x32xf32, #tpu.memory_space<vmem>>, vector<1x128x32xf32>
    %1309 = vector.shape_cast %1308 : vector<1x128x32xf32> to vector<128x32xf32>
    %cst_402 = arith.constant dense<0.000000e+00> : vector<16x32xf32>
    %1310 = tpu.matmul %1307, %1309, %cst_402 {dimension_numbers = #tpu.dot_dimension_numbers<[1], [0], [0], [1], [0, 0, 1, 1], [], []>} : vector<16x128xf32>, vector<128x32xf32>, vector<16x32xf32> -> vector<16x32xf32>
    %c0_403 = arith.constant 0 : index
    %c0_404 = arith.constant 0 : index
    %c0_405 = arith.constant 0 : index
    %1311 = vector.load %arg20[%c0_403, %c0_404, %c0_405] : memref<2x1x32xf32, #tpu.memory_space<vmem>>, vector<1x1x32xf32>
    %1312 = vector.shape_cast %1311 : vector<1x1x32xf32> to vector<1x32xf32>
    %1313 = vector.broadcast %1312 : vector<1x32xf32> to vector<16x32xf32>
    %1314 = arith.addf %1310, %1313 : vector<16x32xf32>
    %1315 = arith.addf %1298, %1314 : vector<16x32xf32>
    %1316 = vector.broadcast %1286 : f32 to vector<16x32xf32>
    %1317 = arith.mulf %1316, %1315 : vector<16x32xf32>
    %1318 = math.tanh %1317 : vector<16x32xf32>
    %c0_406 = arith.constant 0 : index
    %c0_407 = arith.constant 0 : index
    %c0_408 = arith.constant 0 : index
    %1319 = vector.load %arg23[%c0_406, %c0_407, %c0_408] : memref<2x1x32xf32, #tpu.memory_space<vmem>>, vector<1x1x32xf32>
    %1320 = vector.shape_cast %1319 : vector<1x1x32xf32> to vector<1x32xf32>
    %1321 = vector.broadcast %1320 : vector<1x32xf32> to vector<16x32xf32>
    %1322 = arith.mulf %1318, %1321 : vector<16x32xf32>
    %c0_409 = arith.constant 0 : index
    %c0_410 = arith.constant 0 : index
    %c0_411 = arith.constant 0 : index
    %1323 = vector.load %arg24[%c0_409, %c0_410, %c0_411] : memref<2x1x32xf32, #tpu.memory_space<vmem>>, vector<1x1x32xf32>
    %1324 = vector.shape_cast %1323 : vector<1x1x32xf32> to vector<1x32xf32>
    %1325 = vector.broadcast %1324 : vector<1x32xf32> to vector<16x32xf32>
    %1326 = arith.addf %1322, %1325 : vector<16x32xf32>
    %c1_412 = arith.constant 1 : index
    %c0_413 = arith.constant 0 : index
    %c0_414 = arith.constant 0 : index
    %1327 = vector.load %arg13[%c1_412, %c0_413, %c0_414] : memref<2x32x96xf32, #tpu.memory_space<vmem>>, vector<1x32x96xf32>
    %1328 = vector.shape_cast %1327 : vector<1x32x96xf32> to vector<32x96xf32>
    %cst_415 = arith.constant dense<0.000000e+00> : vector<16x96xf32>
    %1329 = tpu.matmul %1326, %1328, %cst_415 {dimension_numbers = #tpu.dot_dimension_numbers<[1], [0], [0], [1], [0, 0, 1, 1], [], []>} : vector<16x32xf32>, vector<32x96xf32>, vector<16x96xf32> -> vector<16x96xf32>
    %c1_416 = arith.constant 1 : index
    %c0_417 = arith.constant 0 : index
    %c0_418 = arith.constant 0 : index
    %1330 = vector.load %arg14[%c1_416, %c0_417, %c0_418] : memref<2x1x96xf32, #tpu.memory_space<vmem>>, vector<1x1x96xf32>
    %1331 = vector.shape_cast %1330 : vector<1x1x96xf32> to vector<1x96xf32>
    %1332 = vector.broadcast %1331 : vector<1x96xf32> to vector<16x96xf32>
    %1333 = arith.addf %1329, %1332 : vector<16x96xf32>
    %c1_419 = arith.constant 1 : index
    %c0_420 = arith.constant 0 : index
    %c0_421 = arith.constant 0 : index
    %1334 = vector.load %arg15[%c1_419, %c0_420, %c0_421] : memref<2x32x32xf32, #tpu.memory_space<vmem>>, vector<1x32x32xf32>
    %1335 = vector.shape_cast %1334 : vector<1x32x32xf32> to vector<32x32xf32>
    %1336 = vector.extract_strided_slice %1333 {offsets = [0, 0], sizes = [16, 8], strides = [1, 1]} : vector<16x96xf32> to vector<16x8xf32>
    %1337 = vector.shape_cast %1336 : vector<16x8xf32> to vector<2x8x8xf32>
    %1338 = vector.extract_strided_slice %1333 {offsets = [0, 32], sizes = [16, 8], strides = [1, 1]} : vector<16x96xf32> to vector<16x8xf32>
    %1339 = vector.shape_cast %1338 : vector<16x8xf32> to vector<2x8x8xf32>
    %1340 = vector.extract_strided_slice %1333 {offsets = [0, 64], sizes = [16, 8], strides = [1, 1]} : vector<16x96xf32> to vector<16x8xf32>
    %1341 = vector.shape_cast %1340 : vector<16x8xf32> to vector<2x8x8xf32>
    "tpu.trace_start"() <{level = 10 : i32, message = "bqd,bkd->bqk"}> : () -> ()
    %cst_422 = arith.constant dense<0.000000e+00> : vector<2x8x8xf32>
    %1342 = tpu.matmul %1337, %1339, %cst_422 {dimension_numbers = #tpu.dot_dimension_numbers<[2], [2], [1], [1], [0, 0, 0, 1, 1, 1], [0], [0]>} : vector<2x8x8xf32>, vector<2x8x8xf32>, vector<2x8x8xf32> -> vector<2x8x8xf32>
    "tpu.trace_stop"() : () -> ()
    %cst_423 = arith.constant 0.353553385 : f32
    %1343 = vector.broadcast %cst_423 : f32 to vector<2x8x8xf32>
    %1344 = arith.mulf %1342, %1343 : vector<2x8x8xf32>
    %cst_424 = arith.constant dense<0xFF800000> : vector<2x8xf32>
    %1345 = vector.multi_reduction <maximumf>, %1344, %cst_424 [2] : vector<2x8x8xf32> to vector<2x8xf32>
    %1346 = vector.shape_cast %1345 : vector<2x8xf32> to vector<2x8x1xf32>
    %1347 = vector.broadcast %1346 : vector<2x8x1xf32> to vector<2x8x8xf32>
    %1348 = arith.subf %1344, %1347 : vector<2x8x8xf32>
    %1349 = math.exp %1348 : vector<2x8x8xf32>
    %cst_425 = arith.constant dense<0.000000e+00> : vector<2x8xf32>
    %1350 = vector.multi_reduction <add>, %1349, %cst_425 [2] : vector<2x8x8xf32> to vector<2x8xf32>
    %1351 = vector.shape_cast %1350 : vector<2x8xf32> to vector<2x8x1xf32>
    %1352 = tpu.reciprocal %1351 {approx = true} : vector<2x8x1xf32> -> vector<2x8x1xf32>
    %1353 = vector.broadcast %1352 : vector<2x8x1xf32> to vector<2x8x8xf32>
    %1354 = arith.mulf %1349, %1353 : vector<2x8x8xf32>
    "tpu.trace_start"() <{level = 10 : i32, message = "bqk,bkd->bqd"}> : () -> ()
    %cst_426 = arith.constant dense<0.000000e+00> : vector<2x8x8xf32>
    %1355 = tpu.matmul %1354, %1341, %cst_426 {dimension_numbers = #tpu.dot_dimension_numbers<[2], [1], [1], [2], [0, 0, 0, 1, 1, 2], [0], [0]>} : vector<2x8x8xf32>, vector<2x8x8xf32>, vector<2x8x8xf32> -> vector<2x8x8xf32>
    "tpu.trace_stop"() : () -> ()
    %1356 = vector.shape_cast %1355 : vector<2x8x8xf32> to vector<16x8xf32>
    %1357 = vector.extract_strided_slice %1335 {offsets = [0, 0], sizes = [8, 32], strides = [1, 1]} : vector<32x32xf32> to vector<8x32xf32>
    %cst_427 = arith.constant dense<0.000000e+00> : vector<16x32xf32>
    %1358 = tpu.matmul %1356, %1357, %cst_427 {dimension_numbers = #tpu.dot_dimension_numbers<[1], [0], [0], [1], [0, 0, 1, 1], [], []>} : vector<16x8xf32>, vector<8x32xf32>, vector<16x32xf32> -> vector<16x32xf32>
    %1359 = vector.extract_strided_slice %1333 {offsets = [0, 8], sizes = [16, 8], strides = [1, 1]} : vector<16x96xf32> to vector<16x8xf32>
    %1360 = vector.shape_cast %1359 : vector<16x8xf32> to vector<2x8x8xf32>
    %1361 = vector.extract_strided_slice %1333 {offsets = [0, 40], sizes = [16, 8], strides = [1, 1]} : vector<16x96xf32> to vector<16x8xf32>
    %1362 = vector.shape_cast %1361 : vector<16x8xf32> to vector<2x8x8xf32>
    %1363 = vector.extract_strided_slice %1333 {offsets = [0, 72], sizes = [16, 8], strides = [1, 1]} : vector<16x96xf32> to vector<16x8xf32>
    %1364 = vector.shape_cast %1363 : vector<16x8xf32> to vector<2x8x8xf32>
    "tpu.trace_start"() <{level = 10 : i32, message = "bqd,bkd->bqk"}> : () -> ()
    %cst_428 = arith.constant dense<0.000000e+00> : vector<2x8x8xf32>
    %1365 = tpu.matmul %1360, %1362, %cst_428 {dimension_numbers = #tpu.dot_dimension_numbers<[2], [2], [1], [1], [0, 0, 0, 1, 1, 1], [0], [0]>} : vector<2x8x8xf32>, vector<2x8x8xf32>, vector<2x8x8xf32> -> vector<2x8x8xf32>
    "tpu.trace_stop"() : () -> ()
    %cst_429 = arith.constant 0.353553385 : f32
    %1366 = vector.broadcast %cst_429 : f32 to vector<2x8x8xf32>
    %1367 = arith.mulf %1365, %1366 : vector<2x8x8xf32>
    %cst_430 = arith.constant dense<0xFF800000> : vector<2x8xf32>
    %1368 = vector.multi_reduction <maximumf>, %1367, %cst_430 [2] : vector<2x8x8xf32> to vector<2x8xf32>
    %1369 = vector.shape_cast %1368 : vector<2x8xf32> to vector<2x8x1xf32>
    %1370 = vector.broadcast %1369 : vector<2x8x1xf32> to vector<2x8x8xf32>
    %1371 = arith.subf %1367, %1370 : vector<2x8x8xf32>
    %1372 = math.exp %1371 : vector<2x8x8xf32>
    %cst_431 = arith.constant dense<0.000000e+00> : vector<2x8xf32>
    %1373 = vector.multi_reduction <add>, %1372, %cst_431 [2] : vector<2x8x8xf32> to vector<2x8xf32>
    %1374 = vector.shape_cast %1373 : vector<2x8xf32> to vector<2x8x1xf32>
    %1375 = tpu.reciprocal %1374 {approx = true} : vector<2x8x1xf32> -> vector<2x8x1xf32>
    %1376 = vector.broadcast %1375 : vector<2x8x1xf32> to vector<2x8x8xf32>
    %1377 = arith.mulf %1372, %1376 : vector<2x8x8xf32>
    "tpu.trace_start"() <{level = 10 : i32, message = "bqk,bkd->bqd"}> : () -> ()
    %cst_432 = arith.constant dense<0.000000e+00> : vector<2x8x8xf32>
    %1378 = tpu.matmul %1377, %1364, %cst_432 {dimension_numbers = #tpu.dot_dimension_numbers<[2], [1], [1], [2], [0, 0, 0, 1, 1, 2], [0], [0]>} : vector<2x8x8xf32>, vector<2x8x8xf32>, vector<2x8x8xf32> -> vector<2x8x8xf32>
    "tpu.trace_stop"() : () -> ()
    %1379 = vector.shape_cast %1378 : vector<2x8x8xf32> to vector<16x8xf32>
    %1380 = vector.extract_strided_slice %1335 {offsets = [8, 0], sizes = [8, 32], strides = [1, 1]} : vector<32x32xf32> to vector<8x32xf32>
    %cst_433 = arith.constant dense<0.000000e+00> : vector<16x32xf32>
    %1381 = tpu.matmul %1379, %1380, %cst_433 {dimension_numbers = #tpu.dot_dimension_numbers<[1], [0], [0], [1], [0, 0, 1, 1], [], []>} : vector<16x8xf32>, vector<8x32xf32>, vector<16x32xf32> -> vector<16x32xf32>
    %1382 = arith.addf %1358, %1381 : vector<16x32xf32>
    %1383 = vector.extract_strided_slice %1333 {offsets = [0, 16], sizes = [16, 8], strides = [1, 1]} : vector<16x96xf32> to vector<16x8xf32>
    %1384 = vector.shape_cast %1383 : vector<16x8xf32> to vector<2x8x8xf32>
    %1385 = vector.extract_strided_slice %1333 {offsets = [0, 48], sizes = [16, 8], strides = [1, 1]} : vector<16x96xf32> to vector<16x8xf32>
    %1386 = vector.shape_cast %1385 : vector<16x8xf32> to vector<2x8x8xf32>
    %1387 = vector.extract_strided_slice %1333 {offsets = [0, 80], sizes = [16, 8], strides = [1, 1]} : vector<16x96xf32> to vector<16x8xf32>
    %1388 = vector.shape_cast %1387 : vector<16x8xf32> to vector<2x8x8xf32>
    "tpu.trace_start"() <{level = 10 : i32, message = "bqd,bkd->bqk"}> : () -> ()
    %cst_434 = arith.constant dense<0.000000e+00> : vector<2x8x8xf32>
    %1389 = tpu.matmul %1384, %1386, %cst_434 {dimension_numbers = #tpu.dot_dimension_numbers<[2], [2], [1], [1], [0, 0, 0, 1, 1, 1], [0], [0]>} : vector<2x8x8xf32>, vector<2x8x8xf32>, vector<2x8x8xf32> -> vector<2x8x8xf32>
    "tpu.trace_stop"() : () -> ()
    %cst_435 = arith.constant 0.353553385 : f32
    %1390 = vector.broadcast %cst_435 : f32 to vector<2x8x8xf32>
    %1391 = arith.mulf %1389, %1390 : vector<2x8x8xf32>
    %cst_436 = arith.constant dense<0xFF800000> : vector<2x8xf32>
    %1392 = vector.multi_reduction <maximumf>, %1391, %cst_436 [2] : vector<2x8x8xf32> to vector<2x8xf32>
    %1393 = vector.shape_cast %1392 : vector<2x8xf32> to vector<2x8x1xf32>
    %1394 = vector.broadcast %1393 : vector<2x8x1xf32> to vector<2x8x8xf32>
    %1395 = arith.subf %1391, %1394 : vector<2x8x8xf32>
    %1396 = math.exp %1395 : vector<2x8x8xf32>
    %cst_437 = arith.constant dense<0.000000e+00> : vector<2x8xf32>
    %1397 = vector.multi_reduction <add>, %1396, %cst_437 [2] : vector<2x8x8xf32> to vector<2x8xf32>
    %1398 = vector.shape_cast %1397 : vector<2x8xf32> to vector<2x8x1xf32>
    %1399 = tpu.reciprocal %1398 {approx = true} : vector<2x8x1xf32> -> vector<2x8x1xf32>
    %1400 = vector.broadcast %1399 : vector<2x8x1xf32> to vector<2x8x8xf32>
    %1401 = arith.mulf %1396, %1400 : vector<2x8x8xf32>
    "tpu.trace_start"() <{level = 10 : i32, message = "bqk,bkd->bqd"}> : () -> ()
    %cst_438 = arith.constant dense<0.000000e+00> : vector<2x8x8xf32>
    %1402 = tpu.matmul %1401, %1388, %cst_438 {dimension_numbers = #tpu.dot_dimension_numbers<[2], [1], [1], [2], [0, 0, 0, 1, 1, 2], [0], [0]>} : vector<2x8x8xf32>, vector<2x8x8xf32>, vector<2x8x8xf32> -> vector<2x8x8xf32>
    "tpu.trace_stop"() : () -> ()
    %1403 = vector.shape_cast %1402 : vector<2x8x8xf32> to vector<16x8xf32>
    %1404 = vector.extract_strided_slice %1335 {offsets = [16, 0], sizes = [8, 32], strides = [1, 1]} : vector<32x32xf32> to vector<8x32xf32>
    %cst_439 = arith.constant dense<0.000000e+00> : vector<16x32xf32>
    %1405 = tpu.matmul %1403, %1404, %cst_439 {dimension_numbers = #tpu.dot_dimension_numbers<[1], [0], [0], [1], [0, 0, 1, 1], [], []>} : vector<16x8xf32>, vector<8x32xf32>, vector<16x32xf32> -> vector<16x32xf32>
    %1406 = arith.addf %1382, %1405 : vector<16x32xf32>
    %1407 = vector.extract_strided_slice %1333 {offsets = [0, 24], sizes = [16, 8], strides = [1, 1]} : vector<16x96xf32> to vector<16x8xf32>
    %1408 = vector.shape_cast %1407 : vector<16x8xf32> to vector<2x8x8xf32>
    %1409 = vector.extract_strided_slice %1333 {offsets = [0, 56], sizes = [16, 8], strides = [1, 1]} : vector<16x96xf32> to vector<16x8xf32>
    %1410 = vector.shape_cast %1409 : vector<16x8xf32> to vector<2x8x8xf32>
    %1411 = vector.extract_strided_slice %1333 {offsets = [0, 88], sizes = [16, 8], strides = [1, 1]} : vector<16x96xf32> to vector<16x8xf32>
    %1412 = vector.shape_cast %1411 : vector<16x8xf32> to vector<2x8x8xf32>
    "tpu.trace_start"() <{level = 10 : i32, message = "bqd,bkd->bqk"}> : () -> ()
    %cst_440 = arith.constant dense<0.000000e+00> : vector<2x8x8xf32>
    %1413 = tpu.matmul %1408, %1410, %cst_440 {dimension_numbers = #tpu.dot_dimension_numbers<[2], [2], [1], [1], [0, 0, 0, 1, 1, 1], [0], [0]>} : vector<2x8x8xf32>, vector<2x8x8xf32>, vector<2x8x8xf32> -> vector<2x8x8xf32>
    "tpu.trace_stop"() : () -> ()
    %cst_441 = arith.constant 0.353553385 : f32
    %1414 = vector.broadcast %cst_441 : f32 to vector<2x8x8xf32>
    %1415 = arith.mulf %1413, %1414 : vector<2x8x8xf32>
    %cst_442 = arith.constant dense<0xFF800000> : vector<2x8xf32>
    %1416 = vector.multi_reduction <maximumf>, %1415, %cst_442 [2] : vector<2x8x8xf32> to vector<2x8xf32>
    %1417 = vector.shape_cast %1416 : vector<2x8xf32> to vector<2x8x1xf32>
    %1418 = vector.broadcast %1417 : vector<2x8x1xf32> to vector<2x8x8xf32>
    %1419 = arith.subf %1415, %1418 : vector<2x8x8xf32>
    %1420 = math.exp %1419 : vector<2x8x8xf32>
    %cst_443 = arith.constant dense<0.000000e+00> : vector<2x8xf32>
    %1421 = vector.multi_reduction <add>, %1420, %cst_443 [2] : vector<2x8x8xf32> to vector<2x8xf32>
    %1422 = vector.shape_cast %1421 : vector<2x8xf32> to vector<2x8x1xf32>
    %1423 = tpu.reciprocal %1422 {approx = true} : vector<2x8x1xf32> -> vector<2x8x1xf32>
    %1424 = vector.broadcast %1423 : vector<2x8x1xf32> to vector<2x8x8xf32>
    %1425 = arith.mulf %1420, %1424 : vector<2x8x8xf32>
    "tpu.trace_start"() <{level = 10 : i32, message = "bqk,bkd->bqd"}> : () -> ()
    %cst_444 = arith.constant dense<0.000000e+00> : vector<2x8x8xf32>
    %1426 = tpu.matmul %1425, %1412, %cst_444 {dimension_numbers = #tpu.dot_dimension_numbers<[2], [1], [1], [2], [0, 0, 0, 1, 1, 2], [0], [0]>} : vector<2x8x8xf32>, vector<2x8x8xf32>, vector<2x8x8xf32> -> vector<2x8x8xf32>
    "tpu.trace_stop"() : () -> ()
    %1427 = vector.shape_cast %1426 : vector<2x8x8xf32> to vector<16x8xf32>
    %1428 = vector.extract_strided_slice %1335 {offsets = [24, 0], sizes = [8, 32], strides = [1, 1]} : vector<32x32xf32> to vector<8x32xf32>
    %cst_445 = arith.constant dense<0.000000e+00> : vector<16x32xf32>
    %1429 = tpu.matmul %1427, %1428, %cst_445 {dimension_numbers = #tpu.dot_dimension_numbers<[1], [0], [0], [1], [0, 0, 1, 1], [], []>} : vector<16x8xf32>, vector<8x32xf32>, vector<16x32xf32> -> vector<16x32xf32>
    %1430 = arith.addf %1406, %1429 : vector<16x32xf32>
    %c1_446 = arith.constant 1 : index
    %c0_447 = arith.constant 0 : index
    %c0_448 = arith.constant 0 : index
    %1431 = vector.load %arg16[%c1_446, %c0_447, %c0_448] : memref<2x1x32xf32, #tpu.memory_space<vmem>>, vector<1x1x32xf32>
    %1432 = vector.shape_cast %1431 : vector<1x1x32xf32> to vector<1x32xf32>
    %1433 = vector.broadcast %1432 : vector<1x32xf32> to vector<16x32xf32>
    %1434 = arith.addf %1430, %1433 : vector<16x32xf32>
    %c1_449 = arith.constant 1 : index
    %c0_450 = arith.constant 0 : index
    %1435 = memref.load %arg25[%c1_449, %c0_450] : memref<2x2xf32, #tpu.memory_space<smem>>
    %c1_451 = arith.constant 1 : index
    %c1_452 = arith.constant 1 : index
    %1436 = memref.load %arg25[%c1_451, %c1_452] : memref<2x2xf32, #tpu.memory_space<smem>>
    %1437 = arith.addf %1326, %1434 : vector<16x32xf32>
    %1438 = vector.broadcast %1435 : f32 to vector<16x32xf32>
    %1439 = arith.mulf %1438, %1437 : vector<16x32xf32>
    %1440 = math.tanh %1439 : vector<16x32xf32>
    %c1_453 = arith.constant 1 : index
    %c0_454 = arith.constant 0 : index
    %c0_455 = arith.constant 0 : index
    %1441 = vector.load %arg21[%c1_453, %c0_454, %c0_455] : memref<2x1x32xf32, #tpu.memory_space<vmem>>, vector<1x1x32xf32>
    %1442 = vector.shape_cast %1441 : vector<1x1x32xf32> to vector<1x32xf32>
    %1443 = vector.broadcast %1442 : vector<1x32xf32> to vector<16x32xf32>
    %1444 = arith.mulf %1440, %1443 : vector<16x32xf32>
    %c1_456 = arith.constant 1 : index
    %c0_457 = arith.constant 0 : index
    %c0_458 = arith.constant 0 : index
    %1445 = vector.load %arg22[%c1_456, %c0_457, %c0_458] : memref<2x1x32xf32, #tpu.memory_space<vmem>>, vector<1x1x32xf32>
    %1446 = vector.shape_cast %1445 : vector<1x1x32xf32> to vector<1x32xf32>
    %1447 = vector.broadcast %1446 : vector<1x32xf32> to vector<16x32xf32>
    %1448 = arith.addf %1444, %1447 : vector<16x32xf32>
    %c1_459 = arith.constant 1 : index
    %c0_460 = arith.constant 0 : index
    %c0_461 = arith.constant 0 : index
    %1449 = vector.load %arg17[%c1_459, %c0_460, %c0_461] : memref<2x32x128xf32, #tpu.memory_space<vmem>>, vector<1x32x128xf32>
    %1450 = vector.shape_cast %1449 : vector<1x32x128xf32> to vector<32x128xf32>
    %cst_462 = arith.constant dense<0.000000e+00> : vector<16x128xf32>
    %1451 = tpu.matmul %1448, %1450, %cst_462 {dimension_numbers = #tpu.dot_dimension_numbers<[1], [0], [0], [1], [0, 0, 1, 1], [], []>} : vector<16x32xf32>, vector<32x128xf32>, vector<16x128xf32> -> vector<16x128xf32>
    %c1_463 = arith.constant 1 : index
    %c0_464 = arith.constant 0 : index
    %c0_465 = arith.constant 0 : index
    %1452 = vector.load %arg18[%c1_463, %c0_464, %c0_465] : memref<2x1x128xf32, #tpu.memory_space<vmem>>, vector<1x1x128xf32>
    %1453 = vector.shape_cast %1452 : vector<1x1x128xf32> to vector<1x128xf32>
    %1454 = vector.broadcast %1453 : vector<1x128xf32> to vector<16x128xf32>
    %1455 = arith.addf %1451, %1454 : vector<16x128xf32>
    %cst_466 = arith.constant 0.000000e+00 : f32
    %1456 = vector.broadcast %cst_466 : f32 to vector<16x128xf32>
    %1457 = arith.maximumf %1455, %1456 : vector<16x128xf32>
    %c1_467 = arith.constant 1 : index
    %c0_468 = arith.constant 0 : index
    %c0_469 = arith.constant 0 : index
    %1458 = vector.load %arg19[%c1_467, %c0_468, %c0_469] : memref<2x128x32xf32, #tpu.memory_space<vmem>>, vector<1x128x32xf32>
    %1459 = vector.shape_cast %1458 : vector<1x128x32xf32> to vector<128x32xf32>
    %cst_470 = arith.constant dense<0.000000e+00> : vector<16x32xf32>
    %1460 = tpu.matmul %1457, %1459, %cst_470 {dimension_numbers = #tpu.dot_dimension_numbers<[1], [0], [0], [1], [0, 0, 1, 1], [], []>} : vector<16x128xf32>, vector<128x32xf32>, vector<16x32xf32> -> vector<16x32xf32>
    %c1_471 = arith.constant 1 : index
    %c0_472 = arith.constant 0 : index
    %c0_473 = arith.constant 0 : index
    %1461 = vector.load %arg20[%c1_471, %c0_472, %c0_473] : memref<2x1x32xf32, #tpu.memory_space<vmem>>, vector<1x1x32xf32>
    %1462 = vector.shape_cast %1461 : vector<1x1x32xf32> to vector<1x32xf32>
    %1463 = vector.broadcast %1462 : vector<1x32xf32> to vector<16x32xf32>
    %1464 = arith.addf %1460, %1463 : vector<16x32xf32>
    %1465 = arith.addf %1448, %1464 : vector<16x32xf32>
    %1466 = vector.broadcast %1436 : f32 to vector<16x32xf32>
    %1467 = arith.mulf %1466, %1465 : vector<16x32xf32>
    %1468 = math.tanh %1467 : vector<16x32xf32>
    %c1_474 = arith.constant 1 : index
    %c0_475 = arith.constant 0 : index
    %c0_476 = arith.constant 0 : index
    %1469 = vector.load %arg23[%c1_474, %c0_475, %c0_476] : memref<2x1x32xf32, #tpu.memory_space<vmem>>, vector<1x1x32xf32>
    %1470 = vector.shape_cast %1469 : vector<1x1x32xf32> to vector<1x32xf32>
    %1471 = vector.broadcast %1470 : vector<1x32xf32> to vector<16x32xf32>
    %1472 = arith.mulf %1468, %1471 : vector<16x32xf32>
    %c1_477 = arith.constant 1 : index
    %c0_478 = arith.constant 0 : index
    %c0_479 = arith.constant 0 : index
    %1473 = vector.load %arg24[%c1_477, %c0_478, %c0_479] : memref<2x1x32xf32, #tpu.memory_space<vmem>>, vector<1x1x32xf32>
    %1474 = vector.shape_cast %1473 : vector<1x1x32xf32> to vector<1x32xf32>
    %1475 = vector.broadcast %1474 : vector<1x32xf32> to vector<16x32xf32>
    %1476 = arith.addf %1472, %1475 : vector<16x32xf32>
    %c0_480 = arith.constant 0 : index
    %c0_481 = arith.constant 0 : index
    %c0_482 = arith.constant 0 : index
    %1477 = vector.load %arg35[%c0_480, %c0_481, %c0_482] : memref<2x8x16xf32, #tpu.memory_space<vmem>>, vector<2x8x16xf32>
    %1478 = vector.shape_cast %1477 : vector<2x8x16xf32> to vector<16x16xf32>
    %c0_483 = arith.constant 0 : index
    %c0_484 = arith.constant 0 : index
    %c0_485 = arith.constant 0 : index
    %1479 = vector.load %arg36[%c0_483, %c0_484, %c0_485] : memref<2x8x16xf32, #tpu.memory_space<vmem>>, vector<2x8x16xf32>
    %1480 = vector.shape_cast %1479 : vector<2x8x16xf32> to vector<16x16xf32>
    %c0_486 = arith.constant 0 : index
    %c0_487 = arith.constant 0 : index
    %1481 = vector.load %arg10[%c0_486, %c0_487] : memref<16x1xf32, #tpu.memory_space<vmem>>, vector<16x1xf32>
    %cst_488 = arith.constant dense<0.000000e+00> : vector<16x1xf32>
    %1482 = tpu.matmul %1478, %1481, %cst_488 {dimension_numbers = #tpu.dot_dimension_numbers<[1], [0], [0], [1], [0, 0, 1, 1], [], []>} : vector<16x16xf32>, vector<16x1xf32>, vector<16x1xf32> -> vector<16x1xf32>
    %c0_489 = arith.constant 0 : index
    %c0_490 = arith.constant 0 : index
    %1483 = vector.load %arg11[%c0_489, %c0_490] : memref<16x1xf32, #tpu.memory_space<vmem>>, vector<16x1xf32>
    %cst_491 = arith.constant dense<0.000000e+00> : vector<16x1xf32>
    %1484 = tpu.matmul %1480, %1483, %cst_491 {dimension_numbers = #tpu.dot_dimension_numbers<[1], [0], [0], [1], [0, 0, 1, 1], [], []>} : vector<16x16xf32>, vector<16x1xf32>, vector<16x1xf32> -> vector<16x1xf32>
    %1485 = arith.addf %1482, %1484 : vector<16x1xf32>
    %c0_492 = arith.constant 0 : index
    %c0_493 = arith.constant 0 : index
    %1486 = vector.load %arg12[%c0_492, %c0_493] : memref<1x1xf32, #tpu.memory_space<vmem>>, vector<1x1xf32>
    %1487 = vector.broadcast %1486 : vector<1x1xf32> to vector<16x1xf32>
    %1488 = arith.addf %1485, %1487 : vector<16x1xf32>
    %1489 = vector.shape_cast %1488 : vector<16x1xf32> to vector<2x8x1xf32>
    %cst_494 = arith.constant dense<0xFF800000> : vector<2x1xf32>
    %1490 = vector.multi_reduction <maximumf>, %1489, %cst_494 [1] : vector<2x8x1xf32> to vector<2x1xf32>
    %1491 = vector.shape_cast %1490 : vector<2x1xf32> to vector<2x1x1xf32>
    %1492 = vector.broadcast %1491 : vector<2x1x1xf32> to vector<2x8x1xf32>
    %1493 = arith.subf %1489, %1492 : vector<2x8x1xf32>
    %1494 = math.exp %1493 : vector<2x8x1xf32>
    %cst_495 = arith.constant dense<0.000000e+00> : vector<2x1xf32>
    %1495 = vector.multi_reduction <add>, %1494, %cst_495 [1] : vector<2x8x1xf32> to vector<2x1xf32>
    %1496 = vector.shape_cast %1495 : vector<2x1xf32> to vector<2x1x1xf32>
    %1497 = tpu.reciprocal %1496 {approx = true} : vector<2x1x1xf32> -> vector<2x1x1xf32>
    %1498 = vector.broadcast %1497 : vector<2x1x1xf32> to vector<2x8x1xf32>
    %1499 = arith.mulf %1494, %1498 : vector<2x8x1xf32>
    %1500 = vector.shape_cast %1476 : vector<16x32xf32> to vector<2x8x32xf32>
    %1501 = vector.broadcast %1499 : vector<2x8x1xf32> to vector<2x8x32xf32>
    %1502 = arith.mulf %1500, %1501 : vector<2x8x32xf32>
    %cst_496 = arith.constant dense<0.000000e+00> : vector<2x32xf32>
    %1503 = vector.multi_reduction <add>, %1502, %cst_496 [1] : vector<2x8x32xf32> to vector<2x32xf32>
    %cst_497 = arith.constant 8.000000e+00 : f32
    %1504 = vector.broadcast %cst_497 : f32 to vector<2x32xf32>
    %1505 = arith.divf %1503, %1504 : vector<2x32xf32>
    %c0_498 = arith.constant 0 : index
    %c0_499 = arith.constant 0 : index
    %1506 = vector.load %arg26[%c0_498, %c0_499] : memref<32x16xf32, #tpu.memory_space<vmem>>, vector<32x16xf32>
    %cst_500 = arith.constant dense<0.000000e+00> : vector<2x16xf32>
    %1507 = tpu.matmul %1505, %1506, %cst_500 {dimension_numbers = #tpu.dot_dimension_numbers<[1], [0], [0], [1], [0, 0, 1, 1], [], []>} : vector<2x32xf32>, vector<32x16xf32>, vector<2x16xf32> -> vector<2x16xf32>
    %c0_501 = arith.constant 0 : index
    %c0_502 = arith.constant 0 : index
    %1508 = vector.load %arg27[%c0_501, %c0_502] : memref<1x16xf32, #tpu.memory_space<vmem>>, vector<1x16xf32>
    %1509 = vector.broadcast %1508 : vector<1x16xf32> to vector<2x16xf32>
    %1510 = arith.addf %1507, %1509 : vector<2x16xf32>
    %cst_503 = arith.constant 0.000000e+00 : f32
    %1511 = vector.broadcast %cst_503 : f32 to vector<2x16xf32>
    %1512 = arith.maximumf %1510, %1511 : vector<2x16xf32>
    %c0_504 = arith.constant 0 : index
    %c0_505 = arith.constant 0 : index
    %1513 = vector.load %arg28[%c0_504, %c0_505] : memref<16x1xf32, #tpu.memory_space<vmem>>, vector<16x1xf32>
    %cst_506 = arith.constant dense<0.000000e+00> : vector<2x1xf32>
    %1514 = tpu.matmul %1512, %1513, %cst_506 {dimension_numbers = #tpu.dot_dimension_numbers<[1], [0], [0], [1], [0, 0, 1, 1], [], []>} : vector<2x16xf32>, vector<16x1xf32>, vector<2x1xf32> -> vector<2x1xf32>
    %c0_507 = arith.constant 0 : index
    %c0_508 = arith.constant 0 : index
    %1515 = vector.load %arg29[%c0_507, %c0_508] : memref<1x1xf32, #tpu.memory_space<vmem>>, vector<1x1xf32>
    %1516 = vector.broadcast %1515 : vector<1x1xf32> to vector<2x1xf32>
    %1517 = arith.addf %1514, %1516 : vector<2x1xf32>
    %c0_509 = arith.constant 0 : index
    %c0_510 = arith.constant 0 : index
    %1518 = vector.load %arg30[%c0_509, %c0_510] : memref<2x1xf32, #tpu.memory_space<vmem>>, vector<2x1xf32>
    tpu.vector_store %arg30[%c0_509, %c0_510], %1517 {strides = array<i32>} : memref<2x1xf32, #tpu.memory_space<vmem>>, vector<2x1xf32>,
    return
  }
}

</mosaic_0001>

<bundles_post_ra>
// kernel: tfcam_forward.1
= control target key start
LH: loop header
LB: loop body
LE: loop exit
PB: predicated region body
PF: predicated region fallthrough
CT: control target
= control target key end

     0   :  { %s12025_s6 = smov 1   ;;  %s12026_s10 = smov 2   ;;  %s14237_s0 = inlined_call_operand.smem [shape: u32[31], index: -1, kind: input, shape index: {}] }
   0x1   :  { %s12096_s5 = sld [smem:[%s14237_s0]]   ;;  %s12027_s14 = smov 3  }
   0x2   :  { %s12101_s9 = sld [smem:[%s14237_s0 + %s12025_s6]]   ;;  %s12028_s18 = smov 4  }
   0x3   :  { %s12106_s13 = sld [smem:[%s14237_s0 + %s12026_s10]]   ;;  %s12029_s22 = smov 5  }
   0x4   :  { %s12111_s17 = sld [smem:[%s14237_s0 + %s12027_s14]]   ;;  %s12030_s26 = smov 6  }
   0x5   :  { %s12116_s21 = sld [smem:[%s14237_s0 + %s12028_s18]]   ;;  %s12031_s30 = smov 7  }
   0x6   :  { %s12121_s25 = sld [smem:[%s14237_s0 + %s12029_s22]]   ;;  %s12032_s4 = smov 8  }
   0x7   :  { %s12126_s29 = sld [smem:[%s14237_s0 + %s12030_s26]]   ;;  %s12033_s10 = smov 9  }
   0x8   :  { %s12131_s3 = sld [smem:[%s14237_s0 + %s12031_s30]]   ;;  %s12034_s15 = smov 10  }
   0x9   :  { %s12136_s8 = sld [smem:[%s14237_s0 + %s12032_s4]]   ;;  %s12035_s20 = smov 11  }
   0xa   :  { %s12141_s14 = sld [smem:[%s14237_s0 + %s12033_s10]]   ;;  %s12036_s26 = smov 12  }
   0xb   :  { %s12146_s19 = sld [smem:[%s14237_s0 + %s12034_s15]]   ;;  %s12037_s1 = smov 13  }
   0xc   :  { %14274 = sst [smem:[#allocation37_spill]] %s12121_s25  ;;  %s12038_s7 = smov 14  }
   0xd   :  { %14275 = sst [smem:[#allocation38_spill]] %s12126_s29  ;;  %s12039_s15 = smov 15  }
   0xe   :  { %14276 = sst [smem:[#allocation39_spill]] %s12131_s3  ;;  %s12040_s22 = smov 16  }
   0xf   :  { %s12151_s24 = sld [smem:[%s14237_s0 + %s12035_s20]]   ;;  %s12041_s28 = smov 17  }
  0x10   :  { %s9905_s30 = sld [smem:[%s14237_s0 + %s12036_s26]]  }
  0x11   :  { %14277 = sst [smem:[#allocation40_spill]] %s12146_s19 }
  0x12   :  { %s12159_s6 = sld [smem:[%s14237_s0 + %s12037_s1]]   ;;  %s12045_s1 = smov 21  }
  0x13   :  { %s12164_s12 = sld [smem:[%s14237_s0 + %s12038_s7]]   ;;  %s12042_s7 = smov 18  }
  0x14   :  { %s12169_s20 = sld [smem:[%s14237_s0 + %s12039_s15]]   ;;  %s12043_s15 = smov 19  }
  0x15   :  { %14278 = sst [smem:[#allocation41_spill]] %s12151_s24  ;;  %s12048_s24 = smov 24  }
  0x16   :  { %s12174_s27 = sld [smem:[%s14237_s0 + %s12040_s22]]   ;;  %v66_v0 = vstv %s9905_s30  ;;  %s12044_s22 = smov 20  }
  0x17   :  { %s12179_s4 = sld [smem:[%s14237_s0 + %s12041_s28]]   ;;  %67 = vst [vmem:[#allocation10] sm:$0x1] %v66_v0  ;;  %s12046_s30 = smov 22  }
  0x18   :  { %14279 = sst [smem:[#allocation42_spill]] %s12159_s6 }
  0x19   :  { %14280 = sst [smem:[#allocation43_spill]] %s12164_s12 }
  0x1a   :  { %14281 = sst [smem:[#allocation44_spill]] %s12169_s20 }
  0x1b   :  { %s12184_s19 = sld [smem:[%s14237_s0 + %s12042_s7]]  }
  0x1c   :  { %14282 = sst [smem:[#allocation45_spill]] %s12174_s27  ;;  %s12049_s27 = smov 25  }
  0x1d   :  { %14283 = sst [smem:[#allocation46_spill]] %s12179_s4 }
  0x1e   :  { %s12189_s23 = sld [smem:[%s14237_s0 + %s12043_s15]]   ;;  %s12047_s15 = smov 23  }
  0x1f   :  { %s12194_s28 = sld [smem:[%s14237_s0 + %s12044_s22]]  }
  0x20   :  { %s12199_s7 = sld [smem:[%s14237_s0 + %s12045_s1]]  }
  0x21   :  { %s12204_s16 = sld [smem:[%s14237_s0 + %s12046_s30]]   ;;  %s12050_s30 = smov 26  }
  0x22   :  { %s12209_s4 = sld [smem:[%s14237_s0 + %s12047_s15]]  }
  0x23   :  { %s12214_s20 = sld [smem:[%s14237_s0 + %s12048_s24]]   ;;  %s12052_s24 = smov 28  }
  0x24   :  { %14284 = sst [smem:[#allocation47_spill]] %s12189_s23  ;;  %s12051_s23 = smov 27  }
  0x25   :  { %s12219_s12 = sld [smem:[%s14237_s0 + %s12049_s27]]   ;;  %s12053_s27 = smov 30  }
  0x26   :  { %s12224_s6 = sld [smem:[%s14237_s0 + %s12050_s30]]   ;;  %s12054_s30 = smov 29  }
  0x27   :  { %s12229_s3 = sld [smem:[%s14237_s0 + %s12051_s23]]  }
  0x28   :  { %s12234_s29 = sld [smem:[%s14237_s0 + %s12052_s24]]  }
  0x29   :  { %s12239_s25 = sld [smem:[%s14237_s0 + %s12053_s27]]  }
  0x2c   :  { %14285 = sst [smem:[#allocation48_spill]] %s12224_s6 }
  0x2d   :  { %s9922_s6 = sld [smem:[%s14237_s0 + %s12054_s30]]  }
  0x33   :  { %v68_v1 = vstv %s9922_s6 }
  0x34   :  { %69 = vst [vmem:[#allocation11] sm:$0x1] %v68_v1 }
  0x35   :  { %70 = vsyncpa [#allocation13], 0 }
  0x36   :  { %71 = vsyncpa [#allocation16], 0 }
  0x37   :  { %72 = vsyncpa [#allocation19], 0 }
  0x38   :  { %73 = vsyncpa [#allocation22], 0 }
  0x39   :  { %74 = vsyncpa [#allocation25], 0 }
  0x3a   :  { %75 = vsyncpa [#allocation28], 0 }
  0x3b   :  { %76 = vsyncpa [#allocation14], 0  ;;  %s12055_s23 = smov [#allocation15]   ;;  %s12056_s18 = smov [#allocation18]  }
  0x3c   :  { %s95_s15 = sshll.u32 %s12055_s23, 4  ;;  %s127_s24 = sshll.u32 %s12056_s18, 4  ;;  %s96_s15 = int_to_ptr.vmem [resolvable:$true] %s95_s15  ;;  %s128_s24 = int_to_ptr.vmem [resolvable:$true] %s127_s24 }
  0x3d   :  { %s11811_s22 = scalar_lea.vmem %s96_s15, 16  ;;  %s11815_s26 = scalar_lea.vmem %s96_s15, 32 }
  0x3e   :  { %p11812_p0 = scmp.ne.s32.totalorder %s96_s15, %s11811_s22  ;;  %p11816_p1 = scmp.lt.s32.totalorder %s96_s15, %s96_s15 }
  0x3f   :  { %p11817_p2 = scmp.lt.s32.totalorder %s11815_s26, %s11811_s22 }
  0x41   :  { %p11818_p3 = por %p11817_p2, %p11816_p1 }
  0x43   :  { %p11819_p4 = pnand %p11818_p3, %p11812_p0 }
  0x45   :  { %11822 = shalt.err (!%p11819_p4)
}
  0x46   :  { %98 = dma.hbm_to_vmem [thread:$0]  %s12106_s13, 16, %s96_s15, [#allocation16]  }
  0x47   :  { %s11831_s0 = scalar_lea.vmem %s128_s24, 16  ;;  %s11835_s6 = scalar_lea.vmem %s128_s24, 32 }
  0x48   :  { %p11832_p5 = scmp.ne.s32.totalorder %s128_s24, %s11831_s0  ;;  %p11836_p6 = scmp.lt.s32.totalorder %s128_s24, %s128_s24 }
  0x49   :  { %p11837_p7 = scmp.lt.s32.totalorder %s11835_s6, %s11831_s0 }
  0x4b   :  { %p11838_p8 = por %p11837_p7, %p11836_p6 }
  0x4d   :  { %p11839_p9 = pnand %p11838_p8, %p11832_p5 }
  0x4f   :  { %11842 = shalt.err (!%p11839_p9)
}
  0x50   :  { %130 = dma.hbm_to_vmem [thread:$0]  %s12141_s14, 16, %s128_s24, [#allocation19]  }
  0x51   :  { %s12057_s27 = smov [#allocation21]   ;;  %s12058_s2 = smov [#allocation24]  }
  0x52   :  { %s166_s1 = sshll.u32 %s12057_s27, 4  ;;  %s190_s30 = sshll.u32 %s12058_s2, 4  ;;  %s167_s1 = int_to_ptr.vmem [resolvable:$true] %s166_s1  ;;  %s191_s30 = int_to_ptr.vmem [resolvable:$true] %s190_s30 }
  0x53   :  { %s11851_s10 = scalar_lea.vmem %s167_s1, 32  ;;  %p11856_p11 = scmp.lt.s32.totalorder %s167_s1, %s167_s1 }
  0x54   :  { %p11852_p10 = scmp.ne.s32.totalorder %s167_s1, %s11851_s10  ;;  %p11857_p12 = scmp.lt.s32.totalorder %s11851_s10, %s11851_s10 }
  0x56   :  { %p11858_p13 = por %p11857_p12, %p11856_p11 }
  0x58   :  { %p11859_p0 = pnand %p11858_p13, %p11852_p10 }
  0x5a   :  { %11862 = shalt.err (!%p11859_p0)
}
  0x5b   :  { %s12059_s13 = smov 16   ;;  %s12060_s11 = smov 1  }
  0x5c   :  { %172 = dma.hbm_to_vmem [thread:$0]  %s12194_s28, 32, %s167_s1, [#allocation22], %s12059_s13, %s12059_s13, %s12060_s11  }
  0x5d   :  { %s11871_s14 = scalar_lea.vmem %s191_s30, 32  ;;  %p11876_p2 = scmp.lt.s32.totalorder %s191_s30, %s191_s30 }
  0x5e   :  { %p11872_p1 = scmp.ne.s32.totalorder %s191_s30, %s11871_s14  ;;  %p11877_p3 = scmp.lt.s32.totalorder %s11871_s14, %s11871_s14 }
  0x60   :  { %p11878_p4 = por %p11877_p3, %p11876_p2 }
  0x62   :  { %p11879_p5 = pnand %p11878_p4, %p11872_p1 }
  0x64   :  { %11882 = shalt.err (!%p11879_p5)
}
  0x65   :  { %196 = dma.hbm_to_vmem [thread:$0]  %s12204_s16, 32, %s191_s30, [#allocation25], %s12059_s13, %s12059_s13, %s12060_s11  }
  0x66   :  { %s12061_s23 = smov [#allocation12]   ;;  %s12062_s18 = smov [#allocation17]  }
  0x67   :  { %s85_s15 = sshll.u32 %s12061_s23, 4  ;;  %s114_s24 = sshll.u32 %s12062_s18, 4  ;;  %s86_s15 = int_to_ptr.vmem [resolvable:$true] %s85_s15  ;;  %s115_s24 = int_to_ptr.vmem [resolvable:$true] %s114_s24 }
  0x68   :  { %s11891_s22 = scalar_lea.vmem %s86_s15, 64  ;;  %p11896_p7 = scmp.lt.s32.totalorder %s86_s15, %s86_s15 }
  0x69   :  { %p11892_p6 = scmp.ne.s32.totalorder %s86_s15, %s11891_s22  ;;  %p11897_p8 = scmp.lt.s32.totalorder %s11891_s22, %s11891_s22 }
  0x6b   :  { %p11898_p9 = por %p11897_p8, %p11896_p7 }
  0x6d   :  { %p11899_p10 = pnand %p11898_p9, %p11892_p6 }
  0x6f   :  { %11902 = shalt.err (!%p11899_p10)
}
  0x70   :  { %88 = dma.hbm_to_vmem [thread:$0]  %s12101_s9, 64, %s86_s15, [#allocation13]  }
  0x71   :  { %s11911_s28 = scalar_lea.vmem %s115_s24, 256  ;;  %p11916_p12 = scmp.lt.s32.totalorder %s115_s24, %s115_s24 }
  0x72   :  { %p11912_p11 = scmp.ne.s32.totalorder %s115_s24, %s11911_s28  ;;  %p11917_p13 = scmp.lt.s32.totalorder %s11911_s28, %s11911_s28 }
  0x74   :  { %p11918_p0 = por %p11917_p13, %p11916_p12 }
  0x76   :  { %p11919_p1 = pnand %p11918_p0, %p11912_p11 }
  0x78   :  { %11922 = shalt.err (!%p11919_p1)
}
  0x79   :  { %s12063_s16 = smov 128   ;;  %s12064_s26 = smov 8  }
  0x7a   :  { %120 = dma.hbm_to_vmem [thread:$0]  %s12136_s8, 256, %s115_s24, [#allocation16], %s12063_s16, %s12063_s16, %s12064_s26  }
  0x7b   :  { %s12065_s0 = smov [#allocation20]   ;;  %s12066_s27 = smov [#allocation23]  }
  0x7c   :  { %s152_s6 = sshll.u32 %s12065_s0, 4  ;;  %s178_s1 = sshll.u32 %s12066_s27, 4  ;;  %s153_s6 = int_to_ptr.vmem [resolvable:$true] %s152_s6  ;;  %s179_s1 = int_to_ptr.vmem [resolvable:$true] %s178_s1 }
  0x7d   :  { %s11931_s2 = scalar_lea.vmem %s153_s6, 32  ;;  %p11936_p3 = scmp.lt.s32.totalorder %s153_s6, %s153_s6 }
  0x7e   :  { %p11932_p2 = scmp.ne.s32.totalorder %s153_s6, %s11931_s2  ;;  %p11937_p4 = scmp.lt.s32.totalorder %s11931_s2, %s11931_s2 }
  0x80   :  { %p11938_p5 = por %p11937_p4, %p11936_p3 }
  0x82   :  { %p11939_p6 = pnand %p11938_p5, %p11932_p2 }
  0x84   :  { %11942 = shalt.err (!%p11939_p6)
}
  0x85   :  { %158 = dma.hbm_to_vmem [thread:$0]  %s12184_s19, 32, %s153_s6, [#allocation19], %s12059_s13, %s12059_s13, %s12060_s11  }
  0x86   :  { %s11951_s9 = scalar_lea.vmem %s179_s1, 32  ;;  %p11956_p8 = scmp.lt.s32.totalorder %s179_s1, %s179_s1 }
  0x87   :  { %p11952_p7 = scmp.ne.s32.totalorder %s179_s1, %s11951_s9  ;;  %p11957_p9 = scmp.lt.s32.totalorder %s11951_s9, %s11951_s9 }
  0x89   :  { %p11958_p10 = por %p11957_p9, %p11956_p8 }
  0x8b   :  { %p11959_p11 = pnand %p11958_p10, %p11952_p7 }
  0x8d   :  { %11962 = shalt.err (!%p11959_p11)
}
  0x8e   :  { %184 = dma.hbm_to_vmem [thread:$0]  %s12199_s7, 32, %s179_s1, [#allocation22], %s12059_s13, %s12059_s13, %s12060_s11  }
  0x8f   :  { %s12067_s8 = smov [#allocation26]   ;;  %s12068_s10 = smov [#allocation27]  }
  0x90   :  { %s202_s30 = sshll.u32 %s12067_s8, 4  ;;  %s214_s14 = sshll.u32 %s12068_s10, 4  ;;  %s203_s30 = int_to_ptr.vmem [resolvable:$true] %s202_s30  ;;  %s215_s14 = int_to_ptr.vmem [resolvable:$true] %s214_s14 }
  0x91   :  { %s11971_s23 = scalar_lea.vmem %s203_s30, 32  ;;  %p11976_p13 = scmp.lt.s32.totalorder %s203_s30, %s203_s30 }
  0x92   :  { %p11972_p12 = scmp.ne.s32.totalorder %s203_s30, %s11971_s23  ;;  %p11977_p0 = scmp.lt.s32.totalorder %s11971_s23, %s11971_s23 }
  0x94   :  { %p11978_p1 = por %p11977_p0, %p11976_p13 }
  0x96   :  { %p11979_p2 = pnand %p11978_p1, %p11972_p12 }
  0x98   :  { %11982 = shalt.err (!%p11979_p2)
}
  0x99   :  { %208 = dma.hbm_to_vmem [thread:$0]  %s12209_s4, 32, %s203_s30, [#allocation25], %s12059_s13, %s12059_s13, %s12060_s11  }
  0x9a   :  { %s11991_s19 = scalar_lea.vmem %s215_s14, 32  ;;  %p11996_p4 = scmp.lt.s32.totalorder %s215_s14, %s215_s14 }
  0x9b   :  { %p11992_p3 = scmp.ne.s32.totalorder %s215_s14, %s11991_s19  ;;  %p11997_p5 = scmp.lt.s32.totalorder %s11991_s19, %s11991_s19 }
  0x9d   :  { %p11998_p6 = por %p11997_p5, %p11996_p4 }
  0x9f   :  { %p11999_p7 = pnand %p11998_p6, %p11992_p3 }
  0xa1   :  { %12002 = shalt.err (!%p11999_p7)
}
  0xa2   :  { %220 = dma.hbm_to_vmem [thread:$0]  %s12214_s20, 32, %s215_s14, [#allocation28], %s12059_s13, %s12059_s13, %s12060_s11  }
  0xa3   :  { %s12069_s7 = smov [#allocation29]  }
  0xa4   :  { %228 = dma.hbm_to_smem %s12219_s12, 32, %s12069_s7, [#allocation14]  }
  0xa5   :  { %12011 = dma.done.wait [#allocation13], 64  }
  0xa6   :  { %12012 = vsyncadd [#allocation13], 4294967232 }
  0xa7   :  { %12013 = dma.done.wait [#allocation16], 272  }
  0xa8   :  { %12014 = vsyncadd [#allocation16], 4294967024 }
  0xa9   :  { %12015 = dma.done.wait [#allocation19], 48  }
  0xaa   :  { %12016 = vsyncadd [#allocation19], 4294967248 }
  0xab   :  { %12017 = dma.done.wait [#allocation22], 64  }
  0xac   :  { %12018 = vsyncadd [#allocation22], 4294967232 }
  0xad   :  { %12019 = dma.done.wait [#allocation25], 64  }
  0xae   :  { %12020 = vsyncadd [#allocation25], 4294967232 }
  0xaf   :  { %12021 = dma.done.wait [#allocation28], 32  }
  0xb0   :  { %12022 = vsyncadd [#allocation28], 4294967264 }
  0xb1   :  { %12023 = dma.done.wait [#allocation14], 32  }
  0xb2   :  { %12024 = vsyncadd [#allocation14], 4294967264 }
  0xb3   :  { %270 = sfence }
  0xb4   :  { %v272_v2 = vld [vmem:[%s12096_s5 + $0x8] sm:$0xff]  ;;  %v271_v3 = vld [vmem:[%s12096_s5] sm:$0xff]  ;;  %v12070_v4 = vmov 0   ;;  %v12071_v5 = vmov 1   ;;  %v12072_v6 = vmov 2   ;;  %v364_v7 = vld [vmem:[%s12116_s21 + $0x18] sm:$0xff]  ;;  %v284_v18 = vlaneseq }
  0xb5   :  { %11172 = vset.pattern.permute.xlu1 %v12070_v4  ;;  %11170 = vset.pattern.permute.xlu0 %v12070_v4  ;;  %v9937_v8 = vld [vmem:[%s12116_s21 + $0x38] sm:$0xff]  ;;  %v12073_v9 = vmov 3   ;;  %v363_v10 = vld [vmem:[%s12116_s21 + $0x10] sm:$0xff]  ;;  %v362_v12 = vld [vmem:[%s12116_s21 + $0x8] sm:$0xff]  ;;  %vm372_vm0 = vcmask 261120   ;;  %s14286_s5 = sld [smem:[#allocation37_spill]] }
  0xb6   :  { %281 = vperm.xlu1 %11172, %v272_v2   ;;  %276 = vperm.xlu0 %11170, %v271_v3   ;;  %v9936_v11 = vld [vmem:[%s12116_s21 + $0x30] sm:$0xff]  ;;  %v9935_v13 = vld [vmem:[%s12116_s21 + $0x28] sm:$0xff]  ;;  %v361_v14 = vld [vmem:[%s12116_s21] sm:$0xff]  ;;  %v285_v19 = vshrl.u32 %v284_v18, 7  ;;  %v14250_v1 = vmov 0.0   ;;  %vm12075_vm1 = vmmov 0  }
  0xb7   :  { %10479 = vmatprep.subr.mxu0 %v364_v7  ;;  %10490 = vmatprep.subr.mxu1 %v9937_v8  ;;  %v9934_v15 = vld [vmem:[%s12116_s21 + $0x20] sm:$0xff]  ;;  %v9945_v16 = vld [vmem:[%s12116_s21 + $0x58] sm:$0xff]  ;;  %v9944_v57 = vld [vmem:[%s12116_s21 + $0x50] sm:$0xff]  ;;  %vm454_vm2 = vcmask 523264   ;;  %s12077_s12 = smov 32   ;;  %vm1279_vm3 = vcmask 1041409  }
  0xb8   :  { %10480 = vmatpush3.msra.mxu0 %v364_v7  ;;  %10491 = vmatpush3.msra.mxu1 %v9937_v8  ;;  %v9953_v17 = vld [vmem:[%s12116_s21 + $0x78] sm:$0xff]  ;;  %v286_v22 = vsub.s32 0, %v285_v19  ;;  %v300_v23 = vsub.s32 1, %v285_v19  ;;  %v273_v24 = vld [vmem:[#allocation12] sm:$0xf]  ;;  %v316_v25 = vsub.s32 2, %v285_v19 }
  0xb9   :  { %10481 = vmatprep.subr.mxu0 %v363_v10  ;;  %10492 = vmatprep.subr.mxu1 %v9936_v11  ;;  %v332_v33 = vsub.s32 3, %v285_v19  ;;  %v9924_v45 = vld [vmem:[#allocation15] ss:$0 sm:$0xff]  ;;  %v9952_v58 = vld [vmem:[%s12116_s21 + $0x70] sm:$0xff]  ;;  %v9943_v59 = vld [vmem:[%s12116_s21 + $0x48] sm:$0xff]  ;;  %s12078_s20 = smov 80  }
  0xba   :  { %11173 = vset.pattern.permute.xlu1 %v12071_v5  ;;  %11171 = vset.pattern.permute.xlu0 %v12071_v5  ;;  %v287_v28 = vrot.slane %v273_v24, %v286_v22  ;;  %v301_v29 = vrot.slane %v273_v24, %v300_v23  ;;  %v317_v32 = vrot.slane %v273_v24, %v316_v25  ;;  %v347_v48 = vld [vmem:[%s12111_s17] sm:$0xff]  ;;  %v9951_v60 = vld [vmem:[%s12116_s21 + $0x68] sm:$0xff]  ;;  %s14287_s17 = sld [smem:[#allocation38_spill]]  ;;  %vm729_vm4 = vcmask 130048   ;;  %s12079_s18 = smov 64  }
  0xbb   :  { %295 = vperm.xlu1 %11173, %v272_v2   ;;  %291 = vperm.xlu0 %11171, %v271_v3   ;;  %v333_v37 = vrot.slane %v273_v24, %v332_v33  ;;  %v9942_v61 = vld [vmem:[%s12116_s21 + $0x40] sm:$0xff]  ;;  %v12309_v63 = vld [vmem:[%s14286_s5 + $0x8] sm:$0xff]  ;;  %v12312_v0 = vld [vmem:[%s14286_s5 + $0x18] sm:$0xff]  ;;  %vm865_vm5 = vcmask 122880   ;;  %s14311_s4 = sld [smem:[#allocation39_spill]]  ;;  %vm5545_vm6 = vcmask 64512  }
  0xbc   :  { %10482 = vmatpush3.msra.mxu0 %v363_v10  ;;  %10493 = vmatpush3.msra.mxu1 %v9936_v11  ;;  %v9950_v62 = vld [vmem:[%s12116_s21 + $0x60] sm:$0xff]  ;;  %v12340_v5 = vld [vmem:[%s14286_s5 + $0x38] sm:$0xff]  ;;  %v12352_v7 = vld [vmem:[%s14286_s5 + $0x30] sm:$0xff]  ;;  %s12076_s21 = smov 96   ;;  %s14312_s11 = sld [smem:[#allocation42_spill]]  ;;  %vm9644_vm7 = vcmask 7168  }
  0xbd   :  { %10483 = vmatprep.subr.mxu0 %v362_v12  ;;  %10494 = vmatprep.subr.mxu1 %v9935_v13  ;;  %s14313_s15 = sld [smem:[#allocation43_spill]]  ;;  %s12080_s24 = smov 88   ;;  %vm9881_vm8 = vcmask 1024  }
  0xbe   :  { %10484 = vmatpush3.msra.mxu0 %v362_v12  ;;  %10495 = vmatpush3.msra.mxu1 %v9935_v13  ;;  %s12081_s22 = smov 120   ;;  %s12082_s28 = smov 56  }
  0xbf   :  { %11174 = vset.pattern.permute.xlu1 %v12072_v6  ;;  %11175 = vset.pattern.permute.xlu0 %v12072_v6  ;;  %v12347_v6 = vld [vmem:[%s14286_s5 + $0x20] sm:$0xff]  ;;  %s12083_s16 = smov 112   ;;  %s14314_s26 = sld [smem:[#allocation44_spill]] }
  0xc0   :  { %307 = vperm.xlu1 %11174, %v271_v3   ;;  %311 = vperm.xlu0 %11175, %v272_v2   ;;  %v9931_v8 = vld [vmem:[%s14287_s17] ss:$0 sm:$0xff]  ;;  %v9947_v18 = vld [vmem:[%s14287_s17 + $0x2] ss:$0 sm:$0xff]  ;;  %v9955_v19 = vld [vmem:[%s14287_s17 + $0x3] ss:$0 sm:$0xff] }
  0xc1   :  { %10485 = vmatprep.subr.mxu0 %v361_v14  ;;  %10496 = vmatprep.subr.mxu1 %v9934_v15  ;;  %s12084_s0 = smov 48   ;;  %s12085_s6 = smov 72  }
  0xc2   :  { %10486 = vmatpush3.msra.mxu0 %v361_v14  ;;  %10497 = vmatpush3.msra.mxu1 %v9934_v15  ;;  %s12086_s27 = smov 104   ;;  %s12087_s1 = smov 40  }
  0xc3   :  { %10501 = vmatprep.subr.mxu0 %v9945_v16  ;;  %10512 = vmatprep.subr.mxu1 %v9953_v17  ;;  %s14315_s2 = sld [smem:[#allocation46_spill]] }
  0xc4   :  { %11176 = vset.pattern.permute.xlu1 %v12073_v9  ;;  %11177 = vset.pattern.permute.xlu0 %v12070_v4  ;;  %v9939_v9 = vld [vmem:[%s14287_s17 + $0x1] ss:$0 sm:$0xff]  ;;  %s14316_s9 = sld [smem:[#allocation47_spill]] }
  0xc5   :  { %323 = vperm.xlu1 %11176, %v271_v3   ;;  %v12326_v3 = vld [vmem:[%s14286_s5 + $0x10] sm:$0xff]  ;;  %s14317_s8 = sld [smem:[#allocation45_spill]] }
  0xc6   :  { %s7206_s30 = sld [smem:[#allocation29]] }
  0xc7   :  { %s10093_s10 = sld [smem:[#allocation29 + $0x1]] }
  0xc8   :  { %s10148_s14 = sld [smem:[#allocation29 + $0x80]] }
  0xc9   :  { %327 = vperm.xlu1 %11176, %v272_v2   ;;  %v12321_v2 = vld [vmem:[%s14286_s5] sm:$0xff]  ;;  %s14341_s23 = sld [smem:[#allocation40_spill]] }
  0xca   :  { %s14342_s19 = sld [smem:[#allocation48_spill]] }
  0xcb   :  { %s10149_s7 = sld [smem:[#allocation29 + $0x81]] }
  0xcd   :  { %11178 = vset.pattern.permute.xlu1 %v12070_v4  ;;  %v12337_v4 = vld [vmem:[%s14286_s5 + $0x28] sm:$0xff] }
 0x131   :  { %v282_v20 = vpop.permute.xlu1 %281  ;;  %v277_v21 = vpop.permute.xlu0 %276 }
 0x132   :  { %v288_v30 = vmul.f32 %v287_v28, %v277_v21  ;;  %v289_v41 = vmul.f32 %v287_v28, %v282_v20 }
 0x136   :  { %v296_v26 = vpop.permute.xlu1 %295  ;;  %v292_v27 = vpop.permute.xlu0 %291 }
 0x137   :  { %v302_v31 = vmul.f32 %v301_v29, %v292_v27  ;;  %v303_v39 = vmul.f32 %v301_v29, %v296_v26 }
 0x139   :  { %v304_v35 = vadd.f32 %v302_v31, %v288_v30  ;;  %v305_v46 = vadd.f32 %v303_v39, %v289_v41 }
 0x13b   :  { %v308_v34 = vpop.permute.xlu1 %307  ;;  %v312_v38 = vpop.permute.xlu0 %311 }
 0x13c   :  { %v318_v36 = vmul.f32 %v317_v32, %v308_v34  ;;  %v319_v43 = vmul.f32 %v317_v32, %v312_v38 }
 0x13e   :  { %v320_v42 = vadd.f32 %v318_v36, %v304_v35  ;;  %v321_v50 = vadd.f32 %v319_v43, %v305_v46 }
 0x140   :  { %v324_v40 = vpop.permute.xlu1 %323 }
 0x141   :  { %v334_v44 = vmul.f32 %v333_v37, %v324_v40 }
 0x143   :  { %v336_v47 = vadd.f32 %v334_v44, %v320_v42 }
 0x144   :  { %v328_v49 = vpop.permute.xlu1 %327 }
 0x145   :  { %v345_v51 = vadd.f32 %v9924_v45, %v336_v47  ;;  %v335_v52 = vmul.f32 %v333_v37, %v328_v49 }
 0x147   :  { %v12286_v53 = vadd.f32 %v347_v48, %v345_v51  ;;  %v337_v54 = vadd.f32 %v335_v52, %v321_v50 }
 0x149   :  { %v346_v55 = vadd.f32 %v9924_v45, %v337_v54  ;;  %10487 = vmatprep.mubr.msk.f32.mxu0 %vm372_vm0, %v12286_v53  ;;  %10498 = vmatprep.mubr.msk.f32.mxu1 %vm372_vm0, %v12286_v53 }
 0x14b   :  { %v12292_v56 = vadd.f32 %v347_v48, %v346_v55 }
 0x14d   :  { %10488 = vmatmul.mubr.msk.f32.vlgmr.msra.gmra.mxu0 %vm372_vm0, %v12292_v56  ;;  %10499 = vmatmul.mubr.msk.f32.vlgmr.msra.gmra.mxu1 %vm372_vm0, %v12292_v56 }
 0x14e   :  { %10502 = vmatpush3.msra.mxu0 %v9945_v16  ;;  %10513 = vmatpush3.msra.mxu1 %v9953_v17 }
 0x14f   :  { %10503 = vmatprep.subr.mxu0 %v9944_v57  ;;  %10509 = vmatprep.mubr.msk.f32.mxu0 %vm372_vm0, %v12286_v53 }
 0x150   :  { %10514 = vmatprep.subr.mxu1 %v9952_v58  ;;  %10520 = vmatprep.mubr.msk.f32.mxu1 %vm372_vm0, %v12286_v53 }
 0x151   :  { %10504 = vmatpush3.msra.mxu0 %v9944_v57  ;;  %10515 = vmatpush3.msra.mxu1 %v9952_v58 }
 0x152   :  { %10505 = vmatprep.subr.mxu0 %v9943_v59  ;;  %10516 = vmatprep.subr.mxu1 %v9951_v60 }
 0x153   :  { %10506 = vmatpush3.msra.mxu0 %v9943_v59  ;;  %10517 = vmatpush3.msra.mxu1 %v9951_v60 }
 0x154   :  { %10507 = vmatprep.subr.mxu0 %v9942_v61  ;;  %10518 = vmatprep.subr.mxu1 %v9950_v62 }
 0x155   :  { %10508 = vmatpush3.msra.mxu0 %v9942_v61  ;;  %10519 = vmatpush3.msra.mxu1 %v9950_v62 }
 0x156   :  { %10510 = vmatmul.mubr.msk.f32.vlgmr.msra.gmra.mxu0 %vm372_vm0, %v12292_v56  ;;  %10521 = vmatmul.mubr.msk.f32.vlgmr.msra.gmra.mxu1 %vm372_vm0, %v12292_v56 }
 0x157   :  { %10523 = vmatprep.subr.mxu0 %v14250_v1  ;;  %10530 = vmatprep.subr.mxu1 %v14250_v1 }
 0x158   :  { %10524 = vmatpush3.msra.mxu0 %v12309_v63  ;;  %10531 = vmatpush3.msra.mxu1 %v12312_v0 }
 0x159   :  { %10525 = vmatprep.subr.mxu0 %v14250_v1  ;;  %10532 = vmatprep.subr.mxu1 %v14250_v1 }
 0x15a   :  { %10526 = vmatpush3.msra.mxu0 %v12321_v2  ;;  %10527 = vmatprep.mubr.msk.f32.mxu0 %vm12075_vm1, %v14250_v1 }
 0x15b   :  { %10533 = vmatpush3.msra.mxu1 %v12326_v3  ;;  %10534 = vmatprep.mubr.msk.f32.mxu1 %vm12075_vm1, %v14250_v1 }
 0x15c   :  { %10528 = vmatmul.mubr.f32.vlgmr.msra.gmra.mxu0 %v14250_v1  ;;  %10535 = vmatmul.mubr.f32.vlgmr.msra.gmra.mxu1 %v14250_v1 }
 0x15d   :  { %10537 = vmatprep.subr.mxu0 %v14250_v1  ;;  %10544 = vmatprep.subr.mxu1 %v14250_v1 }
 0x15e   :  { %10538 = vmatpush3.msra.mxu0 %v12337_v4  ;;  %10545 = vmatpush3.msra.mxu1 %v12340_v5 }
 0x15f   :  { %10539 = vmatprep.subr.mxu0 %v14250_v1  ;;  %10546 = vmatprep.subr.mxu1 %v14250_v1 }
 0x160   :  { %10540 = vmatpush3.msra.mxu0 %v12347_v6  ;;  %10541 = vmatprep.mubr.msk.f32.mxu0 %vm12075_vm1, %v14250_v1 }
 0x161   :  { %10547 = vmatpush3.msra.mxu1 %v12352_v7  ;;  %10548 = vmatprep.mubr.msk.f32.mxu1 %vm12075_vm1, %v14250_v1 }
 0x162   :  { %10542 = vmatmul.mubr.f32.vlgmr.msra.gmra.mxu0 %v14250_v1  ;;  %10549 = vmatmul.mubr.f32.vlgmr.msra.gmra.mxu1 %v14250_v1 }
 0x163   :  { %10551 = vmatprep.subr.mxu0 %v14250_v1  ;;  %10558 = vmatprep.subr.mxu1 %v14250_v1 }
 0x164   :  { %10552 = vmatpush3.msra.mxu0 %v12309_v63  ;;  %10559 = vmatpush3.msra.mxu1 %v12312_v0 }
 0x165   :  { %10553 = vmatprep.subr.mxu0 %v14250_v1  ;;  %10560 = vmatprep.subr.mxu1 %v14250_v1 }
 0x166   :  { %10561 = vmatpush3.msra.mxu1 %v12326_v3  ;;  %10562 = vmatprep.mubr.msk.f32.mxu1 %vm12075_vm1, %v14250_v1 }
 0x167   :  { %10554 = vmatpush3.msra.mxu0 %v12321_v2  ;;  %10555 = vmatprep.mubr.msk.f32.mxu0 %vm12075_vm1, %v14250_v1 }
 0x168   :  { %10565 = vmatprep.subr.mxu0 %v14250_v1  ;;  %10572 = vmatprep.subr.mxu1 %v14250_v1 }
 0x20d   :  { %v10489_v10 = vpop.f32.mrf.mxu0  ;;  %v10500_v11 = vpop.f32.mrf.mxu1 }
 0x20e   :  { %v451_v12 = vadd.f32 %v10489_v10, %v9931_v8  ;;  %v542_v13 = vadd.f32 %v10500_v11, %v9939_v9 }
 0x20f   :  { %v445_v14 = vpop.f32.mrf.mxu0  ;;  %v536_v15 = vpop.f32.mrf.mxu1 }
 0x210   :  { %456 = vst.msk [vmem:[#allocation2 + $0x8] sm:$0xff] %vm454_vm2, %v451_v12  ;;  %546 = vst.msk [vmem:[#allocation3 + $0x8] sm:$0xff] %vm454_vm2, %v542_v13  ;;  %v446_v16 = vadd.f32 %v9931_v8, %v445_v14  ;;  %v537_v17 = vadd.f32 %v9939_v9, %v536_v15 }
 0x212   :  { %455 = vst.msk [vmem:[#allocation2] sm:$0xff] %vm454_vm2, %v446_v16  ;;  %545 = vst.msk [vmem:[#allocation3] sm:$0xff] %vm454_vm2, %v537_v17 }
 0x216   :  { %v10511_v20 = vpop.f32.mrf.mxu0  ;;  %v10522_v21 = vpop.f32.mrf.mxu1 }
 0x217   :  { %v632_v22 = vadd.f32 %v10511_v20, %v9947_v18  ;;  %v722_v23 = vadd.f32 %v10522_v21, %v9955_v19  ;;  %v728_v35 = vld [vmem:[#allocation2 + $0x8] sm:$0x1]  ;;  %v869_v40 = vld [vmem:[#allocation3 + $0xf] sm:$0x1] }
 0x218   :  { %v626_v24 = vpop.f32.mrf.mxu0  ;;  %v716_v25 = vpop.f32.mrf.mxu1 }
 0x219   :  { %636 = vst.msk [vmem:[#allocation4 + $0x8] sm:$0xff] %vm454_vm2, %v632_v22  ;;  %726 = vst.msk [vmem:[#allocation5 + $0x8] sm:$0xff] %vm454_vm2, %v722_v23  ;;  %v627_v26 = vadd.f32 %v9947_v18, %v626_v24  ;;  %v717_v27 = vadd.f32 %v9955_v19, %v716_v25  ;;  %v727_v28 = vld [vmem:[#allocation2] sm:$0x1]  ;;  %v868_v29 = vld [vmem:[#allocation3 + $0x7] sm:$0x1] }
 0x21b   :  { %635 = vst.msk [vmem:[#allocation4] sm:$0xff] %vm454_vm2, %v627_v26  ;;  %725 = vst.msk [vmem:[#allocation5] sm:$0xff] %vm454_vm2, %v717_v27 }
 0x21c   :  { %v799_v30 = vpop.f32.mrf.mxu0  ;;  %v936_v31 = vpop.f32.mrf.mxu1 }
 0x21d   :  { %v804_v32 = vrot.slane %v799_v30, 1  ;;  %v807_v33 = vadd.f32 %v799_v30, %v727_v28  ;;  %v944_v34 = vadd.f32 %v936_v31, %v868_v29  ;;  %v941_v36 = vrot.slane %v936_v31, 1 }
 0x21e   :  { %v10529_v37 = vpop.f32.mrf.mxu0  ;;  %v10536_v38 = vpop.f32.mrf.mxu1 }
 0x21f   :  { %v808_v39 = vadd.f32 %v804_v32, %v728_v35  ;;  %11179 = vtanh.f32 %v807_v33  ;;  %v945_v41 = vadd.f32 %v941_v36, %v869_v40  ;;  %v9958_v11 = vmul.f32 -1.442695, %v807_v33 }
 0x220   :  { %11181 = vtanh.f32 %v944_v34  ;;  %v1005_v44 = vld [vmem:[#allocation4 + $0x8] sm:$0x1]  ;;  %v1141_v51 = vld [vmem:[#allocation5 + $0xf] sm:$0x1]  ;;  %v9960_v12 = vmul.f32 -1.442695, %v944_v34 }
 0x221   :  { %11183 = vtanh.f32 %v808_v39  ;;  %v9959_v13 = vmul.f32 -1.442695, %v808_v39  ;;  %v9961_v14 = vmul.f32 -1.442695, %v945_v41 }
 0x222   :  { %v1072_v42 = vpop.f32.mrf.mxu0  ;;  %v1208_v43 = vpop.f32.mrf.mxu1  ;;  %11185 = vtanh.f32 %v945_v41  ;;  %v1004_v48 = vld [vmem:[#allocation4] sm:$0x1]  ;;  %v1140_v55 = vld [vmem:[#allocation5 + $0x7] sm:$0x1] }
 0x223   :  { %v1077_v45 = vrot.slane %v1072_v42, 1  ;;  %v1213_v50 = vrot.slane %v1208_v43, 1  ;;  %v1080_v52 = vadd.f32 %v1072_v42, %v1004_v48  ;;  %v1216_v59 = vadd.f32 %v1208_v43, %v1140_v55 }
 0x224   :  { %v10543_v46 = vpop.f32.mrf.mxu0  ;;  %v10550_v47 = vpop.f32.mrf.mxu1 }
 0x225   :  { %v1081_v49 = vadd.f32 %v1077_v45, %v1005_v44  ;;  %v1217_v54 = vadd.f32 %v1213_v50, %v1141_v51  ;;  %v9962_v16 = vmul.f32 -1.442695, %v1080_v52  ;;  %v9964_v20 = vmul.f32 -1.442695, %v1216_v59 }
 0x227   :  { %11187 = vtanh.f32 %v1081_v49  ;;  %v9963_v15 = vmul.f32 -1.442695, %v1081_v49  ;;  %v9965_v17 = vmul.f32 -1.442695, %v1217_v54 }
 0x228   :  { %11189 = vtanh.f32 %v1080_v52 }
 0x229   :  { %11191 = vtanh.f32 %v1217_v54 }
 0x22a   :  { %11193 = vtanh.f32 %v1216_v59 }
 0x22b   :  { %11195 = vpow2.f32 %v9958_v11 }
 0x22c   :  { %v11180_v57 = vpop.eup %11179  ;;  %11197 = vpow2.f32 %v9960_v12 }
 0x22d   :  { %v11182_v58 = vpop.eup %11181  ;;  %827 = vrot.lane.b32.xlu0 %v11180_v57, %s12076_s21  ;;  %11199 = vpow2.f32 %v9959_v13 }
 0x22e   :  { %964 = vrot.lane.b32.xlu1 %v11182_v58, %s12076_s21  ;;  %v11184_v60 = vpop.eup %11183  ;;  %11201 = vpow2.f32 %v9961_v14 }
 0x22f   :  { %v11186_v61 = vpop.eup %11185  ;;  %11203 = vpow2.f32 %v9963_v15 }
 0x230   :  { %11205 = vpow2.f32 %v9962_v16 }
 0x231   :  { %829 = vrot.lane.b32.xlu0 %v11184_v60, %s12076_s21  ;;  %11207 = vpow2.f32 %v9965_v17 }
 0x232   :  { %966 = vrot.lane.b32.xlu1 %v11186_v61, %s12076_s21  ;;  %11209 = vpow2.f32 %v9964_v20 }
 0x234   :  { %v11188_v62 = vpop.eup %11187 }
 0x235   :  { %1102 = vrot.lane.b32.xlu0 %v11188_v62, %s12076_s21  ;;  %v11190_v8 = vpop.eup %11189 }
 0x236   :  { %v11192_v9 = vpop.eup %11191 }
 0x237   :  { %1238 = vrot.lane.b32.xlu1 %v11192_v9, %s12076_s21  ;;  %v11194_v10 = vpop.eup %11193 }
 0x238   :  { %v11196_v18 = vpop.eup %11195 }
 0x239   :  { %1100 = vrot.lane.b32.xlu0 %v11190_v8, %s12076_s21  ;;  %v11198_v19 = vpop.eup %11197  ;;  %v815_v21 = vadd.f32 1.0, %v11196_v18 }
 0x23a   :  { %v11200_v22 = vpop.eup %11199  ;;  %v952_v23 = vadd.f32 1.0, %v11198_v19 }
 0x23b   :  { %1236 = vrot.lane.b32.xlu1 %v11194_v10, %s12076_s21  ;;  %v11202_v24 = vpop.eup %11201  ;;  %v816_v25 = vadd.f32 1.0, %v11200_v22  ;;  %11211 = vrcp.f32 %v815_v21 }
 0x23c   :  { %11213 = vrcp.f32 %v952_v23  ;;  %v953_v26 = vadd.f32 1.0, %v11202_v24  ;;  %v11204_v27 = vpop.eup %11203 }
 0x23d   :  { %11215 = vrcp.f32 %v816_v25  ;;  %v11206_v28 = vpop.eup %11205  ;;  %v1089_v29 = vadd.f32 1.0, %v11204_v27 }
 0x23e   :  { %11217 = vrcp.f32 %v953_v26  ;;  %v11208_v30 = vpop.eup %11207  ;;  %v1088_v31 = vadd.f32 1.0, %v11206_v28 }
 0x23f   :  { %11219 = vrcp.f32 %v1089_v29  ;;  %v1225_v32 = vadd.f32 1.0, %v11208_v30  ;;  %v11210_v33 = vpop.eup %11209 }
 0x240   :  { %11221 = vrcp.f32 %v1088_v31  ;;  %v1224_v39 = vadd.f32 1.0, %v11210_v33 }
 0x241   :  { %11223 = vrcp.f32 %v1225_v32 }
 0x242   :  { %11225 = vrcp.f32 %v1224_v39 }
 0x248   :  { %v12398_v34 = vpop.eup %11211 }
 0x249   :  { %v12400_v36 = vpop.eup %11213  ;;  %v823_v61 = vmul.f32 0.0, %v12398_v34 }
 0x24a   :  { %v12405_v41 = vpop.eup %11215  ;;  %v960_v62 = vmul.f32 0.0, %v12400_v36 }
 0x24b   :  { %v12409_v44 = vpop.eup %11217  ;;  %v824_v12 = vmul.f32 0.0, %v12405_v41 }
 0x24c   :  { %v12414_v47 = vpop.eup %11219  ;;  %v961_v15 = vmul.f32 0.0, %v12409_v44 }
 0x24d   :  { %v12417_v50 = vpop.eup %11221  ;;  %v1097_v18 = vmul.f32 0.0, %v12414_v47 }
 0x24e   :  { %v12420_v51 = vpop.eup %11223  ;;  %v1096_v22 = vmul.f32 0.0, %v12417_v50 }
 0x24f   :  { %v12426_v58 = vpop.eup %11225  ;;  %v1233_v21 = vmul.f32 0.0, %v12420_v51 }
 0x250   :  { %v1232_v29 = vmul.f32 0.0, %v12426_v58 }
 0x29f   :  { %v828_v35 = vpop.permute.xlu0 %827 }
 0x2a0   :  { %v965_v37 = vpop.permute.xlu1 %964  ;;  %v833_v38 = vmul.f32 %v12398_v34, %v828_v35 }
 0x2a1   :  { %v970_v40 = vmul.f32 %v12400_v36, %v965_v37 }
 0x2a2   :  { %837 = vrot.lane.b32.xlu0 %v833_v38, %s12059_s13 }
 0x2a3   :  { %974 = vrot.lane.b32.xlu1 %v970_v40, %s12059_s13  ;;  %v830_v42 = vpop.permute.xlu0 %829 }
 0x2a4   :  { %v834_v43 = vmul.f32 %v12405_v41, %v830_v42  ;;  %v967_v45 = vpop.permute.xlu1 %966 }
 0x2a5   :  { %v971_v46 = vmul.f32 %v12409_v44, %v967_v45 }
 0x2a6   :  { %839 = vrot.lane.b32.xlu0 %v834_v43, %s12059_s13 }
 0x2a7   :  { %976 = vrot.lane.b32.xlu1 %v971_v46, %s12059_s13  ;;  %v1103_v48 = vpop.permute.xlu0 %1102 }
 0x2a8   :  { %v1107_v49 = vmul.f32 %v12414_v47, %v1103_v48 }
 0x2a9   :  { %v1239_v52 = vpop.permute.xlu1 %1238 }
 0x2aa   :  { %1112 = vrot.lane.b32.xlu0 %v1107_v49, %s12059_s13  ;;  %v1243_v55 = vmul.f32 %v12420_v51, %v1239_v52 }
 0x2ab   :  { %v1101_v54 = vpop.permute.xlu0 %1100 }
 0x2ac   :  { %v1106_v57 = vmul.f32 %v12417_v50, %v1101_v54  ;;  %1248 = vrot.lane.b32.xlu1 %v1243_v55, %s12059_s13 }
 0x2ad   :  { %v1237_v59 = vpop.permute.xlu1 %1236 }
 0x2ae   :  { %1110 = vrot.lane.b32.xlu0 %v1106_v57, %s12059_s13  ;;  %v1242_v60 = vmul.f32 %v12426_v58, %v1237_v59 }
 0x2b0   :  { %1246 = vrot.lane.b32.xlu1 %v1242_v60, %s12059_s13 }
 0x314   :  { %v838_v8 = vpop.permute.xlu0 %837 }
 0x315   :  { %v975_v9 = vpop.permute.xlu1 %974  ;;  %v12432_v10 = vadd.f32 %v838_v8, %v823_v61 }
 0x316   :  { %v12434_v11 = vadd.f32 %v975_v9, %v960_v62 }
 0x317   :  { %11227 = vtanh.f32 %v12432_v10 }
 0x318   :  { %11229 = vtanh.f32 %v12434_v11  ;;  %v840_v13 = vpop.permute.xlu0 %839 }
 0x319   :  { %v12439_v14 = vadd.f32 %v840_v13, %v824_v12  ;;  %v977_v16 = vpop.permute.xlu1 %976 }
 0x31a   :  { %v12443_v17 = vadd.f32 %v977_v16, %v961_v15 }
 0x31b   :  { %11231 = vtanh.f32 %v12439_v14 }
 0x31c   :  { %11233 = vtanh.f32 %v12443_v17  ;;  %v1113_v19 = vpop.permute.xlu0 %1112 }
 0x31d   :  { %v12447_v20 = vadd.f32 %v1113_v19, %v1097_v18 }
 0x31e   :  { %v1249_v23 = vpop.permute.xlu1 %1248 }
 0x31f   :  { %11235 = vtanh.f32 %v12447_v20  ;;  %v12452_v26 = vadd.f32 %v1249_v23, %v1233_v21  ;;  %v1277_v21 = vld [vmem:[#allocation2 + $0x9] sm:$0x1]  ;;  %v1419_v23 = vld [vmem:[#allocation3 + $0x6] sm:$0x1] }
 0x320   :  { %v1111_v24 = vpop.permute.xlu0 %1110 }
 0x321   :  { %v12454_v27 = vadd.f32 %v1111_v24, %v1096_v22  ;;  %11237 = vtanh.f32 %v12452_v26 }
 0x322   :  { %v1247_v30 = vpop.permute.xlu1 %1246 }
 0x323   :  { %11239 = vtanh.f32 %v12454_v27  ;;  %v12461_v32 = vadd.f32 %v1247_v30, %v1232_v29  ;;  %v1420_v29 = vld [vmem:[#allocation3 + $0xe] sm:$0x1] }
 0x324   :  { %v11228_v25 = vpop.eup %11227 }
 0x325   :  { %v11230_v28 = vpop.eup %11229  ;;  %849 = vrot.lane.b32.xlu0 %v11228_v25, %s12077_s12  ;;  %11241 = vtanh.f32 %v12461_v32 }
 0x326   :  { %986 = vrot.lane.b32.xlu1 %v11230_v28, %s12077_s12 }
 0x328   :  { %v11232_v31 = vpop.eup %11231 }
 0x329   :  { %851 = vrot.lane.b32.xlu0 %v11232_v31, %s12077_s12  ;;  %v11234_v33 = vpop.eup %11233 }
 0x32a   :  { %988 = vrot.lane.b32.xlu1 %v11234_v33, %s12077_s12  ;;  %v1562_v33 = vld [vmem:[#allocation4 + $0x9] sm:$0x1] }
 0x32c   :  { %v11236_v35 = vpop.eup %11235 }
 0x32d   :  { %1124 = vrot.lane.b32.xlu0 %v11236_v35, %s12077_s12 }
 0x32e   :  { %v11238_v37 = vpop.eup %11237 }
 0x32f   :  { %1260 = vrot.lane.b32.xlu1 %v11238_v37, %s12077_s12 }
 0x330   :  { %v11240_v38 = vpop.eup %11239 }
 0x331   :  { %1122 = vrot.lane.b32.xlu0 %v11240_v38, %s12077_s12 }
 0x332   :  { %v11242_v39 = vpop.eup %11241 }
 0x333   :  { %1258 = vrot.lane.b32.xlu1 %v11242_v39, %s12077_s12 }
 0x397   :  { %v850_v40 = vpop.permute.xlu0 %849 }
 0x398   :  { %v987_v42 = vpop.permute.xlu1 %986  ;;  %v12474_v46 = vmul.f32 %v12398_v34, %v850_v40  ;;  %v1561_v40 = vld [vmem:[#allocation4 + $0x1] sm:$0x1] }
 0x399   :  { %v12483_v55 = vmul.f32 %v12400_v36, %v987_v42 }
 0x39a   :  { %14289 = vst [vmem:[#allocation50_spill] sm:$0xff] %v12474_v46 }
 0x39b   :  { %v852_v43 = vpop.permute.xlu0 %851  ;;  %14291 = vst [vmem:[#allocation52_spill] sm:$0xff] %v12483_v55 }
 0x39c   :  { %v12471_v45 = vmul.f32 %v12405_v41, %v852_v43  ;;  %v989_v48 = vpop.permute.xlu1 %988 }
 0x39d   :  { %v12478_v52 = vmul.f32 %v12409_v44, %v989_v48 }
 0x39e   :  { %14288 = vst [vmem:[#allocation49_spill] sm:$0xff] %v12471_v45  ;;  %v1278_v49 = vrot.slane %v12471_v45, 7 }
 0x39f   :  { %14290 = vst [vmem:[#allocation51_spill] sm:$0xff] %v12478_v52  ;;  %v1421_v57 = vrot.slane %v12478_v52, 7  ;;  %v1125_v41 = vpop.permute.xlu0 %1124 }
 0x3a0   :  { %v1280_v54 = vsel %vm1279_vm3, %v1278_v49, %v12474_v46  ;;  %v12490_v59 = vmul.f32 %v12414_v47, %v1125_v41  ;;  %v1704_v49 = vld [vmem:[#allocation5 + $0xe] sm:$0x1]  ;;  %v1703_v41 = vld [vmem:[#allocation5 + $0x6] sm:$0x1] }
 0x3a1   :  { %1281 = vrot.lane.b32.xlu0 %v1280_v54, %s12078_s20  ;;  %v1422_v34 = vsel %vm1279_vm3, %v1421_v57, %v12483_v55  ;;  %v1261_v44 = vpop.permute.xlu1 %1260 }
 0x3a2   :  { %1423 = vrot.lane.b32.xlu1 %v1422_v34, %s12078_s20  ;;  %v12494_v60 = vmul.f32 %v12420_v51, %v1261_v44  ;;  %v1563_v61 = vrot.slane %v12490_v59, 7 }
 0x3a3   :  { %v1123_v36 = vpop.permute.xlu0 %1122 }
 0x3a4   :  { %v12498_v62 = vmul.f32 %v12417_v50, %v1123_v36  ;;  %v1705_v12 = vrot.slane %v12494_v60, 7 }
 0x3a5   :  { %v1259_v8 = vpop.permute.xlu1 %1258 }
 0x3a6   :  { %v1564_v9 = vsel %vm1279_vm3, %v1563_v61, %v12498_v62  ;;  %v12504_v47 = vmul.f32 %v12426_v58, %v1259_v8 }
 0x3a7   :  { %1565 = vrot.lane.b32.xlu0 %v1564_v9, %s12078_s20 }
 0x3a8   :  { %v1706_v51 = vsel %vm1279_vm3, %v1705_v12, %v12504_v47 }
 0x3a9   :  { %1707 = vrot.lane.b32.xlu1 %v1706_v51, %s12078_s20 }
 0x413   :  { %v1282_v13 = vpop.permute.xlu0 %1281 }
 0x414   :  { %10556 = vmatmul.mubr.msk.f32.vlgmr.msra.gmra.mxu0 %vm729_vm4, %v1282_v13  ;;  %v1424_v50 = vpop.permute.xlu1 %1423 }
 0x415   :  { %10566 = vmatpush3.msra.mxu0 %v12337_v4  ;;  %10569 = vmatprep.mubr.msk.f32.mxu0 %vm12075_vm1, %v14250_v1 }
 0x416   :  { %10567 = vmatprep.subr.mxu0 %v14250_v1  ;;  %10563 = vmatmul.mubr.msk.f32.vlgmr.msra.gmra.mxu1 %vm729_vm4, %v1424_v50 }
 0x417   :  { %10568 = vmatpush3.msra.mxu0 %v12347_v6  ;;  %10573 = vmatpush3.msra.mxu1 %v12340_v5 }
 0x418   :  { %10576 = vmatprep.mubr.msk.f32.mxu1 %vm12075_vm1, %v14250_v1  ;;  %10574 = vmatprep.subr.mxu1 %v14250_v1 }
 0x419   :  { %10579 = vmatprep.subr.mxu0 %v14250_v1  ;;  %10575 = vmatpush3.msra.mxu1 %v12352_v7  ;;  %v1566_v58 = vpop.permute.xlu0 %1565 }
 0x41a   :  { %10586 = vmatprep.subr.mxu1 %v14250_v1  ;;  %10570 = vmatmul.mubr.msk.f32.vlgmr.msra.gmra.mxu0 %vm729_vm4, %v1566_v58 }
 0x41b   :  { %10580 = vmatpush3.msra.mxu0 %v12309_v63  ;;  %10583 = vmatprep.mubr.msk.f32.mxu0 %vm12075_vm1, %v14250_v1  ;;  %v1708_v15 = vpop.permute.xlu1 %1707  ;;  %v1276_v63 = vld [vmem:[#allocation2 + $0x1] sm:$0x1] }
 0x41c   :  { %10581 = vmatprep.subr.mxu0 %v14250_v1  ;;  %10577 = vmatmul.mubr.msk.f32.vlgmr.msra.gmra.mxu1 %vm729_vm4, %v1708_v15 }
 0x41d   :  { %10582 = vmatpush3.msra.mxu0 %v12321_v2  ;;  %10587 = vmatpush3.msra.mxu1 %v12312_v0 }
 0x41e   :  { %10590 = vmatprep.mubr.msk.f32.mxu1 %vm12075_vm1, %v14250_v1  ;;  %10588 = vmatprep.subr.mxu1 %v14250_v1 }
 0x41f   :  { %10593 = vmatprep.subr.mxu0 %v14250_v1  ;;  %10589 = vmatpush3.msra.mxu1 %v12326_v3 }
 0x420   :  { %10600 = vmatprep.subr.mxu1 %v14250_v1 }
 0x4d4   :  { %v1351_v16 = vpop.f32.mrf.mxu0 }
 0x4d5   :  { %v1356_v18 = vrot.slane %v1351_v16, 1  ;;  %v1359_v19 = vadd.f32 %v1351_v16, %v1276_v63 }
 0x4d6   :  { %v10557_v22 = vpop.f32.mrf.mxu0  ;;  %v1493_v0 = vpop.f32.mrf.mxu1 }
 0x4d7   :  { %v1360_v2 = vadd.f32 %v1356_v18, %v1277_v21  ;;  %11243 = vtanh.f32 %v1359_v19  ;;  %v1498_v24 = vrot.slane %v1493_v0, 1  ;;  %v1501_v25 = vadd.f32 %v1493_v0, %v1419_v23 }
 0x4d8   :  { %v10564_v28 = vpop.f32.mrf.mxu1  ;;  %v9967_v51 = vmul.f32 -1.442695, %v1359_v19 }
 0x4d9   :  { %11245 = vtanh.f32 %v1360_v2  ;;  %v1502_v30 = vadd.f32 %v1498_v24, %v1420_v29  ;;  %v9968_v13 = vmul.f32 -1.442695, %v1360_v2  ;;  %v9970_v50 = vmul.f32 -1.442695, %v1501_v25 }
 0x4da   :  { %11247 = vtanh.f32 %v1501_v25  ;;  %v1635_v3 = vpop.f32.mrf.mxu0 }
 0x4db   :  { %v1640_v31 = vrot.slane %v1635_v3, 1  ;;  %11249 = vtanh.f32 %v1502_v30  ;;  %v1643_v48 = vadd.f32 %v1635_v3, %v1561_v40  ;;  %v9971_v58 = vmul.f32 -1.442695, %v1502_v30 }
 0x4dc   :  { %v10571_v35 = vpop.f32.mrf.mxu0  ;;  %v1777_v38 = vpop.f32.mrf.mxu1 }
 0x4dd   :  { %v1644_v37 = vadd.f32 %v1640_v31, %v1562_v33  ;;  %v1782_v39 = vrot.slane %v1777_v38, 1  ;;  %v1785_v44 = vadd.f32 %v1777_v38, %v1703_v41  ;;  %v9973_v16 = vmul.f32 -1.442695, %v1643_v48 }
 0x4de   :  { %v10578_v42 = vpop.f32.mrf.mxu1 }
 0x4df   :  { %11251 = vtanh.f32 %v1644_v37  ;;  %v1786_v54 = vadd.f32 %v1782_v39, %v1704_v49  ;;  %v9974_v15 = vmul.f32 -1.442695, %v1644_v37  ;;  %v9976_v23 = vmul.f32 -1.442695, %v1785_v44 }
 0x4e0   :  { %11253 = vtanh.f32 %v1643_v48 }
 0x4e1   :  { %11255 = vtanh.f32 %v1786_v54  ;;  %v9977_v18 = vmul.f32 -1.442695, %v1786_v54 }
 0x4e2   :  { %11257 = vtanh.f32 %v1785_v44 }
 0x4e3   :  { %11259 = vpow2.f32 %v9967_v51 }
 0x4e4   :  { %v11244_v43 = vpop.eup %11243  ;;  %11261 = vpow2.f32 %v9968_v13 }
 0x4e5   :  { %1379 = vrot.lane.b32.xlu0 %v11244_v43, %s12076_s21  ;;  %11263 = vpow2.f32 %v9970_v50 }
 0x4e6   :  { %v11246_v57 = vpop.eup %11245  ;;  %11265 = vpow2.f32 %v9971_v58 }
 0x4e7   :  { %v11248_v34 = vpop.eup %11247  ;;  %11267 = vpow2.f32 %v9974_v15 }
 0x4e8   :  { %1521 = vrot.lane.b32.xlu1 %v11248_v34, %s12076_s21  ;;  %v11250_v36 = vpop.eup %11249  ;;  %11269 = vpow2.f32 %v9973_v16 }
 0x4e9   :  { %1381 = vrot.lane.b32.xlu0 %v11246_v57, %s12076_s21  ;;  %11271 = vpow2.f32 %v9977_v18 }
 0x4ec   :  { %1523 = vrot.lane.b32.xlu1 %v11250_v36, %s12076_s21  ;;  %v11252_v61 = vpop.eup %11251 }
 0x4ed   :  { %1665 = vrot.lane.b32.xlu0 %v11252_v61, %s12076_s21  ;;  %v11254_v8 = vpop.eup %11253 }
 0x4ee   :  { %v11256_v9 = vpop.eup %11255 }
 0x4ef   :  { %v11258_v12 = vpop.eup %11257 }
 0x4f0   :  { %1807 = vrot.lane.b32.xlu1 %v11256_v9, %s12076_s21  ;;  %v11260_v63 = vpop.eup %11259 }
 0x4f1   :  { %1663 = vrot.lane.b32.xlu0 %v11254_v8, %s12076_s21  ;;  %v1367_v21 = vadd.f32 1.0, %v11260_v63  ;;  %v11262_v22 = vpop.eup %11261 }
 0x4f2   :  { %v11264_v0 = vpop.eup %11263  ;;  %v1368_v24 = vadd.f32 1.0, %v11262_v22 }
 0x4f3   :  { %11273 = vrcp.f32 %v1367_v21  ;;  %v1509_v19 = vadd.f32 1.0, %v11264_v0  ;;  %v11266_v2 = vpop.eup %11265 }
 0x4f4   :  { %1805 = vrot.lane.b32.xlu1 %v11258_v12, %s12076_s21  ;;  %11275 = vpow2.f32 %v9976_v23  ;;  %v11268_v25 = vpop.eup %11267  ;;  %v1510_v28 = vadd.f32 1.0, %v11266_v2 }
 0x4f5   :  { %11277 = vrcp.f32 %v1368_v24  ;;  %v1652_v29 = vadd.f32 1.0, %v11268_v25  ;;  %v11270_v30 = vpop.eup %11269 }
 0x4f6   :  { %11279 = vrcp.f32 %v1509_v19  ;;  %v11272_v3 = vpop.eup %11271  ;;  %v1651_v33 = vadd.f32 1.0, %v11270_v30 }
 0x4f7   :  { %11281 = vrcp.f32 %v1510_v28  ;;  %v1794_v38 = vadd.f32 1.0, %v11272_v3 }
 0x4f8   :  { %11283 = vrcp.f32 %v1652_v29 }
 0x4f9   :  { %11285 = vrcp.f32 %v1651_v33 }
 0x4fa   :  { %11287 = vrcp.f32 %v1794_v38 }
 0x500   :  { %v12546_v31 = vpop.eup %11273 }
 0x501   :  { %v11276_v39 = vpop.eup %11275  ;;  %v1375_v18 = vmul.f32 %v12546_v31, %v12432_v10 }
 0x502   :  { %v12550_v40 = vpop.eup %11277  ;;  %v1793_v49 = vadd.f32 1.0, %v11276_v39 }
 0x503   :  { %v12553_v48 = vpop.eup %11279  ;;  %v1376_v0 = vmul.f32 %v12550_v40, %v12439_v14 }
 0x504   :  { %v12558_v41 = vpop.eup %11281  ;;  %11289 = vrcp.f32 %v1793_v49  ;;  %v1517_v24 = vmul.f32 %v12553_v48, %v12434_v11 }
 0x505   :  { %v12561_v36 = vpop.eup %11283  ;;  %v1518_v10 = vmul.f32 %v12558_v41, %v12443_v17 }
 0x506   :  { %v12566_v9 = vpop.eup %11285  ;;  %v1660_v14 = vmul.f32 %v12561_v36, %v12447_v20 }
 0x507   :  { %v12569_v13 = vpop.eup %11287  ;;  %v1659_v33 = vmul.f32 %v12566_v9, %v12454_v27 }
 0x508   :  { %v1802_v17 = vmul.f32 %v12569_v13, %v12452_v26 }
 0x511   :  { %v12574_v15 = vpop.eup %11289 }
 0x512   :  { %v1801_v27 = vmul.f32 %v12574_v15, %v12461_v32 }
 0x557   :  { %v1380_v35 = vpop.permute.xlu0 %1379 }
 0x558   :  { %v1385_v37 = vmul.f32 %v12546_v31, %v1380_v35 }
 0x55a   :  { %1389 = vrot.lane.b32.xlu0 %v1385_v37, %s12059_s13  ;;  %v1522_v54 = vpop.permute.xlu1 %1521 }
 0x55b   :  { %v1382_v42 = vpop.permute.xlu0 %1381  ;;  %v1527_v57 = vmul.f32 %v12553_v48, %v1522_v54 }
 0x55c   :  { %v1386_v43 = vmul.f32 %v12550_v40, %v1382_v42 }
 0x55d   :  { %1531 = vrot.lane.b32.xlu1 %v1527_v57, %s12059_s13 }
 0x55e   :  { %1391 = vrot.lane.b32.xlu0 %v1386_v43, %s12059_s13  ;;  %v1524_v34 = vpop.permute.xlu1 %1523 }
 0x55f   :  { %v1528_v44 = vmul.f32 %v12558_v41, %v1524_v34  ;;  %v1666_v61 = vpop.permute.xlu0 %1665 }
 0x560   :  { %v1670_v8 = vmul.f32 %v12561_v36, %v1666_v61 }
 0x561   :  { %1533 = vrot.lane.b32.xlu1 %v1528_v44, %s12059_s13 }
 0x562   :  { %1675 = vrot.lane.b32.xlu0 %v1670_v8, %s12059_s13  ;;  %v1808_v50 = vpop.permute.xlu1 %1807 }
 0x563   :  { %v1664_v12 = vpop.permute.xlu0 %1663  ;;  %v1812_v58 = vmul.f32 %v12569_v13, %v1808_v50 }
 0x564   :  { %v1669_v51 = vmul.f32 %v12566_v9, %v1664_v12 }
 0x565   :  { %1817 = vrot.lane.b32.xlu1 %v1812_v58, %s12059_s13 }
 0x566   :  { %1673 = vrot.lane.b32.xlu0 %v1669_v51, %s12059_s13  ;;  %v1806_v63 = vpop.permute.xlu1 %1805 }
 0x567   :  { %v1811_v16 = vmul.f32 %v12574_v15, %v1806_v63 }
 0x569   :  { %1815 = vrot.lane.b32.xlu1 %v1811_v16, %s12059_s13 }
 0x5cc   :  { %v1390_v21 = vpop.permute.xlu0 %1389 }
 0x5cd   :  { %v12580_v22 = vadd.f32 %v1390_v21, %v1375_v18 }
 0x5cf   :  { %11291 = vtanh.f32 %v12580_v22  ;;  %v1532_v2 = vpop.permute.xlu1 %1531 }
 0x5d0   :  { %v1392_v23 = vpop.permute.xlu0 %1391  ;;  %v12589_v25 = vadd.f32 %v1532_v2, %v1517_v24 }
 0x5d1   :  { %v12587_v19 = vadd.f32 %v1392_v23, %v1376_v0 }
 0x5d3   :  { %11293 = vtanh.f32 %v12587_v19  ;;  %v1534_v28 = vpop.permute.xlu1 %1533 }
 0x5d4   :  { %11295 = vtanh.f32 %v12589_v25  ;;  %v12595_v29 = vadd.f32 %v1534_v28, %v1518_v10  ;;  %v1676_v11 = vpop.permute.xlu0 %1675 }
 0x5d5   :  { %v12600_v30 = vadd.f32 %v1676_v11, %v1660_v14 }
 0x5d6   :  { %11297 = vtanh.f32 %v12595_v29 }
 0x5d7   :  { %11299 = vtanh.f32 %v12600_v30  ;;  %v1818_v20 = vpop.permute.xlu1 %1817 }
 0x5d8   :  { %v1674_v35 = vpop.permute.xlu0 %1673  ;;  %v12610_v39 = vadd.f32 %v1818_v20, %v1802_v17 }
 0x5d9   :  { %v12608_v37 = vadd.f32 %v1674_v35, %v1659_v33  ;;  %v1845_v33 = vld [vmem:[#allocation2 + $0x2] sm:$0x1] }
 0x5db   :  { %11301 = vtanh.f32 %v12608_v37  ;;  %v1816_v43 = vpop.permute.xlu1 %1815 }
 0x5dc   :  { %v11292_v3 = vpop.eup %11291  ;;  %11303 = vtanh.f32 %v12610_v39  ;;  %v12618_v26 = vadd.f32 %v1816_v43, %v1801_v27  ;;  %v1987_v43 = vld [vmem:[#allocation3 + $0x5] sm:$0x1] }
 0x5dd   :  { %1401 = vrot.lane.b32.xlu0 %v11292_v3, %s12077_s12  ;;  %v12702_v3 = vld [vmem:[%s14286_s5 + $0x10] sm:$0xff] }
 0x5de   :  { %11305 = vtanh.f32 %v12618_v26 }
 0x5e0   :  { %v11294_v38 = vpop.eup %11293 }
 0x5e1   :  { %1403 = vrot.lane.b32.xlu0 %v11294_v38, %s12077_s12  ;;  %v11296_v42 = vpop.eup %11295  ;;  %v1846_v38 = vld [vmem:[#allocation2 + $0xa] sm:$0x1] }
 0x5e2   :  { %1543 = vrot.lane.b32.xlu1 %v11296_v42, %s12077_s12 }
 0x5e3   :  { %v11298_v49 = vpop.eup %11297 }
 0x5e4   :  { %v11300_v54 = vpop.eup %11299 }
 0x5e5   :  { %1687 = vrot.lane.b32.xlu0 %v11300_v54, %s12077_s12 }
 0x5e6   :  { %1545 = vrot.lane.b32.xlu1 %v11298_v49, %s12077_s12 }
 0x5e8   :  { %v11302_v57 = vpop.eup %11301 }
 0x5e9   :  { %1685 = vrot.lane.b32.xlu0 %v11302_v57, %s12077_s12  ;;  %v11304_v34 = vpop.eup %11303 }
 0x5ea   :  { %1829 = vrot.lane.b32.xlu1 %v11304_v34, %s12077_s12  ;;  %v1988_v34 = vld [vmem:[#allocation3 + $0xd] sm:$0x1] }
 0x5eb   :  { %v11306_v32 = vpop.eup %11305 }
 0x5ee   :  { %1827 = vrot.lane.b32.xlu1 %v11306_v32, %s12077_s12 }
 0x64f   :  { %v1402_v44 = vpop.permute.xlu0 %1401 }
 0x650   :  { %v12630_v51 = vmul.f32 %v12546_v31, %v1402_v44 }
 0x652   :  { %14293 = vst [vmem:[#allocation54_spill] sm:$0xff] %v12630_v51 }
 0x653   :  { %v1404_v61 = vpop.permute.xlu0 %1403 }
 0x654   :  { %v12627_v8 = vmul.f32 %v12550_v40, %v1404_v61  ;;  %v1544_v12 = vpop.permute.xlu1 %1543 }
 0x655   :  { %v12640_v18 = vmul.f32 %v12553_v48, %v1544_v12 }
 0x656   :  { %14292 = vst [vmem:[#allocation53_spill] sm:$0xff] %v12627_v8  ;;  %v1847_v50 = vrot.slane %v12627_v8, 7 }
 0x657   :  { %v1688_v21 = vpop.permute.xlu0 %1687 }
 0x658   :  { %v1848_v58 = vsel %vm1279_vm3, %v1847_v50, %v12630_v51  ;;  %v1546_v63 = vpop.permute.xlu1 %1545  ;;  %v12644_v31 = vmul.f32 %v12561_v36, %v1688_v21  ;;  %v2130_v50 = vld [vmem:[#allocation4 + $0xa] sm:$0x1]  ;;  %v2129_v21 = vld [vmem:[#allocation4 + $0x2] sm:$0x1] }
 0x659   :  { %1849 = vrot.lane.b32.xlu0 %v1848_v58, %s12078_s20  ;;  %v12637_v16 = vmul.f32 %v12558_v41, %v1546_v63 }
 0x65a   :  { %v2131_v24 = vrot.slane %v12644_v31, 7 }
 0x65b   :  { %14294 = vst [vmem:[#allocation55_spill] sm:$0xff] %v12637_v16  ;;  %v1989_v40 = vrot.slane %v12637_v16, 7  ;;  %v1686_v23 = vpop.permute.xlu0 %1685 }
 0x65c   :  { %v12651_v41 = vmul.f32 %v12566_v9, %v1686_v23  ;;  %v1830_v2 = vpop.permute.xlu1 %1829 }
 0x65d   :  { %v1990_v0 = vsel %vm1279_vm3, %v1989_v40, %v12640_v18  ;;  %v12654_v48 = vmul.f32 %v12569_v13, %v1830_v2 }
 0x65e   :  { %1991 = vrot.lane.b32.xlu1 %v1990_v0, %s12078_s20  ;;  %v2132_v10 = vsel %vm1279_vm3, %v2131_v24, %v12651_v41 }
 0x65f   :  { %2133 = vrot.lane.b32.xlu0 %v2132_v10, %s12078_s20  ;;  %v2273_v28 = vrot.slane %v12654_v48, 7 }
 0x660   :  { %v1828_v36 = vpop.permute.xlu1 %1827 }
 0x661   :  { %v12661_v14 = vmul.f32 %v12574_v15, %v1828_v36  ;;  %v12695_v15 = vld [vmem:[%s14286_s5 + $0x18] sm:$0xff] }
 0x662   :  { %v2272_v36 = vld [vmem:[#allocation5 + $0xd] sm:$0x1] }
 0x663   :  { %v2274_v11 = vsel %vm1279_vm3, %v2273_v28, %v12661_v14 }
 0x664   :  { %2275 = vrot.lane.b32.xlu1 %v2274_v11, %s12078_s20 }
 0x6cb   :  { %v1850_v9 = vpop.permute.xlu0 %1849 }
 0x6cc   :  { %10584 = vmatmul.mubr.msk.f32.vlgmr.msra.gmra.mxu0 %vm729_vm4, %v1850_v9  ;;  %v2271_v9 = vld [vmem:[#allocation5 + $0x5] sm:$0x1] }
 0x6cd   :  { %10594 = vmatpush3.msra.mxu0 %v12337_v4  ;;  %10597 = vmatprep.mubr.msk.f32.mxu0 %vm12075_vm1, %v14250_v1 }
 0x6ce   :  { %10595 = vmatprep.subr.mxu0 %v14250_v1 }
 0x6cf   :  { %10596 = vmatpush3.msra.mxu0 %v12347_v6  ;;  %v12682_v6 = vld [vmem:[%s14286_s5 + $0x8] sm:$0xff] }
 0x6d0   :  { %10607 = vmatprep.subr.mxu0 %v14250_v1  ;;  %v1992_v13 = vpop.permute.xlu1 %1991 }
 0x6d1   :  { %10591 = vmatmul.mubr.msk.f32.vlgmr.msra.gmra.mxu1 %vm729_vm4, %v1992_v13  ;;  %v2134_v4 = vpop.permute.xlu0 %2133 }
 0x6d2   :  { %10601 = vmatpush3.msra.mxu1 %v12340_v5  ;;  %10604 = vmatprep.mubr.msk.f32.mxu1 %vm12075_vm1, %v14250_v1  ;;  %v12689_v5 = vld [vmem:[%s14286_s5] sm:$0xff] }
 0x6d3   :  { %10602 = vmatprep.subr.mxu1 %v14250_v1  ;;  %10598 = vmatmul.mubr.msk.f32.vlgmr.msra.gmra.mxu0 %vm729_vm4, %v2134_v4 }
 0x6d4   :  { %10603 = vmatpush3.msra.mxu1 %v12352_v7  ;;  %10608 = vmatpush3.msra.mxu0 %v12682_v6 }
 0x6d5   :  { %10614 = vmatprep.subr.mxu1 %v14250_v1  ;;  %10611 = vmatprep.mubr.msk.f32.mxu0 %vm12075_vm1, %v14250_v1 }
 0x6d6   :  { %10609 = vmatprep.subr.mxu0 %v14250_v1  ;;  %v2276_v7 = vpop.permute.xlu1 %2275 }
 0x6d7   :  { %10610 = vmatpush3.msra.mxu0 %v12689_v5  ;;  %10605 = vmatmul.mubr.msk.f32.vlgmr.msra.gmra.mxu1 %vm729_vm4, %v2276_v7 }
 0x6d8   :  { %10621 = vmatprep.subr.mxu0 %v14250_v1  ;;  %10615 = vmatpush3.msra.mxu1 %v12695_v15 }
 0x6d9   :  { %10618 = vmatprep.mubr.msk.f32.mxu1 %vm12075_vm1, %v14250_v1  ;;  %10616 = vmatprep.subr.mxu1 %v14250_v1 }
 0x6da   :  { %10617 = vmatpush3.msra.mxu1 %v12702_v3 }
 0x6db   :  { %10628 = vmatprep.subr.mxu1 %v14250_v1 }
 0x78c   :  { %v1919_v35 = vpop.f32.mrf.mxu0 }
 0x78d   :  { %v1924_v17 = vrot.slane %v1919_v35, 1  ;;  %v1927_v20 = vadd.f32 %v1919_v35, %v1845_v33 }
 0x78e   :  { %v10585_v42 = vpop.f32.mrf.mxu0 }
 0x78f   :  { %v1928_v27 = vadd.f32 %v1924_v17, %v1846_v38  ;;  %11307 = vtanh.f32 %v1927_v20  ;;  %v9979_v38 = vmul.f32 -1.442695, %v1927_v20 }
 0x791   :  { %v2061_v49 = vpop.f32.mrf.mxu1  ;;  %11309 = vtanh.f32 %v1928_v27  ;;  %v9980_v42 = vmul.f32 -1.442695, %v1928_v27 }
 0x792   :  { %v2066_v54 = vrot.slane %v2061_v49, 1  ;;  %v2069_v57 = vadd.f32 %v2061_v49, %v1987_v43 }
 0x793   :  { %v10592_v32 = vpop.f32.mrf.mxu1  ;;  %v2203_v61 = vpop.f32.mrf.mxu0 }
 0x794   :  { %v2070_v44 = vadd.f32 %v2066_v54, %v1988_v34  ;;  %11311 = vtanh.f32 %v2069_v57  ;;  %v2208_v12 = vrot.slane %v2203_v61, 1  ;;  %v2211_v0 = vadd.f32 %v2203_v61, %v2129_v21 }
 0x795   :  { %v10599_v58 = vpop.f32.mrf.mxu0  ;;  %v9982_v43 = vmul.f32 -1.442695, %v2069_v57 }
 0x796   :  { %11313 = vtanh.f32 %v2070_v44  ;;  %v2212_v63 = vadd.f32 %v2208_v12, %v2130_v50  ;;  %v9983_v49 = vmul.f32 -1.442695, %v2070_v44  ;;  %v9985_v32 = vmul.f32 -1.442695, %v2211_v0 }
 0x797   :  { %v2345_v23 = vpop.f32.mrf.mxu1 }
 0x798   :  { %11315 = vtanh.f32 %v2212_v63  ;;  %v2350_v24 = vrot.slane %v2345_v23, 1  ;;  %v2353_v13 = vadd.f32 %v2345_v23, %v2271_v9  ;;  %v9986_v54 = vmul.f32 -1.442695, %v2212_v63 }
 0x799   :  { %v10606_v2 = vpop.f32.mrf.mxu1  ;;  %11317 = vtanh.f32 %v2211_v0 }
 0x79a   :  { %v2354_v28 = vadd.f32 %v2350_v24, %v2272_v36  ;;  %v9988_v21 = vmul.f32 -1.442695, %v2353_v13 }
 0x79c   :  { %v11308_v40 = vpop.eup %11307  ;;  %11319 = vtanh.f32 %v2354_v28  ;;  %v9989_v50 = vmul.f32 -1.442695, %v2354_v28 }
 0x79d   :  { %1947 = vrot.lane.b32.xlu0 %v11308_v40, %s12076_s21  ;;  %11321 = vtanh.f32 %v2353_v13 }
 0x79e   :  { %v11310_v10 = vpop.eup %11309  ;;  %11323 = vpow2.f32 %v9979_v38 }
 0x79f   :  { %11325 = vpow2.f32 %v9980_v42 }
 0x7a0   :  { %11327 = vpow2.f32 %v9982_v43 }
 0x7a1   :  { %1949 = vrot.lane.b32.xlu0 %v11310_v10, %s12076_s21  ;;  %v11312_v11 = vpop.eup %11311  ;;  %11329 = vpow2.f32 %v9983_v49 }
 0x7a2   :  { %2089 = vrot.lane.b32.xlu1 %v11312_v11, %s12076_s21  ;;  %11331 = vpow2.f32 %v9986_v54 }
 0x7a3   :  { %v11314_v4 = vpop.eup %11313  ;;  %11333 = vpow2.f32 %v9985_v32 }
 0x7a5   :  { %v11316_v7 = vpop.eup %11315 }
 0x7a6   :  { %2091 = vrot.lane.b32.xlu1 %v11314_v4, %s12076_s21  ;;  %2233 = vrot.lane.b32.xlu0 %v11316_v7, %s12076_s21  ;;  %v11318_v33 = vpop.eup %11317 }
 0x7a9   :  { %v11320_v35 = vpop.eup %11319 }
 0x7aa   :  { %2231 = vrot.lane.b32.xlu0 %v11318_v33, %s12076_s21  ;;  %2375 = vrot.lane.b32.xlu1 %v11320_v35, %s12076_s21  ;;  %v11322_v17 = vpop.eup %11321 }
 0x7ab   :  { %v11324_v34 = vpop.eup %11323 }
 0x7ac   :  { %v1935_v61 = vadd.f32 1.0, %v11324_v34  ;;  %v11326_v12 = vpop.eup %11325 }
 0x7ad   :  { %v11328_v58 = vpop.eup %11327  ;;  %v1936_v40 = vadd.f32 1.0, %v11326_v12 }
 0x7ae   :  { %2373 = vrot.lane.b32.xlu1 %v11322_v17, %s12076_s21  ;;  %11335 = vrcp.f32 %v1935_v61  ;;  %v2077_v20 = vadd.f32 1.0, %v11328_v58  ;;  %v11330_v27 = vpop.eup %11329 }
 0x7af   :  { %11337 = vpow2.f32 %v9989_v50  ;;  %v2078_v57 = vadd.f32 1.0, %v11330_v27  ;;  %v11332_v44 = vpop.eup %11331 }
 0x7b0   :  { %11339 = vrcp.f32 %v1936_v40  ;;  %v2220_v63 = vadd.f32 1.0, %v11332_v44  ;;  %v11334_v0 = vpop.eup %11333 }
 0x7b1   :  { %11341 = vpow2.f32 %v9988_v21  ;;  %v2219_v2 = vadd.f32 1.0, %v11334_v0 }
 0x7b2   :  { %11343 = vrcp.f32 %v2077_v20 }
 0x7b3   :  { %11345 = vrcp.f32 %v2078_v57 }
 0x7b4   :  { %11347 = vrcp.f32 %v2220_v63 }
 0x7b5   :  { %11349 = vrcp.f32 %v2219_v2 }
 0x7bb   :  { %v12714_v23 = vpop.eup %11335 }
 0x7bc   :  { %v11338_v36 = vpop.eup %11337  ;;  %v1943_v57 = vmul.f32 %v12714_v23, %v12580_v22 }
 0x7bd   :  { %v12718_v28 = vpop.eup %11339  ;;  %v2362_v13 = vadd.f32 1.0, %v11338_v36 }
 0x7be   :  { %v11342_v9 = vpop.eup %11341  ;;  %v1944_v0 = vmul.f32 %v12718_v28, %v12587_v19 }
 0x7bf   :  { %v12721_v7 = vpop.eup %11343  ;;  %v2361_v17 = vadd.f32 1.0, %v11342_v9  ;;  %11351 = vrcp.f32 %v2362_v13 }
 0x7c0   :  { %v12726_v38 = vpop.eup %11345  ;;  %v2085_v2 = vmul.f32 %v12721_v7, %v12589_v25 }
 0x7c1   :  { %11353 = vrcp.f32 %v2361_v17  ;;  %v12730_v49 = vpop.eup %11347  ;;  %v2086_v22 = vmul.f32 %v12726_v38, %v12595_v29 }
 0x7c2   :  { %v12734_v32 = vpop.eup %11349  ;;  %v2228_v19 = vmul.f32 %v12730_v49, %v12600_v30 }
 0x7cc   :  { %v12738_v50 = vpop.eup %11351 }
 0x7ce   :  { %v12742_v21 = vpop.eup %11353 }
 0x80f   :  { %v1948_v24 = vpop.permute.xlu0 %1947 }
 0x810   :  { %v1953_v10 = vmul.f32 %v12714_v23, %v1948_v24 }
 0x812   :  { %1957 = vrot.lane.b32.xlu0 %v1953_v10, %s12059_s13 }
 0x813   :  { %v1950_v11 = vpop.permute.xlu0 %1949 }
 0x814   :  { %v1954_v4 = vmul.f32 %v12718_v28, %v1950_v11  ;;  %v2090_v33 = vpop.permute.xlu1 %2089 }
 0x815   :  { %v2095_v35 = vmul.f32 %v12721_v7, %v2090_v33 }
 0x816   :  { %1959 = vrot.lane.b32.xlu0 %v1954_v4, %s12059_s13 }
 0x817   :  { %2099 = vrot.lane.b32.xlu1 %v2095_v35, %s12059_s13  ;;  %v2227_v35 = vmul.f32 %v12734_v32, %v12608_v37  ;;  %v2369_v37 = vmul.f32 %v12742_v21, %v12618_v26 }
 0x818   :  { %v2092_v42 = vpop.permute.xlu1 %2091  ;;  %v2234_v54 = vpop.permute.xlu0 %2233 }
 0x819   :  { %v2096_v43 = vmul.f32 %v12726_v38, %v2092_v42  ;;  %v2238_v34 = vmul.f32 %v12730_v49, %v2234_v54 }
 0x81b   :  { %2101 = vrot.lane.b32.xlu1 %v2096_v43, %s12059_s13  ;;  %2243 = vrot.lane.b32.xlu0 %v2238_v34, %s12059_s13  ;;  %v2370_v43 = vmul.f32 %v12738_v50, %v12610_v39 }
 0x81c   :  { %v2232_v61 = vpop.permute.xlu0 %2231  ;;  %v2376_v58 = vpop.permute.xlu1 %2375 }
 0x81d   :  { %v2237_v12 = vmul.f32 %v12734_v32, %v2232_v61  ;;  %v2380_v40 = vmul.f32 %v12738_v50, %v2376_v58 }
 0x81f   :  { %2241 = vrot.lane.b32.xlu0 %v2237_v12, %s12059_s13  ;;  %2385 = vrot.lane.b32.xlu1 %v2380_v40, %s12059_s13 }
 0x820   :  { %v2374_v20 = vpop.permute.xlu1 %2373 }
 0x821   :  { %v2379_v27 = vmul.f32 %v12742_v21, %v2374_v20 }
 0x823   :  { %2383 = vrot.lane.b32.xlu1 %v2379_v27, %s12059_s13 }
 0x884   :  { %v1958_v44 = vpop.permute.xlu0 %1957 }
 0x885   :  { %v12748_v63 = vadd.f32 %v1958_v44, %v1943_v57 }
 0x887   :  { %11355 = vtanh.f32 %v12748_v63 }
 0x888   :  { %v1960_v24 = vpop.permute.xlu0 %1959 }
 0x889   :  { %v12755_v10 = vadd.f32 %v1960_v24, %v1944_v0  ;;  %v2100_v36 = vpop.permute.xlu1 %2099 }
 0x88a   :  { %v12757_v11 = vadd.f32 %v2100_v36, %v2085_v2 }
 0x88b   :  { %11357 = vtanh.f32 %v12755_v10 }
 0x88c   :  { %11359 = vtanh.f32 %v12757_v11 }
 0x88d   :  { %v2102_v9 = vpop.permute.xlu1 %2101  ;;  %v2244_v25 = vpop.permute.xlu0 %2243 }
 0x88e   :  { %v12763_v13 = vadd.f32 %v2102_v9, %v2086_v22  ;;  %v12768_v4 = vadd.f32 %v2244_v25, %v2228_v19 }
 0x890   :  { %11361 = vtanh.f32 %v12763_v13 }
 0x891   :  { %11363 = vtanh.f32 %v12768_v4  ;;  %v2242_v29 = vpop.permute.xlu0 %2241  ;;  %v2386_v54 = vpop.permute.xlu1 %2385 }
 0x892   :  { %v12774_v17 = vadd.f32 %v2242_v29, %v2227_v35  ;;  %v12780_v34 = vadd.f32 %v2386_v54, %v2370_v43 }
 0x894   :  { %v11356_v33 = vpop.eup %11355  ;;  %11365 = vtanh.f32 %v12774_v17 }
 0x895   :  { %1969 = vrot.lane.b32.xlu0 %v11356_v33, %s12077_s12  ;;  %11367 = vtanh.f32 %v12780_v34  ;;  %v2384_v12 = vpop.permute.xlu1 %2383 }
 0x896   :  { %v12786_v58 = vadd.f32 %v2384_v12, %v2369_v37  ;;  %v12849_v12 = vld [vmem:[%s14286_s5 + $0x38] sm:$0xff] }
 0x898   :  { %v11358_v42 = vpop.eup %11357  ;;  %11369 = vtanh.f32 %v12786_v58 }
 0x899   :  { %1971 = vrot.lane.b32.xlu0 %v11358_v42, %s12077_s12  ;;  %v11360_v30 = vpop.eup %11359 }
 0x89a   :  { %2111 = vrot.lane.b32.xlu1 %v11360_v30, %s12077_s12 }
 0x89d   :  { %v11362_v61 = vpop.eup %11361 }
 0x89e   :  { %2113 = vrot.lane.b32.xlu1 %v11362_v61, %s12077_s12  ;;  %v11364_v39 = vpop.eup %11363  ;;  %v12836_v61 = vld [vmem:[%s14286_s5 + $0x28] sm:$0xff] }
 0x89f   :  { %2255 = vrot.lane.b32.xlu0 %v11364_v39, %s12077_s12  ;;  %v12856_v39 = vld [vmem:[%s14286_s5 + $0x30] sm:$0xff] }
 0x8a1   :  { %v11366_v40 = vpop.eup %11365 }
 0x8a2   :  { %v11368_v20 = vpop.eup %11367 }
 0x8a3   :  { %2253 = vrot.lane.b32.xlu0 %v11366_v40, %s12077_s12  ;;  %2397 = vrot.lane.b32.xlu1 %v11368_v20, %s12077_s12 }
 0x8a5   :  { %v11370_v27 = vpop.eup %11369 }
 0x8a7   :  { %2395 = vrot.lane.b32.xlu1 %v11370_v27, %s12077_s12  ;;  %v2413_v27 = vld [vmem:[#allocation2 + $0x3] sm:$0x1] }
 0x907   :  { %v1970_v26 = vpop.permute.xlu0 %1969 }
 0x908   :  { %v12798_v24 = vmul.f32 %v12714_v23, %v1970_v26 }
 0x90a   :  { %14296 = vst [vmem:[#allocation57_spill] sm:$0xff] %v12798_v24 }
 0x90b   :  { %v1972_v57 = vpop.permute.xlu0 %1971 }
 0x90c   :  { %v12795_v44 = vmul.f32 %v12718_v28, %v1972_v57  ;;  %v2112_v0 = vpop.permute.xlu1 %2111 }
 0x90d   :  { %v12808_v19 = vmul.f32 %v12721_v7, %v2112_v0 }
 0x90e   :  { %14295 = vst [vmem:[#allocation56_spill] sm:$0xff] %v12795_v44  ;;  %v2415_v2 = vrot.slane %v12795_v44, 7 }
 0x90f   :  { %14298 = vst [vmem:[#allocation59_spill] sm:$0xff] %v12808_v19 }
 0x910   :  { %v2416_v36 = vsel %vm1279_vm3, %v2415_v2, %v12798_v24  ;;  %v2114_v22 = vpop.permute.xlu1 %2113  ;;  %v2414_v2 = vld [vmem:[#allocation2 + $0xb] sm:$0x1] }
 0x911   :  { %2417 = vrot.lane.b32.xlu0 %v2416_v36, %s12078_s20  ;;  %v12805_v9 = vmul.f32 %v12726_v38, %v2114_v22  ;;  %v2256_v25 = vpop.permute.xlu0 %2255 }
 0x912   :  { %v12812_v23 = vmul.f32 %v12730_v49, %v2256_v25 }
 0x913   :  { %14297 = vst [vmem:[#allocation58_spill] sm:$0xff] %v12805_v9  ;;  %v2557_v28 = vrot.slane %v12805_v9, 7 }
 0x914   :  { %v2699_v29 = vrot.slane %v12812_v23, 7 }
 0x915   :  { %v2558_v33 = vsel %vm1279_vm3, %v2557_v28, %v12808_v19  ;;  %v2254_v35 = vpop.permute.xlu0 %2253  ;;  %v2398_v42 = vpop.permute.xlu1 %2397  ;;  %v2555_v28 = vld [vmem:[#allocation3 + $0x4] sm:$0x1] }
 0x916   :  { %2559 = vrot.lane.b32.xlu1 %v2558_v33, %s12078_s20  ;;  %v12819_v38 = vmul.f32 %v12734_v32, %v2254_v35  ;;  %v12825_v49 = vmul.f32 %v12738_v50, %v2398_v42  ;;  %v12843_v50 = vld [vmem:[%s14286_s5 + $0x20] sm:$0xff] }
 0x918   :  { %v2700_v7 = vsel %vm1279_vm3, %v2699_v29, %v12819_v38  ;;  %v2841_v30 = vrot.slane %v12825_v49, 7  ;;  %v2556_v29 = vld [vmem:[#allocation3 + $0xc] sm:$0x1] }
 0x919   :  { %2701 = vrot.lane.b32.xlu0 %v2700_v7, %s12078_s20  ;;  %v2396_v43 = vpop.permute.xlu1 %2395 }
 0x91a   :  { %v12829_v54 = vmul.f32 %v12742_v21, %v2396_v43 }
 0x91c   :  { %v2842_v32 = vsel %vm1279_vm3, %v2841_v30, %v12829_v54 }
 0x91d   :  { %2843 = vrot.lane.b32.xlu1 %v2842_v32, %s12078_s20  ;;  %v2698_v32 = vld [vmem:[#allocation4 + $0xb] sm:$0x1] }
 0x983   :  { %v2418_v37 = vpop.permute.xlu0 %2417 }
 0x984   :  { %10612 = vmatmul.mubr.msk.f32.vlgmr.msra.gmra.mxu0 %vm729_vm4, %v2418_v37 }
 0x985   :  { %10622 = vmatpush3.msra.mxu0 %v12836_v61  ;;  %10625 = vmatprep.mubr.msk.f32.mxu0 %vm12075_vm1, %v14250_v1 }
 0x986   :  { %10623 = vmatprep.subr.mxu0 %v14250_v1 }
 0x987   :  { %10624 = vmatpush3.msra.mxu0 %v12843_v50 }
 0x988   :  { %10635 = vmatprep.subr.mxu0 %v14250_v1  ;;  %v2560_v21 = vpop.permute.xlu1 %2559 }
 0x989   :  { %10619 = vmatmul.mubr.msk.f32.vlgmr.msra.gmra.mxu1 %vm729_vm4, %v2560_v21 }
 0x98a   :  { %10629 = vmatpush3.msra.mxu1 %v12849_v12  ;;  %10632 = vmatprep.mubr.msk.f32.mxu1 %vm12075_vm1, %v14250_v1 }
 0x98b   :  { %10630 = vmatprep.subr.mxu1 %v14250_v1  ;;  %v2702_v40 = vpop.permute.xlu0 %2701 }
 0x98c   :  { %10631 = vmatpush3.msra.mxu1 %v12856_v39  ;;  %10626 = vmatmul.mubr.msk.f32.vlgmr.msra.gmra.mxu0 %vm729_vm4, %v2702_v40 }
 0x98d   :  { %10642 = vmatprep.subr.mxu1 %v14250_v1  ;;  %10636 = vmatpush3.msra.mxu0 %v12682_v6 }
 0x98e   :  { %10639 = vmatprep.mubr.msk.f32.mxu0 %vm12075_vm1, %v14250_v1  ;;  %10637 = vmatprep.subr.mxu0 %v14250_v1 }
 0x98f   :  { %10638 = vmatpush3.msra.mxu0 %v12689_v5  ;;  %v2844_v20 = vpop.permute.xlu1 %2843 }
 0x990   :  { %10649 = vmatprep.subr.mxu0 %v14250_v1  ;;  %10633 = vmatmul.mubr.msk.f32.vlgmr.msra.gmra.mxu1 %vm729_vm4, %v2844_v20  ;;  %v2697_v20 = vld [vmem:[#allocation4 + $0x3] sm:$0x1] }
 0x991   :  { %10643 = vmatpush3.msra.mxu1 %v12695_v15  ;;  %10646 = vmatprep.mubr.msk.f32.mxu1 %vm12075_vm1, %v14250_v1 }
 0x992   :  { %10644 = vmatprep.subr.mxu1 %v14250_v1 }
 0x993   :  { %10645 = vmatpush3.msra.mxu1 %v12702_v3 }
 0x994   :  { %10656 = vmatprep.subr.mxu1 %v14250_v1 }
 0xa44   :  { %v2487_v26 = vpop.f32.mrf.mxu0 }
 0xa45   :  { %v2492_v57 = vrot.slane %v2487_v26, 1  ;;  %v2495_v0 = vadd.f32 %v2487_v26, %v2413_v27 }
 0xa46   :  { %v10613_v36 = vpop.f32.mrf.mxu0 }
 0xa47   :  { %v2496_v22 = vadd.f32 %v2492_v57, %v2414_v2  ;;  %11371 = vtanh.f32 %v2495_v0 }
 0xa49   :  { %v2629_v25 = vpop.f32.mrf.mxu1  ;;  %11373 = vtanh.f32 %v2496_v22 }
 0xa4a   :  { %v2634_v33 = vrot.slane %v2629_v25, 1  ;;  %v2637_v35 = vadd.f32 %v2629_v25, %v2555_v28  ;;  %v2840_v28 = vld [vmem:[#allocation5 + $0xc] sm:$0x1] }
 0xa4b   :  { %v10620_v7 = vpop.f32.mrf.mxu1 }
 0xa4c   :  { %v2638_v42 = vadd.f32 %v2634_v33, %v2556_v29  ;;  %11375 = vtanh.f32 %v2637_v35  ;;  %v2771_v43 = vpop.f32.mrf.mxu0  ;;  %v2839_v29 = vld [vmem:[#allocation5 + $0x4] sm:$0x1] }
 0xa4d   :  { %v2776_v30 = vrot.slane %v2771_v43, 1  ;;  %v2779_v27 = vadd.f32 %v2771_v43, %v2697_v20  ;;  %v9991_v20 = vmul.f32 -1.442695, %v2495_v0 }
 0xa4e   :  { %11377 = vtanh.f32 %v2638_v42  ;;  %v10627_v37 = vpop.f32.mrf.mxu0 }
 0xa4f   :  { %v2780_v21 = vadd.f32 %v2776_v30, %v2698_v32 }
 0xa50   :  { %v2913_v57 = vpop.f32.mrf.mxu1 }
 0xa51   :  { %11379 = vtanh.f32 %v2780_v21  ;;  %v2918_v2 = vrot.slane %v2913_v57, 1  ;;  %v2921_v30 = vadd.f32 %v2913_v57, %v2839_v29  ;;  %v9994_v57 = vmul.f32 -1.442695, %v2637_v35 }
 0xa52   :  { %11381 = vtanh.f32 %v2779_v27  ;;  %v10634_v25 = vpop.f32.mrf.mxu1 }
 0xa53   :  { %v2922_v33 = vadd.f32 %v2918_v2, %v2840_v28  ;;  %v9995_v2 = vmul.f32 -1.442695, %v2638_v42  ;;  %v9997_v25 = vmul.f32 -1.442695, %v2779_v27 }
 0xa54   :  { %v11372_v40 = vpop.eup %11371 }
 0xa55   :  { %2515 = vrot.lane.b32.xlu0 %v11372_v40, %s12076_s21  ;;  %11383 = vtanh.f32 %v2922_v33 }
 0xa56   :  { %v11374_v26 = vpop.eup %11373  ;;  %11385 = vtanh.f32 %v2921_v30 }
 0xa57   :  { %11387 = vpow2.f32 %v9991_v20  ;;  %v10000_v20 = vmul.f32 -1.442695, %v2921_v30 }
 0xa59   :  { %2517 = vrot.lane.b32.xlu0 %v11374_v26, %s12076_s21  ;;  %v11376_v36 = vpop.eup %11375  ;;  %v9992_v26 = vmul.f32 -1.442695, %v2496_v22 }
 0xa5a   :  { %2657 = vrot.lane.b32.xlu1 %v11376_v36, %s12076_s21  ;;  %v9998_v36 = vmul.f32 -1.442695, %v2780_v21 }
 0xa5b   :  { %v11378_v7 = vpop.eup %11377  ;;  %11389 = vpow2.f32 %v9992_v26 }
 0xa5c   :  { %11391 = vpow2.f32 %v9994_v57 }
 0xa5d   :  { %11393 = vpow2.f32 %v9995_v2 }
 0xa5e   :  { %2659 = vrot.lane.b32.xlu1 %v11378_v7, %s12076_s21  ;;  %v11380_v43 = vpop.eup %11379  ;;  %11395 = vpow2.f32 %v9998_v36 }
 0xa5f   :  { %2801 = vrot.lane.b32.xlu0 %v11380_v43, %s12076_s21  ;;  %v11382_v32 = vpop.eup %11381  ;;  %11397 = vpow2.f32 %v9997_v25 }
 0xa62   :  { %v11384_v37 = vpop.eup %11383 }
 0xa63   :  { %2799 = vrot.lane.b32.xlu0 %v11382_v32, %s12076_s21  ;;  %2943 = vrot.lane.b32.xlu1 %v11384_v37, %s12076_s21  ;;  %v11386_v40 = vpop.eup %11385  ;;  %v10001_v32 = vmul.f32 -1.442695, %v2922_v33 }
 0xa64   :  { %v11388_v28 = vpop.eup %11387 }
 0xa65   :  { %v2503_v29 = vadd.f32 1.0, %v11388_v28 }
 0xa67   :  { %2941 = vrot.lane.b32.xlu1 %v11386_v40, %s12076_s21  ;;  %11399 = vrcp.f32 %v2503_v29 }
 0xa68   :  { %v11390_v7 = vpop.eup %11389  ;;  %11401 = vpow2.f32 %v10001_v32 }
 0xa69   :  { %v11392_v43 = vpop.eup %11391  ;;  %v2504_v37 = vadd.f32 1.0, %v11390_v7 }
 0xa6a   :  { %v2645_v40 = vadd.f32 1.0, %v11392_v43  ;;  %v11394_v0 = vpop.eup %11393 }
 0xa6b   :  { %11403 = vrcp.f32 %v2504_v37  ;;  %v2646_v22 = vadd.f32 1.0, %v11394_v0  ;;  %v11396_v35 = vpop.eup %11395 }
 0xa6c   :  { %11405 = vrcp.f32 %v2645_v40  ;;  %v2788_v42 = vadd.f32 1.0, %v11396_v35  ;;  %v11398_v21 = vpop.eup %11397 }
 0xa6d   :  { %11407 = vpow2.f32 %v10000_v20  ;;  %v2787_v33 = vadd.f32 1.0, %v11398_v21 }
 0xa6e   :  { %11409 = vrcp.f32 %v2646_v22 }
 0xa6f   :  { %11411 = vrcp.f32 %v2788_v42 }
 0xa70   :  { %11413 = vrcp.f32 %v2787_v33 }
 0xa74   :  { %v12882_v27 = vpop.eup %11399 }
 0xa75   :  { %v11402_v2 = vpop.eup %11401 }
 0xa76   :  { %v2930_v29 = vadd.f32 1.0, %v11402_v2 }
 0xa78   :  { %v12886_v30 = vpop.eup %11403  ;;  %11415 = vrcp.f32 %v2930_v29 }
 0xa79   :  { %v12889_v25 = vpop.eup %11405 }
 0xa7a   :  { %v11408_v43 = vpop.eup %11407 }
 0xa7b   :  { %v12894_v37 = vpop.eup %11409  ;;  %v2929_v40 = vadd.f32 1.0, %v11408_v43  ;;  %v2511_v43 = vmul.f32 %v12882_v27, %v12748_v63 }
 0xa7c   :  { %v12898_v22 = vpop.eup %11411  ;;  %v2654_v63 = vmul.f32 %v12894_v37, %v12763_v13 }
 0xa7d   :  { %11417 = vrcp.f32 %v2929_v40  ;;  %v12902_v21 = vpop.eup %11413 }
 0xa85   :  { %v12906_v33 = vpop.eup %11415 }
 0xac7   :  { %v2516_v26 = vpop.permute.xlu0 %2515 }
 0xac8   :  { %v2521_v57 = vmul.f32 %v12882_v27, %v2516_v26 }
 0xaca   :  { %2525 = vrot.lane.b32.xlu0 %v2521_v57, %s12059_s13 }
 0xacb   :  { %v2518_v36 = vpop.permute.xlu0 %2517 }
 0xacc   :  { %v2522_v28 = vmul.f32 %v12886_v30, %v2518_v36  ;;  %v2658_v7 = vpop.permute.xlu1 %2657 }
 0xacd   :  { %v2663_v32 = vmul.f32 %v12889_v25, %v2658_v7 }
 0xace   :  { %2527 = vrot.lane.b32.xlu0 %v2522_v28, %s12059_s13  ;;  %v12910_v28 = vpop.eup %11417 }
 0xacf   :  { %2667 = vrot.lane.b32.xlu1 %v2663_v32, %s12059_s13 }
 0xad0   :  { %v2660_v0 = vpop.permute.xlu1 %2659 }
 0xad1   :  { %v2664_v20 = vmul.f32 %v12894_v37, %v2660_v0  ;;  %v2802_v35 = vpop.permute.xlu0 %2801  ;;  %v2512_v0 = vmul.f32 %v12886_v30, %v12755_v10  ;;  %v2796_v10 = vmul.f32 %v12898_v22, %v12768_v4  ;;  %v2938_v4 = vmul.f32 %v12906_v33, %v12780_v34 }
 0xad2   :  { %v2806_v42 = vmul.f32 %v12898_v22, %v2802_v35  ;;  %v2653_v35 = vmul.f32 %v12889_v25, %v12757_v11 }
 0xad3   :  { %2669 = vrot.lane.b32.xlu1 %v2664_v20, %s12059_s13 }
 0xad4   :  { %2811 = vrot.lane.b32.xlu0 %v2806_v42, %s12059_s13 }
 0xad5   :  { %v2800_v26 = vpop.permute.xlu0 %2799  ;;  %v2944_v2 = vpop.permute.xlu1 %2943 }
 0xad6   :  { %v2805_v57 = vmul.f32 %v12902_v21, %v2800_v26  ;;  %v2948_v36 = vmul.f32 %v12906_v33, %v2944_v2 }
 0xad8   :  { %2809 = vrot.lane.b32.xlu0 %v2805_v57, %s12059_s13  ;;  %2953 = vrot.lane.b32.xlu1 %v2948_v36, %s12059_s13 }
 0xad9   :  { %v2942_v29 = vpop.permute.xlu1 %2941 }
 0xada   :  { %v2947_v7 = vmul.f32 %v12910_v28, %v2942_v29 }
 0xadc   :  { %2951 = vrot.lane.b32.xlu1 %v2947_v7, %s12059_s13 }
 0xb3c   :  { %v2526_v32 = vpop.permute.xlu0 %2525 }
 0xb3d   :  { %v12916_v40 = vadd.f32 %v2526_v32, %v2511_v43  ;;  %v2795_v43 = vmul.f32 %v12902_v21, %v12774_v17  ;;  %v2937_v17 = vmul.f32 %v12910_v28, %v12786_v58 }
 0xb3f   :  { %11419 = vtanh.f32 %v12916_v40 }
 0xb40   :  { %v2528_v20 = vpop.permute.xlu0 %2527 }
 0xb41   :  { %v12923_v42 = vadd.f32 %v2528_v20, %v2512_v0  ;;  %v2668_v26 = vpop.permute.xlu1 %2667 }
 0xb42   :  { %v12925_v57 = vadd.f32 %v2668_v26, %v2653_v35 }
 0xb43   :  { %11421 = vtanh.f32 %v12923_v42 }
 0xb44   :  { %11423 = vtanh.f32 %v12925_v57 }
 0xb45   :  { %v2670_v2 = vpop.permute.xlu1 %2669 }
 0xb46   :  { %v12931_v36 = vadd.f32 %v2670_v2, %v2654_v63  ;;  %v2812_v11 = vpop.permute.xlu0 %2811 }
 0xb47   :  { %v12936_v7 = vadd.f32 %v2812_v11, %v2796_v10 }
 0xb48   :  { %11425 = vtanh.f32 %v12931_v36 }
 0xb49   :  { %11427 = vtanh.f32 %v12936_v7 }
 0xb4a   :  { %v2810_v13 = vpop.permute.xlu0 %2809  ;;  %v2954_v35 = vpop.permute.xlu1 %2953 }
 0xb4b   :  { %v12942_v0 = vadd.f32 %v2810_v13, %v2795_v43  ;;  %v12949_v26 = vadd.f32 %v2954_v35, %v2938_v4 }
 0xb4c   :  { %v11420_v29 = vpop.eup %11419 }
 0xb4d   :  { %2537 = vrot.lane.b32.xlu0 %v11420_v29, %s12077_s12  ;;  %11429 = vtanh.f32 %v12942_v0 }
 0xb4e   :  { %11431 = vtanh.f32 %v12949_v26  ;;  %v2952_v2 = vpop.permute.xlu1 %2951 }
 0xb4f   :  { %v12955_v10 = vadd.f32 %v2952_v2, %v2937_v17 }
 0xb50   :  { %v11422_v32 = vpop.eup %11421 }
 0xb51   :  { %2539 = vrot.lane.b32.xlu0 %v11422_v32, %s12077_s12  ;;  %v11424_v20 = vpop.eup %11423  ;;  %11433 = vtanh.f32 %v12955_v10 }
 0xb52   :  { %2679 = vrot.lane.b32.xlu1 %v11424_v20, %s12077_s12 }
 0xb55   :  { %v11426_v63 = vpop.eup %11425 }
 0xb56   :  { %2681 = vrot.lane.b32.xlu1 %v11426_v63, %s12077_s12  ;;  %v11428_v34 = vpop.eup %11427 }
 0xb57   :  { %2823 = vrot.lane.b32.xlu0 %v11428_v34, %s12077_s12 }
 0xb5a   :  { %v11430_v11 = vpop.eup %11429 }
 0xb5b   :  { %2821 = vrot.lane.b32.xlu0 %v11430_v11, %s12077_s12  ;;  %v11432_v29 = vpop.eup %11431 }
 0xb5c   :  { %2965 = vrot.lane.b32.xlu1 %v11432_v29, %s12077_s12 }
 0xb5e   :  { %v11434_v43 = vpop.eup %11433 }
 0xb60   :  { %2963 = vrot.lane.b32.xlu1 %v11434_v43, %s12077_s12 }
 0xbbf   :  { %v2538_v58 = vpop.permute.xlu0 %2537 }
 0xbc0   :  { %v12966_v4 = vmul.f32 %v12882_v27, %v2538_v58 }
 0xbc2   :  { %14300 = vst [vmem:[#allocation61_spill] sm:$0xff] %v12966_v4 }
 0xbc3   :  { %v2540_v13 = vpop.permute.xlu0 %2539 }
 0xbc4   :  { %v12963_v32 = vmul.f32 %v12886_v30, %v2540_v13  ;;  %v2680_v20 = vpop.permute.xlu1 %2679 }
 0xbc5   :  { %v12976_v34 = vmul.f32 %v12889_v25, %v2680_v20 }
 0xbc6   :  { %14299 = vst [vmem:[#allocation60_spill] sm:$0xff] %v12963_v32  ;;  %v2983_v35 = vrot.slane %v12963_v32, 7 }
 0xbc8   :  { %v2984_v63 = vsel %vm1279_vm3, %v2983_v35, %v12966_v4  ;;  %v2682_v17 = vpop.permute.xlu1 %2681  ;;  %v3834_v4 = vld [vmem:[#allocation4 + $0xd] sm:$0x1] }
 0xbc9   :  { %2985 = vrot.lane.b32.xlu0 %v2984_v63, %s12078_s20  ;;  %v12973_v2 = vmul.f32 %v12894_v37, %v2682_v17  ;;  %v2824_v11 = vpop.permute.xlu0 %2823 }
 0xbca   :  { %v12982_v29 = vmul.f32 %v12898_v22, %v2824_v11 }
 0xbcb   :  { %14301 = vst [vmem:[#allocation62_spill] sm:$0xff] %v12973_v2  ;;  %v3125_v30 = vrot.slane %v12973_v2, 7 }
 0xbcc   :  { %v3267_v58 = vrot.slane %v12982_v29, 7 }
 0xbcd   :  { %v3126_v27 = vsel %vm1279_vm3, %v3125_v30, %v12976_v34  ;;  %v2822_v43 = vpop.permute.xlu0 %2821 }
 0xbce   :  { %3127 = vrot.lane.b32.xlu1 %v3126_v27, %s12078_s20  ;;  %v12987_v37 = vmul.f32 %v12902_v21, %v2822_v43  ;;  %v2966_v13 = vpop.permute.xlu1 %2965  ;;  %v2982_v43 = vld [vmem:[#allocation2 + $0xc] sm:$0x1] }
 0xbcf   :  { %v12993_v20 = vmul.f32 %v12906_v33, %v2966_v13  ;;  %v3123_v13 = vld [vmem:[#allocation3 + $0x3] sm:$0x1] }
 0xbd0   :  { %v3268_v25 = vsel %vm1279_vm3, %v3267_v58, %v12987_v37 }
 0xbd1   :  { %3269 = vrot.lane.b32.xlu0 %v3268_v25, %s12078_s20  ;;  %v3409_v22 = vrot.slane %v12993_v20, 7 }
 0xbd2   :  { %v2964_v35 = vpop.permute.xlu1 %2963 }
 0xbd3   :  { %v12997_v63 = vmul.f32 %v12910_v28, %v2964_v35 }
 0xbd5   :  { %v3410_v17 = vsel %vm1279_vm3, %v3409_v22, %v12997_v63 }
 0xbd6   :  { %3411 = vrot.lane.b32.xlu1 %v3410_v17, %s12078_s20  ;;  %v3124_v17 = vld [vmem:[#allocation3 + $0xb] sm:$0x1] }
 0xc3b   :  { %v2986_v21 = vpop.permute.xlu0 %2985 }
 0xc3c   :  { %10640 = vmatmul.mubr.msk.f32.vlgmr.msra.gmra.mxu0 %vm729_vm4, %v2986_v21 }
 0xc3d   :  { %10650 = vmatpush3.msra.mxu0 %v12836_v61  ;;  %10653 = vmatprep.mubr.msk.f32.mxu0 %vm12075_vm1, %v14250_v1 }
 0xc3e   :  { %10651 = vmatprep.subr.mxu0 %v14250_v1 }
 0xc3f   :  { %10652 = vmatpush3.msra.mxu0 %v12843_v50 }
 0xc40   :  { %10663 = vmatprep.subr.mxu0 %v14250_v1  ;;  %v3128_v33 = vpop.permute.xlu1 %3127 }
 0xc41   :  { %10647 = vmatmul.mubr.msk.f32.vlgmr.msra.gmra.mxu1 %vm729_vm4, %v3128_v33 }
 0xc42   :  { %10657 = vmatpush3.msra.mxu1 %v12849_v12  ;;  %10660 = vmatprep.mubr.msk.f32.mxu1 %vm12075_vm1, %v14250_v1 }
 0xc43   :  { %10658 = vmatprep.subr.mxu1 %v14250_v1  ;;  %v3270_v28 = vpop.permute.xlu0 %3269 }
 0xc44   :  { %10659 = vmatpush3.msra.mxu1 %v12856_v39  ;;  %10654 = vmatmul.mubr.msk.f32.vlgmr.msra.gmra.mxu0 %vm729_vm4, %v3270_v28 }
 0xc45   :  { %10670 = vmatprep.subr.mxu1 %v14250_v1  ;;  %10664 = vmatpush3.msra.mxu0 %v12682_v6  ;;  %v2981_v6 = vld [vmem:[#allocation2 + $0x4] sm:$0x1] }
 0xc46   :  { %10667 = vmatprep.mubr.msk.f32.mxu0 %vm12075_vm1, %v14250_v1  ;;  %10665 = vmatprep.subr.mxu0 %v14250_v1 }
 0xc47   :  { %10666 = vmatpush3.msra.mxu0 %v12689_v5 }
 0xc48   :  { %10677 = vmatprep.subr.mxu0 %v14250_v1  ;;  %v3412_v30 = vpop.permute.xlu1 %3411 }
 0xc49   :  { %10661 = vmatmul.mubr.msk.f32.vlgmr.msra.gmra.mxu1 %vm729_vm4, %v3412_v30  ;;  %v3266_v30 = vld [vmem:[#allocation4 + $0xc] sm:$0x1] }
 0xc4a   :  { %10671 = vmatpush3.msra.mxu1 %v12695_v15  ;;  %10674 = vmatprep.mubr.msk.f32.mxu1 %vm12075_vm1, %v14250_v1 }
 0xc4b   :  { %10672 = vmatprep.subr.mxu1 %v14250_v1 }
 0xc4c   :  { %10673 = vmatpush3.msra.mxu1 %v12702_v3 }
 0xc4d   :  { %10684 = vmatprep.subr.mxu1 %v14250_v1 }
 0xcfc   :  { %v3055_v11 = vpop.f32.mrf.mxu0 }
 0xcfd   :  { %v3060_v27 = vrot.slane %v3055_v11, 1  ;;  %v3063_v5 = vadd.f32 %v3055_v11, %v2981_v6  ;;  %v3265_v11 = vld [vmem:[#allocation4 + $0x4] sm:$0x1] }
 0xcfe   :  { %v10641_v58 = vpop.f32.mrf.mxu0 }
 0xcff   :  { %v3064_v25 = vadd.f32 %v3060_v27, %v2982_v43  ;;  %11435 = vtanh.f32 %v3063_v5 }
 0xd01   :  { %v3197_v35 = vpop.f32.mrf.mxu1  ;;  %11437 = vtanh.f32 %v3064_v25 }
 0xd02   :  { %v3202_v15 = vrot.slane %v3197_v35, 1  ;;  %v3205_v22 = vadd.f32 %v3197_v35, %v3123_v13 }
 0xd03   :  { %v10648_v21 = vpop.f32.mrf.mxu1 }
 0xd04   :  { %v3206_v33 = vadd.f32 %v3202_v15, %v3124_v17  ;;  %11439 = vtanh.f32 %v3205_v22  ;;  %v3339_v3 = vpop.f32.mrf.mxu0  ;;  %v3408_v17 = vld [vmem:[#allocation5 + $0xb] sm:$0x1] }
 0xd05   :  { %v3344_v28 = vrot.slane %v3339_v3, 1  ;;  %v3347_v27 = vadd.f32 %v3339_v3, %v3265_v11 }
 0xd06   :  { %11441 = vtanh.f32 %v3206_v33  ;;  %v10655_v1 = vpop.f32.mrf.mxu0 }
 0xd07   :  { %v3348_v6 = vadd.f32 %v3344_v28, %v3266_v30  ;;  %v3407_v28 = vld [vmem:[#allocation5 + $0x3] sm:$0x1] }
 0xd09   :  { %11443 = vtanh.f32 %v3348_v6  ;;  %v3481_v58 = vpop.f32.mrf.mxu1 }
 0xd0a   :  { %v3486_v35 = vrot.slane %v3481_v58, 1  ;;  %11445 = vtanh.f32 %v3347_v27 }
 0xd0b   :  { %v10662_v15 = vpop.f32.mrf.mxu1 }
 0xd0c   :  { %v11436_v32 = vpop.eup %11435  ;;  %v3490_v1 = vadd.f32 %v3486_v35, %v3408_v17  ;;  %v10004_v35 = vmul.f32 -1.442695, %v3064_v25  ;;  %v10006_v15 = vmul.f32 -1.442695, %v3205_v22  ;;  %v10010_v17 = vmul.f32 -1.442695, %v3348_v6 }
 0xd0d   :  { %3083 = vrot.lane.b32.xlu0 %v11436_v32, %s12076_s21  ;;  %v3489_v32 = vadd.f32 %v3481_v58, %v3407_v28  ;;  %v10007_v58 = vmul.f32 -1.442695, %v3206_v33  ;;  %v10009_v28 = vmul.f32 -1.442695, %v3347_v27 }
 0xd0e   :  { %v11438_v43 = vpop.eup %11437  ;;  %11447 = vtanh.f32 %v3490_v1 }
 0xd0f   :  { %11449 = vtanh.f32 %v3489_v32  ;;  %v10012_v22 = vmul.f32 -1.442695, %v3489_v32 }
 0xd11   :  { %3085 = vrot.lane.b32.xlu0 %v11438_v43, %s12076_s21  ;;  %v11440_v13 = vpop.eup %11439 }
 0xd12   :  { %3225 = vrot.lane.b32.xlu1 %v11440_v13, %s12076_s21  ;;  %v10003_v13 = vmul.f32 -1.442695, %v3063_v5  ;;  %v10013_v5 = vmul.f32 -1.442695, %v3490_v1 }
 0xd13   :  { %v11442_v21 = vpop.eup %11441 }
 0xd14   :  { %11451 = vpow2.f32 %v10003_v13 }
 0xd15   :  { %11453 = vpow2.f32 %v10004_v35 }
 0xd16   :  { %3227 = vrot.lane.b32.xlu1 %v11442_v21, %s12076_s21  ;;  %v11444_v3 = vpop.eup %11443  ;;  %11455 = vpow2.f32 %v10006_v15 }
 0xd17   :  { %3369 = vrot.lane.b32.xlu0 %v11444_v3, %s12076_s21  ;;  %v11446_v30 = vpop.eup %11445  ;;  %11457 = vpow2.f32 %v10007_v58 }
 0xd18   :  { %11459 = vpow2.f32 %v10010_v17 }
 0xd19   :  { %11461 = vpow2.f32 %v10009_v28 }
 0xd1b   :  { %3367 = vrot.lane.b32.xlu0 %v11446_v30, %s12076_s21  ;;  %v11448_v11 = vpop.eup %11447 }
 0xd1c   :  { %3511 = vrot.lane.b32.xlu1 %v11448_v11, %s12076_s21  ;;  %v11450_v43 = vpop.eup %11449 }
 0xd20   :  { %3509 = vrot.lane.b32.xlu1 %v11450_v43, %s12076_s21 }
 0xd21   :  { %v11452_v21 = vpop.eup %11451 }
 0xd22   :  { %v3071_v3 = vadd.f32 1.0, %v11452_v21  ;;  %v11454_v30 = vpop.eup %11453 }
 0xd23   :  { %v11456_v8 = vpop.eup %11455  ;;  %v3072_v11 = vadd.f32 1.0, %v11454_v30 }
 0xd24   :  { %11463 = vrcp.f32 %v3071_v3  ;;  %v3213_v44 = vadd.f32 1.0, %v11456_v8  ;;  %v11458_v43 = vpop.eup %11457 }
 0xd25   :  { %11465 = vrcp.f32 %v3072_v11  ;;  %v3214_v25 = vadd.f32 1.0, %v11458_v43  ;;  %v11460_v33 = vpop.eup %11459 }
 0xd26   :  { %11467 = vrcp.f32 %v3213_v44  ;;  %v11462_v6 = vpop.eup %11461  ;;  %v3356_v27 = vadd.f32 1.0, %v11460_v33 }
 0xd27   :  { %11469 = vpow2.f32 %v10013_v5  ;;  %v3355_v58 = vadd.f32 1.0, %v11462_v6 }
 0xd28   :  { %11471 = vrcp.f32 %v3214_v25 }
 0xd29   :  { %11473 = vpow2.f32 %v10012_v22 }
 0xd2a   :  { %11475 = vrcp.f32 %v3356_v27 }
 0xd2b   :  { %11477 = vrcp.f32 %v3355_v58 }
 0xd31   :  { %v13038_v13 = vpop.eup %11463 }
 0xd32   :  { %v13042_v8 = vpop.eup %11465 }
 0xd33   :  { %v13045_v32 = vpop.eup %11467 }
 0xd34   :  { %v11470_v21 = vpop.eup %11469 }
 0xd35   :  { %v13050_v3 = vpop.eup %11471  ;;  %v3498_v30 = vadd.f32 1.0, %v11470_v21 }
 0xd36   :  { %v11474_v43 = vpop.eup %11473 }
 0xd37   :  { %v3497_v25 = vadd.f32 1.0, %v11474_v43  ;;  %11479 = vrcp.f32 %v3498_v30  ;;  %v13054_v22 = vpop.eup %11475  ;;  %v3079_v30 = vmul.f32 %v13038_v13, %v12916_v40  ;;  %v3222_v40 = vmul.f32 %v13050_v3, %v12931_v36 }
 0xd38   :  { %v13058_v27 = vpop.eup %11477 }
 0xd39   :  { %11481 = vrcp.f32 %v3497_v25 }
 0xd44   :  { %v13062_v58 = vpop.eup %11479 }
 0xd7f   :  { %v3084_v35 = vpop.permute.xlu0 %3083 }
 0xd80   :  { %v3089_v15 = vmul.f32 %v13038_v13, %v3084_v35 }
 0xd82   :  { %3093 = vrot.lane.b32.xlu0 %v3089_v15, %s12059_s13 }
 0xd83   :  { %v3086_v1 = vpop.permute.xlu0 %3085 }
 0xd84   :  { %v3090_v44 = vmul.f32 %v13042_v8, %v3086_v1  ;;  %v3226_v17 = vpop.permute.xlu1 %3225 }
 0xd85   :  { %v3231_v28 = vmul.f32 %v13045_v32, %v3226_v17  ;;  %v13066_v17 = vpop.eup %11481 }
 0xd86   :  { %3095 = vrot.lane.b32.xlu0 %v3090_v44, %s12059_s13 }
 0xd87   :  { %3235 = vrot.lane.b32.xlu1 %v3231_v28, %s12059_s13 }
 0xd88   :  { %v3228_v11 = vpop.permute.xlu1 %3227 }
 0xd89   :  { %v3232_v5 = vmul.f32 %v13050_v3, %v3228_v11  ;;  %v3370_v33 = vpop.permute.xlu0 %3369 }
 0xd8a   :  { %v3374_v6 = vmul.f32 %v13054_v22, %v3370_v33  ;;  %v3221_v33 = vmul.f32 %v13045_v32, %v12925_v57 }
 0xd8b   :  { %3237 = vrot.lane.b32.xlu1 %v3232_v5, %s12059_s13  ;;  %v3080_v5 = vmul.f32 %v13042_v8, %v12923_v42  ;;  %v3364_v42 = vmul.f32 %v13054_v22, %v12936_v7 }
 0xd8c   :  { %3379 = vrot.lane.b32.xlu0 %v3374_v6, %s12059_s13 }
 0xd8d   :  { %v3368_v35 = vpop.permute.xlu0 %3367 }
 0xd8e   :  { %v3373_v15 = vmul.f32 %v13058_v27, %v3368_v35  ;;  %v3512_v1 = vpop.permute.xlu1 %3511 }
 0xd8f   :  { %v3516_v44 = vmul.f32 %v13062_v58, %v3512_v1 }
 0xd90   :  { %3377 = vrot.lane.b32.xlu0 %v3373_v15, %s12059_s13 }
 0xd91   :  { %3521 = vrot.lane.b32.xlu1 %v3516_v44, %s12059_s13 }
 0xd92   :  { %v3510_v21 = vpop.permute.xlu1 %3509 }
 0xd93   :  { %v3515_v28 = vmul.f32 %v13066_v17, %v3510_v21 }
 0xd95   :  { %3519 = vrot.lane.b32.xlu1 %v3515_v28, %s12059_s13 }
 0xdf4   :  { %v3094_v11 = vpop.permute.xlu0 %3093 }
 0xdf5   :  { %v13072_v43 = vadd.f32 %v3094_v11, %v3079_v30  ;;  %v3363_v30 = vmul.f32 %v13058_v27, %v12942_v0  ;;  %v3505_v0 = vmul.f32 %v13066_v17, %v12955_v10 }
 0xdf7   :  { %11483 = vtanh.f32 %v13072_v43 }
 0xdf8   :  { %v3096_v25 = vpop.permute.xlu0 %3095 }
 0xdf9   :  { %v13079_v6 = vadd.f32 %v3096_v25, %v3080_v5  ;;  %v3236_v35 = vpop.permute.xlu1 %3235 }
 0xdfa   :  { %v13081_v15 = vadd.f32 %v3236_v35, %v3221_v33  ;;  %v3506_v33 = vmul.f32 %v13062_v58, %v12949_v26 }
 0xdfb   :  { %11485 = vtanh.f32 %v13079_v6 }
 0xdfc   :  { %11487 = vtanh.f32 %v13081_v15 }
 0xdfd   :  { %v3238_v1 = vpop.permute.xlu1 %3237 }
 0xdfe   :  { %v13087_v44 = vadd.f32 %v3238_v1, %v3222_v40  ;;  %v3380_v21 = vpop.permute.xlu0 %3379 }
 0xdff   :  { %v13092_v28 = vadd.f32 %v3380_v21, %v3364_v42 }
 0xe00   :  { %11489 = vtanh.f32 %v13087_v44 }
 0xe01   :  { %11491 = vtanh.f32 %v13092_v28 }
 0xe02   :  { %v3378_v11 = vpop.permute.xlu0 %3377 }
 0xe03   :  { %v13098_v5 = vadd.f32 %v3378_v11, %v3363_v30  ;;  %v3522_v35 = vpop.permute.xlu1 %3521 }
 0xe04   :  { %v11484_v57 = vpop.eup %11483  ;;  %v13106_v40 = vadd.f32 %v3522_v35, %v3506_v33 }
 0xe05   :  { %3105 = vrot.lane.b32.xlu0 %v11484_v57, %s12077_s12  ;;  %11493 = vtanh.f32 %v13098_v5 }
 0xe06   :  { %11495 = vtanh.f32 %v13106_v40 }
 0xe07   :  { %v3520_v1 = vpop.permute.xlu1 %3519 }
 0xe08   :  { %v11486_v36 = vpop.eup %11485  ;;  %v13111_v57 = vadd.f32 %v3520_v1, %v3505_v0 }
 0xe09   :  { %3107 = vrot.lane.b32.xlu0 %v11486_v36, %s12077_s12  ;;  %v11488_v25 = vpop.eup %11487 }
 0xe0a   :  { %3247 = vrot.lane.b32.xlu1 %v11488_v25, %s12077_s12  ;;  %11497 = vtanh.f32 %v13111_v57 }
 0xe0d   :  { %v11490_v7 = vpop.eup %11489 }
 0xe0e   :  { %3249 = vrot.lane.b32.xlu1 %v11490_v7, %s12077_s12  ;;  %v11492_v42 = vpop.eup %11491 }
 0xe0f   :  { %3391 = vrot.lane.b32.xlu0 %v11492_v42, %s12077_s12 }
 0xe12   :  { %v11494_v21 = vpop.eup %11493 }
 0xe13   :  { %3389 = vrot.lane.b32.xlu0 %v11494_v21, %s12077_s12  ;;  %v11496_v26 = vpop.eup %11495 }
 0xe14   :  { %3533 = vrot.lane.b32.xlu1 %v11496_v26, %s12077_s12 }
 0xe17   :  { %v11498_v30 = vpop.eup %11497 }
 0xe18   :  { %3531 = vrot.lane.b32.xlu1 %v11498_v30, %s12077_s12 }
 0xe77   :  { %v3106_v36 = vpop.permute.xlu0 %3105 }
 0xe78   :  { %v13122_v7 = vmul.f32 %v13038_v13, %v3106_v36 }
 0xe7a   :  { %14303 = vst [vmem:[#allocation64_spill] sm:$0xff] %v13122_v7 }
 0xe7b   :  { %v3108_v11 = vpop.permute.xlu0 %3107 }
 0xe7c   :  { %v13119_v10 = vmul.f32 %v13042_v8, %v3108_v11  ;;  %v3248_v25 = vpop.permute.xlu1 %3247 }
 0xe7d   :  { %v13132_v42 = vmul.f32 %v13045_v32, %v3248_v25 }
 0xe7e   :  { %14302 = vst [vmem:[#allocation63_spill] sm:$0xff] %v13119_v10  ;;  %v3551_v33 = vrot.slane %v13119_v10, 7 }
 0xe7f   :  { %14305 = vst [vmem:[#allocation66_spill] sm:$0xff] %v13132_v42 }
 0xe80   :  { %v3552_v35 = vsel %vm1279_vm3, %v3551_v33, %v13122_v7  ;;  %v3250_v0 = vpop.permute.xlu1 %3249 }
 0xe81   :  { %3553 = vrot.lane.b32.xlu0 %v3552_v35, %s12078_s20  ;;  %v13129_v1 = vmul.f32 %v13050_v3, %v3250_v0  ;;  %v3392_v21 = vpop.permute.xlu0 %3391 }
 0xe82   :  { %v13139_v26 = vmul.f32 %v13054_v22, %v3392_v21  ;;  %v3549_v21 = vld [vmem:[#allocation2 + $0x5] sm:$0x1] }
 0xe83   :  { %14304 = vst [vmem:[#allocation65_spill] sm:$0xff] %v13129_v1  ;;  %v3693_v8 = vrot.slane %v13129_v1, 7 }
 0xe84   :  { %v3835_v36 = vrot.slane %v13139_v26, 7 }
 0xe85   :  { %v3694_v13 = vsel %vm1279_vm3, %v3693_v8, %v13132_v42  ;;  %v3390_v30 = vpop.permute.xlu0 %3389  ;;  %v14306_v8 = vmov 0.0   ;;  %v4543_v42 = vld [vmem:[#allocation5 + $0x1] sm:$0x1] }
 0xe86   :  { %3695 = vrot.lane.b32.xlu1 %v3694_v13, %s12078_s20  ;;  %v13143_v3 = vmul.f32 %v13058_v27, %v3390_v30  ;;  %v3534_v11 = vpop.permute.xlu1 %3533  ;;  %v13194_v13 = vld [vmem:[%s14286_s5 + $0x10] sm:$0xff] }
 0xe87   :  { %v13149_v25 = vmul.f32 %v13062_v58, %v3534_v11  ;;  %v3550_v11 = vld [vmem:[#allocation2 + $0xd] sm:$0x1] }
 0xe88   :  { %v3836_v32 = vsel %vm1279_vm3, %v3835_v36, %v13143_v3 }
 0xe89   :  { %3837 = vrot.lane.b32.xlu0 %v3836_v32, %s12078_s20  ;;  %v3977_v35 = vrot.slane %v13149_v25, 7 }
 0xe8a   :  { %v3532_v33 = vpop.permute.xlu1 %3531 }
 0xe8b   :  { %v13153_v22 = vmul.f32 %v13066_v17, %v3532_v33  ;;  %v13187_v17 = vld [vmem:[%s14286_s5 + $0x18] sm:$0xff] }
 0xe8d   :  { %v3978_v0 = vsel %vm1279_vm3, %v3977_v35, %v13153_v22 }
 0xe8e   :  { %3979 = vrot.lane.b32.xlu1 %v3978_v0, %s12078_s20  ;;  %v3691_v0 = vld [vmem:[#allocation3 + $0x2] sm:$0x1] }
 0xef3   :  { %v3554_v27 = vpop.permute.xlu0 %3553 }
 0xef4   :  { %10668 = vmatmul.mubr.msk.f32.vlgmr.msra.gmra.mxu0 %vm729_vm4, %v3554_v27 }
 0xef5   :  { %10678 = vmatpush3.msra.mxu0 %v12836_v61  ;;  %10681 = vmatprep.mubr.msk.f32.mxu0 %vm12075_vm1, %v14306_v8 }
 0xef6   :  { %10679 = vmatprep.subr.mxu0 %v14306_v8 }
 0xef7   :  { %10680 = vmatpush3.msra.mxu0 %v12843_v50  ;;  %v13174_v50 = vld [vmem:[%s14286_s5 + $0x8] sm:$0xff] }
 0xef8   :  { %10691 = vmatprep.subr.mxu0 %v14306_v8  ;;  %v3696_v58 = vpop.permute.xlu1 %3695 }
 0xef9   :  { %10675 = vmatmul.mubr.msk.f32.vlgmr.msra.gmra.mxu1 %vm729_vm4, %v3696_v58 }
 0xefa   :  { %10685 = vmatpush3.msra.mxu1 %v12849_v12  ;;  %10688 = vmatprep.mubr.msk.f32.mxu1 %vm12075_vm1, %v14306_v8  ;;  %v13181_v12 = vld [vmem:[%s14286_s5] sm:$0xff] }
 0xefb   :  { %10686 = vmatprep.subr.mxu1 %v14306_v8  ;;  %v3838_v61 = vpop.permute.xlu0 %3837 }
 0xefc   :  { %10687 = vmatpush3.msra.mxu1 %v12856_v39  ;;  %10682 = vmatmul.mubr.msk.f32.vlgmr.msra.gmra.mxu0 %vm729_vm4, %v3838_v61 }
 0xefd   :  { %10698 = vmatprep.subr.mxu1 %v14306_v8  ;;  %10692 = vmatpush3.msra.mxu0 %v13174_v50 }
 0xefe   :  { %10695 = vmatprep.mubr.msk.f32.mxu0 %vm12075_vm1, %v14306_v8  ;;  %10693 = vmatprep.subr.mxu0 %v14306_v8 }
 0xeff   :  { %10694 = vmatpush3.msra.mxu0 %v13181_v12 }
 0xf00   :  { %10705 = vmatprep.subr.mxu0 %v14306_v8  ;;  %v3980_v39 = vpop.permute.xlu1 %3979 }
 0xf01   :  { %10689 = vmatmul.mubr.msk.f32.vlgmr.msra.gmra.mxu1 %vm729_vm4, %v3980_v39  ;;  %v3692_v39 = vld [vmem:[#allocation3 + $0xa] sm:$0x1] }
 0xf02   :  { %10699 = vmatpush3.msra.mxu1 %v13187_v17  ;;  %10702 = vmatprep.mubr.msk.f32.mxu1 %vm12075_vm1, %v14306_v8 }
 0xf03   :  { %10700 = vmatprep.subr.mxu1 %v14306_v8 }
 0xf04   :  { %10701 = vmatpush3.msra.mxu1 %v13194_v13 }
 0xf05   :  { %10712 = vmatprep.subr.mxu1 %v14306_v8 }
 0xfb4   :  { %v3623_v30 = vpop.f32.mrf.mxu0 }
 0xfb5   :  { %v3628_v36 = vrot.slane %v3623_v30, 1  ;;  %v3631_v32 = vadd.f32 %v3623_v30, %v3549_v21  ;;  %v3833_v30 = vld [vmem:[#allocation4 + $0x5] sm:$0x1] }
 0xfb6   :  { %v10669_v33 = vpop.f32.mrf.mxu0 }
 0xfb7   :  { %v3632_v35 = vadd.f32 %v3628_v36, %v3550_v11  ;;  %11499 = vtanh.f32 %v3631_v32 }
 0xfb9   :  { %v3765_v27 = vpop.f32.mrf.mxu1  ;;  %11501 = vtanh.f32 %v3632_v35 }
 0xfba   :  { %v3770_v58 = vrot.slane %v3765_v27, 1  ;;  %v3773_v61 = vadd.f32 %v3765_v27, %v3691_v0 }
 0xfbb   :  { %v10676_v10 = vpop.f32.mrf.mxu1 }
 0xfbc   :  { %v3774_v45 = vadd.f32 %v3770_v58, %v3692_v39  ;;  %11503 = vtanh.f32 %v3773_v61  ;;  %v3907_v7 = vpop.f32.mrf.mxu0  ;;  %v3976_v58 = vld [vmem:[#allocation5 + $0xa] sm:$0x1] }
 0xfbd   :  { %v3912_v24 = vrot.slane %v3907_v7, 1  ;;  %v3915_v11 = vadd.f32 %v3907_v7, %v3833_v30 }
 0xfbe   :  { %11505 = vtanh.f32 %v3774_v45  ;;  %v10683_v1 = vpop.f32.mrf.mxu0 }
 0xfbf   :  { %v3916_v21 = vadd.f32 %v3912_v24, %v3834_v4  ;;  %v3975_v4 = vld [vmem:[#allocation5 + $0x2] sm:$0x1]  ;;  %v10021_v51 = vmul.f32 -1.442695, %v3915_v11 }
 0xfc1   :  { %11507 = vtanh.f32 %v3916_v21  ;;  %v4049_v10 = vpop.f32.mrf.mxu1 }
 0xfc2   :  { %11509 = vtanh.f32 %v3915_v11  ;;  %v4054_v27 = vrot.slane %v4049_v10, 1 }
 0xfc3   :  { %v10690_v39 = vpop.f32.mrf.mxu1 }
 0xfc4   :  { %v11500_v46 = vpop.eup %11499  ;;  %v4058_v24 = vadd.f32 %v4054_v27, %v3976_v58  ;;  %v10018_v27 = vmul.f32 -1.442695, %v3773_v61  ;;  %v10022_v39 = vmul.f32 -1.442695, %v3916_v21 }
 0xfc5   :  { %3651 = vrot.lane.b32.xlu0 %v11500_v46, %s12076_s21  ;;  %v4057_v46 = vadd.f32 %v4049_v10, %v3975_v4  ;;  %v10019_v10 = vmul.f32 -1.442695, %v3774_v45 }
 0xfc6   :  { %v11502_v36 = vpop.eup %11501  ;;  %11511 = vtanh.f32 %v4058_v24 }
 0xfc7   :  { %11513 = vtanh.f32 %v4057_v46  ;;  %v10024_v61 = vmul.f32 -1.442695, %v4057_v46 }
 0xfc9   :  { %3653 = vrot.lane.b32.xlu0 %v11502_v36, %s12076_s21  ;;  %v11504_v33 = vpop.eup %11503 }
 0xfca   :  { %3793 = vrot.lane.b32.xlu1 %v11504_v33, %s12076_s21  ;;  %v10015_v33 = vmul.f32 -1.442695, %v3631_v32  ;;  %v10025_v32 = vmul.f32 -1.442695, %v4058_v24 }
 0xfcb   :  { %v11506_v0 = vpop.eup %11505 }
 0xfcc   :  { %11515 = vpow2.f32 %v10015_v33 }
 0xfce   :  { %3795 = vrot.lane.b32.xlu1 %v11506_v0, %s12076_s21  ;;  %v11508_v1 = vpop.eup %11507  ;;  %v10016_v0 = vmul.f32 -1.442695, %v3632_v35 }
 0xfcf   :  { %3937 = vrot.lane.b32.xlu0 %v11508_v1, %s12076_s21  ;;  %v11510_v7 = vpop.eup %11509 }
 0xfd0   :  { %11517 = vpow2.f32 %v10016_v0 }
 0xfd1   :  { %11519 = vpow2.f32 %v10018_v27 }
 0xfd2   :  { %11521 = vpow2.f32 %v10019_v10 }
 0xfd3   :  { %3935 = vrot.lane.b32.xlu0 %v11510_v7, %s12076_s21  ;;  %v11512_v30 = vpop.eup %11511  ;;  %11523 = vpow2.f32 %v10022_v39 }
 0xfd4   :  { %4079 = vrot.lane.b32.xlu1 %v11512_v30, %s12076_s21  ;;  %v11514_v36 = vpop.eup %11513 }
 0xfd8   :  { %4077 = vrot.lane.b32.xlu1 %v11514_v36, %s12076_s21 }
 0xfd9   :  { %v11516_v58 = vpop.eup %11515 }
 0xfda   :  { %v3639_v4 = vadd.f32 1.0, %v11516_v58 }
 0xfdc   :  { %11525 = vrcp.f32 %v3639_v4 }
 0xfdd   :  { %v11518_v1 = vpop.eup %11517  ;;  %11527 = vpow2.f32 %v10021_v51 }
 0xfde   :  { %v11520_v7 = vpop.eup %11519  ;;  %v3640_v9 = vadd.f32 1.0, %v11518_v1 }
 0xfdf   :  { %v3781_v30 = vadd.f32 1.0, %v11520_v7  ;;  %v11522_v36 = vpop.eup %11521 }
 0xfe0   :  { %11529 = vrcp.f32 %v3640_v9  ;;  %v3782_v35 = vadd.f32 1.0, %v11522_v36  ;;  %v11524_v45 = vpop.eup %11523 }
 0xfe1   :  { %11531 = vrcp.f32 %v3781_v30  ;;  %v3924_v33 = vadd.f32 1.0, %v11524_v45 }
 0xfe2   :  { %11533 = vpow2.f32 %v10025_v32 }
 0xfe3   :  { %11535 = vrcp.f32 %v3782_v35 }
 0xfe4   :  { %11537 = vpow2.f32 %v10024_v61 }
 0xfe5   :  { %11539 = vrcp.f32 %v3924_v33 }
 0xfe9   :  { %v13206_v21 = vpop.eup %11525 }
 0xfea   :  { %v11528_v0 = vpop.eup %11527 }
 0xfeb   :  { %v3923_v9 = vadd.f32 1.0, %v11528_v0 }
 0xfed   :  { %v13210_v51 = vpop.eup %11529  ;;  %11541 = vrcp.f32 %v3923_v9 }
 0xfee   :  { %v13213_v10 = vpop.eup %11531 }
 0xfef   :  { %v11534_v4 = vpop.eup %11533 }
 0xff0   :  { %v13218_v1 = vpop.eup %11535  ;;  %v4066_v30 = vadd.f32 1.0, %v11534_v4 }
 0xff1   :  { %v11538_v32 = vpop.eup %11537 }
 0xff2   :  { %v4065_v35 = vadd.f32 1.0, %v11538_v32  ;;  %11543 = vrcp.f32 %v4066_v30  ;;  %v13222_v61 = vpop.eup %11539  ;;  %v3648_v32 = vmul.f32 %v13210_v51, %v13079_v6 }
 0xff4   :  { %11545 = vrcp.f32 %v4065_v35 }
0x1037   :  { %v3652_v11 = vpop.permute.xlu0 %3651 }
0x1038   :  { %v3657_v27 = vmul.f32 %v13206_v21, %v3652_v11  ;;  %v13226_v11 = vpop.eup %11541 }
0x1039   :  { %v13230_v9 = vpop.eup %11543 }
0x103a   :  { %3661 = vrot.lane.b32.xlu0 %v3657_v27, %s12059_s13 }
0x103b   :  { %v3654_v24 = vpop.permute.xlu0 %3653 }
0x103c   :  { %v3658_v46 = vmul.f32 %v13210_v51, %v3654_v24  ;;  %v3794_v58 = vpop.permute.xlu1 %3793 }
0x103d   :  { %v3799_v39 = vmul.f32 %v13213_v10, %v3794_v58  ;;  %v13234_v58 = vpop.eup %11545 }
0x103e   :  { %3663 = vrot.lane.b32.xlu0 %v3658_v46, %s12059_s13 }
0x103f   :  { %3803 = vrot.lane.b32.xlu1 %v3799_v39, %s12059_s13 }
0x1040   :  { %v3796_v7 = vpop.permute.xlu1 %3795 }
0x1041   :  { %v3800_v36 = vmul.f32 %v13218_v1, %v3796_v7  ;;  %v3938_v45 = vpop.permute.xlu0 %3937  ;;  %v3647_v7 = vmul.f32 %v13206_v21, %v13072_v43  ;;  %v3790_v43 = vmul.f32 %v13218_v1, %v13087_v44  ;;  %v3931_v44 = vmul.f32 %v13226_v11, %v13098_v5 }
0x1042   :  { %v3942_v33 = vmul.f32 %v13222_v61, %v3938_v45  ;;  %v3789_v45 = vmul.f32 %v13213_v10, %v13081_v15  ;;  %v3932_v15 = vmul.f32 %v13222_v61, %v13092_v28  ;;  %v4073_v5 = vmul.f32 %v13234_v58, %v13111_v57 }
0x1043   :  { %3805 = vrot.lane.b32.xlu1 %v3800_v36, %s12059_s13 }
0x1044   :  { %3947 = vrot.lane.b32.xlu0 %v3942_v33, %s12059_s13 }
0x1045   :  { %v3936_v0 = vpop.permute.xlu0 %3935 }
0x1046   :  { %v3941_v27 = vmul.f32 %v13226_v11, %v3936_v0  ;;  %v4080_v24 = vpop.permute.xlu1 %4079 }
0x1047   :  { %v4084_v46 = vmul.f32 %v13230_v9, %v4080_v24 }
0x1048   :  { %3945 = vrot.lane.b32.xlu0 %v3941_v27, %s12059_s13 }
0x1049   :  { %4089 = vrot.lane.b32.xlu1 %v4084_v46, %s12059_s13 }
0x104a   :  { %v4078_v39 = vpop.permute.xlu1 %4077 }
0x104b   :  { %v4083_v4 = vmul.f32 %v13234_v58, %v4078_v39 }
0x104d   :  { %4087 = vrot.lane.b32.xlu1 %v4083_v4, %s12059_s13 }
0x10ac   :  { %v3662_v30 = vpop.permute.xlu0 %3661 }
0x10ad   :  { %v13240_v36 = vadd.f32 %v3662_v30, %v3647_v7 }
0x10af   :  { %11547 = vtanh.f32 %v13240_v36 }
0x10b0   :  { %v3664_v35 = vpop.permute.xlu0 %3663 }
0x10b1   :  { %v13247_v33 = vadd.f32 %v3664_v35, %v3648_v32  ;;  %v3804_v0 = vpop.permute.xlu1 %3803 }
0x10b2   :  { %v13249_v27 = vadd.f32 %v3804_v0, %v3789_v45  ;;  %v4074_v45 = vmul.f32 %v13230_v9, %v13106_v40 }
0x10b3   :  { %11549 = vtanh.f32 %v13247_v33 }
0x10b4   :  { %11551 = vtanh.f32 %v13249_v27 }
0x10b5   :  { %v3806_v24 = vpop.permute.xlu1 %3805 }
0x10b6   :  { %v13255_v46 = vadd.f32 %v3806_v24, %v3790_v43  ;;  %v3948_v39 = vpop.permute.xlu0 %3947 }
0x10b7   :  { %v13261_v4 = vadd.f32 %v3948_v39, %v3932_v15 }
0x10b8   :  { %11553 = vtanh.f32 %v13255_v46 }
0x10b9   :  { %11555 = vtanh.f32 %v13261_v4 }
0x10ba   :  { %v3946_v30 = vpop.permute.xlu0 %3945 }
0x10bb   :  { %v13267_v35 = vadd.f32 %v3946_v30, %v3931_v44  ;;  %v4090_v0 = vpop.permute.xlu1 %4089 }
0x10bc   :  { %v11548_v6 = vpop.eup %11547  ;;  %v13274_v43 = vadd.f32 %v4090_v0, %v4074_v45 }
0x10bd   :  { %3673 = vrot.lane.b32.xlu0 %v11548_v6, %s12077_s12  ;;  %11557 = vtanh.f32 %v13267_v35 }
0x10be   :  { %11559 = vtanh.f32 %v13274_v43 }
0x10bf   :  { %v4088_v24 = vpop.permute.xlu1 %4087 }
0x10c0   :  { %v11550_v7 = vpop.eup %11549  ;;  %v13279_v15 = vadd.f32 %v4088_v24, %v4073_v5 }
0x10c1   :  { %3675 = vrot.lane.b32.xlu0 %v11550_v7, %s12077_s12  ;;  %v11552_v32 = vpop.eup %11551 }
0x10c2   :  { %3815 = vrot.lane.b32.xlu1 %v11552_v32, %s12077_s12  ;;  %11561 = vtanh.f32 %v13279_v15 }
0x10c5   :  { %v11554_v28 = vpop.eup %11553 }
0x10c6   :  { %3817 = vrot.lane.b32.xlu1 %v11554_v28, %s12077_s12  ;;  %v11556_v6 = vpop.eup %11555 }
0x10c7   :  { %3959 = vrot.lane.b32.xlu0 %v11556_v6, %s12077_s12 }
0x10ca   :  { %v11558_v39 = vpop.eup %11557 }
0x10cb   :  { %3957 = vrot.lane.b32.xlu0 %v11558_v39, %s12077_s12  ;;  %v11560_v40 = vpop.eup %11559 }
0x10cc   :  { %4101 = vrot.lane.b32.xlu1 %v11560_v40, %s12077_s12 }
0x10cf   :  { %v11562_v7 = vpop.eup %11561 }
0x10d0   :  { %4099 = vrot.lane.b32.xlu1 %v11562_v7, %s12077_s12 }
0x112f   :  { %v3674_v44 = vpop.permute.xlu0 %3673 }
0x1130   :  { %v13290_v28 = vmul.f32 %v13206_v21, %v3674_v44 }
0x1132   :  { %14308 = vst [vmem:[#allocation68_spill] sm:$0xff] %v13290_v28 }
0x1133   :  { %v3676_v30 = vpop.permute.xlu0 %3675 }
0x1134   :  { %v13287_v57 = vmul.f32 %v13210_v51, %v3676_v30  ;;  %v3816_v32 = vpop.permute.xlu1 %3815 }
0x1135   :  { %v13300_v6 = vmul.f32 %v13213_v10, %v3816_v32 }
0x1136   :  { %14307 = vst [vmem:[#allocation67_spill] sm:$0xff] %v13287_v57  ;;  %v4119_v45 = vrot.slane %v13287_v57, 7 }
0x1138   :  { %v4120_v0 = vsel %vm1279_vm3, %v4119_v45, %v13290_v28  ;;  %v3818_v5 = vpop.permute.xlu1 %3817 }
0x1139   :  { %4121 = vrot.lane.b32.xlu0 %v4120_v0, %s12078_s20  ;;  %v13297_v24 = vmul.f32 %v13218_v1, %v3818_v5  ;;  %v3960_v39 = vpop.permute.xlu0 %3959 }
0x113a   :  { %v13307_v40 = vmul.f32 %v13222_v61, %v3960_v39  ;;  %v13348_v39 = vld [vmem:[%s14286_s5 + $0x30] sm:$0xff] }
0x113b   :  { %14309 = vst [vmem:[#allocation69_spill] sm:$0xff] %v13297_v24  ;;  %v4261_v51 = vrot.slane %v13297_v24, 7 }
0x113c   :  { %v4403_v44 = vrot.slane %v13307_v40, 7 }
0x113d   :  { %v4262_v21 = vsel %vm1279_vm3, %v4261_v51, %v13300_v6  ;;  %v3958_v7 = vpop.permute.xlu0 %3957  ;;  %v13328_v51 = vld [vmem:[%s14286_s5 + $0x28] sm:$0xff] }
0x113e   :  { %4263 = vrot.lane.b32.xlu1 %v4262_v21, %s12078_s20  ;;  %v13311_v1 = vmul.f32 %v13226_v11, %v3958_v7  ;;  %v4102_v30 = vpop.permute.xlu1 %4101  ;;  %v13341_v21 = vld [vmem:[%s14286_s5 + $0x38] sm:$0xff] }
0x113f   :  { %v13317_v32 = vmul.f32 %v13230_v9, %v4102_v30  ;;  %v13335_v9 = vld [vmem:[%s14286_s5 + $0x20] sm:$0xff] }
0x1140   :  { %v4404_v10 = vsel %vm1279_vm3, %v4403_v44, %v13311_v1 }
0x1141   :  { %4405 = vrot.lane.b32.xlu0 %v4404_v10, %s12078_s20  ;;  %v4545_v61 = vrot.slane %v13317_v32, 7 }
0x1142   :  { %v4100_v45 = vpop.permute.xlu1 %4099 }
0x1143   :  { %v13321_v0 = vmul.f32 %v13234_v58, %v4100_v45  ;;  %v4118_v45 = vld [vmem:[#allocation2 + $0xe] sm:$0x1] }
0x1145   :  { %v4546_v11 = vsel %vm1279_vm3, %v4545_v61, %v13321_v0 }
0x1146   :  { %4547 = vrot.lane.b32.xlu1 %v4546_v11, %s12078_s20 }
0x11ab   :  { %v4122_v5 = vpop.permute.xlu0 %4121 }
0x11ac   :  { %10696 = vmatmul.mubr.msk.f32.vlgmr.msra.gmra.mxu0 %vm729_vm4, %v4122_v5  ;;  %v4259_v5 = vld [vmem:[#allocation3 + $0x1] sm:$0x1] }
0x11ad   :  { %10706 = vmatpush3.msra.mxu0 %v13328_v51  ;;  %10709 = vmatprep.mubr.msk.f32.mxu0 %vm12075_vm1, %v14306_v8 }
0x11ae   :  { %10707 = vmatprep.subr.mxu0 %v14306_v8 }
0x11af   :  { %10708 = vmatpush3.msra.mxu0 %v13335_v9 }
0x11b0   :  { %10719 = vmatprep.subr.mxu0 %v14306_v8  ;;  %v4264_v58 = vpop.permute.xlu1 %4263 }
0x11b1   :  { %10703 = vmatmul.mubr.msk.f32.vlgmr.msra.gmra.mxu1 %vm729_vm4, %v4264_v58 }
0x11b2   :  { %10713 = vmatpush3.msra.mxu1 %v13341_v21  ;;  %10716 = vmatprep.mubr.msk.f32.mxu1 %vm12075_vm1, %v14306_v8 }
0x11b3   :  { %10714 = vmatprep.subr.mxu1 %v14306_v8  ;;  %v4406_v7 = vpop.permute.xlu0 %4405 }
0x11b4   :  { %10715 = vmatpush3.msra.mxu1 %v13348_v39  ;;  %10710 = vmatmul.mubr.msk.f32.vlgmr.msra.gmra.mxu0 %vm729_vm4, %v4406_v7 }
0x11b5   :  { %10726 = vmatprep.subr.mxu1 %v14306_v8  ;;  %10720 = vmatpush3.msra.mxu0 %v13174_v50  ;;  %v4117_v50 = vld [vmem:[#allocation2 + $0x6] sm:$0x1] }
0x11b6   :  { %10723 = vmatprep.mubr.msk.f32.mxu0 %vm12075_vm1, %v14306_v8  ;;  %10721 = vmatprep.subr.mxu0 %v14306_v8 }
0x11b7   :  { %10722 = vmatpush3.msra.mxu0 %v13181_v12 }
0x11b8   :  { %10733 = vmatprep.subr.mxu0 %v14306_v8  ;;  %v4548_v44 = vpop.permute.xlu1 %4547 }
0x11b9   :  { %10717 = vmatmul.mubr.msk.f32.vlgmr.msra.gmra.mxu1 %vm729_vm4, %v4548_v44  ;;  %v4260_v44 = vld [vmem:[#allocation3 + $0x9] sm:$0x1] }
0x11ba   :  { %10727 = vmatpush3.msra.mxu1 %v13187_v17  ;;  %10730 = vmatprep.mubr.msk.f32.mxu1 %vm12075_vm1, %v14306_v8 }
0x11bb   :  { %10728 = vmatprep.subr.mxu1 %v14306_v8 }
0x11bc   :  { %10729 = vmatpush3.msra.mxu1 %v13194_v13 }
0x11bd   :  { %10740 = vmatprep.subr.mxu1 %v14306_v8 }
0x126c   :  { %v4191_v10 = vpop.f32.mrf.mxu0 }
0x126d   :  { %v4196_v30 = vrot.slane %v4191_v10, 1  ;;  %v4199_v12 = vadd.f32 %v4191_v10, %v4117_v50  ;;  %v4402_v50 = vld [vmem:[#allocation4 + $0xe] sm:$0x1] }
0x126e   :  { %v10697_v61 = vpop.f32.mrf.mxu0 }
0x126f   :  { %v4200_v11 = vadd.f32 %v4196_v30, %v4118_v45  ;;  %11563 = vtanh.f32 %v4199_v12  ;;  %v4401_v61 = vld [vmem:[#allocation4 + $0x6] sm:$0x1] }
0x1271   :  { %v4333_v58 = vpop.f32.mrf.mxu1  ;;  %11565 = vtanh.f32 %v4200_v11 }
0x1272   :  { %v4338_v17 = vrot.slane %v4333_v58, 1  ;;  %v4341_v7 = vadd.f32 %v4333_v58, %v4259_v5 }
0x1273   :  { %v10704_v57 = vpop.f32.mrf.mxu1 }
0x1274   :  { %v4342_v28 = vadd.f32 %v4338_v17, %v4260_v44  ;;  %11567 = vtanh.f32 %v4341_v7  ;;  %v4475_v13 = vpop.f32.mrf.mxu0 }
0x1275   :  { %v4480_v24 = vrot.slane %v4475_v13, 1  ;;  %v4483_v5 = vadd.f32 %v4475_v13, %v4401_v61  ;;  %v10028_v61 = vmul.f32 -1.442695, %v4200_v11 }
0x1276   :  { %11569 = vtanh.f32 %v4342_v28  ;;  %v10711_v2 = vpop.f32.mrf.mxu0 }
0x1277   :  { %v4484_v30 = vadd.f32 %v4480_v24, %v4402_v50  ;;  %v4544_v2 = vld [vmem:[#allocation5 + $0x9] sm:$0x1]  ;;  %v10033_v19 = vmul.f32 -1.442695, %v4483_v5 }
0x1279   :  { %11571 = vtanh.f32 %v4484_v30  ;;  %v4617_v58 = vpop.f32.mrf.mxu1 }
0x127a   :  { %v4622_v17 = vrot.slane %v4617_v58, 1  ;;  %11573 = vtanh.f32 %v4483_v5  ;;  %v4625_v16 = vadd.f32 %v4617_v58, %v4543_v42  ;;  %v10031_v42 = vmul.f32 -1.442695, %v4342_v28 }
0x127b   :  { %v10718_v44 = vpop.f32.mrf.mxu1 }
0x127c   :  { %v11564_v52 = vpop.eup %11563  ;;  %v10034_v44 = vmul.f32 -1.442695, %v4484_v30 }
0x127d   :  { %4219 = vrot.lane.b32.xlu0 %v11564_v52, %s12076_s21  ;;  %v4626_v52 = vadd.f32 %v4622_v17, %v4544_v2 }
0x127e   :  { %v11566_v10 = vpop.eup %11565 }
0x127f   :  { %11575 = vtanh.f32 %v4626_v52 }
0x1280   :  { %11577 = vtanh.f32 %v4625_v16 }
0x1281   :  { %4221 = vrot.lane.b32.xlu0 %v11566_v10, %s12076_s21  ;;  %v11568_v45 = vpop.eup %11567 }
0x1282   :  { %4361 = vrot.lane.b32.xlu1 %v11568_v45, %s12076_s21  ;;  %v10027_v45 = vmul.f32 -1.442695, %v4199_v12  ;;  %v10037_v12 = vmul.f32 -1.442695, %v4626_v52 }
0x1283   :  { %v11570_v57 = vpop.eup %11569 }
0x1284   :  { %11579 = vpow2.f32 %v10027_v45 }
0x1285   :  { %11581 = vpow2.f32 %v10028_v61 }
0x1286   :  { %4363 = vrot.lane.b32.xlu1 %v11570_v57, %s12076_s21  ;;  %v11572_v24 = vpop.eup %11571  ;;  %v10030_v57 = vmul.f32 -1.442695, %v4341_v7  ;;  %v10036_v7 = vmul.f32 -1.442695, %v4625_v16 }
0x1287   :  { %4505 = vrot.lane.b32.xlu0 %v11572_v24, %s12076_s21  ;;  %v11574_v50 = vpop.eup %11573 }
0x1288   :  { %11583 = vpow2.f32 %v10030_v57 }
0x1289   :  { %11585 = vpow2.f32 %v10031_v42 }
0x128b   :  { %4503 = vrot.lane.b32.xlu0 %v11574_v50, %s12076_s21 }
0x128c   :  { %v11576_v13 = vpop.eup %11575 }
0x128d   :  { %4647 = vrot.lane.b32.xlu1 %v11576_v13, %s12076_s21  ;;  %v11578_v10 = vpop.eup %11577 }
0x1291   :  { %4645 = vrot.lane.b32.xlu1 %v11578_v10, %s12076_s21  ;;  %v11580_v58 = vpop.eup %11579 }
0x1292   :  { %v4207_v17 = vadd.f32 1.0, %v11580_v58  ;;  %v11582_v2 = vpop.eup %11581 }
0x1293   :  { %v4208_v50 = vadd.f32 1.0, %v11582_v2 }
0x1294   :  { %11587 = vrcp.f32 %v4207_v17 }
0x1295   :  { %v11584_v24 = vpop.eup %11583  ;;  %11589 = vpow2.f32 %v10034_v44 }
0x1296   :  { %v4349_v13 = vadd.f32 1.0, %v11584_v24  ;;  %v11586_v55 = vpop.eup %11585  ;;  %11591 = vrcp.f32 %v4208_v50 }
0x1297   :  { %11593 = vpow2.f32 %v10033_v19  ;;  %v4350_v11 = vadd.f32 1.0, %v11586_v55 }
0x1298   :  { %11595 = vrcp.f32 %v4349_v13 }
0x1299   :  { %11597 = vpow2.f32 %v10037_v12 }
0x129a   :  { %11599 = vrcp.f32 %v4350_v11 }
0x129b   :  { %11601 = vpow2.f32 %v10036_v7 }
0x12a1   :  { %v13374_v28 = vpop.eup %11587 }
0x12a2   :  { %v11590_v30 = vpop.eup %11589 }
0x12a3   :  { %v13378_v5 = vpop.eup %11591  ;;  %v4492_v61 = vadd.f32 1.0, %v11590_v30 }
0x12a4   :  { %v11594_v19 = vpop.eup %11593 }
0x12a5   :  { %v13381_v52 = vpop.eup %11595  ;;  %v4491_v58 = vadd.f32 1.0, %v11594_v19  ;;  %11603 = vrcp.f32 %v4492_v61 }
0x12a6   :  { %v11598_v17 = vpop.eup %11597 }
0x12a7   :  { %v13386_v2 = vpop.eup %11599  ;;  %11605 = vrcp.f32 %v4491_v58  ;;  %v4634_v50 = vadd.f32 1.0, %v11598_v17  ;;  %v4215_v17 = vmul.f32 %v13374_v28, %v13240_v36 }
0x12a8   :  { %v11602_v13 = vpop.eup %11601  ;;  %v4358_v36 = vmul.f32 %v13386_v2, %v13255_v46 }
0x12a9   :  { %v4633_v12 = vadd.f32 1.0, %v11602_v13  ;;  %11607 = vrcp.f32 %v4634_v50  ;;  %v4216_v50 = vmul.f32 %v13378_v5, %v13247_v33 }
0x12ab   :  { %11609 = vrcp.f32 %v4633_v12  ;;  %v4357_v12 = vmul.f32 %v13381_v52, %v13249_v27 }
0x12b2   :  { %v13390_v11 = vpop.eup %11603 }
0x12b4   :  { %v13394_v30 = vpop.eup %11605 }
0x12b5   :  { %v4499_v46 = vmul.f32 %v13394_v30, %v13267_v35 }
0x12ef   :  { %v4220_v10 = vpop.permute.xlu0 %4219 }
0x12f0   :  { %v4225_v45 = vmul.f32 %v13374_v28, %v4220_v10 }
0x12f2   :  { %4229 = vrot.lane.b32.xlu0 %v4225_v45, %s12059_s13 }
0x12f3   :  { %v4222_v57 = vpop.permute.xlu0 %4221 }
0x12f4   :  { %v4226_v55 = vmul.f32 %v13378_v5, %v4222_v57  ;;  %v4362_v16 = vpop.permute.xlu1 %4361  ;;  %v13398_v57 = vpop.eup %11607 }
0x12f5   :  { %v4367_v42 = vmul.f32 %v13381_v52, %v4362_v16  ;;  %v13402_v16 = vpop.eup %11609 }
0x12f6   :  { %4231 = vrot.lane.b32.xlu0 %v4226_v55, %s12059_s13 }
0x12f7   :  { %4371 = vrot.lane.b32.xlu1 %v4367_v42, %s12059_s13 }
0x12f8   :  { %v4364_v44 = vpop.permute.xlu1 %4363 }
0x12f9   :  { %v4368_v24 = vmul.f32 %v13386_v2, %v4364_v44  ;;  %v4506_v7 = vpop.permute.xlu0 %4505 }
0x12fa   :  { %v4510_v10 = vmul.f32 %v13390_v11, %v4506_v7 }
0x12fb   :  { %4373 = vrot.lane.b32.xlu1 %v4368_v24, %s12059_s13 }
0x12fc   :  { %4515 = vrot.lane.b32.xlu0 %v4510_v10, %s12059_s13 }
0x12fd   :  { %v4504_v45 = vpop.permute.xlu0 %4503 }
0x12fe   :  { %v4509_v61 = vmul.f32 %v13394_v30, %v4504_v45 }
0x12ff   :  { %v4648_v19 = vpop.permute.xlu1 %4647 }
0x1300   :  { %4513 = vrot.lane.b32.xlu0 %v4509_v61, %s12059_s13  ;;  %v4652_v55 = vmul.f32 %v13398_v57, %v4648_v19 }
0x1302   :  { %4657 = vrot.lane.b32.xlu1 %v4652_v55, %s12059_s13  ;;  %v4500_v55 = vmul.f32 %v13390_v11, %v13261_v4  ;;  %v4642_v4 = vmul.f32 %v13398_v57, %v13274_v43 }
0x1303   :  { %v4646_v42 = vpop.permute.xlu1 %4645 }
0x1304   :  { %v4651_v58 = vmul.f32 %v13402_v16, %v4646_v42 }
0x1306   :  { %4655 = vrot.lane.b32.xlu1 %v4651_v58, %s12059_s13 }
0x1364   :  { %v4230_v44 = vpop.permute.xlu0 %4229 }
0x1365   :  { %v13408_v24 = vadd.f32 %v4230_v44, %v4215_v17 }
0x1367   :  { %11611 = vtanh.f32 %v13408_v24 }
0x1368   :  { %v4232_v13 = vpop.permute.xlu0 %4231 }
0x1369   :  { %v13415_v7 = vadd.f32 %v4232_v13, %v4216_v50  ;;  %v4372_v10 = vpop.permute.xlu1 %4371 }
0x136a   :  { %v13417_v45 = vadd.f32 %v4372_v10, %v4357_v12 }
0x136b   :  { %11613 = vtanh.f32 %v13415_v7 }
0x136c   :  { %11615 = vtanh.f32 %v13417_v45 }
0x136d   :  { %v4374_v61 = vpop.permute.xlu1 %4373 }
0x136e   :  { %v13423_v19 = vadd.f32 %v4374_v61, %v4358_v36  ;;  %v4516_v42 = vpop.permute.xlu0 %4515  ;;  %v4641_v36 = vmul.f32 %v13402_v16, %v13279_v15 }
0x136f   :  { %v13430_v17 = vadd.f32 %v4516_v42, %v4500_v55 }
0x1370   :  { %11617 = vtanh.f32 %v13423_v19 }
0x1371   :  { %11619 = vtanh.f32 %v13430_v17 }
0x1372   :  { %v4514_v44 = vpop.permute.xlu0 %4513 }
0x1373   :  { %v13436_v13 = vadd.f32 %v4514_v44, %v4499_v46 }
0x1374   :  { %v11612_v33 = vpop.eup %11611  ;;  %v4658_v12 = vpop.permute.xlu1 %4657 }
0x1375   :  { %4241 = vrot.lane.b32.xlu0 %v11612_v33, %s12077_s12  ;;  %11621 = vtanh.f32 %v13436_v13  ;;  %v13442_v10 = vadd.f32 %v4658_v12, %v4642_v4 }
0x1377   :  { %11623 = vtanh.f32 %v13442_v10 }
0x1378   :  { %v11614_v27 = vpop.eup %11613  ;;  %v4656_v35 = vpop.permute.xlu1 %4655 }
0x1379   :  { %4243 = vrot.lane.b32.xlu0 %v11614_v27, %s12077_s12  ;;  %v11616_v58 = vpop.eup %11615  ;;  %v13447_v61 = vadd.f32 %v4656_v35, %v4641_v36 }
0x137a   :  { %4383 = vrot.lane.b32.xlu1 %v11616_v58, %s12077_s12 }
0x137b   :  { %11625 = vtanh.f32 %v13447_v61 }
0x137d   :  { %v11618_v50 = vpop.eup %11617 }
0x137e   :  { %4385 = vrot.lane.b32.xlu1 %v11618_v50, %s12077_s12  ;;  %v11620_v33 = vpop.eup %11619 }
0x137f   :  { %4527 = vrot.lane.b32.xlu0 %v11620_v33, %s12077_s12 }
0x1382   :  { %v11622_v27 = vpop.eup %11621 }
0x1383   :  { %4525 = vrot.lane.b32.xlu0 %v11622_v27, %s12077_s12 }
0x1384   :  { %v11624_v43 = vpop.eup %11623 }
0x1385   :  { %4669 = vrot.lane.b32.xlu1 %v11624_v43, %s12077_s12 }
0x1388   :  { %v11626_v55 = vpop.eup %11625 }
0x1389   :  { %4667 = vrot.lane.b32.xlu1 %v11626_v55, %s12077_s12 }
0x13e7   :  { %v4242_v42 = vpop.permute.xlu0 %4241 }
0x13e8   :  { %v13458_v44 = vmul.f32 %v13374_v28, %v4242_v42 }
0x13eb   :  { %v4244_v58 = vpop.permute.xlu0 %4243 }
0x13ec   :  { %v13455_v15 = vmul.f32 %v13378_v5, %v4244_v58  ;;  %v4384_v46 = vpop.permute.xlu1 %4383 }
0x13ed   :  { %v13468_v35 = vmul.f32 %v13381_v52, %v4384_v46 }
0x13ee   :  { %14310 = vst [vmem:[#allocation70_spill] sm:$0xff] %v13455_v15  ;;  %v4687_v50 = vrot.slane %v13455_v15, 7 }
0x13f0   :  { %v4688_v4 = vsel %vm1279_vm3, %v4687_v50, %v13458_v44  ;;  %v4386_v12 = vpop.permute.xlu1 %4385 }
0x13f1   :  { %4689 = vrot.lane.b32.xlu0 %v4688_v4, %s12078_s20  ;;  %v13465_v36 = vmul.f32 %v13386_v2, %v4386_v12  ;;  %v4528_v33 = vpop.permute.xlu0 %4527 }
0x13f2   :  { %v13475_v27 = vmul.f32 %v13390_v11, %v4528_v33 }
0x13f3   :  { %v4829_v5 = vrot.slane %v13465_v36, 7 }
0x13f4   :  { %v4971_v55 = vrot.slane %v13475_v27, 7 }
0x13f5   :  { %v4830_v28 = vsel %vm1279_vm3, %v4829_v5, %v13468_v35  ;;  %v4526_v43 = vpop.permute.xlu0 %4525 }
0x13f6   :  { %4831 = vrot.lane.b32.xlu1 %v4830_v28, %s12078_s20  ;;  %v13479_v2 = vmul.f32 %v13394_v30, %v4526_v43 }
0x13f7   :  { %v4670_v42 = vpop.permute.xlu1 %4669 }
0x13f8   :  { %v4972_v52 = vsel %vm1279_vm3, %v4971_v55, %v13479_v2  ;;  %v13485_v58 = vmul.f32 %v13398_v57, %v4670_v42 }
0x13f9   :  { %4973 = vrot.lane.b32.xlu0 %v4972_v52, %s12078_s20  ;;  %v4970_v52 = vld [vmem:[#allocation4 + $0xf] sm:$0x1] }
0x13fa   :  { %v5113_v50 = vrot.slane %v13485_v58, 7 }
0x13fb   :  { %v4668_v46 = vpop.permute.xlu1 %4667 }
0x13fc   :  { %v13489_v11 = vmul.f32 %v13402_v16, %v4668_v46 }
0x13fe   :  { %v5114_v4 = vsel %vm1279_vm3, %v5113_v50, %v13489_v11 }
0x13ff   :  { %5115 = vrot.lane.b32.xlu1 %v5114_v4, %s12078_s20 }
0x1463   :  { %v4690_v30 = vpop.permute.xlu0 %4689 }
0x1464   :  { %10724 = vmatmul.mubr.msk.f32.vlgmr.msra.gmra.mxu0 %vm729_vm4, %v4690_v30 }
0x1465   :  { %10734 = vmatpush3.msra.mxu0 %v13328_v51  ;;  %10737 = vmatprep.mubr.msk.f32.mxu0 %vm12075_vm1, %v14306_v8 }
0x1466   :  { %10735 = vmatprep.subr.mxu0 %v14306_v8 }
0x1467   :  { %10736 = vmatpush3.msra.mxu0 %v13335_v9 }
0x1468   :  { %v4832_v57 = vpop.permute.xlu1 %4831 }
0x1469   :  { %10731 = vmatmul.mubr.msk.f32.vlgmr.msra.gmra.mxu1 %vm729_vm4, %v4832_v57  ;;  %v5112_v57 = vld [vmem:[#allocation5 + $0x8] sm:$0x1] }
0x146a   :  { %10741 = vmatpush3.msra.mxu1 %v13341_v21  ;;  %10744 = vmatprep.mubr.msk.f32.mxu1 %vm12075_vm1, %v14306_v8  ;;  %v4969_v21 = vld [vmem:[#allocation4 + $0x7] sm:$0x1] }
0x146b   :  { %10742 = vmatprep.subr.mxu1 %v14306_v8  ;;  %v4974_v51 = vpop.permute.xlu0 %4973 }
0x146c   :  { %10743 = vmatpush3.msra.mxu1 %v13348_v39  ;;  %10738 = vmatmul.mubr.msk.f32.vlgmr.msra.gmra.mxu0 %vm729_vm4, %v4974_v51  ;;  %v5111_v39 = vld [vmem:[#allocation5] sm:$0x1] }
0x1471   :  { %v5116_v16 = vpop.permute.xlu1 %5115 }
0x1472   :  { %10745 = vmatmul.mubr.msk.f32.vlgmr.msra.gmra.mxu1 %vm729_vm4, %v5116_v16 }
0x1524   :  { %v13508_v12 = vpop.f32.mrf.mxu0 }
0x1526   :  { %v10725_v9 = vpop.f32.mrf.mxu0 }
0x1529   :  { %v13510_v5 = vpop.f32.mrf.mxu1 }
0x152b   :  { %v10732_v28 = vpop.f32.mrf.mxu1 }
0x152c   :  { %v5043_v33 = vpop.f32.mrf.mxu0 }
0x152d   :  { %v5048_v43 = vrot.slane %v5043_v33, 1  ;;  %v5051_v55 = vadd.f32 %v5043_v33, %v4969_v21 }
0x152e   :  { %v10739_v42 = vpop.f32.mrf.mxu0 }
0x152f   :  { %v5052_v46 = vadd.f32 %v5048_v43, %v4970_v52  ;;  %11627 = vtanh.f32 %v5051_v55  ;;  %v10045_v43 = vmul.f32 -1.442695, %v5051_v55 }
0x1531   :  { %11629 = vtanh.f32 %v5052_v46  ;;  %v10046_v52 = vmul.f32 -1.442695, %v5052_v46 }
0x1532   :  { %v5185_v50 = vpop.f32.mrf.mxu1 }
0x1533   :  { %v5190_v4 = vrot.slane %v5185_v50, 1  ;;  %v5193_v30 = vadd.f32 %v5185_v50, %v5111_v39 }
0x1534   :  { %v10746_v51 = vpop.f32.mrf.mxu1 }
0x1535   :  { %v5194_v16 = vadd.f32 %v5190_v4, %v5112_v57  ;;  %11631 = vtanh.f32 %v5193_v30  ;;  %v10048_v42 = vmul.f32 -1.442695, %v5193_v30 }
0x1537   :  { %11633 = vtanh.f32 %v5194_v16  ;;  %v10049_v39 = vmul.f32 -1.442695, %v5194_v16 }
0x1538   :  { %11635 = vpow2.f32 %v10045_v43 }
0x1539   :  { %11637 = vpow2.f32 %v10046_v52 }
0x153a   :  { %11639 = vpow2.f32 %v10048_v42 }
0x153b   :  { %11641 = vpow2.f32 %v10049_v39 }
0x153c   :  { %v11628_v9 = vpop.eup %11627 }
0x153d   :  { %5071 = vrot.lane.b32.xlu0 %v11628_v9, %s12076_s21 }
0x153e   :  { %v11630_v28 = vpop.eup %11629 }
0x1541   :  { %5073 = vrot.lane.b32.xlu0 %v11630_v28, %s12076_s21 }
0x1542   :  { %v11632_v21 = vpop.eup %11631 }
0x1543   :  { %5213 = vrot.lane.b32.xlu1 %v11632_v21, %s12076_s21 }
0x1544   :  { %v11634_v33 = vpop.eup %11633 }
0x1545   :  { %v11636_v50 = vpop.eup %11635 }
0x1546   :  { %v5059_v4 = vadd.f32 1.0, %v11636_v50  ;;  %v11638_v57 = vpop.eup %11637 }
0x1547   :  { %5215 = vrot.lane.b32.xlu1 %v11634_v33, %s12076_s21  ;;  %v5060_v51 = vadd.f32 1.0, %v11638_v57  ;;  %v11640_v9 = vpop.eup %11639 }
0x1548   :  { %11643 = vrcp.f32 %v5059_v4  ;;  %v5201_v28 = vadd.f32 1.0, %v11640_v9  ;;  %v11642_v21 = vpop.eup %11641 }
0x1549   :  { %11645 = vrcp.f32 %v5060_v51  ;;  %v5202_v15 = vadd.f32 1.0, %v11642_v21 }
0x154a   :  { %11647 = vrcp.f32 %v5201_v28 }
0x154b   :  { %11649 = vrcp.f32 %v5202_v15 }
0x1555   :  { %v13516_v55 = vpop.eup %11643 }
0x1556   :  { %v13520_v16 = vpop.eup %11645  ;;  %v5067_v57 = vmul.f32 %v13516_v55, %v13436_v13 }
0x1557   :  { %v13524_v52 = vpop.eup %11647  ;;  %v5068_v28 = vmul.f32 %v13520_v16, %v13430_v17 }
0x1558   :  { %v13530_v15 = vpop.eup %11649 }
0x15af   :  { %v5072_v46 = vpop.permute.xlu0 %5071 }
0x15b0   :  { %v5077_v30 = vmul.f32 %v13516_v55, %v5072_v46  ;;  %v5209_v46 = vmul.f32 %v13524_v52, %v13447_v61 }
0x15b2   :  { %5081 = vrot.lane.b32.xlu0 %v5077_v30, %s12059_s13 }
0x15b3   :  { %v5074_v33 = vpop.permute.xlu0 %5073 }
0x15b4   :  { %v5078_v43 = vmul.f32 %v13520_v16, %v5074_v33 }
0x15b5   :  { %v5214_v42 = vpop.permute.xlu1 %5213 }
0x15b6   :  { %5083 = vrot.lane.b32.xlu0 %v5078_v43, %s12059_s13  ;;  %v5219_v39 = vmul.f32 %v13524_v52, %v5214_v42 }
0x15b8   :  { %5223 = vrot.lane.b32.xlu1 %v5219_v39, %s12059_s13 }
0x15b9   :  { %v5216_v50 = vpop.permute.xlu1 %5215 }
0x15ba   :  { %1132 = vrot.lane.b32.xlu0 %v12498_v62, %s12078_s20  ;;  %v5220_v4 = vmul.f32 %v13530_v15, %v5216_v50 }
0x15bc   :  { %5225 = vrot.lane.b32.xlu1 %v5220_v4, %s12059_s13 }
0x15c0   :  { %1268 = vrot.lane.b32.xlu1 %v12504_v47, %s12078_s20  ;;  %v5210_v47 = vmul.f32 %v13530_v15, %v13442_v10 }
0x1624   :  { %v5082_v51 = vpop.permute.xlu0 %5081 }
0x1625   :  { %v5087_v9 = vadd.f32 %v5082_v51, %v5067_v57 }
0x1627   :  { %11651 = vtanh.f32 %v5087_v9 }
0x1628   :  { %v5084_v62 = vpop.permute.xlu0 %5083 }
0x1629   :  { %v5088_v21 = vadd.f32 %v5084_v62, %v5068_v28 }
0x162a   :  { %v5224_v30 = vpop.permute.xlu1 %5223 }
0x162b   :  { %11653 = vtanh.f32 %v5088_v21  ;;  %v5229_v43 = vadd.f32 %v5224_v30, %v5209_v46 }
0x162c   :  { %v1133_v33 = vpop.permute.xlu0 %1132 }
0x162d   :  { %1138 = vst.msk [vmem:[#allocation8] sm:$0x1] %vm865_vm5, %v1133_v33  ;;  %11655 = vtanh.f32 %v5229_v43 }
0x162e   :  { %v5226_v13 = vpop.permute.xlu1 %5225 }
0x162f   :  { %v5230_v42 = vadd.f32 %v5226_v13, %v5210_v47 }
0x1631   :  { %11657 = vtanh.f32 %v5230_v42 }
0x1632   :  { %v1269_v39 = vpop.permute.xlu1 %1268 }
0x1633   :  { %1274 = vst.msk [vmem:[#allocation9 + $0x7] sm:$0x1] %vm865_vm5, %v1269_v39 }
0x1634   :  { %v11652_v17 = vpop.eup %11651 }
0x1635   :  { %5093 = vrot.lane.b32.xlu0 %v11652_v17, %s12077_s12 }
0x1638   :  { %v11654_v61 = vpop.eup %11653 }
0x1639   :  { %5095 = vrot.lane.b32.xlu0 %v11654_v61, %s12077_s12  ;;  %v5449_v61 = vld [vmem:[%s14312_s11 + $0x18] sm:$0xff] }
0x163a   :  { %v11656_v50 = vpop.eup %11655 }
0x163b   :  { %5235 = vrot.lane.b32.xlu1 %v11656_v50, %s12077_s12  ;;  %v5448_v50 = vld [vmem:[%s14312_s11 + $0x10] sm:$0xff] }
0x163d   :  { %1695 = vrot.lane.b32.xlu0 %v12651_v41, %s12078_s20 }
0x163e   :  { %v11658_v4 = vpop.eup %11657 }
0x163f   :  { %5237 = vrot.lane.b32.xlu1 %v11658_v4, %s12077_s12  ;;  %v5447_v4 = vld [vmem:[%s14312_s11 + $0x8] sm:$0xff] }
0x1641   :  { %2263 = vrot.lane.b32.xlu0 %v12819_v38, %s12078_s20  ;;  %v5257_v38 = vld [vmem:[%s14311_s4] sm:$0xff] }
0x1643   :  { %1837 = vrot.lane.b32.xlu1 %v12661_v14, %s12078_s20  ;;  %v5258_v14 = vld [vmem:[%s14311_s4 + $0x8] sm:$0xff] }
0x1644   :  { %10754 = vmatprep.subr.mxu1 %v5258_v14 }
0x1645   :  { %2831 = vrot.lane.b32.xlu0 %v12987_v37, %s12078_s20  ;;  %10755 = vmatpush3.msra.mxu1 %v5258_v14 }
0x1646   :  { %10756 = vmatprep.subr.mxu1 %v5257_v38 }
0x1647   :  { %2405 = vrot.lane.b32.xlu1 %v12829_v54, %s12078_s20  ;;  %10757 = vmatpush3.msra.mxu1 %v5257_v38 }
0x1648   :  { %10772 = vmatprep.subr.mxu1 %v14306_v8 }
0x1649   :  { %3399 = vrot.lane.b32.xlu0 %v13143_v3, %s12078_s20 }
0x164b   :  { %2973 = vrot.lane.b32.xlu1 %v12997_v63, %s12078_s20 }
0x164d   :  { %3967 = vrot.lane.b32.xlu0 %v13311_v1, %s12078_s20 }
0x164f   :  { %3541 = vrot.lane.b32.xlu1 %v13153_v22, %s12078_s20 }
0x1651   :  { %4535 = vrot.lane.b32.xlu0 %v13479_v2, %s12078_s20 }
0x1653   :  { %4109 = vrot.lane.b32.xlu1 %v13321_v0, %s12078_s20 }
0x1655   :  { %1134 = vrot.lane.b32.xlu0 %v12490_v59, %s12078_s20 }
0x1657   :  { %4677 = vrot.lane.b32.xlu1 %v13489_v11, %s12078_s20 }
0x1659   :  { %1697 = vrot.lane.b32.xlu0 %v12644_v31, %s12078_s20  ;;  %v5260_v31 = vld [vmem:[#allocation17 + $0x8] sm:$0xff] }
0x165a   :  { %10747 = vmatprep.subr.mxu0 %v5260_v31 }
0x165b   :  { %1270 = vrot.lane.b32.xlu1 %v12494_v60, %s12078_s20  ;;  %10748 = vmatpush3.msra.mxu0 %v5260_v31 }
0x165d   :  { %2265 = vrot.lane.b32.xlu0 %v12812_v23, %s12078_s20  ;;  %v5259_v23 = vld [vmem:[#allocation17] sm:$0xff] }
0x165e   :  { %10749 = vmatprep.subr.mxu0 %v5259_v23 }
0x165f   :  { %1839 = vrot.lane.b32.xlu1 %v12654_v48, %s12078_s20  ;;  %10750 = vmatpush3.msra.mxu0 %v5259_v23 }
0x1660   :  { %10761 = vmatprep.subr.mxu0 %v5449_v61 }
0x1661   :  { %2833 = vrot.lane.b32.xlu0 %v12982_v29, %s12078_s20 }
0x1663   :  { %2407 = vrot.lane.b32.xlu1 %v12825_v49, %s12078_s20 }
0x1665   :  { %3401 = vrot.lane.b32.xlu0 %v13139_v26, %s12078_s20 }
0x1667   :  { %2975 = vrot.lane.b32.xlu1 %v12993_v20, %s12078_s20 }
0x1669   :  { %3969 = vrot.lane.b32.xlu0 %v13307_v40, %s12078_s20 }
0x166b   :  { %3543 = vrot.lane.b32.xlu1 %v13149_v25, %s12078_s20 }
0x166d   :  { %4537 = vrot.lane.b32.xlu0 %v13475_v27, %s12078_s20 }
0x166f   :  { %4111 = vrot.lane.b32.xlu1 %v13317_v32, %s12078_s20 }
0x1673   :  { %4679 = vrot.lane.b32.xlu1 %v13485_v58, %s12078_s20 }
0x16a7   :  { %v5094_v59 = vpop.permute.xlu0 %5093 }
0x16a8   :  { %v5099_v60 = vmul.f32 %v13516_v55, %v5094_v59  ;;  %v5446_v59 = vld [vmem:[%s14312_s11] sm:$0xff] }
0x16aa   :  { %5103 = vrot.lane.b32.xlu0 %v5099_v60, %s12078_s20 }
0x16ab   :  { %v5096_v41 = vpop.permute.xlu0 %5095 }
0x16ac   :  { %v5100_v48 = vmul.f32 %v13520_v16, %v5096_v41  ;;  %v10054_v41 = vld [vmem:[#allocation18] ss:$0 sm:$0xff] }
0x16ad   :  { %v5236_v49 = vpop.permute.xlu1 %5235 }
0x16ae   :  { %5105 = vrot.lane.b32.xlu0 %v5100_v48, %s12078_s20  ;;  %v5241_v29 = vmul.f32 %v13524_v52, %v5236_v49 }
0x16af   :  { %v1696_v54 = vpop.permute.xlu0 %1695 }
0x16b0   :  { %1701 = vst.msk [vmem:[#allocation8 + $0x1] sm:$0x1] %vm865_vm5, %v1696_v54  ;;  %5245 = vrot.lane.b32.xlu1 %v5241_v29, %s12078_s20 }
0x16b1   :  { %v5238_v37 = vpop.permute.xlu1 %5237 }
0x16b2   :  { %v5242_v63 = vmul.f32 %v13530_v15, %v5238_v37 }
0x16b3   :  { %v2264_v20 = vpop.permute.xlu0 %2263 }
0x16b4   :  { %2269 = vst.msk [vmem:[#allocation8 + $0x2] sm:$0x1] %vm865_vm5, %v2264_v20  ;;  %5247 = vrot.lane.b32.xlu1 %v5242_v63, %s12078_s20 }
0x16b5   :  { %v1838_v26 = vpop.permute.xlu1 %1837 }
0x16b6   :  { %1843 = vst.msk [vmem:[#allocation9 + $0x6] sm:$0x1] %vm865_vm5, %v1838_v26 }
0x16b7   :  { %v2832_v3 = vpop.permute.xlu0 %2831 }
0x16b8   :  { %2837 = vst.msk [vmem:[#allocation8 + $0x3] sm:$0x1] %vm865_vm5, %v2832_v3 }
0x16b9   :  { %v2406_v25 = vpop.permute.xlu1 %2405 }
0x16ba   :  { %2411 = vst.msk [vmem:[#allocation9 + $0x5] sm:$0x1] %vm865_vm5, %v2406_v25 }
0x16bb   :  { %v3400_v22 = vpop.permute.xlu0 %3399 }
0x16bc   :  { %3405 = vst.msk [vmem:[#allocation8 + $0x4] sm:$0x1] %vm865_vm5, %v3400_v22 }
0x16bd   :  { %v2974_v40 = vpop.permute.xlu1 %2973 }
0x16be   :  { %2979 = vst.msk [vmem:[#allocation9 + $0x4] sm:$0x1] %vm865_vm5, %v2974_v40 }
0x16bf   :  { %v3968_v1 = vpop.permute.xlu0 %3967 }
0x16c0   :  { %3973 = vst.msk [vmem:[#allocation8 + $0x5] sm:$0x1] %vm865_vm5, %v3968_v1 }
0x16c1   :  { %v3542_v32 = vpop.permute.xlu1 %3541 }
0x16c2   :  { %3547 = vst.msk [vmem:[#allocation9 + $0x3] sm:$0x1] %vm865_vm5, %v3542_v32  ;;  %v10057_v32 = vld [vmem:[%s14313_s15] ss:$0 sm:$0xff] }
0x16c3   :  { %v4536_v0 = vpop.permute.xlu0 %4535 }
0x16c4   :  { %4541 = vst.msk [vmem:[#allocation8 + $0x6] sm:$0x1] %vm865_vm5, %v4536_v0 }
0x16c5   :  { %v4110_v10 = vpop.permute.xlu1 %4109 }
0x16c6   :  { %4115 = vst.msk [vmem:[#allocation9 + $0x2] sm:$0x1] %vm865_vm5, %v4110_v10 }
0x16c7   :  { %v1135_v27 = vpop.permute.xlu0 %1134 }
0x16c8   :  { %1139 = vst.msk [vmem:[#allocation8 + $0x8] sm:$0x1] %vm865_vm5, %v1135_v27 }
0x16c9   :  { %v4678_v2 = vpop.permute.xlu1 %4677 }
0x16ca   :  { %4683 = vst.msk [vmem:[#allocation9 + $0x1] sm:$0x1] %vm865_vm5, %v4678_v2 }
0x16cb   :  { %v1698_v58 = vpop.permute.xlu0 %1697 }
0x16cc   :  { %1702 = vst.msk [vmem:[#allocation8 + $0x9] sm:$0x1] %vm865_vm5, %v1698_v58 }
0x16cd   :  { %v1271_v11 = vpop.permute.xlu1 %1270 }
0x16ce   :  { %1275 = vst.msk [vmem:[#allocation9 + $0xf] sm:$0x1] %vm865_vm5, %v1271_v11 }
0x16cf   :  { %v2266_v55 = vpop.permute.xlu0 %2265 }
0x16d0   :  { %2270 = vst.msk [vmem:[#allocation8 + $0xa] sm:$0x1] %vm865_vm5, %v2266_v55 }
0x16d1   :  { %v1840_v16 = vpop.permute.xlu1 %1839 }
0x16d2   :  { %1844 = vst.msk [vmem:[#allocation9 + $0xe] sm:$0x1] %vm865_vm5, %v1840_v16 }
0x16d3   :  { %v2834_v52 = vpop.permute.xlu0 %2833 }
0x16d4   :  { %2838 = vst.msk [vmem:[#allocation8 + $0xb] sm:$0x1] %vm865_vm5, %v2834_v52 }
0x16d5   :  { %v2408_v15 = vpop.permute.xlu1 %2407 }
0x16d6   :  { %2412 = vst.msk [vmem:[#allocation9 + $0xd] sm:$0x1] %vm865_vm5, %v2408_v15 }
0x16d7   :  { %v3402_v57 = vpop.permute.xlu0 %3401 }
0x16d8   :  { %3406 = vst.msk [vmem:[#allocation8 + $0xc] sm:$0x1] %vm865_vm5, %v3402_v57 }
0x16d9   :  { %v2976_v51 = vpop.permute.xlu1 %2975 }
0x16da   :  { %2980 = vst.msk [vmem:[#allocation9 + $0xc] sm:$0x1] %vm865_vm5, %v2976_v51 }
0x16db   :  { %v3970_v9 = vpop.permute.xlu0 %3969 }
0x16dc   :  { %3974 = vst.msk [vmem:[#allocation8 + $0xd] sm:$0x1] %vm865_vm5, %v3970_v9 }
0x16dd   :  { %v3544_v28 = vpop.permute.xlu1 %3543 }
0x16de   :  { %3548 = vst.msk [vmem:[#allocation9 + $0xb] sm:$0x1] %vm865_vm5, %v3544_v28 }
0x16df   :  { %v4538_v62 = vpop.permute.xlu0 %4537 }
0x16e0   :  { %4542 = vst.msk [vmem:[#allocation8 + $0xe] sm:$0x1] %vm865_vm5, %v4538_v62 }
0x16e1   :  { %v4112_v21 = vpop.permute.xlu1 %4111 }
0x16e2   :  { %4116 = vst.msk [vmem:[#allocation9 + $0xa] sm:$0x1] %vm865_vm5, %v4112_v21 }
0x16e5   :  { %v4680_v46 = vpop.permute.xlu1 %4679 }
0x16e6   :  { %4684 = vst.msk [vmem:[#allocation9 + $0x9] sm:$0x1] %vm865_vm5, %v4680_v46 }
0x171c   :  { %v5104_v30 = vpop.permute.xlu0 %5103 }
0x171d   :  { %5109 = vst.msk [vmem:[#allocation8 + $0x7] sm:$0x1] %vm865_vm5, %v5104_v30 }
0x1720   :  { %v5106_v33 = vpop.permute.xlu0 %5105 }
0x1721   :  { %5110 = vst.msk [vmem:[#allocation8 + $0xf] sm:$0x1] %vm865_vm5, %v5106_v33 }
0x1722   :  { %v5246_v43 = vpop.permute.xlu1 %5245 }
0x1723   :  { %5251 = vst.msk [vmem:[#allocation9] sm:$0x1] %vm865_vm5, %v5246_v43 }
0x1724   :  { %v5253_v47 = vld [vmem:[#allocation8] sm:$0xff] }
0x1725   :  { %10758 = vmatprep.mubr.msk.f32.mxu1 %vm729_vm4, %v5253_v47 }
0x1726   :  { %v5248_v13 = vpop.permute.xlu1 %5247 }
0x1727   :  { %5252 = vst.msk [vmem:[#allocation9 + $0x8] sm:$0x1] %vm865_vm5, %v5248_v13 }
0x1728   :  { %v5254_v42 = vld [vmem:[#allocation8 + $0x8] sm:$0xff] }
0x1729   :  { %10759 = vmatmul.mubr.msk.f32.vlgmr.msra.gmra.mxu1 %vm729_vm4, %v5254_v42 }
0x172a   :  { %10774 = vmatprep.mubr.msk.f32.mxu1 %vm12075_vm1, %v14306_v8  ;;  %v5255_v17 = vld [vmem:[#allocation9] sm:$0xff] }
0x172b   :  { %10751 = vmatprep.mubr.msk.f32.mxu0 %vm729_vm4, %v5255_v17 }
0x172e   :  { %v5256_v39 = vld [vmem:[#allocation9 + $0x8] sm:$0xff] }
0x172f   :  { %10752 = vmatmul.mubr.msk.f32.vlgmr.msra.gmra.mxu0 %vm729_vm4, %v5256_v39 }
0x1730   :  { %10762 = vmatpush3.msra.mxu0 %v5449_v61 }
0x1731   :  { %10763 = vmatprep.subr.mxu0 %v5448_v50 }
0x1732   :  { %10764 = vmatpush3.msra.mxu0 %v5448_v50 }
0x1733   :  { %10765 = vmatprep.subr.mxu0 %v5447_v4 }
0x1734   :  { %10766 = vmatpush3.msra.mxu0 %v5447_v4 }
0x1735   :  { %10767 = vmatprep.subr.mxu0 %v5446_v59 }
0x1736   :  { %10768 = vmatpush3.msra.mxu0 %v5446_v59 }
0x1737   :  { %10782 = vmatprep.subr.mxu0 %v14306_v8 }
0x17e9   :  { %v10760_v60 = vpop.f32.mrf.mxu1 }
0x17eb   :  { %v5414_v48 = vpop.f32.mrf.mxu1 }
0x17ef   :  { %v10753_v31 = vpop.f32.mrf.mxu0 }
0x17f0   :  { %v5420_v14 = vadd.f32 %v10760_v60, %v10753_v31 }
0x17f1   :  { %v5333_v23 = vpop.f32.mrf.mxu0 }
0x17f2   :  { %v5431_v38 = vadd.f32 %v10054_v41, %v5420_v14  ;;  %v5415_v49 = vadd.f32 %v5414_v48, %v5333_v23 }
0x17f4   :  { %v10056_v54 = vmul.f32 -1.442695, %v5431_v38  ;;  %v5430_v29 = vadd.f32 %v10054_v41, %v5415_v49 }
0x17f6   :  { %11659 = vpow2.f32 %v10056_v54  ;;  %v10055_v37 = vmul.f32 -1.442695, %v5430_v29 }
0x17f8   :  { %11661 = vpow2.f32 %v10055_v37 }
0x1803   :  { %v11660_v20 = vpop.eup %11659 }
0x1804   :  { %v5439_v63 = vadd.f32 1.0, %v11660_v20 }
0x1805   :  { %v11662_v26 = vpop.eup %11661 }
0x1806   :  { %v5438_v3 = vadd.f32 1.0, %v11662_v26  ;;  %11663 = vrcp.f32 %v5439_v63 }
0x1808   :  { %11665 = vrcp.f32 %v5438_v3 }
0x1813   :  { %v11664_v25 = vpop.eup %11663 }
0x1814   :  { %v13658_v1 = vmul.f32 %v11664_v25, %v12292_v56 }
0x1815   :  { %v11666_v22 = vpop.eup %11665 }
0x1816   :  { %v13655_v40 = vmul.f32 %v11666_v22, %v12286_v53 }
0x1818   :  { %10769 = vmatprep.mubr.msk.f32.mxu0 %vm372_vm0, %v13655_v40 }
0x1819   :  { %10770 = vmatmul.mubr.msk.f32.vlgmr.msra.gmra.mxu0 %vm372_vm0, %v13658_v1 }
0x181a   :  { %10784 = vmatprep.mubr.msk.f32.mxu0 %vm12075_vm1, %v14306_v8 }
0x18d9   :  { %v10771_v0 = vpop.f32.mrf.mxu0 }
0x18da   :  { %v13667_v10 = vadd.f32 %v10771_v0, %v10057_v32 }
0x18db   :  { %v5529_v27 = vpop.f32.mrf.mxu0 }
0x18dc   :  { %v13669_v2 = vadd.f32 %v10057_v32, %v5529_v27  ;;  %5621 = vrot.lane.b32.xlu1 %v13667_v10, %s12076_s21 }
0x18de   :  { %5543 = vrot.lane.b32.xlu0 %v13669_v2, %s12076_s21 }
0x194e   :  { %v5622_v56 = vpop.permute.xlu1 %5621 }
0x1950   :  { %v5544_v53 = vpop.permute.xlu0 %5543 }
0x1951   :  { %10773 = vmatpush3.xpose.msk.msra.mxu1 %vm5545_vm6, %v5544_v53 }
0x1952   :  { %10777 = vmatprep.subr.mxu1 %v14306_v8 }
0x1954   :  { %10775 = vmatmul.mubr.msk.f32.vlgmr.msra.gmra.mxu1 %vm5545_vm6, %v13669_v2 }
0x1955   :  { %10778 = vmatpush3.xpose.msk.msra.mxu1 %vm5545_vm6, %v5622_v56  ;;  %10779 = vmatprep.mubr.msk.f32.mxu1 %vm12075_vm1, %v14306_v8 }
0x1956   :  { %10787 = vmatprep.subr.mxu1 %v14306_v8 }
0x1958   :  { %10780 = vmatmul.mubr.msk.f32.vlgmr.msra.gmra.mxu1 %vm5545_vm6, %v13667_v10 }
0x1959   :  { %10789 = vmatprep.mubr.msk.f32.mxu1 %vm12075_vm1, %v14306_v8 }
0x1a14   :  { %v5616_v58 = vpop.f32.mrf.mxu1 }
0x1a15   :  { %v5697_v11 = vmul.f32 0.35355338, %v5616_v58 }
0x1a16   :  { %v10776_v55 = vpop.f32.mrf.mxu1 }
0x1a17   :  { %v5699_v16 = vsel %vm5545_vm6, %v5697_v11, -inf }
0x1a18   :  { %5700 = vmax.xlane.f32.xlu0 %v5699_v16  ;;  %v5693_v52 = vpop.f32.mrf.mxu1 }
0x1a19   :  { %v5698_v15 = vmul.f32 0.35355338, %v5693_v52 }
0x1a1a   :  { %v10781_v57 = vpop.f32.mrf.mxu1 }
0x1a1b   :  { %v5702_v51 = vsel %vm5545_vm6, %v5698_v15, -inf }
0x1a1c   :  { %5703 = vmax.xlane.f32.xlu1 %v5702_v51 }
0x1a2d   :  { %5721 = vrot.lane.b32.xlu1 %v13669_v2, %s12079_s18 }
0x1a2e   :  { %5797 = vrot.lane.b32.xlu0 %v13667_v10, %s12079_s18 }
0x1a31   :  { %5875 = vrot.lane.b32.xlu1 %v13669_v2, %s12080_s24 }
0x1a35   :  { %5953 = vrot.lane.b32.xlu1 %v13667_v10, %s12080_s24 }
0x1a39   :  { %5951 = vrot.lane.b32.xlu1 %v13667_v10, %s12081_s22 }
0x1aa1   :  { %v5701_v9 = vpop.xlane.xlu0 %5700 }
0x1aa2   :  { %v5705_v28 = vsub.f32 %v5697_v11, %v5701_v9  ;;  %v5538_v9 = vld [vmem:[%s14314_s26] sm:$0xff] }
0x1aa4   :  { %v5707_v62 = vmul.f32 1.442695, %v5705_v28 }
0x1aa5   :  { %v5798_v21 = vpop.permute.xlu0 %5797  ;;  %v5704_v46 = vpop.xlane.xlu1 %5703 }
0x1aa6   :  { %11667 = vpow2.f32 %v5707_v62  ;;  %v5706_v30 = vsub.f32 %v5698_v15, %v5704_v46  ;;  %10788 = vmatpush3.msra.mxu1 %v5798_v21 }
0x1aa7   :  { %10797 = vmatprep.subr.mxu1 %v14306_v8 }
0x1aa8   :  { %v5709_v33 = vmul.f32 1.442695, %v5706_v30 }
0x1aa9   :  { %v5722_v43 = vpop.permute.xlu1 %5721 }
0x1aaa   :  { %11669 = vpow2.f32 %v5709_v33  ;;  %10783 = vmatpush3.msra.mxu0 %v5722_v43 }
0x1aab   :  { %10792 = vmatprep.subr.mxu0 %v14306_v8 }
0x1aad   :  { %v5876_v50 = vpop.permute.xlu1 %5875 }
0x1ab1   :  { %v5954_v31 = vpop.permute.xlu1 %5953 }
0x1ab3   :  { %v11668_v47 = vpop.eup %11667 }
0x1ab4   :  { %v5711_v13 = vsel %vm5545_vm6, %v11668_v47, 0.0 }
0x1ab5   :  { %5712 = vadd.xlane.f32.xlu0 %v5711_v13  ;;  %v5952_v14 = vpop.permute.xlu1 %5951  ;;  %v5539_v13 = vld [vmem:[%s14314_s26 + $0x8] sm:$0xff] }
0x1ab7   :  { %v11670_v42 = vpop.eup %11669 }
0x1ab8   :  { %v5714_v17 = vsel %vm5545_vm6, %v11670_v42, 0.0 }
0x1ab9   :  { %5715 = vadd.xlane.f32.xlu0 %v5714_v17 }
0x1acf   :  { %5873 = vrot.lane.b32.xlu0 %v13669_v2, %s12081_s22 }
0x1b3e   :  { %v5713_v39 = vpop.xlane.xlu0 %5712 }
0x1b3f   :  { %11671 = vrcp.f32 %v5713_v39 }
0x1b42   :  { %v5716_v61 = vpop.xlane.xlu0 %5715 }
0x1b43   :  { %11673 = vrcp.f32 %v5716_v61 }
0x1b46   :  { %v5874_v48 = vpop.permute.xlu0 %5873 }
0x1b4c   :  { %v11672_v4 = vpop.eup %11671 }
0x1b4d   :  { %v5719_v59 = vmul.f32 %v11672_v4, %v11668_v47 }
0x1b4f   :  { %10785 = vmatmul.mubr.msk.f32.vlgmr.msra.gmra.mxu0 %vm5545_vm6, %v5719_v59 }
0x1b50   :  { %v11674_v60 = vpop.eup %11673  ;;  %10793 = vmatpush3.xpose.msk.msra.mxu0 %vm5545_vm6, %v5876_v50  ;;  %10794 = vmatprep.mubr.msk.f32.mxu0 %vm12075_vm1, %v14306_v8 }
0x1b51   :  { %v5720_v41 = vmul.f32 %v11674_v60, %v11670_v42  ;;  %10802 = vmatprep.subr.mxu0 %v14306_v8 }
0x1b53   :  { %10790 = vmatmul.mubr.msk.f32.vlgmr.msra.gmra.mxu1 %vm5545_vm6, %v5720_v41  ;;  %10795 = vmatmul.mubr.msk.f32.vlgmr.msra.gmra.mxu0 %vm5545_vm6, %v5874_v48 }
0x1b54   :  { %10798 = vmatpush3.xpose.msk.msra.mxu1 %vm5545_vm6, %v5954_v31  ;;  %10799 = vmatprep.mubr.msk.f32.mxu1 %vm12075_vm1, %v14306_v8 }
0x1b55   :  { %10807 = vmatprep.subr.mxu1 %v14306_v8  ;;  %10804 = vmatprep.mubr.msk.f32.mxu0 %vm12075_vm1, %v14306_v8 }
0x1b57   :  { %10800 = vmatmul.mubr.msk.f32.vlgmr.msra.gmra.mxu1 %vm5545_vm6, %v5952_v14 }
0x1b58   :  { %10809 = vmatprep.mubr.msk.f32.mxu1 %vm12075_vm1, %v14306_v8 }
0x1c0f   :  { %v5793_v23 = vpop.f32.mrf.mxu0 }
0x1c11   :  { %v10786_v38 = vpop.f32.mrf.mxu0 }
0x1c13   :  { %v5869_v49 = vpop.f32.mrf.mxu1  ;;  %v5947_v54 = vpop.f32.mrf.mxu0 }
0x1c14   :  { %v6029_v29 = vmul.f32 0.35355338, %v5947_v54 }
0x1c15   :  { %v10791_v37 = vpop.f32.mrf.mxu1  ;;  %v10796_v20 = vpop.f32.mrf.mxu0 }
0x1c16   :  { %v6031_v63 = vsel %vm5545_vm6, %v6029_v29, -inf }
0x1c17   :  { %6032 = vmax.xlane.f32.xlu0 %v6031_v63  ;;  %v6025_v26 = vpop.f32.mrf.mxu1 }
0x1c18   :  { %v6030_v3 = vmul.f32 0.35355338, %v6025_v26 }
0x1c19   :  { %v10801_v25 = vpop.f32.mrf.mxu1 }
0x1c1a   :  { %v6034_v22 = vsel %vm5545_vm6, %v6030_v3, -inf }
0x1c1b   :  { %6035 = vmax.xlane.f32.xlu1 %v6034_v22 }
0x1c2c   :  { %6053 = vrot.lane.b32.xlu1 %v13669_v2, %s12082_s28 }
0x1c30   :  { %6369 = vrot.lane.b32.xlu1 %v13669_v2, %s12078_s20 }
0x1c34   :  { %6447 = vrot.lane.b32.xlu1 %v13667_v10, %s12078_s20 }
0x1c38   :  { %6445 = vrot.lane.b32.xlu1 %v13667_v10, %s12083_s16 }
0x1ca0   :  { %v6033_v32 = vpop.xlane.xlu0 %6032 }
0x1ca1   :  { %v6037_v0 = vsub.f32 %v6029_v29, %v6033_v32 }
0x1ca3   :  { %v6039_v27 = vmul.f32 1.442695, %v6037_v0 }
0x1ca4   :  { %v6036_v53 = vpop.xlane.xlu1 %6035 }
0x1ca5   :  { %11675 = vpow2.f32 %v6039_v27  ;;  %v6038_v56 = vsub.f32 %v6030_v3, %v6036_v53 }
0x1ca7   :  { %v6041_v58 = vmul.f32 1.442695, %v6038_v56 }
0x1ca8   :  { %v6054_v11 = vpop.permute.xlu1 %6053 }
0x1ca9   :  { %11677 = vpow2.f32 %v6041_v58  ;;  %10803 = vmatpush3.msra.mxu0 %v6054_v11 }
0x1caa   :  { %10812 = vmatprep.subr.mxu0 %v5539_v13 }
0x1cac   :  { %v6370_v46 = vpop.permute.xlu1 %6369 }
0x1cb0   :  { %v6448_v43 = vpop.permute.xlu1 %6447 }
0x1cb2   :  { %v11676_v55 = vpop.eup %11675 }
0x1cb3   :  { %v6043_v16 = vsel %vm5545_vm6, %v11676_v55, 0.0 }
0x1cb4   :  { %6044 = vadd.xlane.f32.xlu0 %v6043_v16  ;;  %v6446_v47 = vpop.permute.xlu1 %6445 }
0x1cb6   :  { %v11678_v52 = vpop.eup %11677 }
0x1cb7   :  { %v6046_v15 = vsel %vm5545_vm6, %v11678_v52, 0.0 }
0x1cb8   :  { %6047 = vadd.xlane.f32.xlu0 %v6046_v15 }
0x1cce   :  { %6129 = vrot.lane.b32.xlu0 %v13667_v10, %s12082_s28 }
0x1cd2   :  { %6367 = vrot.lane.b32.xlu0 %v13669_v2, %s12083_s16 }
0x1d3d   :  { %v6045_v57 = vpop.xlane.xlu0 %6044 }
0x1d3e   :  { %11679 = vrcp.f32 %v6045_v57 }
0x1d41   :  { %v6048_v51 = vpop.xlane.xlu0 %6047 }
0x1d42   :  { %11681 = vrcp.f32 %v6048_v51 }
0x1d45   :  { %v6130_v28 = vpop.permute.xlu0 %6129 }
0x1d46   :  { %10808 = vmatpush3.msra.mxu1 %v6130_v28 }
0x1d47   :  { %10817 = vmatprep.subr.mxu1 %v5538_v9 }
0x1d49   :  { %v6368_v50 = vpop.permute.xlu0 %6367 }
0x1d4b   :  { %v11680_v62 = vpop.eup %11679 }
0x1d4c   :  { %v6051_v21 = vmul.f32 %v11680_v62, %v11676_v55 }
0x1d4e   :  { %10805 = vmatmul.mubr.msk.f32.vlgmr.msra.gmra.mxu0 %vm5545_vm6, %v6051_v21 }
0x1d4f   :  { %v11682_v30 = vpop.eup %11681  ;;  %10813 = vmatpush3.msra.mxu0 %v5539_v13 }
0x1d50   :  { %v6052_v33 = vmul.f32 %v11682_v30, %v11678_v52  ;;  %10822 = vmatprep.subr.mxu0 %v14306_v8 }
0x1d52   :  { %10810 = vmatmul.mubr.msk.f32.vlgmr.msra.gmra.mxu1 %vm5545_vm6, %v6052_v33 }
0x1d53   :  { %10819 = vmatprep.mubr.msk.f32.mxu1 %vm5545_vm6, %v5793_v23  ;;  %10818 = vmatpush3.msra.mxu1 %v5538_v9  ;;  %v5540_v9 = vld [vmem:[%s14314_s26 + $0x10] sm:$0xff] }
0x1d54   :  { %10827 = vmatprep.subr.mxu1 %v14306_v8 }
0x1d56   :  { %10820 = vmatmul.mubr.msk.f32.vlgmr.msra.gmra.mxu1 %vm5545_vm6, %v5869_v49 }
0x1d57   :  { %10828 = vmatpush3.xpose.msk.msra.mxu1 %vm5545_vm6, %v6448_v43  ;;  %10829 = vmatprep.mubr.msk.f32.mxu1 %vm12075_vm1, %v14306_v8 }
0x1d58   :  { %10837 = vmatprep.subr.mxu1 %v14306_v8 }
0x1d5a   :  { %10830 = vmatmul.mubr.msk.f32.vlgmr.msra.gmra.mxu1 %vm5545_vm6, %v6446_v47 }
0x1d5b   :  { %10839 = vmatprep.mubr.msk.f32.mxu1 %vm12075_vm1, %v14306_v8 }
0x1e0e   :  { %v6125_v42 = vpop.f32.mrf.mxu0 }
0x1e0f   :  { %10814 = vmatprep.mubr.msk.f32.mxu0 %vm5545_vm6, %v6125_v42 }
0x1e10   :  { %v10806_v17 = vpop.f32.mrf.mxu0 }
0x1e12   :  { %v6201_v39 = vpop.f32.mrf.mxu1 }
0x1e13   :  { %10815 = vmatmul.mubr.msk.f32.vlgmr.msra.gmra.mxu0 %vm5545_vm6, %v6201_v39 }
0x1e14   :  { %10823 = vmatpush3.xpose.msk.msra.mxu0 %vm5545_vm6, %v6370_v46  ;;  %v10811_v61 = vpop.f32.mrf.mxu1  ;;  %10824 = vmatprep.mubr.msk.f32.mxu0 %vm12075_vm1, %v14306_v8 }
0x1e15   :  { %10832 = vmatprep.subr.mxu0 %v14306_v8 }
0x1e16   :  { %v13758_v4 = vpop.f32.mrf.mxu1 }
0x1e17   :  { %10825 = vmatmul.mubr.msk.f32.vlgmr.msra.gmra.mxu0 %vm5545_vm6, %v6368_v50 }
0x1e18   :  { %v13761_v59 = vpop.f32.mrf.mxu1  ;;  %10834 = vmatprep.mubr.msk.f32.mxu0 %vm12075_vm1, %v14306_v8 }
0x1e1a   :  { %v6519_v60 = vpop.f32.mrf.mxu1 }
0x1e1b   :  { %v6524_v31 = vmul.f32 0.35355338, %v6519_v60 }
0x1e1c   :  { %v10831_v41 = vpop.f32.mrf.mxu1 }
0x1e1d   :  { %v6528_v48 = vsel %vm5545_vm6, %v6524_v31, -inf }
0x1e1e   :  { %6529 = vmax.xlane.f32.xlu1 %v6528_v48 }
0x1e2f   :  { %6547 = vrot.lane.b32.xlu1 %v13669_v2, %s12084_s0 }
0x1e33   :  { %6784 = vrot.lane.b32.xlu1 %v13669_v2, %s12085_s6 }
0x1e37   :  { %6862 = vrot.lane.b32.xlu1 %v13667_v10, %s12085_s6 }
0x1e3b   :  { %6860 = vrot.lane.b32.xlu1 %v13667_v10, %s12086_s27 }
0x1ea7   :  { %v6530_v14 = vpop.xlane.xlu1 %6529 }
0x1ea8   :  { %v6532_v38 = vsub.f32 %v6524_v31, %v6530_v14 }
0x1eaa   :  { %v6535_v49 = vmul.f32 1.442695, %v6532_v38 }
0x1eab   :  { %v6548_v23 = vpop.permute.xlu1 %6547 }
0x1eac   :  { %10833 = vmatpush3.msra.mxu0 %v6548_v23  ;;  %11683 = vpow2.f32 %v6535_v49 }
0x1ead   :  { %10842 = vmatprep.subr.mxu0 %v5540_v9 }
0x1eaf   :  { %v6785_v52 = vpop.permute.xlu1 %6784 }
0x1eb3   :  { %v6863_v43 = vpop.permute.xlu1 %6862 }
0x1eb7   :  { %v6861_v42 = vpop.permute.xlu1 %6860 }
0x1eb9   :  { %v11684_v3 = vpop.eup %11683 }
0x1eba   :  { %v6540_v25 = vsel %vm5545_vm6, %v11684_v3, 0.0 }
0x1ed3   :  { %v13774_v54 = vpop.f32.mrf.mxu0 }
0x1ed4   :  { %v6364_v31 = vadd.f32 %v13758_v4, %v13774_v54 }
0x1ed5   :  { %v13776_v29 = vpop.f32.mrf.mxu0 }
0x1ed6   :  { %v6359_v48 = vadd.f32 %v13761_v59, %v13776_v29 }
0x1ed7   :  { %v6441_v37 = vpop.f32.mrf.mxu0 }
0x1ed8   :  { %v6523_v20 = vmul.f32 0.35355338, %v6441_v37 }
0x1ed9   :  { %v10826_v63 = vpop.f32.mrf.mxu0 }
0x1eda   :  { %v6525_v26 = vsel %vm5545_vm6, %v6523_v20, -inf }
0x1edb   :  { %6526 = vmax.xlane.f32.xlu0 %v6525_v26 }
0x1edf   :  { %6541 = vadd.xlane.f32.xlu0 %v6540_v25 }
0x1f64   :  { %v6527_v22 = vpop.xlane.xlu0 %6526 }
0x1f65   :  { %v6531_v32 = vsub.f32 %v6523_v20, %v6527_v22 }
0x1f67   :  { %v6533_v0 = vmul.f32 1.442695, %v6531_v32 }
0x1f68   :  { %v6542_v56 = vpop.xlane.xlu0 %6541 }
0x1f69   :  { %11685 = vpow2.f32 %v6533_v0 }
0x1f6a   :  { %11687 = vrcp.f32 %v6542_v56 }
0x1f76   :  { %v11686_v27 = vpop.eup %11685 }
0x1f77   :  { %v6537_v53 = vsel %vm5545_vm6, %v11686_v27, 0.0  ;;  %v11688_v11 = vpop.eup %11687 }
0x1f78   :  { %6538 = vadd.xlane.f32.xlu0 %v6537_v53  ;;  %v6546_v16 = vmul.f32 %v11688_v11, %v11684_v3 }
0x1f8e   :  { %6623 = vrot.lane.b32.xlu0 %v13667_v10, %s12084_s0 }
0x1f92   :  { %6782 = vrot.lane.b32.xlu0 %v13669_v2, %s12086_s27 }
0x2001   :  { %v6539_v58 = vpop.xlane.xlu0 %6538 }
0x2002   :  { %11689 = vrcp.f32 %v6539_v58 }
0x2005   :  { %v6624_v55 = vpop.permute.xlu0 %6623 }
0x2006   :  { %10838 = vmatpush3.msra.mxu1 %v6624_v55 }
0x2007   :  { %10840 = vmatmul.mubr.msk.f32.vlgmr.msra.gmra.mxu1 %vm5545_vm6, %v6546_v16  ;;  %10847 = vmatprep.subr.mxu1 %v14306_v8  ;;  %v7236_v16 = vld [vmem:[%s14315_s2 + $0x18] sm:$0xff] }
0x2008   :  { %10848 = vmatpush3.xpose.msk.msra.mxu1 %vm5545_vm6, %v6785_v52  ;;  %10849 = vmatprep.mubr.msk.f32.mxu1 %vm12075_vm1, %v14306_v8  ;;  %v7235_v52 = vld [vmem:[%s14315_s2 + $0x10] sm:$0xff] }
0x2009   :  { %v6783_v15 = vpop.permute.xlu0 %6782  ;;  %10857 = vmatprep.subr.mxu1 %v14306_v8 }
0x200b   :  { %10850 = vmatmul.mubr.msk.f32.vlgmr.msra.gmra.mxu1 %vm5545_vm6, %v6783_v15  ;;  %v7234_v15 = vld [vmem:[%s14315_s2 + $0x8] sm:$0xff] }
0x200c   :  { %10859 = vmatprep.mubr.msk.f32.mxu1 %vm12075_vm1, %v14306_v8 }
0x200f   :  { %v11690_v57 = vpop.eup %11689 }
0x2010   :  { %v6545_v51 = vmul.f32 %v11690_v57, %v11686_v27  ;;  %v7233_v57 = vld [vmem:[%s14315_s2] sm:$0xff] }
0x2012   :  { %10835 = vmatmul.mubr.msk.f32.vlgmr.msra.gmra.mxu0 %vm5545_vm6, %v6545_v51  ;;  %v7342_v51 = vld [vmem:[%s14316_s9 + $0x78] sm:$0xff] }
0x2013   :  { %10843 = vmatpush3.msra.mxu0 %v5540_v9  ;;  %v7341_v9 = vld [vmem:[%s14316_s9 + $0x70] sm:$0xff] }
0x2014   :  { %10852 = vmatprep.subr.mxu0 %v14306_v8 }
0x20c7   :  { %v6695_v28 = vpop.f32.mrf.mxu1 }
0x20c9   :  { %v10841_v62 = vpop.f32.mrf.mxu1 }
0x20ca   :  { %v7339_v62 = vld [vmem:[%s14316_s9 + $0x60] sm:$0xff] }
0x20cb   :  { %v6856_v21 = vpop.f32.mrf.mxu1 }
0x20cc   :  { %v6938_v46 = vmul.f32 0.35355338, %v6856_v21  ;;  %v7338_v21 = vld [vmem:[%s14316_s9 + $0x58] sm:$0xff] }
0x20cd   :  { %v10851_v30 = vpop.f32.mrf.mxu1 }
0x20ce   :  { %v6940_v33 = vsel %vm5545_vm6, %v6938_v46, -inf  ;;  %v7336_v30 = vld [vmem:[%s14316_s9 + $0x48] sm:$0xff] }
0x20cf   :  { %6941 = vmax.xlane.f32.xlu0 %v6940_v33  ;;  %v7335_v33 = vld [vmem:[%s14316_s9 + $0x40] sm:$0xff] }
0x20d2   :  { %v6619_v47 = vpop.f32.mrf.mxu0 }
0x20d3   :  { %10844 = vmatprep.mubr.msk.f32.mxu0 %vm5545_vm6, %v6619_v47  ;;  %v7333_v47 = vld [vmem:[%s14316_s9 + $0x30] sm:$0xff] }
0x20d4   :  { %v10836_v13 = vpop.f32.mrf.mxu0  ;;  %10845 = vmatmul.mubr.msk.f32.vlgmr.msra.gmra.mxu0 %vm5545_vm6, %v6695_v28  ;;  %v7340_v28 = vld [vmem:[%s14316_s9 + $0x68] sm:$0xff] }
0x20d5   :  { %10853 = vmatpush3.xpose.msk.msra.mxu0 %vm5545_vm6, %v6863_v43  ;;  %10854 = vmatprep.mubr.msk.f32.mxu0 %vm12075_vm1, %v14306_v8  ;;  %v7334_v43 = vld [vmem:[%s14316_s9 + $0x38] sm:$0xff]  ;;  %v7332_v13 = vld [vmem:[%s14316_s9 + $0x28] sm:$0xff] }
0x20d6   :  { %10862 = vmatprep.subr.mxu0 %v14306_v8 }
0x20d8   :  { %10855 = vmatmul.mubr.msk.f32.vlgmr.msra.gmra.mxu0 %vm5545_vm6, %v6861_v42  ;;  %v7331_v42 = vld [vmem:[%s14316_s9 + $0x20] sm:$0xff] }
0x20d9   :  { %10864 = vmatprep.mubr.msk.f32.mxu0 %vm12075_vm1, %v14306_v8 }
0x2158   :  { %v6942_v17 = vpop.xlane.xlu0 %6941 }
0x2159   :  { %v6946_v39 = vsub.f32 %v6938_v46, %v6942_v17  ;;  %v7337_v46 = vld [vmem:[%s14316_s9 + $0x50] sm:$0xff] }
0x215b   :  { %v6948_v61 = vmul.f32 1.442695, %v6946_v39  ;;  %v10092_v39 = vld [vmem:[%s14317_s8] ss:$0 sm:$0xff] }
0x215d   :  { %11691 = vpow2.f32 %v6948_v61 }
0x216a   :  { %v11692_v50 = vpop.eup %11691 }
0x216b   :  { %v6952_v60 = vsel %vm5545_vm6, %v11692_v50, 0.0 }
0x216c   :  { %6953 = vadd.xlane.f32.xlu0 %v6952_v60 }
0x2194   :  { %v10846_v41 = vpop.f32.mrf.mxu0 }
0x2195   :  { %v13812_v14 = vadd.f32 %v10846_v41, %v6364_v31  ;;  %v7210_v41 = vstv %s7206_s30 }
0x2196   :  { %v6771_v23 = vpop.f32.mrf.mxu0 }
0x2197   :  { %v13814_v38 = vadd.f32 %v6771_v23, %v6359_v48 }
0x2198   :  { %v6934_v49 = vpop.f32.mrf.mxu0 }
0x2199   :  { %v6939_v37 = vmul.f32 0.35355338, %v6934_v49 }
0x219a   :  { %v10856_v20 = vpop.f32.mrf.mxu0 }
0x219b   :  { %v6943_v63 = vsel %vm5545_vm6, %v6939_v37, -inf }
0x219c   :  { %6944 = vmax.xlane.f32.xlu1 %v6943_v63  ;;  %v10094_v63 = vld [vmem:[#allocation23] ss:$0 sm:$0xff] }
0x21ad   :  { %6962 = vrot.lane.b32.xlu1 %v13669_v2, %s12087_s1  ;;  %v5541_v2 = vld [vmem:[%s14314_s26 + $0x18] sm:$0xff] }
0x21f5   :  { %v6954_v4 = vpop.xlane.xlu0 %6953 }
0x21f6   :  { %11693 = vrcp.f32 %v6954_v4 }
0x2203   :  { %v11694_v59 = vpop.eup %11693 }
0x2204   :  { %v6960_v25 = vmul.f32 %v11694_v59, %v11692_v50 }
0x2225   :  { %v6945_v54 = vpop.xlane.xlu1 %6944 }
0x2226   :  { %v6947_v29 = vsub.f32 %v6939_v37, %v6945_v54 }
0x2228   :  { %v6950_v26 = vmul.f32 1.442695, %v6947_v29 }
0x2229   :  { %v6963_v3 = vpop.permute.xlu1 %6962 }
0x222a   :  { %11695 = vpow2.f32 %v6950_v26  ;;  %10858 = vmatpush3.msra.mxu1 %v6963_v3  ;;  %v7328_v3 = vld [vmem:[%s14316_s9 + $0x8] sm:$0xff] }
0x222b   :  { %10860 = vmatmul.mubr.msk.f32.vlgmr.msra.gmra.mxu1 %vm5545_vm6, %v6960_v25  ;;  %10867 = vmatprep.subr.mxu1 %v5541_v2  ;;  %v7327_v25 = vld [vmem:[%s14316_s9] sm:$0xff] }
0x222c   :  { %10868 = vmatpush3.msra.mxu1 %v5541_v2 }
0x222d   :  { %10883 = vmatprep.subr.mxu1 %v7342_v51 }
0x2237   :  { %v11696_v22 = vpop.eup %11695 }
0x2238   :  { %v6955_v32 = vsel %vm5545_vm6, %v11696_v22, 0.0 }
0x2239   :  { %6956 = vadd.xlane.f32.xlu0 %v6955_v32 }
0x224f   :  { %7038 = vrot.lane.b32.xlu0 %v13667_v10, %s12087_s1 }
0x22c2   :  { %v6957_v0 = vpop.xlane.xlu0 %6956 }
0x22c3   :  { %11697 = vrcp.f32 %v6957_v0 }
0x22c6   :  { %v7039_v27 = vpop.permute.xlu0 %7038 }
0x22c7   :  { %10863 = vmatpush3.msra.mxu0 %v7039_v27 }
0x22c8   :  { %10872 = vmatprep.subr.mxu0 %v7236_v16 }
0x22d0   :  { %v11698_v53 = vpop.eup %11697 }
0x22d1   :  { %v6961_v56 = vmul.f32 %v11698_v53, %v11696_v22  ;;  %v10096_v22 = vld [vmem:[#allocation20] ss:$0 sm:$0xff] }
0x22d3   :  { %10865 = vmatmul.mubr.msk.f32.vlgmr.msra.gmra.mxu0 %vm5545_vm6, %v6961_v56 }
0x22d4   :  { %10873 = vmatpush3.msra.mxu0 %v7236_v16  ;;  %v10099_v16 = vld [vmem:[#allocation21] ss:$0 sm:$0xff] }
0x22d5   :  { %10874 = vmatprep.subr.mxu0 %v7235_v52 }
0x22d6   :  { %10875 = vmatpush3.msra.mxu0 %v7235_v52 }
0x22d7   :  { %10876 = vmatprep.subr.mxu0 %v7234_v15 }
0x22d8   :  { %10877 = vmatpush3.msra.mxu0 %v7234_v15 }
0x22d9   :  { %10878 = vmatprep.subr.mxu0 %v7233_v57 }
0x22da   :  { %10879 = vmatpush3.msra.mxu0 %v7233_v57  ;;  %v7427_v57 = vstv %s10093_s10 }
0x22eb   :  { %v7034_v58 = vpop.f32.mrf.mxu1 }
0x22ec   :  { %10869 = vmatprep.mubr.msk.f32.mxu1 %vm5545_vm6, %v7034_v58  ;;  %v10105_v58 = vld [vmem:[%s14312_s11 + $0x38] sm:$0xff] }
0x22ed   :  { %v10861_v11 = vpop.f32.mrf.mxu1  ;;  %10918 = vmatprep.subr.mxu0 %v10105_v58 }
0x22ee   :  { %v10104_v11 = vld [vmem:[%s14312_s11 + $0x30] sm:$0xff] }
0x2393   :  { %v7110_v10 = vpop.f32.mrf.mxu0 }
0x2394   :  { %10870 = vmatmul.mubr.msk.f32.vlgmr.msra.gmra.mxu1 %vm5545_vm6, %v7110_v10  ;;  %v10103_v10 = vld [vmem:[%s14312_s11 + $0x28] sm:$0xff] }
0x2395   :  { %v10866_v55 = vpop.f32.mrf.mxu0  ;;  %10884 = vmatpush3.msra.mxu1 %v7342_v51 }
0x2396   :  { %10885 = vmatprep.subr.mxu1 %v7341_v9  ;;  %v10102_v55 = vld [vmem:[%s14312_s11 + $0x20] sm:$0xff] }
0x2397   :  { %10886 = vmatpush3.msra.mxu1 %v7341_v9 }
0x2398   :  { %10887 = vmatprep.subr.mxu1 %v7340_v28 }
0x2399   :  { %10888 = vmatpush3.msra.mxu1 %v7340_v28 }
0x239a   :  { %10889 = vmatprep.subr.mxu1 %v7339_v62 }
0x239b   :  { %10890 = vmatpush3.msra.mxu1 %v7339_v62 }
0x239c   :  { %10891 = vmatprep.subr.mxu1 %v7338_v21 }
0x239d   :  { %10892 = vmatpush3.msra.mxu1 %v7338_v21 }
0x239e   :  { %10893 = vmatprep.subr.mxu1 %v7337_v46 }
0x239f   :  { %10894 = vmatpush3.msra.mxu1 %v7337_v46 }
0x23a0   :  { %10895 = vmatprep.subr.mxu1 %v7336_v30 }
0x23a1   :  { %10896 = vmatpush3.msra.mxu1 %v7336_v30  ;;  %v10100_v30 = vld [vmem:[#allocation26] ss:$0 sm:$0xff] }
0x23a2   :  { %10897 = vmatprep.subr.mxu1 %v7335_v33 }
0x23a3   :  { %10898 = vmatpush3.msra.mxu1 %v7335_v33 }
0x23a4   :  { %10899 = vmatprep.subr.mxu1 %v7334_v43 }
0x23a5   :  { %10900 = vmatpush3.msra.mxu1 %v7334_v43 }
0x23a6   :  { %10901 = vmatprep.subr.mxu1 %v7333_v47 }
0x23a7   :  { %10902 = vmatpush3.msra.mxu1 %v7333_v47 }
0x23a8   :  { %10903 = vmatprep.subr.mxu1 %v7332_v13 }
0x23a9   :  { %10904 = vmatpush3.msra.mxu1 %v7332_v13 }
0x23aa   :  { %10905 = vmatprep.subr.mxu1 %v7331_v42 }
0x23ab   :  { %10906 = vmatpush3.msra.mxu1 %v7331_v42  ;;  %v10101_v42 = vld [vmem:[#allocation27] ss:$0 sm:$0xff] }
0x2454   :  { %v10871_v17 = vpop.f32.mrf.mxu1 }
0x2455   :  { %v7196_v61 = vadd.f32 %v10871_v17, %v13812_v14 }
0x2456   :  { %v7186_v50 = vpop.f32.mrf.mxu1 }
0x2457   :  { %v7205_v60 = vadd.f32 %v10092_v39, %v7196_v61  ;;  %v7195_v31 = vadd.f32 %v7186_v50, %v13814_v38  ;;  %v10095_v38 = vld [vmem:[#allocation24] ss:$0 sm:$0xff]  ;;  %v10107_v50 = vld [vmem:[%s14313_s15 + $0x1] ss:$0 sm:$0xff] }
0x2459   :  { %v7209_v48 = vadd.f32 %v7205_v60, %v13658_v1  ;;  %v7204_v23 = vadd.f32 %v10092_v39, %v7195_v31  ;;  %v7330_v1 = vld [vmem:[%s14316_s9 + $0x18] sm:$0xff] }
0x245a   :  { %10907 = vmatprep.subr.mxu1 %v7330_v1 }
0x245b   :  { %v7212_v49 = vmul.f32 %v7210_v41, %v7209_v48  ;;  %v7208_v37 = vadd.f32 %v7204_v23, %v13655_v40  ;;  %10908 = vmatpush3.msra.mxu1 %v7330_v1  ;;  %v7329_v40 = vld [vmem:[%s14316_s9 + $0x10] sm:$0xff] }
0x245c   :  { %10909 = vmatprep.subr.mxu1 %v7329_v40 }
0x245d   :  { %11699 = vtanh.f32 %v7212_v49  ;;  %v7211_v20 = vmul.f32 %v7210_v41, %v7208_v37  ;;  %10910 = vmatpush3.msra.mxu1 %v7329_v40 }
0x245e   :  { %10911 = vmatprep.subr.mxu1 %v7328_v3 }
0x245f   :  { %11701 = vtanh.f32 %v7211_v20  ;;  %10912 = vmatpush3.msra.mxu1 %v7328_v3 }
0x2460   :  { %10913 = vmatprep.subr.mxu1 %v7327_v25 }
0x2461   :  { %10914 = vmatpush3.msra.mxu1 %v7327_v25 }
0x2462   :  { %10954 = vmatprep.subr.mxu1 %v14306_v8 }
0x246a   :  { %v11700_v4 = vpop.eup %11699 }
0x246b   :  { %v7223_v54 = vmul.f32 %v11700_v4, %v10094_v63 }
0x246c   :  { %v11702_v14 = vpop.eup %11701 }
0x246d   :  { %v7222_v59 = vmul.f32 %v11702_v14, %v10094_v63  ;;  %v7232_v26 = vadd.f32 %v10095_v38, %v7223_v54 }
0x246f   :  { %v7231_v29 = vadd.f32 %v10095_v38, %v7222_v59 }
0x2471   :  { %10880 = vmatprep.mubr.msk.f32.mxu0 %vm372_vm0, %v7231_v29 }
0x2472   :  { %10881 = vmatmul.mubr.msk.f32.vlgmr.msra.gmra.mxu0 %vm372_vm0, %v7232_v26 }
0x2473   :  { %10919 = vmatpush3.msra.mxu0 %v10105_v58 }
0x2474   :  { %10920 = vmatprep.subr.mxu0 %v10104_v11 }
0x2475   :  { %10921 = vmatpush3.msra.mxu0 %v10104_v11 }
0x2476   :  { %10922 = vmatprep.subr.mxu0 %v10103_v10 }
0x2477   :  { %10923 = vmatpush3.msra.mxu0 %v10103_v10 }
0x2478   :  { %10924 = vmatprep.subr.mxu0 %v10102_v55 }
0x2479   :  { %10925 = vmatpush3.msra.mxu0 %v10102_v55 }
0x247a   :  { %10929 = vmatprep.subr.mxu0 %v14306_v8 }
0x2532   :  { %v10882_v32 = vpop.f32.mrf.mxu0 }
0x2533   :  { %v7322_v2 = vadd.f32 %v10882_v32, %v10096_v22 }
0x2534   :  { %v7316_v0 = vpop.f32.mrf.mxu0 }
0x2535   :  { %v7317_v27 = vadd.f32 %v10096_v22, %v7316_v0  ;;  %v7326_v56 = vmax.f32 %v7322_v2, 0.0 }
0x2537   :  { %v7325_v53 = vmax.f32 %v7317_v27, 0.0 }
0x2539   :  { %10915 = vmatprep.mubr.f32.mxu1 %v7325_v53 }
0x253a   :  { %10916 = vmatmul.mubr.f32.vlgmr.msra.gmra.mxu1 %v7326_v56 }
0x253b   :  { %10956 = vmatprep.mubr.msk.f32.mxu1 %vm12075_vm1, %v14306_v8 }
0x25fa   :  { %v10917_v52 = vpop.f32.mrf.mxu1 }
0x25fb   :  { %v7422_v15 = vadd.f32 %v10917_v52, %v10099_v16 }
0x25fc   :  { %v7416_v51 = vpop.f32.mrf.mxu1 }
0x25fd   :  { %v7426_v9 = vadd.f32 %v7422_v15, %v7232_v26  ;;  %v7417_v28 = vadd.f32 %v10099_v16, %v7416_v51 }
0x25ff   :  { %v7429_v62 = vmul.f32 %v7427_v57, %v7426_v9  ;;  %v7425_v21 = vadd.f32 %v7417_v28, %v7231_v29 }
0x2601   :  { %11703 = vtanh.f32 %v7429_v62  ;;  %v7428_v46 = vmul.f32 %v7427_v57, %v7425_v21 }
0x2603   :  { %11705 = vtanh.f32 %v7428_v46 }
0x260e   :  { %v11704_v33 = vpop.eup %11703 }
0x260f   :  { %v7440_v47 = vmul.f32 %v11704_v33, %v10100_v30 }
0x2610   :  { %v11706_v43 = vpop.eup %11705 }
0x2611   :  { %v7439_v13 = vmul.f32 %v11706_v43, %v10100_v30  ;;  %v13864_v39 = vadd.f32 %v10101_v42, %v7440_v47 }
0x2613   :  { %v13862_v17 = vadd.f32 %v10101_v42, %v7439_v13 }
0x2615   :  { %10926 = vmatprep.mubr.msk.f32.mxu0 %vm372_vm0, %v13862_v17 }
0x2616   :  { %10927 = vmatmul.mubr.msk.f32.vlgmr.msra.gmra.mxu0 %vm372_vm0, %v13864_v39 }
0x2617   :  { %10931 = vmatprep.mubr.msk.f32.mxu0 %vm12075_vm1, %v14306_v8 }
0x26d6   :  { %v10928_v61 = vpop.f32.mrf.mxu0 }
0x26d7   :  { %v13877_v41 = vadd.f32 %v10928_v61, %v10107_v50 }
0x26d8   :  { %v7535_v60 = vpop.f32.mrf.mxu0 }
0x26d9   :  { %v13873_v31 = vadd.f32 %v10107_v50, %v7535_v60 }
0x26db   :  { %7550 = vrot.lane.b32.xlu1 %v13873_v31, %s12076_s21 }
0x26df   :  { %7627 = vrot.lane.b32.xlu1 %v13877_v41, %s12076_s21 }
0x274d   :  { %v7551_v48 = vpop.permute.xlu1 %7550 }
0x274e   :  { %10930 = vmatpush3.xpose.msk.msra.mxu0 %vm5545_vm6, %v7551_v48 }
0x274f   :  { %10934 = vmatprep.subr.mxu0 %v14306_v8 }
0x2751   :  { %10932 = vmatmul.mubr.msk.f32.vlgmr.msra.gmra.mxu0 %vm5545_vm6, %v13873_v31  ;;  %v7628_v23 = vpop.permute.xlu1 %7627 }
0x2752   :  { %10935 = vmatpush3.xpose.msk.msra.mxu0 %vm5545_vm6, %v7628_v23  ;;  %10936 = vmatprep.mubr.msk.f32.mxu0 %vm12075_vm1, %v14306_v8 }
0x2753   :  { %10939 = vmatprep.subr.mxu0 %v14306_v8 }
0x2755   :  { %10937 = vmatmul.mubr.msk.f32.vlgmr.msra.gmra.mxu0 %vm5545_vm6, %v13877_v41 }
0x2756   :  { %10941 = vmatprep.mubr.msk.f32.mxu0 %vm12075_vm1, %v14306_v8 }
0x2811   :  { %v7622_v49 = vpop.f32.mrf.mxu0 }
0x2812   :  { %v7703_v37 = vmul.f32 0.35355338, %v7622_v49 }
0x2813   :  { %v10933_v20 = vpop.f32.mrf.mxu0 }
0x2814   :  { %v7705_v63 = vsel %vm5545_vm6, %v7703_v37, -inf }
0x2815   :  { %7706 = vmax.xlane.f32.xlu0 %v7705_v63  ;;  %v7699_v4 = vpop.f32.mrf.mxu0 }
0x2816   :  { %v7704_v14 = vmul.f32 0.35355338, %v7699_v4 }
0x2817   :  { %v10938_v54 = vpop.f32.mrf.mxu0 }
0x2818   :  { %v7708_v59 = vsel %vm5545_vm6, %v7704_v14, -inf }
0x2819   :  { %7709 = vmax.xlane.f32.xlu1 %v7708_v59 }
0x282a   :  { %7727 = vrot.lane.b32.xlu1 %v13873_v31, %s12079_s18 }
0x282e   :  { %7881 = vrot.lane.b32.xlu1 %v13873_v31, %s12080_s24 }
0x2832   :  { %7959 = vrot.lane.b32.xlu1 %v13877_v41, %s12080_s24 }
0x2836   :  { %7957 = vrot.lane.b32.xlu1 %v13877_v41, %s12081_s22 }
0x289e   :  { %v7707_v38 = vpop.xlane.xlu0 %7706 }
0x289f   :  { %v7711_v29 = vsub.f32 %v7703_v37, %v7707_v38 }
0x28a1   :  { %v7713_v26 = vmul.f32 1.442695, %v7711_v29 }
0x28a2   :  { %v7710_v1 = vpop.xlane.xlu1 %7709 }
0x28a3   :  { %11707 = vpow2.f32 %v7713_v26  ;;  %v7712_v40 = vsub.f32 %v7704_v14, %v7710_v1  ;;  %v10110_v26 = vld [vmem:[%s14314_s26 + $0x20] sm:$0xff] }
0x28a5   :  { %v7715_v3 = vmul.f32 1.442695, %v7712_v40 }
0x28a6   :  { %v7728_v25 = vpop.permute.xlu1 %7727 }
0x28a7   :  { %11709 = vpow2.f32 %v7715_v3  ;;  %10940 = vmatpush3.msra.mxu0 %v7728_v25 }
0x28a8   :  { %10944 = vmatprep.subr.mxu0 %v14306_v8 }
0x28aa   :  { %v7882_v22 = vpop.permute.xlu1 %7881 }
0x28ae   :  { %v7960_v32 = vpop.permute.xlu1 %7959 }
0x28af   :  { %10955 = vmatpush3.xpose.msk.msra.mxu1 %vm5545_vm6, %v7960_v32 }
0x28b0   :  { %v11708_v2 = vpop.eup %11707  ;;  %10964 = vmatprep.subr.mxu1 %v14306_v8 }
0x28b1   :  { %v7717_v0 = vsel %vm5545_vm6, %v11708_v2, 0.0 }
0x28b2   :  { %7718 = vadd.xlane.f32.xlu0 %v7717_v0  ;;  %v7958_v27 = vpop.permute.xlu1 %7957 }
0x28b3   :  { %10957 = vmatmul.mubr.msk.f32.vlgmr.msra.gmra.mxu1 %vm5545_vm6, %v7958_v27 }
0x28b4   :  { %v11710_v53 = vpop.eup %11709  ;;  %10966 = vmatprep.mubr.msk.f32.mxu1 %vm12075_vm1, %v14306_v8 }
0x28b5   :  { %v7720_v56 = vsel %vm5545_vm6, %v11710_v53, 0.0 }
0x28b6   :  { %7721 = vadd.xlane.f32.xlu0 %v7720_v56 }
0x28cc   :  { %7803 = vrot.lane.b32.xlu0 %v13877_v41, %s12079_s18 }
0x28d0   :  { %7879 = vrot.lane.b32.xlu0 %v13873_v31, %s12081_s22 }
0x293b   :  { %v7719_v58 = vpop.xlane.xlu0 %7718 }
0x293c   :  { %11711 = vrcp.f32 %v7719_v58 }
0x293f   :  { %v7722_v11 = vpop.xlane.xlu0 %7721 }
0x2940   :  { %11713 = vrcp.f32 %v7722_v11 }
0x2943   :  { %v7804_v16 = vpop.permute.xlu0 %7803 }
0x2947   :  { %v7880_v57 = vpop.permute.xlu0 %7879 }
0x2949   :  { %v11712_v10 = vpop.eup %11711 }
0x294a   :  { %v7725_v55 = vmul.f32 %v11712_v10, %v11708_v2  ;;  %v10111_v2 = vld [vmem:[%s14314_s26 + $0x28] sm:$0xff] }
0x294c   :  { %10942 = vmatmul.mubr.msk.f32.vlgmr.msra.gmra.mxu0 %vm5545_vm6, %v7725_v55 }
0x294d   :  { %v11714_v52 = vpop.eup %11713  ;;  %10945 = vmatpush3.msra.mxu0 %v7804_v16  ;;  %10946 = vmatprep.mubr.msk.f32.mxu0 %vm12075_vm1, %v14306_v8 }
0x294e   :  { %10949 = vmatprep.subr.mxu0 %v14306_v8  ;;  %v7726_v15 = vmul.f32 %v11714_v52, %v11710_v53 }
0x2950   :  { %10947 = vmatmul.mubr.msk.f32.vlgmr.msra.gmra.mxu0 %vm5545_vm6, %v7726_v15 }
0x2951   :  { %10950 = vmatpush3.xpose.msk.msra.mxu0 %vm5545_vm6, %v7882_v22  ;;  %10951 = vmatprep.mubr.msk.f32.mxu0 %vm12075_vm1, %v14306_v8 }
0x2952   :  { %10959 = vmatprep.subr.mxu0 %v14306_v8 }
0x2954   :  { %10952 = vmatmul.mubr.msk.f32.vlgmr.msra.gmra.mxu0 %vm5545_vm6, %v7880_v57 }
0x2955   :  { %10961 = vmatprep.mubr.msk.f32.mxu0 %vm12075_vm1, %v14306_v8 }
0x2973   :  { %v8031_v51 = vpop.f32.mrf.mxu1 }
0x2974   :  { %v8036_v9 = vmul.f32 0.35355338, %v8031_v51 }
0x2975   :  { %v10958_v28 = vpop.f32.mrf.mxu1 }
0x2976   :  { %v8040_v62 = vsel %vm5545_vm6, %v8036_v9, -inf }
0x2977   :  { %8041 = vmax.xlane.f32.xlu1 %v8040_v62 }
0x2988   :  { %8059 = vrot.lane.b32.xlu1 %v13873_v31, %s12082_s28 }
0x298c   :  { %8375 = vrot.lane.b32.xlu1 %v13873_v31, %s12078_s20 }
0x2990   :  { %8453 = vrot.lane.b32.xlu1 %v13877_v41, %s12078_s20 }
0x2994   :  { %8451 = vrot.lane.b32.xlu1 %v13877_v41, %s12083_s16 }
0x2a00   :  { %v8042_v21 = vpop.xlane.xlu1 %8041 }
0x2a01   :  { %v8044_v46 = vsub.f32 %v8036_v9, %v8042_v21 }
0x2a03   :  { %v8047_v33 = vmul.f32 1.442695, %v8044_v46 }
0x2a04   :  { %v8060_v30 = vpop.permute.xlu1 %8059 }
0x2a05   :  { %10960 = vmatpush3.msra.mxu0 %v8060_v30  ;;  %11715 = vpow2.f32 %v8047_v33 }
0x2a06   :  { %10969 = vmatprep.subr.mxu0 %v10111_v2 }
0x2a08   :  { %v8376_v29 = vpop.permute.xlu1 %8375 }
0x2a0c   :  { %v7799_v43 = vpop.f32.mrf.mxu0  ;;  %v8454_v3 = vpop.permute.xlu1 %8453 }
0x2a0e   :  { %v10943_v47 = vpop.f32.mrf.mxu0 }
0x2a10   :  { %v7875_v13 = vpop.f32.mrf.mxu0  ;;  %v8452_v25 = vpop.permute.xlu1 %8451 }
0x2a12   :  { %v10948_v42 = vpop.f32.mrf.mxu0  ;;  %v11716_v23 = vpop.eup %11715 }
0x2a13   :  { %v8052_v49 = vsel %vm5545_vm6, %v11716_v23, 0.0 }
0x2a14   :  { %v7953_v61 = vpop.f32.mrf.mxu0 }
0x2a15   :  { %v8035_v50 = vmul.f32 0.35355338, %v7953_v61 }
0x2a16   :  { %v10953_v60 = vpop.f32.mrf.mxu0 }
0x2a17   :  { %v8037_v48 = vsel %vm5545_vm6, %v8035_v50, -inf }
0x2a18   :  { %8038 = vmax.xlane.f32.xlu0 %v8037_v48 }
0x2a1c   :  { %8053 = vadd.xlane.f32.xlu0 %v8052_v49 }
0x2aa1   :  { %v8039_v37 = vpop.xlane.xlu0 %8038 }
0x2aa2   :  { %v8043_v20 = vsub.f32 %v8035_v50, %v8039_v37 }
0x2aa4   :  { %v8045_v63 = vmul.f32 1.442695, %v8043_v20 }
0x2aa5   :  { %v8054_v54 = vpop.xlane.xlu0 %8053 }
0x2aa6   :  { %11717 = vpow2.f32 %v8045_v63 }
0x2aa7   :  { %11719 = vrcp.f32 %v8054_v54 }
0x2ab3   :  { %v11718_v4 = vpop.eup %11717 }
0x2ab4   :  { %v8049_v14 = vsel %vm5545_vm6, %v11718_v4, 0.0  ;;  %v11720_v38 = vpop.eup %11719 }
0x2ab5   :  { %8050 = vadd.xlane.f32.xlu0 %v8049_v14  ;;  %v8058_v40 = vmul.f32 %v11720_v38, %v11716_v23  ;;  %v10112_v38 = vld [vmem:[%s14314_s26 + $0x30] sm:$0xff] }
0x2acb   :  { %8135 = vrot.lane.b32.xlu0 %v13877_v41, %s12082_s28 }
0x2acf   :  { %8373 = vrot.lane.b32.xlu0 %v13873_v31, %s12083_s16 }
0x2b3e   :  { %v8051_v59 = vpop.xlane.xlu0 %8050 }
0x2b3f   :  { %11721 = vrcp.f32 %v8051_v59 }
0x2b42   :  { %v8136_v1 = vpop.permute.xlu0 %8135 }
0x2b43   :  { %10965 = vmatpush3.msra.mxu1 %v8136_v1 }
0x2b44   :  { %10967 = vmatmul.mubr.msk.f32.vlgmr.msra.gmra.mxu1 %vm5545_vm6, %v8058_v40  ;;  %10974 = vmatprep.subr.mxu1 %v10110_v26 }
0x2b45   :  { %10976 = vmatprep.mubr.msk.f32.mxu1 %vm5545_vm6, %v7799_v43  ;;  %10975 = vmatpush3.msra.mxu1 %v10110_v26 }
0x2b46   :  { %10984 = vmatprep.subr.mxu1 %v14306_v8  ;;  %v8374_v15 = vpop.permute.xlu0 %8373 }
0x2b48   :  { %10977 = vmatmul.mubr.msk.f32.vlgmr.msra.gmra.mxu1 %vm5545_vm6, %v7875_v13 }
0x2b49   :  { %10985 = vmatpush3.xpose.msk.msra.mxu1 %vm5545_vm6, %v8454_v3  ;;  %10986 = vmatprep.mubr.msk.f32.mxu1 %vm12075_vm1, %v14306_v8 }
0x2b4a   :  { %10994 = vmatprep.subr.mxu1 %v14306_v8 }
0x2b4c   :  { %v11722_v22 = vpop.eup %11721  ;;  %10987 = vmatmul.mubr.msk.f32.vlgmr.msra.gmra.mxu1 %vm5545_vm6, %v8452_v25 }
0x2b4d   :  { %v8057_v32 = vmul.f32 %v11722_v22, %v11718_v4  ;;  %10996 = vmatprep.mubr.msk.f32.mxu1 %vm12075_vm1, %v14306_v8 }
0x2b4f   :  { %10962 = vmatmul.mubr.msk.f32.vlgmr.msra.gmra.mxu0 %vm5545_vm6, %v8057_v32 }
0x2b50   :  { %10970 = vmatpush3.msra.mxu0 %v10111_v2 }
0x2b51   :  { %10979 = vmatprep.subr.mxu0 %v14306_v8 }
0x2c04   :  { %v8207_v0 = vpop.f32.mrf.mxu1 }
0x2c06   :  { %v10968_v27 = vpop.f32.mrf.mxu1 }
0x2c08   :  { %v13958_v53 = vpop.f32.mrf.mxu1 }
0x2c0a   :  { %v13960_v56 = vpop.f32.mrf.mxu1 }
0x2c0c   :  { %v8525_v58 = vpop.f32.mrf.mxu1 }
0x2c0d   :  { %v8530_v11 = vmul.f32 0.35355338, %v8525_v58 }
0x2c0e   :  { %v10988_v10 = vpop.f32.mrf.mxu1 }
0x2c0f   :  { %v8131_v55 = vpop.f32.mrf.mxu0  ;;  %v8534_v16 = vsel %vm5545_vm6, %v8530_v11, -inf }
0x2c10   :  { %8535 = vmax.xlane.f32.xlu1 %v8534_v16  ;;  %10971 = vmatprep.mubr.msk.f32.mxu0 %vm5545_vm6, %v8131_v55 }
0x2c11   :  { %v10963_v52 = vpop.f32.mrf.mxu0  ;;  %10972 = vmatmul.mubr.msk.f32.vlgmr.msra.gmra.mxu0 %vm5545_vm6, %v8207_v0 }
0x2c12   :  { %10980 = vmatpush3.xpose.msk.msra.mxu0 %vm5545_vm6, %v8376_v29  ;;  %10981 = vmatprep.mubr.msk.f32.mxu0 %vm12075_vm1, %v14306_v8 }
0x2c13   :  { %10989 = vmatprep.subr.mxu0 %v14306_v8 }
0x2c15   :  { %10982 = vmatmul.mubr.msk.f32.vlgmr.msra.gmra.mxu0 %vm5545_vm6, %v8374_v15 }
0x2c16   :  { %10991 = vmatprep.mubr.msk.f32.mxu0 %vm12075_vm1, %v14306_v8 }
0x2c21   :  { %8553 = vrot.lane.b32.xlu1 %v13873_v31, %s12084_s0 }
0x2c25   :  { %8790 = vrot.lane.b32.xlu1 %v13873_v31, %s12085_s6 }
0x2c29   :  { %8868 = vrot.lane.b32.xlu1 %v13877_v41, %s12085_s6 }
0x2c2d   :  { %8866 = vrot.lane.b32.xlu1 %v13877_v41, %s12086_s27 }
0x2c99   :  { %v8536_v57 = vpop.xlane.xlu1 %8535 }
0x2c9a   :  { %v8538_v9 = vsub.f32 %v8530_v11, %v8536_v57 }
0x2c9c   :  { %v8541_v28 = vmul.f32 1.442695, %v8538_v9 }
0x2c9d   :  { %v8554_v51 = vpop.permute.xlu1 %8553 }
0x2c9e   :  { %10990 = vmatpush3.msra.mxu0 %v8554_v51  ;;  %11723 = vpow2.f32 %v8541_v28 }
0x2c9f   :  { %10999 = vmatprep.subr.mxu0 %v10112_v38 }
0x2ca1   :  { %v8791_v4 = vpop.permute.xlu1 %8790 }
0x2ca5   :  { %v8869_v22 = vpop.permute.xlu1 %8868 }
0x2ca9   :  { %v8867_v0 = vpop.permute.xlu1 %8866 }
0x2cab   :  { %v11724_v47 = vpop.eup %11723 }
0x2cac   :  { %v8546_v13 = vsel %vm5545_vm6, %v11724_v47, 0.0 }
0x2cd1   :  { %v13980_v62 = vpop.f32.mrf.mxu0 }
0x2cd2   :  { %v8370_v16 = vadd.f32 %v13958_v53, %v13980_v62  ;;  %v4828_v62 = vld [vmem:[#allocation3 + $0x8] sm:$0x1] }
0x2cd3   :  { %v13982_v21 = vpop.f32.mrf.mxu0 }
0x2cd4   :  { %v8365_v15 = vadd.f32 %v13960_v56, %v13982_v21  ;;  %v4686_v21 = vld [vmem:[#allocation2 + $0xf] sm:$0x1] }
0x2cd5   :  { %v8447_v46 = vpop.f32.mrf.mxu0 }
0x2cd6   :  { %v8529_v30 = vmul.f32 0.35355338, %v8447_v46 }
0x2cd7   :  { %v10983_v33 = vpop.f32.mrf.mxu0 }
0x2cd8   :  { %v8531_v43 = vsel %vm5545_vm6, %v8529_v30, -inf }
0x2cd9   :  { %8532 = vmax.xlane.f32.xlu0 %v8531_v43  ;;  %v4827_v43 = vld [vmem:[#allocation3] sm:$0x1] }
0x2cda   :  { %v4909_v53 = vadd.f32 %v13510_v5, %v4827_v43 }
0x2cdd   :  { %8547 = vadd.xlane.f32.xlu0 %v8546_v13  ;;  %v4764_v13 = vrot.slane %v13508_v12, 1 }
0x2d62   :  { %v8533_v42 = vpop.xlane.xlu0 %8532 }
0x2d63   :  { %v8537_v61 = vsub.f32 %v8529_v30, %v8533_v42  ;;  %v4768_v42 = vadd.f32 %v4764_v13, %v4686_v21 }
0x2d65   :  { %v8539_v50 = vmul.f32 1.442695, %v8537_v61 }
0x2d66   :  { %v8548_v23 = vpop.xlane.xlu0 %8547 }
0x2d67   :  { %11725 = vpow2.f32 %v8539_v50 }
0x2d68   :  { %11727 = vrcp.f32 %v8548_v23 }
0x2d74   :  { %v11726_v60 = vpop.eup %11725 }
0x2d75   :  { %v8543_v48 = vsel %vm5545_vm6, %v11726_v60, 0.0  ;;  %v11728_v37 = vpop.eup %11727 }
0x2d76   :  { %8544 = vadd.xlane.f32.xlu0 %v8543_v48  ;;  %v8552_v63 = vmul.f32 %v11728_v37, %v11724_v47  ;;  %v4906_v47 = vrot.slane %v13510_v5, 1  ;;  %v10040_v48 = vmul.f32 -1.442695, %v4768_v42 }
0x2d78   :  { %v4910_v56 = vadd.f32 %v4906_v47, %v4828_v62 }
0x2d7a   :  { %v10043_v5 = vmul.f32 -1.442695, %v4910_v56 }
0x2d8c   :  { %8629 = vrot.lane.b32.xlu0 %v13877_v41, %s12084_s0 }
0x2d90   :  { %8788 = vrot.lane.b32.xlu0 %v13873_v31, %s12086_s27 }
0x2dff   :  { %v8545_v49 = vpop.xlane.xlu0 %8544 }
0x2e00   :  { %11729 = vrcp.f32 %v8545_v49 }
0x2e03   :  { %v8630_v20 = vpop.permute.xlu0 %8629 }
0x2e04   :  { %10995 = vmatpush3.msra.mxu1 %v8630_v20 }
0x2e05   :  { %10997 = vmatmul.mubr.msk.f32.vlgmr.msra.gmra.mxu1 %vm5545_vm6, %v8552_v63  ;;  %11004 = vmatprep.subr.mxu1 %v14306_v8 }
0x2e06   :  { %11005 = vmatpush3.xpose.msk.msra.mxu1 %vm5545_vm6, %v8791_v4  ;;  %11006 = vmatprep.mubr.msk.f32.mxu1 %vm12075_vm1, %v14306_v8 }
0x2e07   :  { %v8789_v14 = vpop.permute.xlu0 %8788  ;;  %11014 = vmatprep.subr.mxu1 %v14306_v8 }
0x2e09   :  { %11007 = vmatmul.mubr.msk.f32.vlgmr.msra.gmra.mxu1 %vm5545_vm6, %v8789_v14 }
0x2e0a   :  { %11016 = vmatprep.mubr.msk.f32.mxu1 %vm12075_vm1, %v14306_v8 }
0x2e0d   :  { %v11730_v54 = vpop.eup %11729 }
0x2e0e   :  { %v8551_v59 = vmul.f32 %v11730_v54, %v11726_v60 }
0x2e10   :  { %10992 = vmatmul.mubr.msk.f32.vlgmr.msra.gmra.mxu0 %vm5545_vm6, %v8551_v59 }
0x2e11   :  { %11000 = vmatpush3.msra.mxu0 %v10112_v38 }
0x2e12   :  { %11009 = vmatprep.subr.mxu0 %v14306_v8 }
0x2ec5   :  { %v8701_v29 = vpop.f32.mrf.mxu1 }
0x2ec7   :  { %v10998_v26 = vpop.f32.mrf.mxu1 }
0x2ec8   :  { %v10042_v26 = vmul.f32 -1.442695, %v4909_v53 }
0x2ec9   :  { %v8862_v1 = vpop.f32.mrf.mxu1 }
0x2eca   :  { %v8944_v40 = vmul.f32 0.35355338, %v8862_v1 }
0x2ecb   :  { %v11008_v3 = vpop.f32.mrf.mxu1 }
0x2ecc   :  { %v8946_v25 = vsel %vm5545_vm6, %v8944_v40, -inf }
0x2ecd   :  { %8947 = vmax.xlane.f32.xlu0 %v8946_v25 }
0x2ed0   :  { %v8625_v32 = vpop.f32.mrf.mxu0 }
0x2ed1   :  { %11001 = vmatprep.mubr.msk.f32.mxu0 %vm5545_vm6, %v8625_v32 }
0x2ed2   :  { %v10993_v2 = vpop.f32.mrf.mxu0  ;;  %11002 = vmatmul.mubr.msk.f32.vlgmr.msra.gmra.mxu0 %vm5545_vm6, %v8701_v29 }
0x2ed3   :  { %11010 = vmatpush3.xpose.msk.msra.mxu0 %vm5545_vm6, %v8869_v22  ;;  %11011 = vmatprep.mubr.msk.f32.mxu0 %vm12075_vm1, %v14306_v8 }
0x2ed4   :  { %11019 = vmatprep.subr.mxu0 %v14306_v8 }
0x2ed6   :  { %11012 = vmatmul.mubr.msk.f32.vlgmr.msra.gmra.mxu0 %vm5545_vm6, %v8867_v0 }
0x2ed7   :  { %11021 = vmatprep.mubr.msk.f32.mxu0 %vm12075_vm1, %v14306_v8 }
0x2f56   :  { %v8948_v27 = vpop.xlane.xlu0 %8947 }
0x2f57   :  { %v8952_v58 = vsub.f32 %v8944_v40, %v8948_v27 }
0x2f59   :  { %v8954_v11 = vmul.f32 1.442695, %v8952_v58  ;;  %v4685_v58 = vld [vmem:[#allocation2 + $0x7] sm:$0x1] }
0x2f5b   :  { %11731 = vpow2.f32 %v8954_v11  ;;  %v4767_v11 = vadd.f32 %v13508_v12, %v4685_v58  ;;  %v14331_v58 = vld [vmem:[#allocation57_spill] sm:$0xff] }
0x2f5c   :  { %11733 = vtanh.f32 %v4909_v53 }
0x2f5d   :  { %11735 = vtanh.f32 %v4910_v56 }
0x2f5e   :  { %11737 = vtanh.f32 %v4768_v42 }
0x2f5f   :  { %11739 = vpow2.f32 %v10043_v5  ;;  %v10113_v5 = vld [vmem:[%s14314_s26 + $0x38] sm:$0xff] }
0x2f60   :  { %11741 = vpow2.f32 %v10040_v48 }
0x2f68   :  { %v11732_v10 = vpop.eup %11731 }
0x2f69   :  { %v8958_v55 = vsel %vm5545_vm6, %v11732_v10, 0.0  ;;  %v11734_v61 = vpop.eup %11733 }
0x2f6a   :  { %8959 = vadd.xlane.f32.xlu0 %v8958_v55  ;;  %v11736_v50 = vpop.eup %11735 }
0x2f6b   :  { %v11738_v60 = vpop.eup %11737 }
0x2f6c   :  { %v11740_v49 = vpop.eup %11739 }
0x2f6d   :  { %v4918_v37 = vadd.f32 1.0, %v11740_v49  ;;  %v11742_v20 = vpop.eup %11741 }
0x2f6e   :  { %v4776_v63 = vadd.f32 1.0, %v11742_v20 }
0x2f92   :  { %v11003_v52 = vpop.f32.mrf.mxu0 }
0x2f93   :  { %v14018_v57 = vadd.f32 %v11003_v52, %v8370_v16 }
0x2f94   :  { %v8777_v51 = vpop.f32.mrf.mxu0 }
0x2f95   :  { %v14020_v9 = vadd.f32 %v8777_v51, %v8365_v15  ;;  %v10039_v15 = vmul.f32 -1.442695, %v4767_v11 }
0x2f96   :  { %v8940_v28 = vpop.f32.mrf.mxu0 }
0x2f97   :  { %v8945_v46 = vmul.f32 0.35355338, %v8940_v28 }
0x2f98   :  { %v11013_v30 = vpop.f32.mrf.mxu0 }
0x2f99   :  { %v8949_v33 = vsel %vm5545_vm6, %v8945_v46, -inf }
0x2f9a   :  { %8950 = vmax.xlane.f32.xlu1 %v8949_v33 }
0x2fab   :  { %8968 = vrot.lane.b32.xlu1 %v13873_v31, %s12087_s1 }
0x2faf   :  { %4929 = vrot.lane.b32.xlu1 %v11734_v61, %s12076_s21 }
0x2fb3   :  { %4931 = vrot.lane.b32.xlu1 %v11736_v50, %s12076_s21 }
0x2fb7   :  { %4789 = vrot.lane.b32.xlu1 %v11738_v60, %s12076_s21 }
0x2ff3   :  { %v8960_v23 = vpop.xlane.xlu0 %8959 }
0x2ff4   :  { %11743 = vrcp.f32 %v8960_v23 }
0x2ff5   :  { %11745 = vrcp.f32 %v4918_v37 }
0x2ff6   :  { %11747 = vrcp.f32 %v4776_v63 }
0x3001   :  { %v11744_v4 = vpop.eup %11743 }
0x3002   :  { %v8966_v38 = vmul.f32 %v11744_v4, %v11732_v10  ;;  %v14032_v1 = vpop.eup %11745 }
0x3003   :  { %v14036_v25 = vpop.eup %11747  ;;  %v4926_v51 = vmul.f32 %v14032_v1, %v13423_v19 }
0x3004   :  { %v4784_v12 = vmul.f32 %v14036_v25, %v13415_v7 }
0x3023   :  { %v8951_v31 = vpop.xlane.xlu1 %8950 }
0x3024   :  { %v8953_v14 = vsub.f32 %v8945_v46, %v8951_v31 }
0x3026   :  { %v8956_v54 = vmul.f32 1.442695, %v8953_v14 }
0x3027   :  { %v8969_v59 = vpop.permute.xlu1 %8968 }
0x3028   :  { %11749 = vpow2.f32 %v8956_v54  ;;  %11015 = vmatpush3.msra.mxu1 %v8969_v59  ;;  %v14318_v59 = vld [vmem:[#allocation52_spill] sm:$0xff] }
0x3029   :  { %11017 = vmatmul.mubr.msk.f32.vlgmr.msra.gmra.mxu1 %vm5545_vm6, %v8966_v38  ;;  %11751 = vpow2.f32 %v10042_v26  ;;  %11024 = vmatprep.subr.mxu1 %v10113_v5  ;;  %v14319_v38 = vld [vmem:[#allocation59_spill] sm:$0xff]  ;;  %v14322_v26 = vld [vmem:[#allocation62_spill] sm:$0xff] }
0x302a   :  { %11753 = vtanh.f32 %v4767_v11  ;;  %11025 = vmatpush3.msra.mxu1 %v10113_v5  ;;  %v14332_v11 = vld [vmem:[#allocation64_spill] sm:$0xff] }
0x302b   :  { %v4930_v29 = vpop.permute.xlu1 %4929  ;;  %v10152_v5 = vld [vmem:[%s14315_s2 + $0x20] sm:$0xff] }
0x302f   :  { %v4932_v40 = vpop.permute.xlu1 %4931 }
0x3030   :  { %v4936_v3 = vmul.f32 %v14032_v1, %v4932_v40  ;;  %v14323_v40 = vld [vmem:[#allocation69_spill] sm:$0xff] }
0x3032   :  { %4941 = vrot.lane.b32.xlu1 %v4936_v3, %s12059_s13 }
0x3033   :  { %v4790_v22 = vpop.permute.xlu1 %4789 }
0x3034   :  { %v4794_v32 = vmul.f32 %v14036_v25, %v4790_v22  ;;  %v14324_v22 = vld [vmem:[#allocation51_spill] sm:$0xff] }
0x3035   :  { %v11750_v2 = vpop.eup %11749 }
0x3036   :  { %4799 = vrot.lane.b32.xlu1 %v4794_v32, %s12059_s13  ;;  %v8961_v0 = vsel %vm5545_vm6, %v11750_v2, 0.0  ;;  %v11752_v27 = vpop.eup %11751  ;;  %v14325_v32 = vld [vmem:[#allocation58_spill] sm:$0xff] }
0x3037   :  { %8962 = vadd.xlane.f32.xlu0 %v8961_v0  ;;  %v4917_v10 = vadd.f32 1.0, %v11752_v27  ;;  %v11754_v55 = vpop.eup %11753  ;;  %v14327_v0 = vld [vmem:[#allocation65_spill] sm:$0xff]  ;;  %v14330_v27 = vld [vmem:[#allocation50_spill] sm:$0xff] }
0x3039   :  { %11755 = vrcp.f32 %v4917_v10  ;;  %v14333_v10 = vld [vmem:[#allocation49_spill] sm:$0xff] }
0x303a   :  { %11757 = vpow2.f32 %v10039_v15 }
0x3046   :  { %v11756_v16 = vpop.eup %11755 }
0x3047   :  { %v4935_v52 = vmul.f32 %v11756_v16, %v4930_v29  ;;  %v11758_v33 = vpop.eup %11757  ;;  %v14320_v29 = vld [vmem:[#allocation55_spill] sm:$0xff] }
0x3048   :  { %v4775_v47 = vadd.f32 1.0, %v11758_v33  ;;  %v14338_v33 = vld [vmem:[#allocation60_spill] sm:$0xff] }
0x304d   :  { %9044 = vrot.lane.b32.xlu0 %v13877_v41, %s12087_s1 }
0x3051   :  { %4787 = vrot.lane.b32.xlu0 %v11754_v55, %s12076_s21  ;;  %v14335_v55 = vld [vmem:[#allocation63_spill] sm:$0xff] }
0x3055   :  { %4939 = vrot.lane.b32.xlu0 %v4935_v52, %s12059_s13 }
0x30a4   :  { %v4942_v28 = vpop.permute.xlu1 %4941 }
0x30a5   :  { %v4946_v46 = vadd.f32 %v4942_v28, %v4926_v51 }
0x30a7   :  { %11759 = vtanh.f32 %v4946_v46 }
0x30a8   :  { %v4800_v30 = vpop.permute.xlu1 %4799 }
0x30a9   :  { %v4804_v41 = vadd.f32 %v4800_v30, %v4784_v12  ;;  %v14337_v12 = vld [vmem:[#allocation53_spill] sm:$0xff] }
0x30ab   :  { %11761 = vtanh.f32 %v4804_v41 }
0x30ac   :  { %11763 = vrcp.f32 %v4775_v47 }
0x30b4   :  { %v11760_v43 = vpop.eup %11759 }
0x30b5   :  { %4953 = vrot.lane.b32.xlu1 %v11760_v43, %s12077_s12 }
0x30b8   :  { %v11762_v53 = vpop.eup %11761 }
0x30b9   :  { %4811 = vrot.lane.b32.xlu1 %v11762_v53, %s12077_s12  ;;  %v14058_v62 = vpop.eup %11763  ;;  %v14339_v53 = vld [vmem:[#allocation67_spill] sm:$0xff] }
0x30ba   :  { %v4783_v20 = vmul.f32 %v14058_v62, %v13408_v24  ;;  %v14321_v24 = vld [vmem:[#allocation66_spill] sm:$0xff] }
0x30bd   :  { %1553 = vrot.lane.b32.xlu1 %v12640_v18, %s12078_s20  ;;  %v4925_v18 = vmul.f32 %v11756_v16, %v13417_v45 }
0x30c0   :  { %v8963_v19 = vpop.xlane.xlu0 %8962 }
0x30c1   :  { %11765 = vrcp.f32 %v8963_v19  ;;  %2689 = vrot.lane.b32.xlu1 %v12976_v34, %s12078_s20 }
0x30c4   :  { %v9045_v7 = vpop.permute.xlu0 %9044 }
0x30c5   :  { %11020 = vmatpush3.msra.mxu0 %v9045_v7  ;;  %3825 = vrot.lane.b32.xlu1 %v13300_v6, %s12078_s20 }
0x30c8   :  { %v4788_v13 = vpop.permute.xlu0 %4787 }
0x30c9   :  { %v4793_v56 = vmul.f32 %v14058_v62, %v4788_v13 }
0x30cb   :  { %4797 = vrot.lane.b32.xlu0 %v4793_v56, %s12059_s13  ;;  %s14340_s13 = sld [smem:[#allocation41_spill]] }
0x30cc   :  { %v4940_v21 = vpop.permute.xlu0 %4939 }
0x30cd   :  { %v4945_v42 = vadd.f32 %v4940_v21, %v4925_v18 }
0x30ce   :  { %v11766_v61 = vpop.eup %11765 }
0x30cf   :  { %11767 = vtanh.f32 %v4945_v42  ;;  %v8967_v34 = vmul.f32 %v11766_v61, %v11750_v2  ;;  %v14326_v2 = vld [vmem:[#allocation54_spill] sm:$0xff]  ;;  %v10155_v61 = vld [vmem:[%s14315_s2 + $0x38] sm:$0xff] }
0x30d0   :  { %11029 = vmatprep.subr.mxu0 %v10155_v61 }
0x30d1   :  { %11022 = vmatmul.mubr.msk.f32.vlgmr.msra.gmra.mxu0 %vm5545_vm6, %v8967_v34  ;;  %v10154_v34 = vld [vmem:[%s14315_s2 + $0x30] sm:$0xff] }
0x30d2   :  { %11030 = vmatpush3.msra.mxu0 %v10155_v61  ;;  %v10156_v61 = vld [vmem:[#allocation20 + $0x1] ss:$0 sm:$0xff] }
0x30d3   :  { %11031 = vmatprep.subr.mxu0 %v10154_v34 }
0x30d4   :  { %11032 = vmatpush3.msra.mxu0 %v10154_v34 }
0x30dc   :  { %v11768_v50 = vpop.eup %11767 }
0x30dd   :  { %4951 = vrot.lane.b32.xlu0 %v11768_v50, %s12077_s12  ;;  %v10153_v50 = vld [vmem:[%s14315_s2 + $0x28] sm:$0xff] }
0x30de   :  { %11033 = vmatprep.subr.mxu0 %v10153_v50 }
0x30df   :  { %11034 = vmatpush3.msra.mxu0 %v10153_v50 }
0x30e0   :  { %11035 = vmatprep.subr.mxu0 %v10152_v5 }
0x30e1   :  { %11036 = vmatpush3.msra.mxu0 %v10152_v5 }
0x30e9   :  { %v9040_v6 = vpop.f32.mrf.mxu1 }
0x30ea   :  { %11026 = vmatprep.mubr.msk.f32.mxu1 %vm5545_vm6, %v9040_v6 }
0x30eb   :  { %v11018_v60 = vpop.f32.mrf.mxu1 }
0x3127   :  { %v4954_v48 = vpop.permute.xlu1 %4953 }
0x3128   :  { %v4958_v3 = vmul.f32 %v14032_v1, %v4954_v48  ;;  %v14329_v1 = vld [vmem:[#allocation68_spill] sm:$0xff] }
0x312b   :  { %v14067_v23 = vpop.permute.xlu1 %4811 }
0x312f   :  { %v1554_v45 = vpop.permute.xlu1 %1553 }
0x3130   :  { %1559 = vst.msk [vmem:[#allocation7 + $0x6] sm:$0x1] %vm865_vm5, %v1554_v45 }
0x3133   :  { %v2690_v49 = vpop.permute.xlu1 %2689 }
0x3134   :  { %2695 = vst.msk [vmem:[#allocation7 + $0x4] sm:$0x1] %vm865_vm5, %v2690_v49 }
0x3137   :  { %v3826_v37 = vpop.permute.xlu1 %3825 }
0x3138   :  { %3831 = vst.msk [vmem:[#allocation7 + $0x2] sm:$0x1] %vm865_vm5, %v3826_v37  ;;  %v14158_v37 = vld [vmem:[%s14340_s13 + $0x8] sm:$0xff] }
0x3139   :  { %11075 = vmatprep.subr.mxu0 %v14158_v37 }
0x313d   :  { %v4798_v63 = vpop.permute.xlu0 %4797 }
0x313e   :  { %v4803_v31 = vadd.f32 %v4798_v63, %v4783_v20 }
0x3140   :  { %11769 = vtanh.f32 %v4803_v31  ;;  %v10174_v31 = vld [vmem:[%s14316_s9 + $0xf8] sm:$0xff] }
0x3141   :  { %11040 = vmatprep.subr.mxu1 %v10174_v31 }
0x314d   :  { %v11770_v4 = vpop.eup %11769 }
0x314e   :  { %4809 = vrot.lane.b32.xlu0 %v11770_v4, %s12077_s12  ;;  %v10173_v4 = vld [vmem:[%s14316_s9 + $0xf0] sm:$0xff] }
0x314f   :  { %v4952_v14 = vpop.permute.xlu0 %4951 }
0x3150   :  { %v4957_v54 = vmul.f32 %v11756_v16, %v4952_v14  ;;  %v14336_v16 = vld [vmem:[#allocation70_spill] sm:$0xff] }
0x3151   :  { %v10172_v14 = vld [vmem:[%s14316_s9 + $0xe8] sm:$0xff] }
0x3152   :  { %996 = vrot.lane.b32.xlu0 %v14318_v59, %s12078_s20  ;;  %4961 = vrot.lane.b32.xlu1 %v4957_v54, %s12078_s20  ;;  %v10171_v59 = vld [vmem:[%s14316_s9 + $0xe0] sm:$0xff] }
0x3156   :  { %2121 = vrot.lane.b32.xlu0 %v14319_v38, %s12078_s20  ;;  %1555 = vrot.lane.b32.xlu1 %v14320_v29, %s12078_s20  ;;  %v10170_v38 = vld [vmem:[%s14316_s9 + $0xd8] sm:$0xff] }
0x315a   :  { %3257 = vrot.lane.b32.xlu0 %v14321_v24, %s12078_s20  ;;  %2691 = vrot.lane.b32.xlu1 %v14322_v26, %s12078_s20  ;;  %v10169_v24 = vld [vmem:[%s14316_s9 + $0xd0] sm:$0xff]  ;;  %v10168_v26 = vld [vmem:[%s14316_s9 + $0xc8] sm:$0xff] }
0x315e   :  { %4393 = vrot.lane.b32.xlu0 %v13468_v35, %s12078_s20  ;;  %3827 = vrot.lane.b32.xlu1 %v14323_v40, %s12078_s20  ;;  %v14328_v35 = vld [vmem:[#allocation61_spill] sm:$0xff] }
0x315f   :  { %v10167_v40 = vld [vmem:[%s14316_s9 + $0xc0] sm:$0xff] }
0x3162   :  { %998 = vrot.lane.b32.xlu0 %v14324_v22, %s12078_s20  ;;  %4963 = vrot.lane.b32.xlu1 %v4958_v3, %s12078_s20  ;;  %v10166_v3 = vld [vmem:[%s14316_s9 + $0xb8] sm:$0xff]  ;;  %v10165_v22 = vld [vmem:[%s14316_s9 + $0xb0] sm:$0xff] }
0x3166   :  { %2123 = vrot.lane.b32.xlu0 %v14325_v32, %s12078_s20  ;;  %1411 = vrot.lane.b32.xlu1 %v14326_v2, %s12078_s20  ;;  %v10164_v32 = vld [vmem:[%s14316_s9 + $0xa8] sm:$0xff]  ;;  %v10163_v2 = vld [vmem:[%s14316_s9 + $0xa0] sm:$0xff] }
0x316a   :  { %3259 = vrot.lane.b32.xlu0 %v14327_v0, %s12078_s20  ;;  %2547 = vrot.lane.b32.xlu1 %v14328_v35, %s12078_s20 }
0x316e   :  { %4395 = vrot.lane.b32.xlu0 %v13465_v36, %s12078_s20  ;;  %3683 = vrot.lane.b32.xlu1 %v14329_v1, %s12078_s20  ;;  %v14334_v36 = vld [vmem:[#allocation56_spill] sm:$0xff] }
0x3172   :  { %859 = vrot.lane.b32.xlu0 %v14330_v27, %s12078_s20 }
0x3176   :  { %1979 = vrot.lane.b32.xlu0 %v14331_v58, %s12078_s20 }
0x317a   :  { %3115 = vrot.lane.b32.xlu0 %v14332_v11, %s12078_s20 }
0x317e   :  { %4251 = vrot.lane.b32.xlu0 %v13458_v44, %s12078_s20 }
0x3182   :  { %861 = vrot.lane.b32.xlu0 %v14333_v10, %s12078_s20  ;;  %v10147_v10 = vld [vmem:[%s14317_s8 + $0x1] ss:$0 sm:$0xff] }
0x3186   :  { %1981 = vrot.lane.b32.xlu0 %v14334_v36, %s12078_s20 }
0x318a   :  { %3117 = vrot.lane.b32.xlu0 %v14335_v55, %s12078_s20 }
0x318e   :  { %4253 = vrot.lane.b32.xlu0 %v14336_v16, %s12078_s20 }
0x3191   :  { %v9116_v52 = vpop.f32.mrf.mxu0 }
0x3192   :  { %11027 = vmatmul.mubr.msk.f32.vlgmr.msra.gmra.mxu1 %vm5545_vm6, %v9116_v52 }
0x3193   :  { %v11023_v15 = vpop.f32.mrf.mxu0  ;;  %11041 = vmatpush3.msra.mxu1 %v10174_v31 }
0x3194   :  { %11042 = vmatprep.subr.mxu1 %v10173_v4  ;;  %v9217_v15 = vstv %s10148_s14 }
0x3195   :  { %11043 = vmatpush3.msra.mxu1 %v10173_v4 }
0x3196   :  { %11044 = vmatprep.subr.mxu1 %v10172_v14 }
0x3197   :  { %11045 = vmatpush3.msra.mxu1 %v10172_v14 }
0x3198   :  { %11046 = vmatprep.subr.mxu1 %v10171_v59 }
0x3199   :  { %11047 = vmatpush3.msra.mxu1 %v10171_v59 }
0x319a   :  { %11048 = vmatprep.subr.mxu1 %v10170_v38 }
0x319b   :  { %11049 = vmatpush3.msra.mxu1 %v10170_v38 }
0x319c   :  { %11050 = vmatprep.subr.mxu1 %v10169_v24 }
0x319d   :  { %11051 = vmatpush3.msra.mxu1 %v10169_v24 }
0x319e   :  { %11052 = vmatprep.subr.mxu1 %v10168_v26 }
0x319f   :  { %11053 = vmatpush3.msra.mxu1 %v10168_v26 }
0x31a0   :  { %11054 = vmatprep.subr.mxu1 %v10167_v40 }
0x31a1   :  { %11055 = vmatpush3.msra.mxu1 %v10167_v40 }
0x31a2   :  { %11056 = vmatprep.subr.mxu1 %v10166_v3 }
0x31a3   :  { %11057 = vmatpush3.msra.mxu1 %v10166_v3 }
0x31a4   :  { %11058 = vmatprep.subr.mxu1 %v10165_v22 }
0x31a5   :  { %11059 = vmatpush3.msra.mxu1 %v10165_v22 }
0x31a6   :  { %11060 = vmatprep.subr.mxu1 %v10164_v32 }
0x31a7   :  { %11061 = vmatpush3.msra.mxu1 %v10164_v32 }
0x31a8   :  { %11062 = vmatprep.subr.mxu1 %v10163_v2 }
0x31a9   :  { %11063 = vmatpush3.msra.mxu1 %v10163_v2 }
0x31c0   :  { %v4810_v51 = vpop.permute.xlu0 %4809 }
0x31c1   :  { %v4815_v28 = vmul.f32 %v14058_v62, %v4810_v51  ;;  %v4816_v62 = vmul.f32 %v14036_v25, %v14067_v23 }
0x31c3   :  { %4819 = vrot.lane.b32.xlu1 %v4815_v28, %s12078_s20 }
0x31c4   :  { %v997_v44 = vpop.permute.xlu0 %996  ;;  %v4962_v46 = vpop.permute.xlu1 %4961 }
0x31c5   :  { %1002 = vst.msk [vmem:[#allocation7 + $0x7] sm:$0x1] %vm865_vm5, %v997_v44  ;;  %4967 = vst.msk [vmem:[#allocation7] sm:$0x1] %vm865_vm5, %v4962_v46 }
0x31c7   :  { %1413 = vrot.lane.b32.xlu1 %v14337_v12, %s12078_s20 }
0x31c8   :  { %v2122_v30 = vpop.permute.xlu0 %2121  ;;  %v1556_v41 = vpop.permute.xlu1 %1555 }
0x31c9   :  { %2127 = vst.msk [vmem:[#allocation7 + $0x5] sm:$0x1] %vm865_vm5, %v2122_v30  ;;  %1560 = vst.msk [vmem:[#allocation7 + $0xe] sm:$0x1] %vm865_vm5, %v1556_v41  ;;  %v10150_v30 = vld [vmem:[#allocation23 + $0x1] ss:$0 sm:$0xff] }
0x31cb   :  { %2549 = vrot.lane.b32.xlu1 %v14338_v33, %s12078_s20 }
0x31cc   :  { %v3258_v43 = vpop.permute.xlu0 %3257  ;;  %v2692_v47 = vpop.permute.xlu1 %2691 }
0x31cd   :  { %3263 = vst.msk [vmem:[#allocation7 + $0x3] sm:$0x1] %vm865_vm5, %v3258_v43  ;;  %2696 = vst.msk [vmem:[#allocation7 + $0xc] sm:$0x1] %vm865_vm5, %v2692_v47  ;;  %v10151_v47 = vld [vmem:[#allocation24 + $0x1] ss:$0 sm:$0xff] }
0x31cf   :  { %3685 = vrot.lane.b32.xlu1 %v14339_v53, %s12078_s20 }
0x31d0   :  { %v4394_v19 = vpop.permute.xlu0 %4393  ;;  %v3828_v7 = vpop.permute.xlu1 %3827 }
0x31d1   :  { %4399 = vst.msk [vmem:[#allocation7 + $0x1] sm:$0x1] %vm865_vm5, %v4394_v19  ;;  %3832 = vst.msk [vmem:[#allocation7 + $0xa] sm:$0x1] %vm865_vm5, %v3828_v7  ;;  %v9470_v19 = vld [vmem:[%s14341_s23 + $0x8] sm:$0xff] }
0x31d3   :  { %4821 = vrot.lane.b32.xlu1 %v4816_v62, %s12078_s20  ;;  %v9469_v62 = vld [vmem:[%s14341_s23] sm:$0xff] }
0x31d4   :  { %v999_v13 = vpop.permute.xlu0 %998  ;;  %v4964_v56 = vpop.permute.xlu1 %4963 }
0x31d5   :  { %1003 = vst.msk [vmem:[#allocation7 + $0xf] sm:$0x1] %vm865_vm5, %v999_v13  ;;  %4968 = vst.msk [vmem:[#allocation7 + $0x8] sm:$0x1] %vm865_vm5, %v4964_v56 }
0x31d8   :  { %v2124_v18 = vpop.permute.xlu0 %2123  ;;  %v1412_v21 = vpop.permute.xlu1 %1411 }
0x31d9   :  { %2128 = vst.msk [vmem:[#allocation7 + $0xd] sm:$0x1] %vm865_vm5, %v2124_v18  ;;  %1417 = vst.msk [vmem:[#allocation6 + $0x1] sm:$0x1] %vm865_vm5, %v1412_v21  ;;  %v10162_v18 = vld [vmem:[%s14316_s9 + $0x98] sm:$0xff]  ;;  %v10161_v21 = vld [vmem:[%s14316_s9 + $0x90] sm:$0xff] }
0x31da   :  { %11064 = vmatprep.subr.mxu1 %v10162_v18 }
0x31db   :  { %11065 = vmatpush3.msra.mxu1 %v10162_v18  ;;  %v9712_v18 = vld [vmem:[%s14342_s19] sm:$0xff] }
0x31dc   :  { %v3260_v25 = vpop.permute.xlu0 %3259  ;;  %v2548_v42 = vpop.permute.xlu1 %2547  ;;  %11066 = vmatprep.subr.mxu1 %v10161_v21 }
0x31dd   :  { %3264 = vst.msk [vmem:[#allocation7 + $0xb] sm:$0x1] %vm865_vm5, %v3260_v25  ;;  %2553 = vst.msk [vmem:[#allocation6 + $0x3] sm:$0x1] %vm865_vm5, %v2548_v42  ;;  %11067 = vmatpush3.msra.mxu1 %v10161_v21  ;;  %v10160_v25 = vld [vmem:[%s14316_s9 + $0x88] sm:$0xff]  ;;  %v10159_v42 = vld [vmem:[%s14316_s9 + $0x80] sm:$0xff] }
0x31de   :  { %11068 = vmatprep.subr.mxu1 %v10160_v25  ;;  %v10175_v21 = vld [vmem:[#allocation21 + $0x1] ss:$0 sm:$0xff] }
0x31df   :  { %11069 = vmatpush3.msra.mxu1 %v10160_v25 }
0x31e0   :  { %v4396_v6 = vpop.permute.xlu0 %4395  ;;  %v3684_v60 = vpop.permute.xlu1 %3683  ;;  %11070 = vmatprep.subr.mxu1 %v10159_v42 }
0x31e1   :  { %4400 = vst.msk [vmem:[#allocation7 + $0x9] sm:$0x1] %vm865_vm5, %v4396_v6  ;;  %3689 = vst.msk [vmem:[#allocation6 + $0x5] sm:$0x1] %vm865_vm5, %v3684_v60  ;;  %11071 = vmatpush3.msra.mxu1 %v10159_v42 }
0x31e4   :  { %v860_v48 = vpop.permute.xlu0 %859 }
0x31e5   :  { %866 = vst.msk [vmem:[#allocation6] sm:$0x1] %vm865_vm5, %v860_v48 }
0x31e8   :  { %v1980_v23 = vpop.permute.xlu0 %1979  ;;  %v9468_v7 = vld [vmem:[#allocation7 + $0x8] sm:$0xff] }
0x31e9   :  { %1985 = vst.msk [vmem:[#allocation6 + $0x2] sm:$0x1] %vm865_vm5, %v1980_v23 }
0x31ec   :  { %v3116_v45 = vpop.permute.xlu0 %3115 }
0x31ed   :  { %3121 = vst.msk [vmem:[#allocation6 + $0x4] sm:$0x1] %vm865_vm5, %v3116_v45 }
0x31f0   :  { %v4252_v49 = vpop.permute.xlu0 %4251 }
0x31f1   :  { %4257 = vst.msk [vmem:[#allocation6 + $0x6] sm:$0x1] %vm865_vm5, %v4252_v49 }
0x31f4   :  { %v862_v20 = vpop.permute.xlu0 %861 }
0x31f5   :  { %867 = vst.msk [vmem:[#allocation6 + $0x8] sm:$0x1] %vm865_vm5, %v862_v20 }
0x31f8   :  { %v1982_v63 = vpop.permute.xlu0 %1981 }
0x31f9   :  { %1986 = vst.msk [vmem:[#allocation6 + $0xa] sm:$0x1] %vm865_vm5, %v1982_v63 }
0x31fc   :  { %v3118_v54 = vpop.permute.xlu0 %3117 }
0x31fd   :  { %3122 = vst.msk [vmem:[#allocation6 + $0xc] sm:$0x1] %vm865_vm5, %v3118_v54 }
0x3200   :  { %v4254_v29 = vpop.permute.xlu0 %4253 }
0x3201   :  { %4258 = vst.msk [vmem:[#allocation6 + $0xe] sm:$0x1] %vm865_vm5, %v4254_v29 }
0x3235   :  { %v4820_v0 = vpop.permute.xlu1 %4819 }
0x3236   :  { %4825 = vst.msk [vmem:[#allocation6 + $0x7] sm:$0x1] %vm865_vm5, %v4820_v0 }
0x3239   :  { %v1414_v35 = vpop.permute.xlu1 %1413 }
0x323a   :  { %1418 = vst.msk [vmem:[#allocation6 + $0x9] sm:$0x1] %vm865_vm5, %v1414_v35 }
0x323d   :  { %v2550_v1 = vpop.permute.xlu1 %2549  ;;  %v9465_v13 = vld [vmem:[#allocation6] sm:$0xff] }
0x323e   :  { %2554 = vst.msk [vmem:[#allocation6 + $0xb] sm:$0x1] %vm865_vm5, %v2550_v1 }
0x3241   :  { %v3686_v27 = vpop.permute.xlu1 %3685 }
0x3242   :  { %3690 = vst.msk [vmem:[#allocation6 + $0xd] sm:$0x1] %vm865_vm5, %v3686_v27 }
0x3245   :  { %v4822_v58 = vpop.permute.xlu1 %4821 }
0x3246   :  { %4826 = vst.msk [vmem:[#allocation6 + $0xf] sm:$0x1] %vm865_vm5, %v4822_v58 }
0x324d   :  { %v9466_v56 = vld [vmem:[#allocation6 + $0x8] sm:$0xff] }
0x3252   :  { %v11028_v11 = vpop.f32.mrf.mxu1 }
0x3253   :  { %v9202_v36 = vadd.f32 %v11028_v11, %v14018_v57 }
0x3254   :  { %v9192_v55 = vpop.f32.mrf.mxu1 }
0x3255   :  { %v9212_v16 = vadd.f32 %v10147_v10, %v9202_v36  ;;  %v9201_v52 = vadd.f32 %v9192_v55, %v14020_v9 }
0x3257   :  { %v9216_v51 = vadd.f32 %v9212_v16, %v13864_v39  ;;  %v9211_v28 = vadd.f32 %v10147_v10, %v9201_v52  ;;  %v9471_v39 = vld [vmem:[%s14340_s13] sm:$0xff] }
0x3259   :  { %v9219_v44 = vmul.f32 %v9217_v15, %v9216_v51  ;;  %v9215_v46 = vadd.f32 %v9211_v28, %v13862_v17  ;;  %v9467_v17 = vld [vmem:[#allocation7] sm:$0xff] }
0x325b   :  { %11771 = vtanh.f32 %v9219_v44  ;;  %v9218_v12 = vmul.f32 %v9217_v15, %v9215_v46 }
0x325d   :  { %11773 = vtanh.f32 %v9218_v12 }
0x3268   :  { %v11772_v41 = vpop.eup %11771 }
0x3269   :  { %v9231_v57 = vmul.f32 %v11772_v41, %v10150_v30 }
0x326a   :  { %v11774_v33 = vpop.eup %11773 }
0x326b   :  { %v9230_v43 = vmul.f32 %v11774_v33, %v10150_v30  ;;  %v14190_v53 = vadd.f32 %v10151_v47, %v9231_v57 }
0x326d   :  { %v14188_v9 = vadd.f32 %v10151_v47, %v9230_v43 }
0x326f   :  { %11037 = vmatprep.mubr.msk.f32.mxu0 %vm372_vm0, %v14188_v9 }
0x3270   :  { %11038 = vmatmul.mubr.msk.f32.vlgmr.msra.gmra.mxu0 %vm372_vm0, %v14190_v53 }
0x3271   :  { %11076 = vmatpush3.msra.mxu0 %v14158_v37  ;;  %11079 = vmatprep.mubr.msk.f32.mxu0 %vm729_vm4, %v9467_v17  ;;  %v10182_v37 = vld [vmem:[#allocation10] ss:$0 sm:$0xff] }
0x3272   :  { %11077 = vmatprep.subr.mxu0 %v9471_v39 }
0x3273   :  { %11078 = vmatpush3.msra.mxu0 %v9471_v39 }
0x3274   :  { %11080 = vmatmul.mubr.msk.f32.vlgmr.msra.gmra.mxu0 %vm729_vm4, %v9468_v7  ;;  %11082 = vmatprep.subr.mxu0 %v9470_v19 }
0x3275   :  { %11083 = vmatpush3.msra.mxu0 %v9470_v19  ;;  %11086 = vmatprep.mubr.msk.f32.mxu0 %vm729_vm4, %v9465_v13  ;;  %v9714_v13 = vld [vmem:[%s14342_s19 + $0x10] sm:$0xff] }
0x3276   :  { %11084 = vmatprep.subr.mxu0 %v9469_v62 }
0x3277   :  { %11085 = vmatpush3.msra.mxu0 %v9469_v62  ;;  %v9715_v62 = vld [vmem:[%s14342_s19 + $0x18] sm:$0xff] }
0x3278   :  { %11087 = vmatmul.mubr.msk.f32.vlgmr.msra.gmra.mxu0 %vm729_vm4, %v9466_v56  ;;  %11089 = vmatprep.subr.mxu0 %v14306_v8  ;;  %v9713_v56 = vld [vmem:[%s14342_s19 + $0x8] sm:$0xff] }
0x3279   :  { %11097 = vmatprep.mubr.msk.f32.mxu0 %vm12075_vm1, %v14306_v8  ;;  %11090 = vmatpush3.msra.mxu0 %v9715_v62 }
0x327a   :  { %11091 = vmatprep.subr.mxu0 %v14306_v8 }
0x327b   :  { %11092 = vmatpush3.msra.mxu0 %v9714_v13 }
0x327c   :  { %11093 = vmatprep.subr.mxu0 %v14306_v8 }
0x327d   :  { %11094 = vmatpush3.msra.mxu0 %v9713_v56 }
0x327e   :  { %11095 = vmatprep.subr.mxu0 %v14306_v8 }
0x327f   :  { %11096 = vmatpush3.msra.mxu0 %v9712_v18 }
0x3280   :  { %11100 = vmatprep.subr.mxu0 %v14306_v8 }
0x3330   :  { %v11039_v34 = vpop.f32.mrf.mxu0 }
0x3331   :  { %v9333_v50 = vadd.f32 %v11039_v34, %v10156_v61 }
0x3332   :  { %v9327_v6 = vpop.f32.mrf.mxu0 }
0x3333   :  { %v9328_v60 = vadd.f32 %v10156_v61, %v9327_v6  ;;  %v9337_v23 = vmax.f32 %v9333_v50, 0.0  ;;  %v9440_v61 = vstv %s10149_s7 }
0x3334   :  { %v11081_v5 = vpop.f32.mrf.mxu0 }
0x3335   :  { %v9336_v48 = vmax.f32 %v9328_v60, 0.0 }
0x3336   :  { %v9545_v45 = vpop.f32.mrf.mxu0 }
0x3337   :  { %11072 = vmatprep.mubr.f32.mxu1 %v9336_v48 }
0x3338   :  { %11073 = vmatmul.mubr.f32.vlgmr.msra.gmra.mxu1 %v9337_v23  ;;  %v11088_v49 = vpop.f32.mrf.mxu0  ;;  %v10176_v23 = vld [vmem:[#allocation26 + $0x1] ss:$0 sm:$0xff] }
0x3339   :  { %v9632_v20 = vadd.f32 %v11088_v49, %v11081_v5  ;;  %v10177_v49 = vld [vmem:[#allocation27 + $0x1] ss:$0 sm:$0xff] }
0x333a   :  { %v9626_v63 = vpop.f32.mrf.mxu0 }
0x333b   :  { %v9643_v31 = vadd.f32 %v10182_v37, %v9632_v20  ;;  %v9627_v4 = vadd.f32 %v9626_v63, %v9545_v45 }
0x333d   :  { %v9652_v14 = vsel %vm9644_vm7, %v9643_v31, -inf  ;;  %v9642_v54 = vadd.f32 %v10182_v37, %v9627_v4 }
0x333e   :  { %v9653_v59 = vrot.slane %v9652_v14, 4 }
0x333f   :  { %v9645_v38 = vsel %vm9644_vm7, %v9642_v54, -inf }
0x3340   :  { %v9654_v29 = vmax.f32 %v9652_v14, %v9653_v59  ;;  %v9646_v24 = vrot.slane %v9645_v38, 4 }
0x3342   :  { %v9655_v26 = vrot.slane %v9654_v29, 2  ;;  %v9647_v40 = vmax.f32 %v9645_v38, %v9646_v24 }
0x3344   :  { %v9656_v3 = vmax.f32 %v9654_v29, %v9655_v26  ;;  %v9648_v22 = vrot.slane %v9647_v40, 2 }
0x3346   :  { %v9657_v32 = vrot.slane %v9656_v3, 1  ;;  %v9649_v2 = vmax.f32 %v9647_v40, %v9648_v22 }
0x3348   :  { %v9658_v0 = vmax.f32 %v9656_v3, %v9657_v32  ;;  %v9650_v35 = vrot.slane %v9649_v2, 1 }
0x334a   :  { %v9660_v1 = vsub.f32 %v9643_v31, %v9658_v0  ;;  %v9651_v27 = vmax.f32 %v9649_v2, %v9650_v35 }
0x334c   :  { %v9663_v58 = vmul.f32 1.442695, %v9660_v1  ;;  %v9659_v11 = vsub.f32 %v9642_v54, %v9651_v27 }
0x334e   :  { %11775 = vpow2.f32 %v9663_v58  ;;  %v9661_v10 = vmul.f32 1.442695, %v9659_v11 }
0x3350   :  { %11777 = vpow2.f32 %v9661_v10 }
0x335b   :  { %v11776_v36 = vpop.eup %11775 }
0x335c   :  { %v9672_v55 = vsel %vm9644_vm7, %v11776_v36, 0.0 }
0x335d   :  { %v11778_v16 = vpop.eup %11777  ;;  %v9673_v52 = vrot.slane %v9672_v55, 4 }
0x335e   :  { %v9665_v15 = vsel %vm9644_vm7, %v11778_v16, 0.0 }
0x335f   :  { %v9674_v51 = vadd.f32 %v9673_v52, %v9672_v55  ;;  %v9666_v28 = vrot.slane %v9665_v15, 4  ;;  %v9799_v55 = vld [vmem:[%s12234_s29] sm:$0xff] }
0x3361   :  { %v9675_v44 = vrot.slane %v9674_v51, 2  ;;  %v9667_v46 = vadd.f32 %v9666_v28, %v9665_v15 }
0x3363   :  { %v9676_v12 = vadd.f32 %v9675_v44, %v9674_v51  ;;  %v9668_v30 = vrot.slane %v9667_v46, 2  ;;  %v10185_v44 = vld [vmem:[#allocation11] ss:$0 sm:$0xff] }
0x3365   :  { %v9677_v41 = vrot.slane %v9676_v12, 1  ;;  %v9669_v33 = vadd.f32 %v9668_v30, %v9667_v46 }
0x3367   :  { %v9678_v57 = vadd.f32 %v9677_v41, %v9676_v12  ;;  %v9670_v43 = vrot.slane %v9669_v33, 1 }
0x3369   :  { %11779 = vrcp.f32 %v9678_v57  ;;  %v9671_v47 = vadd.f32 %v9670_v43, %v9669_v33 }
0x336b   :  { %11781 = vrcp.f32 %v9671_v47 }
0x3376   :  { %v11780_v39 = vpop.eup %11779 }
0x3377   :  { %v9682_v17 = vmul.f32 %v11780_v39, %v11776_v36  ;;  %v9800_v36 = vld [vmem:[%s12234_s29 + $0x8] sm:$0xff] }
0x3378   :  { %v11782_v19 = vpop.eup %11781 }
0x3379   :  { %9690 = vperm.xlu1 %11178, %v9682_v17   ;;  %v9681_v7 = vmul.f32 %v11782_v19, %v11778_v16  ;;  %v10183_v16 = vld [vmem:[%s12229_s3] ss:$0 sm:$0xff] }
0x337b   :  { %9685 = vperm.xlu0 %11177, %v9681_v7  }
0x33f4   :  { %v9691_v4 = vpop.permute.xlu1 %9690 }
0x33f6   :  { %v9686_v59 = vpop.permute.xlu0 %9685 }
0x33f8   :  { %v11074_v25 = vpop.f32.mrf.mxu1 }
0x33f9   :  { %v9435_v42 = vadd.f32 %v11074_v25, %v10175_v21 }
0x33fa   :  { %v9429_v34 = vpop.f32.mrf.mxu1 }
0x33fb   :  { %v9439_v50 = vadd.f32 %v9435_v42, %v14190_v53  ;;  %v9430_v6 = vadd.f32 %v10175_v21, %v9429_v34 }
0x33fd   :  { %v9442_v60 = vmul.f32 %v9440_v61, %v9439_v50  ;;  %v9438_v5 = vadd.f32 %v9430_v6, %v14188_v9 }
0x33ff   :  { %11783 = vtanh.f32 %v9442_v60  ;;  %v9441_v48 = vmul.f32 %v9440_v61, %v9438_v5 }
0x3401   :  { %11785 = vtanh.f32 %v9441_v48 }
0x340c   :  { %v11784_v45 = vpop.eup %11783 }
0x340d   :  { %v9454_v37 = vmul.f32 %v11784_v45, %v10176_v23 }
0x340e   :  { %v11786_v20 = vpop.eup %11785 }
0x340f   :  { %v9453_v63 = vmul.f32 %v11786_v20, %v10176_v23  ;;  %v9464_v31 = vadd.f32 %v10177_v49, %v9454_v37 }
0x3411   :  { %v9463_v14 = vadd.f32 %v10177_v49, %v9453_v63  ;;  %v9694_v54 = vmul.f32 %v9691_v4, %v9464_v31 }
0x3413   :  { %v9693_v38 = vmul.f32 %v9686_v59, %v9463_v14  ;;  %v9702_v53 = vsel %vm372_vm0, %v9694_v54, 0.0 }
0x3414   :  { %v9703_v29 = vrot.slane %v9702_v53, 4 }
0x3415   :  { %v9695_v9 = vsel %vm372_vm0, %v9693_v38, 0.0 }
0x3416   :  { %v9696_v24 = vrot.slane %v9695_v9, 4  ;;  %v9704_v26 = vadd.f32 %v9703_v29, %v9702_v53 }
0x3418   :  { %v9697_v40 = vadd.f32 %v9696_v24, %v9695_v9  ;;  %v9705_v3 = vrot.slane %v9704_v26, 2 }
0x341a   :  { %v9698_v22 = vrot.slane %v9697_v40, 2  ;;  %v9706_v32 = vadd.f32 %v9705_v3, %v9704_v26 }
0x341c   :  { %v9699_v2 = vadd.f32 %v9698_v22, %v9697_v40  ;;  %v9707_v0 = vrot.slane %v9706_v32, 1 }
0x341e   :  { %v9700_v35 = vrot.slane %v9699_v2, 1  ;;  %v9708_v1 = vadd.f32 %v9707_v0, %v9706_v32 }
0x3420   :  { %v9701_v27 = vadd.f32 %v9700_v35, %v9699_v2  ;;  %v9711_v11 = vmul.f32 0.125, %v9708_v1 }
0x3422   :  { %v9710_v58 = vmul.f32 0.125, %v9701_v27 }
0x3424   :  { %v9725_v10 = vsel %vm1279_vm3, %v9711_v11, %v9710_v58 }
0x3425   :  { %11098 = vmatmul.mubr.msk.f32.vlgmr.msra.gmra.mxu0 %vm372_vm0, %v9725_v10 }
0x3426   :  { %11104 = vmatprep.mubr.msk.f32.mxu0 %vm12075_vm1, %v14306_v8  ;;  %11101 = vmatpush3.msra.mxu0 %v9800_v36 }
0x3427   :  { %11102 = vmatprep.subr.mxu0 %v14306_v8 }
0x3428   :  { %11103 = vmatpush3.msra.mxu0 %v9799_v55 }
0x34e5   :  { %v9794_v52 = vpop.f32.mrf.mxu0 }
0x34e6   :  { %v9795_v15 = vadd.f32 %v10183_v16, %v9794_v52 }
0x34e7   :  { %v11099_v51 = vpop.f32.mrf.mxu0 }
0x34e8   :  { %v9798_v28 = vmax.f32 %v9795_v15, 0.0 }
0x34ea   :  { %11105 = vmatmul.mubr.msk.f32.vlgmr.msra.gmra.mxu0 %vm729_vm4, %v9798_v28 }
0x35aa   :  { %v9877_v46 = vpop.f32.mrf.mxu0 }
0x35ab   :  { %v9878_v12 = vadd.f32 %v10185_v44, %v9877_v46 }
0x35ac   :  { %v11106_v30 = vpop.f32.mrf.mxu0 }
0x35ad   :  { %9882 = vst.msk [vmem:[%s12239_s25] sm:$0x3] %vm9881_vm8, %v9878_v12 }
0x35ae   :  { %9887 = vsyncpa [#allocation13], 1 }
0x35af   :  { %9888 = vsyncpa [#allocation16], 1 }
0x35b0   :  { %9889 = vsyncpa [#allocation19], 1 }
0x35b1   :  { %9890 = vsyncpa [#allocation22], 1 }
0x35b2   :  { %9891 = vsyncpa [#allocation25], 1 }
0x35b3   :  { %9892 = vsyncpa [#allocation28], 1 }
0x35b4   :  { %9893 = vsyncpa [#allocation14], 1 }

</bundles_post_ra>
